<compile_context>
chip_gen: v5e
topology: v5e:2x2
jax: 0.10.0
libtpu: 0.0.40
codegen_flags: <defaults>
</compile_context>

<pallas_src>
import jax
import jax.numpy as jnp
from jax.experimental import pallas as pl
from jax.experimental.pallas import tpu as pltpu

IMG_SHAPE = (1, 28, 28)
LATENT_DIM = 100
LATENT_PAD = 128                 # lane-dense (128-wide) padded latent
OUT_DIM = IMG_SHAPE[0] * IMG_SHAPE[1] * IMG_SHAPE[2]   # 784
OUT_PAD = 896                    # 7 * 128, lane-dense output columns
BN_EPS = 0.8
LRELU_SLOPE = 0.2


def _leaky_relu(x):
    # Identical to where(x>0, x, 0.2*x) for slope in (0,1); one vmul + vmax.
    return jnp.maximum(x, LRELU_SLOPE * x)


def _batchnorm_train(x, gamma, beta):
    # Training-mode BatchNorm1d: batch mean, biased batch variance, eps=0.8.
    # E[x^2] - m^2 is numerically safe here only because eps=0.8 dominates
    # any cancellation error.  Fold gamma/rsqrt/mean into one FMA.
    m = jnp.mean(x, axis=0, keepdims=True)
    ex2 = jnp.mean(x * x, axis=0, keepdims=True)
    var = ex2 - m * m
    scale = gamma * jax.lax.rsqrt(var + BN_EPS)
    shift = beta - m * scale
    return x * scale + shift


def generator_kernel(
    z_ref,
    w1_ref, b1_ref,
    w2_ref, b2_ref, g2_ref, be2_ref,
    w3_ref, b3_ref, g3_ref, be3_ref,
    w4_ref, b4_ref, g4_ref, be4_ref,
    w5_ref, b5_ref,
    out_ref,
):
    # Weights and activation operands of the matmuls are bf16 (MXU-native);
    # accumulation, bias adds, BatchNorm and LeakyReLU stay in f32.
    z = z_ref[...]                                          # bf16 (B, 128)

    # linear1 + LeakyReLU
    h = jnp.dot(z, w1_ref[...], preferred_element_type=jnp.float32) + b1_ref[...]
    h = _leaky_relu(h)

    # linear2 + BN2 + LeakyReLU
    h = jnp.dot(h.astype(jnp.bfloat16), w2_ref[...],
                preferred_element_type=jnp.float32) + b2_ref[...]
    h = _leaky_relu(_batchnorm_train(h, g2_ref[...], be2_ref[...]))

    # linear3 + BN3 + LeakyReLU
    h = jnp.dot(h.astype(jnp.bfloat16), w3_ref[...],
                preferred_element_type=jnp.float32) + b3_ref[...]
    h = _leaky_relu(_batchnorm_train(h, g3_ref[...], be3_ref[...]))

    # linear4 + BN4 + LeakyReLU
    h = jnp.dot(h.astype(jnp.bfloat16), w4_ref[...],
                preferred_element_type=jnp.float32) + b4_ref[...]
    h = _leaky_relu(_batchnorm_train(h, g4_ref[...], be4_ref[...]))

    # linear5 + tanh (padded columns of w5/b5 are zero -> tanh(0)=0, sliced off
    # in the wrapper)
    h = jnp.dot(h.astype(jnp.bfloat16), w5_ref[...],
                preferred_element_type=jnp.float32) + b5_ref[...]
    out_ref[...] = jnp.tanh(h)


@jax.jit
def generator_forward(z, packed):
    """z: (B, 100) float32; packed: bf16/padded params from pack_params()."""
    B = z.shape[0]

    # Zero-pad the 100-wide latent to 128 lanes; padded rows of w1 are zero so
    # the matmul result is exact.  Cast to bf16 once, outside the kernel.
    z_pad = jnp.zeros((B, LATENT_PAD), jnp.bfloat16)
    z_pad = z_pad.at[:, :LATENT_DIM].set(z.astype(jnp.bfloat16))

    flat_params = [
        packed["w1"], packed["b1"],
        packed["w2"], packed["b2"], packed["g2"], packed["be2"],
        packed["w3"], packed["b3"], packed["g3"], packed["be3"],
        packed["w4"], packed["b4"], packed["g4"], packed["be4"],
        packed["w5"], packed["b5"],
    ]

    vmem_spec = pl.BlockSpec(memory_space=pltpu.MemorySpace.VMEM)
    n_in = 1 + len(flat_params)

    flat = pl.pallas_call(
        generator_kernel,
        out_shape=jax.ShapeDtypeStruct((B, OUT_PAD), jnp.float32),
        in_specs=[vmem_spec] * n_in,
        out_specs=vmem_spec,
        # bf16 weights ~3.2 MiB + small activations; 16 MiB leaves plenty of
        # headroom and never asks for a whole v7x TensorCore's VMEM.
        compiler_params=pltpu.CompilerParams(vmem_limit_bytes=16 << 20),
    )(z_pad, *flat_params)

    # Drop padded output columns and reshape like z.view(-1, 1, 28, 28).
    return flat[:, :OUT_DIM].reshape(B, *IMG_SHAPE)


def init_params(key):
    """Deterministic synthetic parameters matching the PyTorch module shapes.

    Linear weights are stored as (in_features, out_features) so forward is
    x @ W + b (equivalent to PyTorch's x @ W_pt.T + b).  All values f32.
    """
    dims = [LATENT_DIM, 128, 256, 512, 1024, OUT_DIM]
    keys = jax.random.split(key, 16)
    ki = iter(range(16))

    def lin(fan_in, fan_out):
        bound = 1.0 / jnp.sqrt(fan_in)
        w = jax.random.uniform(keys[next(ki)], (fan_in, fan_out),
                               minval=-bound, maxval=bound, dtype=jnp.float32)
        b = jax.random.uniform(keys[next(ki)], (1, fan_out),
                               minval=-bound, maxval=bound, dtype=jnp.float32)
        return w, b

    w1, b1 = lin(dims[0], dims[1])
    w2, b2 = lin(dims[1], dims[2])
    w3, b3 = lin(dims[2], dims[3])
    w4, b4 = lin(dims[3], dims[4])
    w5, b5 = lin(dims[4], dims[5])

    def bn(c):
        # PyTorch inits gamma=1, beta=0; small perturbation so the affine part
        # is actually exercised.
        g = jnp.ones((1, c), jnp.float32) + 0.01 * jax.random.normal(
            keys[next(ki)], (1, c), dtype=jnp.float32)
        be = 0.01 * jax.random.normal(keys[next(ki)], (1, c), dtype=jnp.float32)
        return g, be

    g2, be2 = bn(dims[2])
    g3, be3 = bn(dims[3])
    g4, be4 = bn(dims[4])

    return dict(w1=w1, b1=b1,
                w2=w2, b2=b2, g2=g2, be2=be2,
                w3=w3, b3=b3, g3=g3, be3=be3,
                w4=w4, b4=b4, g4=g4, be4=be4,
                w5=w5, b5=b5)


def pack_params(p):
    """bf16 weights (DMA'd half-width), lane-dense zero padding for w1/w5/b5.

    Biases / BN gamma / BN beta stay f32 (tiny, and keep BN math in f32).
    """
    def bf(x):
        return x.astype(jnp.bfloat16)

    w1 = jnp.zeros((LATENT_PAD, 128), jnp.bfloat16)
    w1 = w1.at[:LATENT_DIM, :].set(bf(p["w1"]))
    w5 = jnp.zeros((1024, OUT_PAD), jnp.bfloat16)
    w5 = w5.at[:, :OUT_DIM].set(bf(p["w5"]))
    b5 = jnp.zeros((1, OUT_PAD), jnp.float32)
    b5 = b5.at[:, :OUT_DIM].set(p["b5"])

    return dict(
        w1=w1, b1=p["b1"],
        w2=bf(p["w2"]), b2=p["b2"], g2=p["g2"], be2=p["be2"],
        w3=bf(p["w3"]), b3=p["b3"], g3=p["g3"], be3=p["be3"],
        w4=bf(p["w4"]), b4=p["b4"], g4=p["g4"], be4=p["be4"],
        w5=w5, b5=b5,
    )


def _bn_ref(x, g, b):
    m = x.mean(0, keepdims=True)
    v = (x * x).mean(0, keepdims=True) - m * m
    s = g * jax.lax.rsqrt(v + BN_EPS)
    return x * s + (b - m * s)


def _lrelu_ref(x):
    return jnp.maximum(x, LRELU_SLOPE * x)


def _reference_forward_bf16(z, p):
    """Pure-JAX reference using the same bf16-operand / f32-accum casting."""
    def bf(x):
        return x.astype(jnp.bfloat16)

    h = _lrelu_ref(jnp.dot(bf(z), bf(p["w1"]),
                           preferred_element_type=jnp.float32) + p["b1"])
    h = _lrelu_ref(_bn_ref(jnp.dot(bf(h), bf(p["w2"]),
                                   preferred_element_type=jnp.float32) + p["b2"],
                           p["g2"], p["be2"]))
    h = _lrelu_ref(_bn_ref(jnp.dot(bf(h), bf(p["w3"]),
                                   preferred_element_type=jnp.float32) + p["b3"],
                           p["g3"], p["be3"]))
    h = _lrelu_ref(_bn_ref(jnp.dot(bf(h), bf(p["w4"]),
                                   preferred_element_type=jnp.float32) + p["b4"],
                           p["g4"], p["be4"]))
    h = jnp.tanh(jnp.dot(bf(h), bf(p["w5"]),
                         preferred_element_type=jnp.float32) + p["b5"])
    return h.reshape(z.shape[0], *IMG_SHAPE)


def _reference_forward_f32(z, p):
    """Full-precision reference for a semantic sanity check."""
    h = _lrelu_ref(z @ p["w1"] + p["b1"])
    h = _lrelu_ref(_bn_ref(h @ p["w2"] + p["b2"], p["g2"], p["be2"]))
    h = _lrelu_ref(_bn_ref(h @ p["w3"] + p["b3"], p["g3"], p["be3"]))
    h = _lrelu_ref(_bn_ref(h @ p["w4"] + p["b4"], p["g4"], p["be4"]))
    h = jnp.tanh(h @ p["w5"] + p["b5"])
    return h.reshape(z.shape[0], *IMG_SHAPE)


if __name__ == "__main__":
    key = jax.random.PRNGKey(0)
    kz, kp = jax.random.split(key)

    B = 8  # small batch (>1 so train-mode BatchNorm is well-defined)
    z = jax.random.normal(kz, (B, LATENT_DIM), dtype=jnp.float32)
    params = init_params(kp)
    packed = pack_params(params)

    out = generator_forward(z, packed)
    out = jax.block_until_ready(out)

    assert out.shape == (B, *IMG_SHAPE), out.shape

    # Tight check against a reference that uses the same bf16 matmul casting.
    ref_bf16 = _reference_forward_bf16(z, params)
    err_bf16 = float(jnp.max(jnp.abs(out - ref_bf16)))
    assert err_bf16 < 2e-3, err_bf16

    # Loose semantic check against the full-f32 reference (bf16 weight drift).
    ref_f32 = _reference_forward_f32(z, params)
    err_f32 = float(jnp.max(jnp.abs(out - ref_f32)))
    assert err_f32 < 1e-1, err_f32

    print("KERNEL_OK")
</pallas_src>

<mosaic_0001>
module attributes {stable_mosaic.version = 11 : i64} {
  func.func @generator_kernel(%arg0: memref<8x128xbf16, #tpu.memory_space<vmem>>, %arg1: memref<128x128xbf16, #tpu.memory_space<vmem>>, %arg2: memref<1x128xf32, #tpu.memory_space<vmem>>, %arg3: memref<128x256xbf16, #tpu.memory_space<vmem>>, %arg4: memref<1x256xf32, #tpu.memory_space<vmem>>, %arg5: memref<1x256xf32, #tpu.memory_space<vmem>>, %arg6: memref<1x256xf32, #tpu.memory_space<vmem>>, %arg7: memref<256x512xbf16, #tpu.memory_space<vmem>>, %arg8: memref<1x512xf32, #tpu.memory_space<vmem>>, %arg9: memref<1x512xf32, #tpu.memory_space<vmem>>, %arg10: memref<1x512xf32, #tpu.memory_space<vmem>>, %arg11: memref<512x1024xbf16, #tpu.memory_space<vmem>>, %arg12: memref<1x1024xf32, #tpu.memory_space<vmem>>, %arg13: memref<1x1024xf32, #tpu.memory_space<vmem>>, %arg14: memref<1x1024xf32, #tpu.memory_space<vmem>>, %arg15: memref<1024x896xbf16, #tpu.memory_space<vmem>>, %arg16: memref<1x896xf32, #tpu.memory_space<vmem>>, %arg17: memref<8x896xf32, #tpu.memory_space<vmem>>) attributes {dimension_semantics = [], scalar_prefetch = 0 : i64, scratch_operands = 0 : i64, tpu.core_type = #tpu.core_type<tc>} {
    %c0 = arith.constant 0 : index
    %c0_0 = arith.constant 0 : index
    %0 = vector.load %arg0[%c0, %c0_0] : memref<8x128xbf16, #tpu.memory_space<vmem>>, vector<8x128xbf16>
    %c0_1 = arith.constant 0 : index
    %c0_2 = arith.constant 0 : index
    %1 = vector.load %arg1[%c0_1, %c0_2] : memref<128x128xbf16, #tpu.memory_space<vmem>>, vector<128x128xbf16>
    %cst = arith.constant dense<0.000000e+00> : vector<8x128xf32>
    %2 = tpu.matmul %0, %1, %cst {dimension_numbers = #tpu.dot_dimension_numbers<[1], [0], [0], [1], [0, 0, 1, 1], [], []>} : vector<8x128xbf16>, vector<128x128xbf16>, vector<8x128xf32> -> vector<8x128xf32>
    %c0_3 = arith.constant 0 : index
    %c0_4 = arith.constant 0 : index
    %3 = vector.load %arg2[%c0_3, %c0_4] : memref<1x128xf32, #tpu.memory_space<vmem>>, vector<1x128xf32>
    %4 = vector.broadcast %3 : vector<1x128xf32> to vector<8x128xf32>
    %5 = arith.addf %2, %4 : vector<8x128xf32>
    %cst_5 = arith.constant 2.000000e-01 : f32
    %6 = vector.broadcast %cst_5 : f32 to vector<8x128xf32>
    %7 = arith.mulf %6, %5 : vector<8x128xf32>
    %8 = arith.maximumf %5, %7 : vector<8x128xf32>
    %9 = arith.truncf %8 : vector<8x128xf32> to vector<8x128xbf16>
    %c0_6 = arith.constant 0 : index
    %c0_7 = arith.constant 0 : index
    %10 = vector.load %arg3[%c0_6, %c0_7] : memref<128x256xbf16, #tpu.memory_space<vmem>>, vector<128x256xbf16>
    %cst_8 = arith.constant dense<0.000000e+00> : vector<8x256xf32>
    %11 = tpu.matmul %9, %10, %cst_8 {dimension_numbers = #tpu.dot_dimension_numbers<[1], [0], [0], [1], [0, 0, 1, 1], [], []>} : vector<8x128xbf16>, vector<128x256xbf16>, vector<8x256xf32> -> vector<8x256xf32>
    %c0_9 = arith.constant 0 : index
    %c0_10 = arith.constant 0 : index
    %12 = vector.load %arg4[%c0_9, %c0_10] : memref<1x256xf32, #tpu.memory_space<vmem>>, vector<1x256xf32>
    %13 = vector.broadcast %12 : vector<1x256xf32> to vector<8x256xf32>
    %14 = arith.addf %11, %13 : vector<8x256xf32>
    %c0_11 = arith.constant 0 : index
    %c0_12 = arith.constant 0 : index
    %15 = vector.load %arg5[%c0_11, %c0_12] : memref<1x256xf32, #tpu.memory_space<vmem>>, vector<1x256xf32>
    %c0_13 = arith.constant 0 : index
    %c0_14 = arith.constant 0 : index
    %16 = vector.load %arg6[%c0_13, %c0_14] : memref<1x256xf32, #tpu.memory_space<vmem>>, vector<1x256xf32>
    %cst_15 = arith.constant dense<0.000000e+00> : vector<256xf32>
    %17 = vector.multi_reduction <add>, %14, %cst_15 [0] : vector<8x256xf32> to vector<256xf32>
    %18 = vector.shape_cast %17 : vector<256xf32> to vector<1x256xf32>
    %cst_16 = arith.constant 8.000000e+00 : f32
    %19 = vector.broadcast %cst_16 : f32 to vector<1x256xf32>
    %20 = arith.divf %18, %19 : vector<1x256xf32>
    %21 = arith.mulf %14, %14 : vector<8x256xf32>
    %cst_17 = arith.constant dense<0.000000e+00> : vector<256xf32>
    %22 = vector.multi_reduction <add>, %21, %cst_17 [0] : vector<8x256xf32> to vector<256xf32>
    %23 = vector.shape_cast %22 : vector<256xf32> to vector<1x256xf32>
    %cst_18 = arith.constant 8.000000e+00 : f32
    %24 = vector.broadcast %cst_18 : f32 to vector<1x256xf32>
    %25 = arith.divf %23, %24 : vector<1x256xf32>
    %26 = arith.mulf %20, %20 : vector<1x256xf32>
    %27 = arith.subf %25, %26 : vector<1x256xf32>
    %cst_19 = arith.constant 8.000000e-01 : f32
    %28 = vector.broadcast %cst_19 : f32 to vector<1x256xf32>
    %29 = arith.addf %27, %28 : vector<1x256xf32>
    %30 = math.rsqrt %29 : vector<1x256xf32>
    %31 = arith.mulf %15, %30 : vector<1x256xf32>
    %32 = arith.mulf %20, %31 : vector<1x256xf32>
    %33 = arith.subf %16, %32 : vector<1x256xf32>
    %34 = vector.broadcast %31 : vector<1x256xf32> to vector<8x256xf32>
    %35 = arith.mulf %14, %34 : vector<8x256xf32>
    %36 = vector.broadcast %33 : vector<1x256xf32> to vector<8x256xf32>
    %37 = arith.addf %35, %36 : vector<8x256xf32>
    %cst_20 = arith.constant 2.000000e-01 : f32
    %38 = vector.broadcast %cst_20 : f32 to vector<8x256xf32>
    %39 = arith.mulf %38, %37 : vector<8x256xf32>
    %40 = arith.maximumf %37, %39 : vector<8x256xf32>
    %41 = arith.truncf %40 : vector<8x256xf32> to vector<8x256xbf16>
    %c0_21 = arith.constant 0 : index
    %c0_22 = arith.constant 0 : index
    %42 = vector.load %arg7[%c0_21, %c0_22] : memref<256x512xbf16, #tpu.memory_space<vmem>>, vector<256x512xbf16>
    %cst_23 = arith.constant dense<0.000000e+00> : vector<8x512xf32>
    %43 = tpu.matmul %41, %42, %cst_23 {dimension_numbers = #tpu.dot_dimension_numbers<[1], [0], [0], [1], [0, 0, 1, 1], [], []>} : vector<8x256xbf16>, vector<256x512xbf16>, vector<8x512xf32> -> vector<8x512xf32>
    %c0_24 = arith.constant 0 : index
    %c0_25 = arith.constant 0 : index
    %44 = vector.load %arg8[%c0_24, %c0_25] : memref<1x512xf32, #tpu.memory_space<vmem>>, vector<1x512xf32>
    %45 = vector.broadcast %44 : vector<1x512xf32> to vector<8x512xf32>
    %46 = arith.addf %43, %45 : vector<8x512xf32>
    %c0_26 = arith.constant 0 : index
    %c0_27 = arith.constant 0 : index
    %47 = vector.load %arg9[%c0_26, %c0_27] : memref<1x512xf32, #tpu.memory_space<vmem>>, vector<1x512xf32>
    %c0_28 = arith.constant 0 : index
    %c0_29 = arith.constant 0 : index
    %48 = vector.load %arg10[%c0_28, %c0_29] : memref<1x512xf32, #tpu.memory_space<vmem>>, vector<1x512xf32>
    %cst_30 = arith.constant dense<0.000000e+00> : vector<512xf32>
    %49 = vector.multi_reduction <add>, %46, %cst_30 [0] : vector<8x512xf32> to vector<512xf32>
    %50 = vector.shape_cast %49 : vector<512xf32> to vector<1x512xf32>
    %cst_31 = arith.constant 8.000000e+00 : f32
    %51 = vector.broadcast %cst_31 : f32 to vector<1x512xf32>
    %52 = arith.divf %50, %51 : vector<1x512xf32>
    %53 = arith.mulf %46, %46 : vector<8x512xf32>
    %cst_32 = arith.constant dense<0.000000e+00> : vector<512xf32>
    %54 = vector.multi_reduction <add>, %53, %cst_32 [0] : vector<8x512xf32> to vector<512xf32>
    %55 = vector.shape_cast %54 : vector<512xf32> to vector<1x512xf32>
    %cst_33 = arith.constant 8.000000e+00 : f32
    %56 = vector.broadcast %cst_33 : f32 to vector<1x512xf32>
    %57 = arith.divf %55, %56 : vector<1x512xf32>
    %58 = arith.mulf %52, %52 : vector<1x512xf32>
    %59 = arith.subf %57, %58 : vector<1x512xf32>
    %cst_34 = arith.constant 8.000000e-01 : f32
    %60 = vector.broadcast %cst_34 : f32 to vector<1x512xf32>
    %61 = arith.addf %59, %60 : vector<1x512xf32>
    %62 = math.rsqrt %61 : vector<1x512xf32>
    %63 = arith.mulf %47, %62 : vector<1x512xf32>
    %64 = arith.mulf %52, %63 : vector<1x512xf32>
    %65 = arith.subf %48, %64 : vector<1x512xf32>
    %66 = vector.broadcast %63 : vector<1x512xf32> to vector<8x512xf32>
    %67 = arith.mulf %46, %66 : vector<8x512xf32>
    %68 = vector.broadcast %65 : vector<1x512xf32> to vector<8x512xf32>
    %69 = arith.addf %67, %68 : vector<8x512xf32>
    %cst_35 = arith.constant 2.000000e-01 : f32
    %70 = vector.broadcast %cst_35 : f32 to vector<8x512xf32>
    %71 = arith.mulf %70, %69 : vector<8x512xf32>
    %72 = arith.maximumf %69, %71 : vector<8x512xf32>
    %73 = arith.truncf %72 : vector<8x512xf32> to vector<8x512xbf16>
    %c0_36 = arith.constant 0 : index
    %c0_37 = arith.constant 0 : index
    %74 = vector.load %arg11[%c0_36, %c0_37] : memref<512x1024xbf16, #tpu.memory_space<vmem>>, vector<512x1024xbf16>
    %cst_38 = arith.constant dense<0.000000e+00> : vector<8x1024xf32>
    %75 = tpu.matmul %73, %74, %cst_38 {dimension_numbers = #tpu.dot_dimension_numbers<[1], [0], [0], [1], [0, 0, 1, 1], [], []>} : vector<8x512xbf16>, vector<512x1024xbf16>, vector<8x1024xf32> -> vector<8x1024xf32>
    %c0_39 = arith.constant 0 : index
    %c0_40 = arith.constant 0 : index
    %76 = vector.load %arg12[%c0_39, %c0_40] : memref<1x1024xf32, #tpu.memory_space<vmem>>, vector<1x1024xf32>
    %77 = vector.broadcast %76 : vector<1x1024xf32> to vector<8x1024xf32>
    %78 = arith.addf %75, %77 : vector<8x1024xf32>
    %c0_41 = arith.constant 0 : index
    %c0_42 = arith.constant 0 : index
    %79 = vector.load %arg13[%c0_41, %c0_42] : memref<1x1024xf32, #tpu.memory_space<vmem>>, vector<1x1024xf32>
    %c0_43 = arith.constant 0 : index
    %c0_44 = arith.constant 0 : index
    %80 = vector.load %arg14[%c0_43, %c0_44] : memref<1x1024xf32, #tpu.memory_space<vmem>>, vector<1x1024xf32>
    %cst_45 = arith.constant dense<0.000000e+00> : vector<1024xf32>
    %81 = vector.multi_reduction <add>, %78, %cst_45 [0] : vector<8x1024xf32> to vector<1024xf32>
    %82 = vector.shape_cast %81 : vector<1024xf32> to vector<1x1024xf32>
    %cst_46 = arith.constant 8.000000e+00 : f32
    %83 = vector.broadcast %cst_46 : f32 to vector<1x1024xf32>
    %84 = arith.divf %82, %83 : vector<1x1024xf32>
    %85 = arith.mulf %78, %78 : vector<8x1024xf32>
    %cst_47 = arith.constant dense<0.000000e+00> : vector<1024xf32>
    %86 = vector.multi_reduction <add>, %85, %cst_47 [0] : vector<8x1024xf32> to vector<1024xf32>
    %87 = vector.shape_cast %86 : vector<1024xf32> to vector<1x1024xf32>
    %cst_48 = arith.constant 8.000000e+00 : f32
    %88 = vector.broadcast %cst_48 : f32 to vector<1x1024xf32>
    %89 = arith.divf %87, %88 : vector<1x1024xf32>
    %90 = arith.mulf %84, %84 : vector<1x1024xf32>
    %91 = arith.subf %89, %90 : vector<1x1024xf32>
    %cst_49 = arith.constant 8.000000e-01 : f32
    %92 = vector.broadcast %cst_49 : f32 to vector<1x1024xf32>
    %93 = arith.addf %91, %92 : vector<1x1024xf32>
    %94 = math.rsqrt %93 : vector<1x1024xf32>
    %95 = arith.mulf %79, %94 : vector<1x1024xf32>
    %96 = arith.mulf %84, %95 : vector<1x1024xf32>
    %97 = arith.subf %80, %96 : vector<1x1024xf32>
    %98 = vector.broadcast %95 : vector<1x1024xf32> to vector<8x1024xf32>
    %99 = arith.mulf %78, %98 : vector<8x1024xf32>
    %100 = vector.broadcast %97 : vector<1x1024xf32> to vector<8x1024xf32>
    %101 = arith.addf %99, %100 : vector<8x1024xf32>
    %cst_50 = arith.constant 2.000000e-01 : f32
    %102 = vector.broadcast %cst_50 : f32 to vector<8x1024xf32>
    %103 = arith.mulf %102, %101 : vector<8x1024xf32>
    %104 = arith.maximumf %101, %103 : vector<8x1024xf32>
    %105 = arith.truncf %104 : vector<8x1024xf32> to vector<8x1024xbf16>
    %c0_51 = arith.constant 0 : index
    %c0_52 = arith.constant 0 : index
    %106 = vector.load %arg15[%c0_51, %c0_52] : memref<1024x896xbf16, #tpu.memory_space<vmem>>, vector<1024x896xbf16>
    %cst_53 = arith.constant dense<0.000000e+00> : vector<8x896xf32>
    %107 = tpu.matmul %105, %106, %cst_53 {dimension_numbers = #tpu.dot_dimension_numbers<[1], [0], [0], [1], [0, 0, 1, 1], [], []>} : vector<8x1024xbf16>, vector<1024x896xbf16>, vector<8x896xf32> -> vector<8x896xf32>
    %c0_54 = arith.constant 0 : index
    %c0_55 = arith.constant 0 : index
    %108 = vector.load %arg16[%c0_54, %c0_55] : memref<1x896xf32, #tpu.memory_space<vmem>>, vector<1x896xf32>
    %109 = vector.broadcast %108 : vector<1x896xf32> to vector<8x896xf32>
    %110 = arith.addf %107, %109 : vector<8x896xf32>
    %111 = math.tanh %110 : vector<8x896xf32>
    %c0_56 = arith.constant 0 : index
    %c0_57 = arith.constant 0 : index
    %112 = vector.load %arg17[%c0_56, %c0_57] : memref<8x896xf32, #tpu.memory_space<vmem>>, vector<8x896xf32>
    tpu.vector_store %arg17[%c0_56, %c0_57], %111 {strides = array<i32>} : memref<8x896xf32, #tpu.memory_space<vmem>>, vector<8x896xf32>,
    return
  }
}

</mosaic_0001>

<bundles_post_ra>
// kernel: generator_forward.1
= control target key start
LH: loop header
LB: loop body
LE: loop exit
PB: predicated region body
PF: predicated region fallthrough
CT: control target
= control target key end

     0   :  { %s12470_s0 = inlined_call_operand.vmem [shape: bf16[8,128], index: 0, kind: input, shape index: {}]   ;;  %s12471_s1 = inlined_call_operand.hbm [shape: bf16[128,128], index: 1, kind: input, shape index: {}]   ;;  %s12472_s2 = inlined_call_operand.hbm [shape: f32[1,128], index: 2, kind: input, shape index: {}]   ;;  %s12473_s3 = inlined_call_operand.hbm [shape: bf16[128,256], index: 3, kind: input, shape index: {}]   ;;  %s12474_s4 = inlined_call_operand.hbm [shape: f32[1,256], index: 4, kind: input, shape index: {}]   ;;  %s12475_s5 = inlined_call_operand.hbm [shape: f32[1,256], index: 5, kind: input, shape index: {}]   ;;  %s12476_s6 = inlined_call_operand.hbm [shape: f32[1,256], index: 6, kind: input, shape index: {}]   ;;  %s12477_s7 = inlined_call_operand.hbm [shape: bf16[256,512], index: 7, kind: input, shape index: {}]   ;;  %s12478_s8 = inlined_call_operand.hbm [shape: f32[1,512], index: 8, kind: input, shape index: {}]   ;;  %s12479_s9 = inlined_call_operand.hbm [shape: f32[1,512], index: 9, kind: input, shape index: {}]   ;;  %s12480_s10 = inlined_call_operand.hbm [shape: f32[1,512], index: 10, kind: input, shape index: {}]   ;;  %s12481_s11 = inlined_call_operand.hbm [shape: bf16[512,1024], index: 11, kind: input, shape index: {}]   ;;  %s12482_s12 = inlined_call_operand.hbm [shape: f32[1,1024], index: 12, kind: input, shape index: {}]   ;;  %s12483_s13 = inlined_call_operand.hbm [shape: f32[1,1024], index: 13, kind: input, shape index: {}]   ;;  %s12484_s14 = inlined_call_operand.hbm [shape: f32[1,1024], index: 14, kind: input, shape index: {}]   ;;  %s12485_s15 = inlined_call_operand.hbm [shape: bf16[1024,896], index: 15, kind: input, shape index: {}]   ;;  %s12486_s16 = inlined_call_operand.hbm [shape: f32[1,896], index: 16, kind: input, shape index: {}]   ;;  %s12487_s17 = inlined_call_operand.vmem [shape: f32[8,896], index: 17, kind: output, shape index: {}]  }
   0x1   :  { %12488 = sst [smem:[#allocation36_spill]] %s12470_s0 }
   0x2   :  { %12489 = sst [smem:[#allocation37_spill]] %s12471_s1 }
   0x3   :  { %22 = vsyncpa [#allocation3], 0 }
   0x4   :  { %23 = vsyncpa [#allocation5], 0 }
   0x5   :  { %24 = vsyncpa [#allocation8], 0 }
   0x6   :  { %25 = vsyncpa [#allocation11], 0 }
   0x7   :  { %26 = vsyncpa [#allocation14], 0 }
   0x8   :  { %27 = vsyncpa [#allocation17], 0 }
   0x9   :  { %28 = vsyncpa [#allocation20], 0 }
   0xa   :  { %29 = vsyncpa [#allocation23], 0  ;;  %s51_s26 = sshll.u32 %s12472_s2, 4  ;;  %s52_s26 = int_to_ptr.hbm [resolvable:$true] %s51_s26 }
   0xb   :  { %30 = vsyncpa [#allocation26], 0  ;;  %s11630_s27 = smov [#allocation4]   ;;  %s75_s30 = sshll.u32 %s12474_s4, 4  ;;  %s76_s30 = int_to_ptr.hbm [resolvable:$true] %s75_s30 }
   0xc   :  { %s53_s28 = sshll.u32 %s11630_s27, 4  ;;  %s11631_s18 = smov [#allocation7]   ;;  %s54_s28 = int_to_ptr.vmem [resolvable:$true] %s53_s28 }
   0xd   :  { %56 = dma.hbm_to_vmem [thread:$0]  %s52_s26, 16, %s54_s28, [#allocation5]  }
   0xe   :  { %s77_s19 = sshll.u32 %s11631_s18, 4  ;;  %s97_s21 = sshll.u32 %s12476_s6, 4  ;;  %s78_s19 = int_to_ptr.vmem [resolvable:$true] %s77_s19  ;;  %s98_s21 = int_to_ptr.hbm [resolvable:$true] %s97_s21 }
   0xf   :  { %80 = dma.hbm_to_vmem [thread:$0]  %s76_s30, 32, %s78_s19, [#allocation8]  }
  0x10   :  { %s121_s23 = sshll.u32 %s12478_s8, 4  ;;  %s11632_s24 = smov [#allocation10]   ;;  %s122_s23 = int_to_ptr.hbm [resolvable:$true] %s121_s23 }
  0x11   :  { %s99_s25 = sshll.u32 %s11632_s24, 4  ;;  %s11633_s4 = smov [#allocation13]   ;;  %s100_s25 = int_to_ptr.vmem [resolvable:$true] %s99_s25 }
  0x12   :  { %102 = dma.hbm_to_vmem [thread:$0]  %s98_s21, 32, %s100_s25, [#allocation11]  }
  0x13   :  { %s123_s26 = sshll.u32 %s11633_s4, 4  ;;  %s143_s29 = sshll.u32 %s12480_s10, 4  ;;  %s124_s26 = int_to_ptr.vmem [resolvable:$true] %s123_s26  ;;  %s144_s29 = int_to_ptr.hbm [resolvable:$true] %s143_s29 }
  0x14   :  { %126 = dma.hbm_to_vmem [thread:$0]  %s122_s23, 64, %s124_s26, [#allocation14]  }
  0x15   :  { %s167_s30 = sshll.u32 %s12482_s12, 4  ;;  %s11634_s18 = smov [#allocation16]   ;;  %s168_s30 = int_to_ptr.hbm [resolvable:$true] %s167_s30 }
  0x16   :  { %s145_s8 = sshll.u32 %s11634_s18, 4  ;;  %s11635_s19 = smov [#allocation19]   ;;  %s146_s8 = int_to_ptr.vmem [resolvable:$true] %s145_s8 }
  0x17   :  { %148 = dma.hbm_to_vmem [thread:$0]  %s144_s29, 64, %s146_s8, [#allocation17]  }
  0x18   :  { %s169_s1 = sshll.u32 %s11635_s19, 4  ;;  %s189_s2 = sshll.u32 %s12484_s14, 4  ;;  %s170_s1 = int_to_ptr.vmem [resolvable:$true] %s169_s1  ;;  %s190_s2 = int_to_ptr.hbm [resolvable:$true] %s189_s2 }
  0x19   :  { %172 = dma.hbm_to_vmem [thread:$0]  %s168_s30, 128, %s170_s1, [#allocation20]  }
  0x1a   :  { %s12490_s23 = sld [smem:[#allocation37_spill]]  ;;  %s11636_s25 = smov [#allocation22]  }
  0x1b   :  { %s191_s12 = sshll.u32 %s11636_s25, 4  ;;  %s11637_s4 = smov [#allocation2]   ;;  %s192_s12 = int_to_ptr.vmem [resolvable:$true] %s191_s12 }
  0x1c   :  { %194 = dma.hbm_to_vmem [thread:$0]  %s190_s2, 128, %s192_s12, [#allocation23]  }
  0x1d   :  { %s39_s26 = sshll.u32 %s11637_s4, 4  ;;  %s11638_s27 = smov 64   ;;  %s40_s26 = int_to_ptr.vmem [resolvable:$true] %s39_s26 }
  0x1e   :  { %s11639_s28 = smov 4   ;;  %s61_s6 = sshll.u32 %s12473_s3, 4  ;;  %s62_s6 = int_to_ptr.hbm [resolvable:$true] %s61_s6 }
  0x1f   :  { %s11640_s0 = smov [#allocation6]   ;;  %s86_s19 = sshll.u32 %s12475_s5, 4  ;;  %s87_s19 = int_to_ptr.hbm [resolvable:$true] %s86_s19 }
  0x20   :  { %s37_s24 = sshll.u32 %s12490_s23, 4  ;;  %s63_s30 = sshll.u32 %s11640_s0, 4  ;;  %s38_s24 = int_to_ptr.hbm [resolvable:$true] %s37_s24  ;;  %s64_s30 = int_to_ptr.vmem [resolvable:$true] %s63_s30 }
  0x21   :  { %45 = dma.hbm_to_vmem [thread:$0]  %s38_s24, 1024, %s40_s26, [#allocation3], %s11638_s27, %s11638_s27, %s11639_s28  }
  0x22   :  { %s11641_s1 = smov 128   ;;  %s11642_s20 = smov 8  }
  0x23   :  { %69 = dma.hbm_to_vmem [thread:$0]  %s62_s6, 2048, %s64_s30, [#allocation5], %s11641_s1, %s11641_s1, %s11642_s20  }
  0x24   :  { %s11643_s21 = smov [#allocation9]   ;;  %s107_s23 = sshll.u32 %s12477_s7, 4  ;;  %s108_s23 = int_to_ptr.hbm [resolvable:$true] %s107_s23 }
  0x25   :  { %s88_s2 = sshll.u32 %s11643_s21, 4  ;;  %s11644_s3 = smov [#allocation12]   ;;  %s89_s2 = int_to_ptr.vmem [resolvable:$true] %s88_s2 }
  0x26   :  { %91 = dma.hbm_to_vmem [thread:$0]  %s87_s19, 32, %s89_s2, [#allocation8]  }
  0x27   :  { %s109_s24 = sshll.u32 %s11644_s3, 4  ;;  %s132_s5 = sshll.u32 %s12479_s9, 4  ;;  %s110_s24 = int_to_ptr.vmem [resolvable:$true] %s109_s24  ;;  %s133_s5 = int_to_ptr.hbm [resolvable:$true] %s132_s5 }
  0x28   :  { %s11645_s4 = smov 256   ;;  %s11646_s26 = smov 16  }
  0x29   :  { %115 = dma.hbm_to_vmem [thread:$0]  %s108_s23, 8192, %s110_s24, [#allocation11], %s11645_s4, %s11645_s4, %s11646_s26  }
  0x2a   :  { %s11647_s27 = smov [#allocation15]   ;;  %s153_s7 = sshll.u32 %s12481_s11, 4  ;;  %s154_s7 = int_to_ptr.hbm [resolvable:$true] %s153_s7 }
  0x2b   :  { %s134_s28 = sshll.u32 %s11647_s27, 4  ;;  %s11648_s6 = smov [#allocation18]   ;;  %s135_s28 = int_to_ptr.vmem [resolvable:$true] %s134_s28 }
  0x2c   :  { %137 = dma.hbm_to_vmem [thread:$0]  %s133_s5, 64, %s135_s28, [#allocation14]  }
  0x2d   :  { %s155_s0 = sshll.u32 %s11648_s6, 4  ;;  %s178_s9 = sshll.u32 %s12483_s13, 4  ;;  %s156_s0 = int_to_ptr.vmem [resolvable:$true] %s155_s0  ;;  %s179_s9 = int_to_ptr.hbm [resolvable:$true] %s178_s9 }
  0x2e   :  { %s11649_s8 = smov 512   ;;  %s11650_s19 = smov 32  }
  0x2f   :  { %161 = dma.hbm_to_vmem [thread:$0]  %s154_s7, 32768, %s156_s0, [#allocation17], %s11649_s8, %s11649_s8, %s11650_s19  }
  0x30   :  { %s11651_s1 = smov [#allocation21]   ;;  %s199_s11 = sshll.u32 %s12485_s15, 4  ;;  %s200_s11 = int_to_ptr.hbm [resolvable:$true] %s199_s11 }
  0x31   :  { %s180_s20 = sshll.u32 %s11651_s1, 4  ;;  %s11652_s10 = smov [#allocation24]   ;;  %s181_s20 = int_to_ptr.vmem [resolvable:$true] %s180_s20 }
  0x32   :  { %183 = dma.hbm_to_vmem [thread:$0]  %s179_s9, 128, %s181_s20, [#allocation20]  }
  0x33   :  { %s201_s22 = sshll.u32 %s11652_s10, 4  ;;  %s213_s13 = sshll.u32 %s12486_s16, 4  ;;  %s202_s22 = int_to_ptr.vmem [resolvable:$true] %s201_s22  ;;  %s214_s13 = int_to_ptr.hbm [resolvable:$true] %s213_s13 }
  0x34   :  { %s11653_s24 = smov 448   ;;  %s11654_s25 = smov 28  }
  0x35   :  { %207 = dma.hbm_to_vmem [thread:$0]  %s200_s11, 57344, %s202_s22, [#allocation23], %s11653_s24, %s11653_s24, %s11654_s25  }
  0x36   :  { %s11655_s12 = smov [#allocation25]  }
  0x37   :  { %s215_s5 = sshll.u32 %s11655_s12, 4  ;;  %s216_s5 = int_to_ptr.vmem [resolvable:$true] %s215_s5 }
  0x38   :  { %218 = dma.hbm_to_vmem [thread:$0]  %s214_s13, 112, %s216_s5, [#allocation26]  }
  0x39   :  { %11612 = dma.done.wait [#allocation3], 1024  }
  0x3a   :  { %11613 = vsyncadd [#allocation3], 4294966272 }
  0x3b   :  { %11614 = dma.done.wait [#allocation5], 2064  }
  0x3c   :  { %11615 = vsyncadd [#allocation5], 4294965232 }
  0x3d   :  { %11616 = dma.done.wait [#allocation8], 64  }
  0x3e   :  { %11617 = vsyncadd [#allocation8], 4294967232 }
  0x3f   :  { %11618 = dma.done.wait [#allocation11], 8224  }
  0x40   :  { %11619 = vsyncadd [#allocation11], 4294959072 }
  0x41   :  { %11620 = dma.done.wait [#allocation14], 128  }
  0x42   :  { %11621 = vsyncadd [#allocation14], 4294967168 }
  0x43   :  { %11622 = dma.done.wait [#allocation17], 32832  }
  0x44   :  { %11623 = vsyncadd [#allocation17], 4294934464 }
  0x45   :  { %11624 = dma.done.wait [#allocation20], 256  }
  0x46   :  { %11625 = vsyncadd [#allocation20], 4294967040 }
  0x47   :  { %11626 = dma.done.wait [#allocation23], 57472  }
  0x48   :  { %11627 = vsyncadd [#allocation23], 4294909824 }
  0x49   :  { %11628 = dma.done.wait [#allocation26], 112  }
  0x4a   :  { %11629 = vsyncadd [#allocation26], 4294967184  ;;  %v10368_v0 = vld [vmem:[#allocation2 + $0x38] sm:$0xff]  ;;  %v10367_v1 = vld [vmem:[#allocation2 + $0x30] sm:$0xff]  ;;  %s12491_s4 = sld [smem:[#allocation36_spill]]  ;;  %vm564_vm6 = vcmask 1040384  }
  0x4b   :  { %352 = vmatpush.bf16.msra.mxu0 %v10368_v0  ;;  %v7283_v2 = vld [vmem:[#allocation6 + $0x70] sm:$0xf]  ;;  %v10384_v3 = vld [vmem:[#allocation6 + $0x74] sm:$0xf0]  ;;  %v10383_v4 = vld [vmem:[#allocation6 + $0x74] sm:$0xf] }
  0x4c   :  { %v7284_v5 = vor.u32 %v10384_v3, %v7283_v2  ;;  %v7285_v6 = vld [vmem:[#allocation6 + $0x78] sm:$0xf0]  ;;  %v7275_v7 = vld [vmem:[#allocation6 + $0x60] sm:$0xf]  ;;  %v10382_v8 = vld [vmem:[#allocation6 + $0x64] sm:$0xf0] }
  0x4d   :  { %v7288_v9 = vor.u32 %v10383_v4, %v7285_v6  ;;  %v10381_v10 = vld [vmem:[#allocation6 + $0x64] sm:$0xf]  ;;  %v7277_v11 = vld [vmem:[#allocation6 + $0x68] sm:$0xf0]  ;;  %v7276_v13 = vor.u32 %v10382_v8, %v7275_v7  ;;  %v7267_v15 = vld [vmem:[#allocation6 + $0x50] sm:$0xf] }
  0x4e   :  { %v10366_v12 = vld [vmem:[#allocation2 + $0x28] sm:$0xff]  ;;  %470 = vmatpush.bf16.msra.mxu1 %v7284_v5  ;;  %v7280_v14 = vor.u32 %v10381_v10, %v7277_v11  ;;  %v10380_v16 = vld [vmem:[#allocation6 + $0x54] sm:$0xf0]  ;;  %v10379_v17 = vld [vmem:[#allocation6 + $0x54] sm:$0xf]  ;;  %v11656_v0 = vmov 8.0  }
  0x4f   :  { %353 = vmatpush.bf16.msra.mxu0 %v10367_v1  ;;  %483 = vmatpush.bf16.msra.mxu2 %v7288_v9  ;;  %v7269_v18 = vld [vmem:[#allocation6 + $0x58] sm:$0xf0]  ;;  %v7268_v20 = vor.u32 %v10380_v16, %v7267_v15  ;;  %v7259_v22 = vld [vmem:[#allocation6 + $0x40] sm:$0xf]  ;;  %v10378_v23 = vld [vmem:[#allocation6 + $0x44] sm:$0xf0]  ;;  %11181 = vrcp.f32 %v11656_v0 }
  0x50   :  { %v10365_v19 = vld [vmem:[#allocation2 + $0x20] sm:$0xff]  ;;  %v7272_v21 = vor.u32 %v10379_v17, %v7269_v18  ;;  %v7261_v25 = vld [vmem:[#allocation6 + $0x48] sm:$0xf0]  ;;  %v10364_v26 = vld [vmem:[#allocation2 + $0x18] sm:$0xff]  ;;  %v7260_v27 = vor.u32 %v10378_v23, %v7259_v22 }
  0x51   :  { %v10377_v24 = vld [vmem:[#allocation6 + $0x44] sm:$0xf]  ;;  %v7251_v29 = vld [vmem:[#allocation6 + $0x30] sm:$0xf]  ;;  %v10376_v30 = vld [vmem:[#allocation6 + $0x34] sm:$0xf0] }
  0x52   :  { %471 = vmatpush.bf16.msra.mxu1 %v7276_v13  ;;  %v7264_v28 = vor.u32 %v10377_v24, %v7261_v25  ;;  %v10375_v31 = vld [vmem:[#allocation6 + $0x34] sm:$0xf]  ;;  %v7253_v32 = vld [vmem:[#allocation6 + $0x38] sm:$0xf0]  ;;  %v7252_v34 = vor.u32 %v10376_v30, %v7251_v29  ;;  %v7243_v36 = vld [vmem:[#allocation6 + $0x20] sm:$0xf] }
  0x53   :  { %354 = vmatpush.bf16.msra.mxu0 %v10366_v12  ;;  %484 = vmatpush.bf16.msra.mxu2 %v7280_v14  ;;  %v10363_v33 = vld [vmem:[#allocation2 + $0x10] sm:$0xff]  ;;  %v7256_v35 = vor.u32 %v10375_v31, %v7253_v32  ;;  %v10374_v37 = vld [vmem:[#allocation6 + $0x24] sm:$0xf0]  ;;  %v10373_v38 = vld [vmem:[#allocation6 + $0x24] sm:$0xf] }
  0x54   :  { %v7245_v39 = vld [vmem:[#allocation6 + $0x28] sm:$0xf0]  ;;  %v7244_v41 = vor.u32 %v10374_v37, %v7243_v36  ;;  %v10361_v43 = vld [vmem:[#allocation2] sm:$0xff]  ;;  %v7235_v45 = vld [vmem:[#allocation6 + $0x10] sm:$0xf] }
  0x55   :  { %v10362_v40 = vld [vmem:[#allocation2 + $0x8] sm:$0xff]  ;;  %v7248_v42 = vor.u32 %v10373_v38, %v7245_v39  ;;  %v283_v44 = vld [vmem:[%s12491_s4] sm:$0xf]  ;;  %v10372_v46 = vld [vmem:[#allocation6 + $0x14] sm:$0xf0]  ;;  %v11800_v2 = vpop.eup %11181 }
  0x56   :  { %472 = vmatpush.bf16.msra.mxu1 %v7268_v20  ;;  %v10371_v47 = vld [vmem:[#allocation6 + $0x14] sm:$0xf]  ;;  %v7236_v48 = vor.u32 %v10372_v46, %v7235_v45  ;;  %v7237_v49 = vld [vmem:[#allocation6 + $0x18] sm:$0xf0]  ;;  %v7227_v51 = vld [vmem:[#allocation6] sm:$0xf]  ;;  %vm515_vm0 = vweird.f32 %v11800_v2 }
  0x57   :  { %355 = vmatpush.bf16.msra.mxu0 %v10365_v19  ;;  %485 = vmatpush.bf16.msra.mxu2 %v7272_v21  ;;  %v7240_v50 = vor.u32 %v10371_v47, %v7237_v49  ;;  %v10370_v52 = vld [vmem:[#allocation6 + $0x4] sm:$0xf0]  ;;  %v10369_v53 = vld [vmem:[#allocation6 + $0x4] sm:$0xf]  ;;  %v7229_v55 = vld [vmem:[#allocation6 + $0x8] sm:$0xf0] }
  0x58   :  { %v7228_v54 = vor.u32 %v10370_v52, %v7227_v51  ;;  %v7232_v56 = vor.u32 %v10369_v53, %v7229_v55  ;;  %v11180_v57 = vld [vmem:[#allocation4] ss:$0 sm:$0xff]  ;;  %v11798_v1 = vld [vmem:[#allocation7] sm:$0x3]  ;;  %v7403_v3 = vld [vmem:[#allocation12 + $0xe0] sm:$0xf] }
  0x59   :  { %v10415_v4 = vld [vmem:[#allocation12 + $0xec] sm:$0xf0]  ;;  %v7531_v5 = vld [vmem:[#allocation12 + $0x1e0] sm:$0xf]  ;;  %v10413_v8 = vld [vmem:[#allocation12 + $0xe4] sm:$0xf] }
  0x5a   :  { %473 = vmatpush.bf16.msra.mxu1 %v7260_v27  ;;  %v7404_v6 = vor.u32 %v10415_v4, %v7403_v3  ;;  %v10447_v7 = vld [vmem:[#allocation12 + $0x1ec] sm:$0xf0]  ;;  %v7405_v9 = vld [vmem:[#allocation12 + $0xf0] sm:$0xf0]  ;;  %v10445_v12 = vld [vmem:[#allocation12 + $0x1e4] sm:$0xf] }
  0x5b   :  { %356 = vmatpush.bf16.msra.mxu0 %v10364_v26  ;;  %486 = vmatpush.bf16.msra.mxu2 %v7264_v28  ;;  %v7532_v10 = vor.u32 %v10447_v7, %v7531_v5  ;;  %v7408_v11 = vor.u32 %v10413_v8, %v7405_v9  ;;  %v7533_v13 = vld [vmem:[#allocation12 + $0x1f0] sm:$0xf0]  ;;  %v386_v14 = vperm.slane %v11798_v1, 0  ;;  %v511_v15 = vmul.f32 8.0, %v11800_v2  ;;  %v7387_v17 = vld [vmem:[#allocation12 + $0xc0] sm:$0xf] }
  0x5c   :  { %990 = vmatpush.bf16.msra.mxu3 %v7404_v6  ;;  %v7536_v16 = vor.u32 %v10445_v12, %v7533_v13  ;;  %v10411_v18 = vld [vmem:[#allocation12 + $0xcc] sm:$0xf0]  ;;  %v7515_v19 = vld [vmem:[#allocation12 + $0x1c0] sm:$0xf]  ;;  %v10409_v22 = vld [vmem:[#allocation12 + $0xc4] sm:$0xf] }
  0x5d   :  { %v7388_v20 = vor.u32 %v10411_v18, %v7387_v17  ;;  %v10443_v21 = vld [vmem:[#allocation12 + $0x1cc] sm:$0xf0]  ;;  %v7389_v23 = vld [vmem:[#allocation12 + $0xd0] sm:$0xf0]  ;;  %v10441_v26 = vld [vmem:[#allocation12 + $0x1c4] sm:$0xf] }
  0x5e   :  { %474 = vmatpush.bf16.msra.mxu1 %v7252_v34  ;;  %v7516_v24 = vor.u32 %v10443_v21, %v7515_v19  ;;  %v7392_v25 = vor.u32 %v10409_v22, %v7389_v23  ;;  %v7517_v27 = vld [vmem:[#allocation12 + $0x1d0] sm:$0xf0]  ;;  %v512_v28 = vsub.f32 1.0, %v511_v15  ;;  %v7371_v31 = vld [vmem:[#allocation12 + $0xa0] sm:$0xf]  ;;  %v387_v45 = vperm.slane %v11798_v1, 1 }
  0x5f   :  { %357 = vmatpush.bf16.msra.mxu0 %v10363_v33  ;;  %487 = vmatpush.bf16.msra.mxu2 %v7256_v35  ;;  %v7520_v29 = vor.u32 %v10441_v26, %v7517_v27  ;;  %v10407_v32 = vld [vmem:[#allocation12 + $0xac] sm:$0xf0]  ;;  %v7499_v33 = vld [vmem:[#allocation12 + $0x1a0] sm:$0xf]  ;;  %v10405_v37 = vld [vmem:[#allocation12 + $0xa4] sm:$0xf] }
  0x60   :  { %991 = vmatpush.bf16.msra.mxu3 %v7388_v20  ;;  %v7372_v35 = vor.u32 %v10407_v32, %v7371_v31  ;;  %v10439_v36 = vld [vmem:[#allocation12 + $0x1ac] sm:$0xf0]  ;;  %v7373_v38 = vld [vmem:[#allocation12 + $0xb0] sm:$0xf0]  ;;  %v513_v47 = vmul.f32 %v11800_v2, %v512_v28  ;;  %v10401_v55 = vld [vmem:[#allocation12 + $0x84] sm:$0xf] }
  0x61   :  { %v7500_v39 = vor.u32 %v10439_v36, %v7499_v33  ;;  %v10403_v49 = vld [vmem:[#allocation12 + $0x8c] sm:$0xf0]  ;;  %v7339_v5 = vld [vmem:[#allocation12 + $0x60] sm:$0xf]  ;;  %v10397_v13 = vld [vmem:[#allocation12 + $0x64] sm:$0xf] }
  0x62   :  { %475 = vmatpush.bf16.msra.mxu1 %v7244_v41  ;;  %v10437_v41 = vld [vmem:[#allocation12 + $0x1a4] sm:$0xf]  ;;  %v514_v1 = vadd.f32 %v11800_v2, %v513_v47  ;;  %v10399_v6 = vld [vmem:[#allocation12 + $0x6c] sm:$0xf0]  ;;  %v7467_v7 = vld [vmem:[#allocation12 + $0x160] sm:$0xf] }
  0x63   :  { %358 = vmatpush.bf16.msra.mxu0 %v10362_v40  ;;  %488 = vmatpush.bf16.msra.mxu2 %v7248_v42  ;;  %v7376_v40 = vor.u32 %v10405_v37, %v7373_v38  ;;  %v7501_v42 = vld [vmem:[#allocation12 + $0x1b0] sm:$0xf0]  ;;  %v10431_v12 = vld [vmem:[#allocation12 + $0x16c] sm:$0xf0]  ;;  %v10429_v17 = vld [vmem:[#allocation12 + $0x164] sm:$0xf] }
  0x64   :  { %992 = vmatpush.bf16.msra.mxu3 %v7372_v35  ;;  %v7504_v46 = vor.u32 %v10437_v41, %v7501_v42  ;;  %v7468_v15 = vor.u32 %v10431_v12, %v7467_v7  ;;  %v7469_v18 = vld [vmem:[#allocation12 + $0x170] sm:$0xf0]  ;;  %v11823_v23 = vsel %vm515_vm0, %v11800_v2, %v514_v1  ;;  %v7323_v26 = vld [vmem:[#allocation12 + $0x40] sm:$0xf]  ;;  %v10395_v27 = vld [vmem:[#allocation12 + $0x4c] sm:$0xf0] }
  0x65   :  { %v7451_v28 = vld [vmem:[#allocation12 + $0x140] sm:$0xf]  ;;  %v10427_v33 = vld [vmem:[#allocation12 + $0x14c] sm:$0xf0]  ;;  %v10393_v35 = vld [vmem:[#allocation12 + $0x44] sm:$0xf]  ;;  %v7324_v37 = vor.u32 %v10395_v27, %v7323_v26 }
  0x66   :  { %476 = vmatpush.bf16.msra.mxu1 %v7236_v48  ;;  %v7355_v48 = vld [vmem:[#allocation12 + $0x80] sm:$0xf]  ;;  %v7452_v38 = vor.u32 %v10427_v33, %v7451_v28  ;;  %v7325_v2 = vld [vmem:[#allocation12 + $0x50] sm:$0xf0]  ;;  %v10385_v12 = vld [vmem:[#allocation12 + $0x4] sm:$0xf] }
  0x67   :  { %359 = vmatpush.bf16.msra.mxu0 %v10361_v43  ;;  %489 = vmatpush.bf16.msra.mxu2 %v7240_v50  ;;  %v7483_v50 = vld [vmem:[#allocation12 + $0x180] sm:$0xf]  ;;  %v7356_v53 = vor.u32 %v10403_v49, %v7355_v48  ;;  %v10391_v48 = vld [vmem:[#allocation12 + $0x2c] sm:$0xf0]  ;;  %v7437_v1 = vld [vmem:[#allocation12 + $0x130] sm:$0xf0] }
  0x68   :  { %v7307_v47 = vld [vmem:[#allocation12 + $0x20] sm:$0xf]  ;;  %v10448_v26 = vld [vmem:[#allocation12 + $0x1f4] sm:$0xf0]  ;;  %v10414_v27 = vld [vmem:[#allocation12 + $0xec] sm:$0xf] }
  0x69   :  { %993 = vmatpush.bf16.msra.mxu3 %v7356_v53  ;;  %v7435_v53 = vld [vmem:[#allocation12 + $0x120] sm:$0xf]  ;;  %v7413_v28 = vld [vmem:[#allocation12 + $0xf8] sm:$0xf0] }
  0x6a   :  { %360 = vmatmul.bf16.vlgmr.msra.gmra.mxu0 %v283_v44  ;;  %477 = vmatpush.bf16.msra.mxu1 %v7228_v54  ;;  %v10435_v54 = vld [vmem:[#allocation12 + $0x18c] sm:$0xf0]  ;;  %v7541_v33 = vld [vmem:[#allocation12 + $0x1f8] sm:$0xf0] }
  0x6b   :  { %490 = vmatpush.bf16.msra.mxu2 %v7232_v56  ;;  %1003 = vmatpush.bf16.msrb.mxu0 %v7532_v10 }
  0x6e   :  { %1016 = vmatpush.bf16.msrb.mxu1 %v7408_v11 }
  0x6f   :  { %1029 = vmatpush.bf16.msrb.mxu2 %v7536_v16  ;;  %1004 = vmatpush.bf16.msrb.mxu0 %v7516_v24  ;;  %v7341_v16 = vld [vmem:[#allocation12 + $0x70] sm:$0xf0] }
  0x70   :  { %v7344_v24 = vor.u32 %v10397_v13, %v7341_v16  ;;  %v7421_v16 = vld [vmem:[#allocation12 + $0x110] sm:$0xf0] }
  0x72   :  { %1017 = vmatpush.bf16.msrb.mxu1 %v7392_v25  ;;  %v7472_v25 = vor.u32 %v10429_v17, %v7469_v18 }
  0x73   :  { %1030 = vmatpush.bf16.msrb.mxu2 %v7520_v29  ;;  %1005 = vmatpush.bf16.msrb.mxu0 %v7500_v39  ;;  %v10425_v39 = vld [vmem:[#allocation12 + $0x144] sm:$0xf] }
  0x76   :  { %1018 = vmatpush.bf16.msrb.mxu1 %v7376_v40  ;;  %v7453_v40 = vld [vmem:[#allocation12 + $0x150] sm:$0xf0] }
  0x77   :  { %1031 = vmatpush.bf16.msrb.mxu2 %v7504_v46  ;;  %v7456_v46 = vor.u32 %v10425_v39, %v7453_v40 }
  0xe7   :  { %v361_v58 = vpop.f32.mrf.mxu0 }
  0xe8   :  { %v362_v59 = vadd.f32 %v11180_v57, %v361_v58  ;;  %v7484_v57 = vor.u32 %v10435_v54, %v7483_v50  ;;  %v7357_v58 = vld [vmem:[#allocation12 + $0x90] sm:$0xf0]  ;;  %v10423_v54 = vld [vmem:[#allocation12 + $0x12c] sm:$0xf0] }
  0xe9   :  { %v7360_v0 = vor.u32 %v10401_v55, %v7357_v58  ;;  %v7308_v55 = vor.u32 %v10391_v48, %v7307_v47  ;;  %v7309_v58 = vld [vmem:[#allocation12 + $0x30] sm:$0xf0]  ;;  %v7525_v47 = vld [vmem:[#allocation12 + $0x1d8] sm:$0xf0]  ;;  %v7379_v48 = vld [vmem:[#allocation12 + $0xa8] sm:$0xf] }
  0xea   :  { %v365_v60 = vmul.f32 0.2, %v362_v59  ;;  %1006 = vmatpush.bf16.msrb.mxu0 %v7484_v57  ;;  %v10389_v57 = vld [vmem:[#allocation12 + $0x24] sm:$0xf] }
  0xeb   :  { %1019 = vmatpush.bf16.msrb.mxu1 %v7360_v0  ;;  %v7312_v0 = vor.u32 %v10389_v57, %v7309_v58  ;;  %v10438_v57 = vld [vmem:[#allocation12 + $0x1ac] sm:$0xf] }
  0xec   :  { %v366_v61 = vmax.f32 %v362_v59, %v365_v60  ;;  %v10433_v59 = vld [vmem:[#allocation12 + $0x184] sm:$0xf]  ;;  %v7485_v60 = vld [vmem:[#allocation12 + $0x190] sm:$0xf0] }
  0xed   :  { %v7488_v4 = vor.u32 %v10433_v59, %v7485_v60  ;;  %v10421_v59 = vld [vmem:[#allocation12 + $0x124] sm:$0xf] }
  0xee   :  { %v367_v62 = vpack.c.bf16 %v366_v61, %v366_v61  ;;  %1007 = vmatpush.bf16.msrb.mxu0 %v7468_v15  ;;  %v10417_v15 = vld [vmem:[#allocation12 + $0x104] sm:$0xf] }
  0xef   :  { %v363_v63 = vpop.f32.mrf.mxu0  ;;  %1032 = vmatpush.bf16.msrb.mxu2 %v7488_v4  ;;  %1020 = vmatpush.bf16.msrb.mxu1 %v7344_v24  ;;  %v7291_v4 = vld [vmem:[#allocation12] sm:$0xf]  ;;  %v7424_v24 = vor.u32 %v10417_v15, %v7421_v16 }
  0xf0   :  { %478 = vmatmul.bf16.vlgmr.msra.gmra.mxu1 %v367_v62  ;;  %491 = vmatmul.bf16.vlgmr.msra.gmra.mxu2 %v367_v62 }
  0xf2   :  { %1008 = vmatpush.bf16.msrb.mxu0 %v7452_v38  ;;  %v7523_v38 = vld [vmem:[#allocation12 + $0x1c8] sm:$0xf] }
  0xf3   :  { %1033 = vmatpush.bf16.msrb.mxu2 %v7472_v25 }
  0xf7   :  { %1034 = vmatpush.bf16.msrb.mxu2 %v7456_v46  ;;  %v10442_v46 = vld [vmem:[#allocation12 + $0x1cc] sm:$0xf] }
 0x16d   :  { %v479_v30 = vpop.f32.mrf.mxu1 }
 0x16e   :  { %v11804_v34 = vadd.f32 %v479_v30, %v386_v14  ;;  %v7340_v14 = vor.u32 %v10399_v6, %v7339_v5  ;;  %v10387_v5 = vld [vmem:[#allocation12 + $0xc] sm:$0xf0]  ;;  %v7419_v6 = vld [vmem:[#allocation12 + $0x100] sm:$0xf] }
 0x170   :  { %v498_v43 = vrot.slane %v11804_v34, 4  ;;  %v519_v44 = vmul.f32 %v11804_v34, %v11804_v34  ;;  %994 = vmatpush.bf16.msra.mxu3 %v7340_v14  ;;  %v7293_v14 = vld [vmem:[#allocation12 + $0x10] sm:$0xf0] }
 0x172   :  { %v499_v51 = vadd.f32 %v498_v43, %v11804_v34  ;;  %v521_v52 = vrot.slane %v519_v44, 4 }
 0x173   :  { %v492_v56 = vpop.f32.mrf.mxu2 }
 0x174   :  { %v500_v61 = vrot.slane %v499_v51, 2  ;;  %v522_v62 = vadd.f32 %v521_v52, %v519_v44  ;;  %v11812_v63 = vadd.f32 %v492_v56, %v387_v45  ;;  %995 = vmatpush.bf16.msra.mxu3 %v7324_v37  ;;  %v7328_v45 = vor.u32 %v10393_v35, %v7325_v2  ;;  %v7395_v35 = vld [vmem:[#allocation12 + $0xc8] sm:$0xf]  ;;  %v10412_v37 = vld [vmem:[#allocation12 + $0xd4] sm:$0xf0] }
 0x175   :  { %v481_v3 = vpop.f32.mrf.mxu1  ;;  %v7436_v56 = vor.u32 %v10423_v54, %v7435_v53  ;;  %v10444_v2 = vld [vmem:[#allocation12 + $0x1d4] sm:$0xf0]  ;;  %v7396_v40 = vor.u32 %v10412_v37, %v7395_v35 }
 0x176   :  { %v501_v8 = vadd.f32 %v500_v61, %v499_v51  ;;  %v523_v9 = vrot.slane %v522_v62, 2  ;;  %v504_v10 = vrot.slane %v11812_v63, 4  ;;  %v520_v11 = vmul.f32 %v11812_v63, %v11812_v63  ;;  %1021 = vmatpush.bf16.msrb.mxu1 %v7328_v45  ;;  %v10440_v53 = vld [vmem:[#allocation12 + $0x1b4] sm:$0xf0] }
 0x177   :  { %1009 = vmatpush.bf16.msrb.mxu0 %v7436_v56  ;;  %v7440_v3 = vor.u32 %v10421_v59, %v7437_v1  ;;  %v7381_v56 = vld [vmem:[#allocation12 + $0xb8] sm:$0xf0]  ;;  %v10396_v37 = vld [vmem:[#allocation12 + $0x54] sm:$0xf0] }
 0x178   :  { %v502_v19 = vrot.slane %v501_v8, 1  ;;  %v524_v20 = vadd.f32 %v523_v9, %v522_v62  ;;  %v505_v21 = vadd.f32 %v504_v10, %v11812_v63  ;;  %v527_v22 = vrot.slane %v520_v11, 4  ;;  %996 = vmatpush.bf16.msra.mxu3 %v7308_v55  ;;  %v10406_v55 = vld [vmem:[#allocation12 + $0xac] sm:$0xf] }
 0x179   :  { %v7292_v10 = vor.u32 %v10387_v5, %v7291_v4  ;;  %1035 = vmatpush.bf16.msrb.mxu2 %v7440_v3  ;;  %v10404_v3 = vld [vmem:[#allocation12 + $0x94] sm:$0xf0]  ;;  %v7491_v4 = vld [vmem:[#allocation12 + $0x188] sm:$0xf] }
 0x17a   :  { %v503_v29 = vadd.f32 %v502_v19, %v501_v8  ;;  %v525_v30 = vrot.slane %v524_v20, 1  ;;  %v506_v31 = vrot.slane %v505_v21, 2  ;;  %v528_v32 = vadd.f32 %v527_v22, %v520_v11  ;;  %v10419_v11 = vld [vmem:[#allocation12 + $0x10c] sm:$0xf0]  ;;  %1022 = vmatpush.bf16.msrb.mxu1 %v7312_v0  ;;  %v7411_v19 = vld [vmem:[#allocation12 + $0xe8] sm:$0xf] }
 0x17b   :  { %v494_v36 = vpop.f32.mrf.mxu2  ;;  %v7420_v13 = vor.u32 %v10419_v11, %v7419_v6  ;;  %v7296_v22 = vor.u32 %v10385_v12, %v7293_v14  ;;  %v7384_v0 = vor.u32 %v10406_v55, %v7381_v56  ;;  %v10436_v5 = vld [vmem:[#allocation12 + $0x194] sm:$0xf0]  ;;  %v10402_v6 = vld [vmem:[#allocation12 + $0x8c] sm:$0xf]  ;;  %v7493_v12 = vld [vmem:[#allocation12 + $0x198] sm:$0xf0] }
 0x17c   :  { %v11826_v41 = vmul.f32 %v11823_v23, %v503_v29  ;;  %v526_v42 = vadd.f32 %v525_v30, %v524_v20  ;;  %v507_v43 = vadd.f32 %v506_v31, %v505_v21  ;;  %v529_v44 = vrot.slane %v528_v32, 2  ;;  %v10416_v20 = vld [vmem:[#allocation12 + $0xf4] sm:$0xf0]  ;;  %v7539_v21 = vld [vmem:[#allocation12 + $0x1e8] sm:$0xf]  ;;  %997 = vmatpush.bf16.msra.mxu3 %v7292_v10 }
 0x17d   :  { %1010 = vmatpush.bf16.msrb.mxu0 %v7420_v13  ;;  %v7412_v25 = vor.u32 %v10416_v20, %v7411_v19  ;;  %v7540_v30 = vor.u32 %v10448_v26, %v7539_v21  ;;  %v7416_v31 = vor.u32 %v10414_v27, %v7413_v28  ;;  %1036 = vmatpush.bf16.msrb.mxu2 %v7424_v24  ;;  %v10434_v10 = vld [vmem:[#allocation12 + $0x18c] sm:$0xf]  ;;  %v7347_v21 = vld [vmem:[#allocation12 + $0x68] sm:$0xf]  ;;  %v10432_v26 = vld [vmem:[#allocation12 + $0x174] sm:$0xf0] }
 0x17e   :  { %v533_v49 = vmul.f32 %v526_v42, %v11823_v23  ;;  %v535_v50 = vmul.f32 %v11826_v41, %v11826_v41  ;;  %v508_v51 = vrot.slane %v507_v43, 1  ;;  %v530_v52 = vadd.f32 %v529_v44, %v528_v32  ;;  %v10446_v32 = vld [vmem:[#allocation12 + $0x1ec] sm:$0xf]  ;;  %1023 = vmatpush.bf16.msrb.mxu1 %v7296_v22  ;;  %v7397_v44 = vld [vmem:[#allocation12 + $0xd8] sm:$0xf0] }
 0x17f   :  { %v7544_v36 = vor.u32 %v10446_v32, %v7541_v33  ;;  %v7524_v42 = vor.u32 %v10444_v2, %v7523_v38  ;;  %v7492_v15 = vor.u32 %v10436_v5, %v7491_v4  ;;  %v10400_v22 = vld [vmem:[#allocation12 + $0x74] sm:$0xf0]  ;;  %v7475_v24 = vld [vmem:[#allocation12 + $0x168] sm:$0xf]  ;;  %v10398_v27 = vld [vmem:[#allocation12 + $0x6c] sm:$0xf] }
 0x180   :  { %v537_v60 = vsub.f32 %v533_v49, %v535_v50  ;;  %v509_v61 = vadd.f32 %v508_v51, %v507_v43  ;;  %v531_v62 = vrot.slane %v530_v52, 1  ;;  %1042 = vmatpush.bf16.msrb.mxu3 %v7412_v25  ;;  %v10410_v43 = vld [vmem:[#allocation12 + $0xcc] sm:$0xf]  ;;  %v7528_v50 = vor.u32 %v10442_v46, %v7525_v47  ;;  %v10408_v51 = vld [vmem:[#allocation12 + $0xb4] sm:$0xf0] }
 0x181   :  { %1055 = vmatpush.bf16.msra.mxu0 %v7540_v30  ;;  %1081 = vmatpush.bf16.msra.mxu2 %v7544_v36  ;;  %v7400_v45 = vor.u32 %v10410_v43, %v7397_v44  ;;  %v7380_v58 = vor.u32 %v10408_v51, %v7379_v48  ;;  %v7348_v25 = vor.u32 %v10400_v22, %v7347_v21  ;;  %v7349_v28 = vld [vmem:[#allocation12 + $0x78] sm:$0xf0]  ;;  %v10430_v32 = vld [vmem:[#allocation12 + $0x16c] sm:$0xf]  ;;  %v7331_v36 = vld [vmem:[#allocation12 + $0x48] sm:$0xf] }
 0x182   :  { %v11831_v7 = vadd.f32 0.8, %v537_v60  ;;  %v11834_v8 = vmul.f32 %v11823_v23, %v509_v61  ;;  %v532_v9 = vadd.f32 %v531_v62, %v530_v52  ;;  %1068 = vmatpush.bf16.msra.mxu1 %v7416_v31  ;;  %v7507_v52 = vld [vmem:[#allocation12 + $0x1a8] sm:$0xf]  ;;  %v7509_v60 = vld [vmem:[#allocation12 + $0x1b8] sm:$0xf0]  ;;  %v7476_v30 = vor.u32 %v10432_v26, %v7475_v24 }
 0x183   :  { %v7508_v59 = vor.u32 %v10440_v53, %v7507_v52  ;;  %v7363_v61 = vld [vmem:[#allocation12 + $0x88] sm:$0xf]  ;;  %v7512_v1 = vor.u32 %v10438_v57, %v7509_v60  ;;  %v7352_v31 = vor.u32 %v10398_v27, %v7349_v28  ;;  %v7477_v33 = vld [vmem:[#allocation12 + $0x178] sm:$0xf0]  ;;  %v10394_v43 = vld [vmem:[#allocation12 + $0x4c] sm:$0xf] }
 0x184   :  { %11183 = vrsqrt.f32 %v11831_v7  ;;  %v534_v17 = vmul.f32 %v532_v9, %v11823_v23  ;;  %v536_v18 = vmul.f32 %v11834_v8, %v11834_v8  ;;  %1043 = vmatpush.bf16.msrb.mxu3 %v7396_v40  ;;  %v7365_v9 = vld [vmem:[#allocation12 + $0x98] sm:$0xf0]  ;;  %v7364_v14 = vor.u32 %v10404_v3, %v7363_v61  ;;  %v7459_v38 = vld [vmem:[#allocation12 + $0x148] sm:$0xf]  ;;  %v10426_v47 = vld [vmem:[#allocation12 + $0x14c] sm:$0xf] }
 0x185   :  { %1056 = vmatpush.bf16.msra.mxu0 %v7524_v42  ;;  %1082 = vmatpush.bf16.msra.mxu2 %v7528_v50  ;;  %v7480_v35 = vor.u32 %v10430_v32, %v7477_v33  ;;  %v10428_v42 = vld [vmem:[#allocation12 + $0x154] sm:$0xf0]  ;;  %v7461_v48 = vld [vmem:[#allocation12 + $0x158] sm:$0xf0]  ;;  %v7315_v53 = vld [vmem:[#allocation12 + $0x28] sm:$0xf]  ;;  %vm547_vm5 = vweird.f32 %v11831_v7 }
 0x186   :  { %v538_v29 = vsub.f32 %v534_v17, %v536_v18  ;;  %1069 = vmatpush.bf16.msra.mxu1 %v7400_v45  ;;  %v7368_v17 = vor.u32 %v10402_v6, %v7365_v9  ;;  %v7496_v18 = vor.u32 %v10434_v10, %v7493_v12  ;;  %v7332_v45 = vor.u32 %v10396_v37, %v7331_v36  ;;  %v7443_v55 = vld [vmem:[#allocation12 + $0x128] sm:$0xf]  ;;  %v496_v56 = vld [vmem:[#allocation9] sm:$0x3]  ;;  %v10424_v57 = vld [vmem:[#allocation12 + $0x134] sm:$0xf0] }
 0x187   :  { %v7460_v46 = vor.u32 %v10428_v42, %v7459_v38  ;;  %v7464_v52 = vor.u32 %v10426_v47, %v7461_v48  ;;  %v10422_v61 = vld [vmem:[#allocation12 + $0x12c] sm:$0xf]  ;;  %v7444_v4 = vor.u32 %v10424_v57, %v7443_v55  ;;  %v7299_v5 = vld [vmem:[#allocation12 + $0x8] sm:$0xf]  ;;  %v10420_v12 = vld [vmem:[#allocation12 + $0x114] sm:$0xf0] }
 0x188   :  { %v11840_v39 = vadd.f32 0.8, %v538_v29  ;;  %1044 = vmatpush.bf16.msrb.mxu3 %v7380_v58  ;;  %v10390_v58 = vld [vmem:[#allocation12 + $0x2c] sm:$0xf]  ;;  %v497_v27 = vld [vmem:[#allocation10] sm:$0x3] }
 0x189   :  { %1057 = vmatpush.bf16.msra.mxu0 %v7508_v59  ;;  %1083 = vmatpush.bf16.msra.mxu2 %v7512_v1  ;;  %v7317_v59 = vld [vmem:[#allocation12 + $0x38] sm:$0xf0]  ;;  %v8283_v47 = vld [vmem:[#allocation18 + $0x5c0] sm:$0xf] }
 0x18a   :  { %v11842_v49 = vpop.eup %11183  ;;  %11185 = vrsqrt.f32 %v11840_v39  ;;  %1070 = vmatpush.bf16.msra.mxu1 %v7384_v0  ;;  %vm557_vm2 = vweird.f32 %v11840_v39  ;;  %v7320_v9 = vor.u32 %v10390_v58, %v7317_v59  ;;  %v10637_v48 = vld [vmem:[#allocation18 + $0x5dc] sm:$0xf0] }
 0x18b   :  { %v542_v54 = vmul.f32 %v11842_v49, %v11831_v7  ;;  %vm548_vm4 = vweird.f32 %v11842_v49  ;;  %v10388_v7 = vld [vmem:[#allocation12 + $0x14] sm:$0xf0]  ;;  %v7739_v58 = vld [vmem:[#allocation18 + $0x180] sm:$0xf] }
 0x18c   :  { %1045 = vmatpush.bf16.msrb.mxu3 %v7364_v14  ;;  %vm11870_vm7 = vmor %vm547_vm5, %vm548_vm4  ;;  %v10501_v59 = vld [vmem:[#allocation18 + $0x19c] sm:$0xf0]  ;;  %vm1216_vm4 = vcmask 1042434   ;;  %vm1218_vm5 = vcmask 1041408  }
 0x18d   :  { %v543_v62 = vmul.f32 %v11842_v49, %v542_v54  ;;  %1058 = vmatpush.bf16.msra.mxu0 %v7492_v15  ;;  %1084 = vmatpush.bf16.msra.mxu2 %v7496_v18  ;;  %v10392_v54 = vld [vmem:[#allocation12 + $0x34] sm:$0xf0]  ;;  %v7301_v15 = vld [vmem:[#allocation12 + $0x18] sm:$0xf0]  ;;  %v8251_v0 = vld [vmem:[#allocation18 + $0x580] sm:$0xf] }
 0x18e   :  { %1071 = vmatpush.bf16.msra.mxu1 %v7368_v17  ;;  %v7316_v3 = vor.u32 %v10392_v54, %v7315_v53  ;;  %v7429_v17 = vld [vmem:[#allocation12 + $0x118] sm:$0xf0]  ;;  %v8539_v53 = vld [vmem:[#allocation18 + $0x7c0] sm:$0xf] }
 0x18f   :  { %v544_v11 = vmul.f32 0.5, %v543_v62  ;;  %v7445_v62 = vld [vmem:[#allocation12 + $0x138] sm:$0xf0]  ;;  %v10701_v54 = vld [vmem:[#allocation18 + $0x7dc] sm:$0xf0] }
 0x190   :  { %v11848_v13 = vpop.eup %11185  ;;  %1046 = vmatpush.bf16.msrb.mxu3 %v7348_v25  ;;  %v7448_v10 = vor.u32 %v10422_v61, %v7445_v62  ;;  %v8540_v57 = vor.u32 %v10701_v54, %v8539_v53  ;;  %v7740_v61 = vor.u32 %v10501_v59, %v7739_v58  ;;  %v10565_v62 = vld [vmem:[#allocation18 + $0x39c] sm:$0xf0] }
 0x191   :  { %v552_v16 = vmul.f32 %v11848_v13, %v11840_v39  ;;  %v545_v19 = vsub.f32 1.5, %v544_v11  ;;  %vm558_vm1 = vweird.f32 %v11848_v13  ;;  %1059 = vmatpush.bf16.msra.mxu0 %v7476_v30  ;;  %v7333_v39 = vld [vmem:[#allocation12 + $0x58] sm:$0xf0]  ;;  %1085 = vmatpush.bf16.msra.mxu2 %v7480_v35  ;;  %v7427_v11 = vld [vmem:[#allocation12 + $0x108] sm:$0xf] }
 0x192   :  { %vm11857_vm3 = vmor %vm557_vm2, %vm558_vm1  ;;  %1072 = vmatpush.bf16.msra.mxu1 %v7352_v31  ;;  %v7336_v51 = vor.u32 %v10394_v43, %v7333_v39  ;;  %v10573_v39 = vld [vmem:[#allocation18 + $0x3dc] sm:$0xf0] }
 0x193   :  { %v553_v20 = vmul.f32 %v11848_v13, %v552_v16  ;;  %v546_v44 = vmul.f32 %v11842_v49, %v545_v19  ;;  %v10418_v16 = vld [vmem:[#allocation12 + $0x10c] sm:$0xf]  ;;  %v7300_v19 = vor.u32 %v10388_v7, %v7299_v5 }
 0x194   :  { %1047 = vmatpush.bf16.msrb.mxu3 %v7332_v45  ;;  %v7432_v24 = vor.u32 %v10418_v16, %v7429_v17  ;;  %v8507_v5 = vld [vmem:[#allocation18 + $0x780] sm:$0xf] }
 0x195   :  { %v554_v29 = vmul.f32 0.5, %v553_v20  ;;  %1060 = vmatpush.bf16.msra.mxu0 %v7460_v46  ;;  %v550_v6 = vsel %vm11870_vm7, %v11842_v49, %v546_v44  ;;  %1086 = vmatpush.bf16.msra.mxu2 %v7464_v52  ;;  %v7428_v20 = vor.u32 %v10420_v12, %v7427_v11  ;;  %v8027_v44 = vld [vmem:[#allocation18 + $0x3c0] sm:$0xf]  ;;  %v8284_v52 = vor.u32 %v10637_v48, %v8283_v47 }
 0x196   :  { %1073 = vmatpush.bf16.msra.mxu1 %v7336_v51  ;;  %v8028_v51 = vor.u32 %v10573_v39, %v8027_v44  ;;  %v10693_v7 = vld [vmem:[#allocation18 + $0x79c] sm:$0xf0] }
 0x197   :  { %v555_v2 = vsub.f32 1.5, %v554_v29  ;;  %v8443_v47 = vld [vmem:[#allocation18 + $0x700] sm:$0xf] }
 0x198   :  { %1048 = vmatpush.bf16.msrb.mxu3 %v7316_v3  ;;  %v10677_v48 = vld [vmem:[#allocation18 + $0x71c] sm:$0xf0] }
 0x199   :  { %v556_v50 = vmul.f32 %v11848_v13, %v555_v2  ;;  %1061 = vmatpush.bf16.msra.mxu0 %v7444_v4  ;;  %1087 = vmatpush.bf16.msra.mxu2 %v7448_v10  ;;  %v8508_v10 = vor.u32 %v10693_v7, %v8507_v5  ;;  %v8444_v53 = vor.u32 %v10677_v48, %v8443_v47  ;;  %v7643_v54 = vld [vmem:[#allocation18 + $0xc0] sm:$0xf] }
 0x19a   :  { %1074 = vmatpush.bf16.msra.mxu1 %v7320_v9  ;;  %v10605_v5 = vld [vmem:[#allocation18 + $0x4dc] sm:$0xf0] }
 0x19b   :  { %v560_v60 = vsel %vm11857_vm3, %v11848_v13, %v556_v50  ;;  %v10386_v13 = vld [vmem:[#allocation12 + $0xc] sm:$0xf] }
 0x19c   :  { %v563_v1 = vrot.slane %v560_v60, 7  ;;  %v7304_v49 = vor.u32 %v10386_v13, %v7301_v15  ;;  %1049 = vmatpush.bf16.msrb.mxu3 %v7300_v19  ;;  %v7995_v60 = vld [vmem:[#allocation18 + $0x380] sm:$0xf] }
 0x19d   :  { %1062 = vmatpush.bf16.msra.mxu0 %v7428_v20  ;;  %1088 = vmatpush.bf16.msra.mxu2 %v7432_v24  ;;  %v7996_v3 = vor.u32 %v10565_v62, %v7995_v60  ;;  %v7707_v13 = vld [vmem:[#allocation18 + $0x140] sm:$0xf] }
 0x19e   :  { %v565_v14 = vsel %vm564_vm6, %v550_v6, %v563_v1  ;;  %1075 = vmatpush.bf16.msra.mxu1 %v7304_v49  ;;  %v10629_v1 = vld [vmem:[#allocation18 + $0x59c] sm:$0xf0] }
 0x19f   :  { %v567_v18 = vmul.f32 %v565_v14, %v496_v56  ;;  %v8252_v4 = vor.u32 %v10629_v1, %v8251_v0  ;;  %v10493_v14 = vld [vmem:[#allocation18 + $0x15c] sm:$0xf0] }
 0x1a0   :  { %v7963_v15 = vld [vmem:[#allocation18 + $0x340] sm:$0xf] }
 0x1a1   :  { %v570_v21 = vperm.slane %v567_v18, 1  ;;  %v569_v22 = vperm.slane %v567_v18, 0  ;;  %v7708_v18 = vor.u32 %v10493_v14, %v7707_v13  ;;  %v10557_v19 = vld [vmem:[#allocation18 + $0x35c] sm:$0xf0] }
 0x1a2   :  { %v8219_v20 = vld [vmem:[#allocation18 + $0x540] sm:$0xf]  ;;  %v7964_v24 = vor.u32 %v10557_v19, %v7963_v15 }
 0x1a3   :  { %v574_v25 = vmul.f32 %v570_v21, %v11834_v8  ;;  %v573_v28 = vmul.f32 %v569_v22, %v11826_v41  ;;  %v582_v31 = vmul.f32 %v570_v21, %v11812_v63  ;;  %v581_v32 = vmul.f32 %v569_v22, %v11804_v34  ;;  %v11883_v63 = vld [vmem:[#allocation13] sm:$0xf]  ;;  %v7771_v34 = vld [vmem:[#allocation18 + $0x1c0] sm:$0xf] }
 0x1a4   :  { %v10509_v41 = vld [vmem:[#allocation18 + $0x1dc] sm:$0xf0]  ;;  %v663_v55 = vperm.slane %v11883_v63, 1  ;;  %v662_v56 = vperm.slane %v11883_v63, 0  ;;  %v664_v15 = vperm.slane %v11883_v63, 2 }
 0x1a5   :  { %v577_v26 = vrot.slane %v574_v25, 7  ;;  %v7772_v46 = vor.u32 %v10509_v41, %v7771_v34  ;;  %v10621_v21 = vld [vmem:[#allocation18 + $0x55c] sm:$0xf0] }
 0x1a6   :  { %v8220_v25 = vor.u32 %v10621_v21, %v8219_v20  ;;  %v8187_v34 = vld [vmem:[#allocation18 + $0x500] sm:$0xf] }
 0x1a7   :  { %v578_v29 = vsel %vm564_vm6, %v573_v28, %v577_v26  ;;  %v8475_v26 = vld [vmem:[#allocation18 + $0x740] sm:$0xf] }
 0x1a8   :  { %v580_v30 = vsub.f32 %v497_v27, %v578_v29  ;;  %v10685_v27 = vld [vmem:[#allocation18 + $0x75c] sm:$0xf0] }
 0x1a9   :  { %v10613_v41 = vld [vmem:[#allocation18 + $0x51c] sm:$0xf0] }
 0x1aa   :  { %v584_v33 = vperm.slane %v580_v30, 0  ;;  %v585_v35 = vperm.slane %v580_v30, 1  ;;  %v8476_v30 = vor.u32 %v10685_v27, %v8475_v26  ;;  %v8188_v39 = vor.u32 %v10613_v41, %v8187_v34  ;;  %v7899_v60 = vld [vmem:[#allocation18 + $0x2c0] sm:$0xf] }
 0x1ab   :  { %v10469_v19 = vld [vmem:[#allocation18 + $0x9c] sm:$0xf0] }
 0x1ac   :  { %v588_v36 = vadd.f32 %v584_v33, %v581_v32  ;;  %v589_v37 = vadd.f32 %v585_v35, %v582_v31  ;;  %v7675_v33 = vld [vmem:[#allocation18 + $0x100] sm:$0xf] }
 0x1ad   :  { %v10485_v35 = vld [vmem:[#allocation18 + $0x11c] sm:$0xf0] }
 0x1ae   :  { %v590_v8 = vmul.f32 0.2, %v588_v36  ;;  %v591_v38 = vmul.f32 0.2, %v589_v37  ;;  %v10461_v34 = vld [vmem:[#allocation18 + $0x5c] sm:$0xf0] }
 0x1af   :  { %v7835_v41 = vld [vmem:[#allocation18 + $0x240] sm:$0xf] }
 0x1b0   :  { %v592_v2 = vmax.f32 %v588_v36, %v590_v8  ;;  %v593_v40 = vmax.f32 %v589_v37, %v591_v38  ;;  %v7676_v8 = vor.u32 %v10485_v35, %v7675_v33  ;;  %v7931_v38 = vld [vmem:[#allocation18 + $0x300] sm:$0xf] }
 0x1b1   :  { %v10525_v48 = vld [vmem:[#allocation18 + $0x25c] sm:$0xf0] }
 0x1b2   :  { %v594_v42 = vpack.c.bf16 %v592_v2, %v592_v2  ;;  %v595_v43 = vpack.c.bf16 %v593_v40, %v593_v40  ;;  %v10549_v2 = vld [vmem:[#allocation18 + $0x31c] sm:$0xf0] }
 0x1b4   :  { %998 = vmatmul.bf16.vlgmr.msra.gmra.mxu3 %v594_v42  ;;  %1011 = vmatmul.bf16.vlgmr.msrb.gmra.mxu0 %v595_v43 }
 0x1b5   :  { %1024 = vmatmul.bf16.vlgmr.msrb.gmra.mxu1 %v594_v42  ;;  %1037 = vmatmul.bf16.vlgmr.msrb.gmra.mxu2 %v595_v43 }
 0x1b6   :  { %2830 = vmatpush.bf16.msra.mxu3 %v7772_v46  ;;  %2843 = vmatpush.bf16.msrb.mxu0 %v8028_v51 }
 0x1b7   :  { %2856 = vmatpush.bf16.msrb.mxu1 %v8284_v52  ;;  %2869 = vmatpush.bf16.msrb.mxu2 %v8540_v57 }
 0x1ba   :  { %2831 = vmatpush.bf16.msra.mxu3 %v7740_v61  ;;  %2844 = vmatpush.bf16.msrb.mxu0 %v7996_v3  ;;  %v10541_v61 = vld [vmem:[#allocation18 + $0x2dc] sm:$0xf0] }
 0x1bb   :  { %2857 = vmatpush.bf16.msrb.mxu1 %v8252_v4  ;;  %2870 = vmatpush.bf16.msrb.mxu2 %v8508_v10  ;;  %v7900_v3 = vor.u32 %v10541_v61, %v7899_v60  ;;  %v8155_v4 = vld [vmem:[#allocation18 + $0x4c0] sm:$0xf] }
 0x1bc   :  { %v8156_v10 = vor.u32 %v10605_v5, %v8155_v4  ;;  %v7547_v5 = vld [vmem:[#allocation18] sm:$0xf] }
 0x1be   :  { %2832 = vmatpush.bf16.msra.mxu3 %v7708_v18  ;;  %2845 = vmatpush.bf16.msrb.mxu0 %v7964_v24  ;;  %v7611_v18 = vld [vmem:[#allocation18 + $0x80] sm:$0xf] }
 0x1bf   :  { %2858 = vmatpush.bf16.msrb.mxu1 %v8220_v25  ;;  %2871 = vmatpush.bf16.msrb.mxu2 %v8476_v30  ;;  %v7867_v24 = vld [vmem:[#allocation18 + $0x280] sm:$0xf] }
 0x1c0   :  { %v10533_v25 = vld [vmem:[#allocation18 + $0x29c] sm:$0xf0] }
 0x1c1   :  { %v10597_v30 = vld [vmem:[#allocation18 + $0x49c] sm:$0xf0] }
 0x1c2   :  { %2833 = vmatpush.bf16.msra.mxu3 %v7676_v8 }
 0x1c3   :  { %2859 = vmatpush.bf16.msrb.mxu1 %v8188_v39  ;;  %2872 = vmatpush.bf16.msrb.mxu2 %v8444_v53 }
 0x1c4   :  { %1050 = vmatmul.bf16.vlgmr.msrb.gmra.mxu3 %v594_v42  ;;  %1063 = vmatmul.bf16.vlgmr.msra.gmra.mxu0 %v595_v43 }
 0x1c5   :  { %1076 = vmatmul.bf16.vlgmr.msra.gmra.mxu1 %v594_v42  ;;  %1089 = vmatmul.bf16.vlgmr.msra.gmra.mxu2 %v595_v43  ;;  %v7932_v43 = vor.u32 %v10549_v2, %v7931_v38 }
 0x1c7   :  { %2846 = vmatpush.bf16.msrb.mxu0 %v7932_v43  ;;  %2860 = vmatpush.bf16.msrb.mxu1 %v8156_v10  ;;  %v7579_v43 = vld [vmem:[#allocation18 + $0x40] sm:$0xf] }
 0x1c8   :  { %v7580_v47 = vor.u32 %v10461_v34, %v7579_v43  ;;  %v10569_v43 = vld [vmem:[#allocation18 + $0x3c4] sm:$0xf] }
 0x1c9   :  { %v8029_v34 = vld [vmem:[#allocation18 + $0x3e0] sm:$0xf0] }
 0x1cb   :  { %2847 = vmatpush.bf16.msrb.mxu0 %v7900_v3 }
 0x231   :  { %v1012_v45 = vpop.f32.mrf.mxu0 }
 0x232   :  { %v1025_v50 = vpop.f32.mrf.mxu1 }
 0x233   :  { %v1026_v6 = vadd.f32 %v1025_v50, %v663_v55  ;;  %v10477_v55 = vld [vmem:[#allocation18 + $0xdc] sm:$0xf0] }
 0x234   :  { %v7644_v59 = vor.u32 %v10477_v55, %v7643_v54 }
 0x236   :  { %2834 = vmatpush.bf16.msra.mxu3 %v7644_v59  ;;  %v10653_v59 = vld [vmem:[#allocation18 + $0x65c] sm:$0xf0] }
 0x237   :  { %v999_v9 = vpop.f32.mrf.mxu3 }
 0x238   :  { %v1000_v11 = vadd.f32 %v999_v9, %v662_v56  ;;  %v1038_v12 = vpop.f32.mrf.mxu2  ;;  %v665_v9 = vperm.slane %v11883_v63, 3 }
 0x239   :  { %v11887_v16 = vadd.f32 %v1038_v12, %v1026_v6  ;;  %v1014_v17 = vpop.f32.mrf.mxu0  ;;  %v10669_v12 = vld [vmem:[#allocation18 + $0x6dc] sm:$0xf0] }
 0x23a   :  { %v11889_v22 = vadd.f32 %v1012_v45, %v1000_v11  ;;  %v1027_v49 = vpop.f32.mrf.mxu1  ;;  %v8411_v11 = vld [vmem:[#allocation18 + $0x6c0] sm:$0xf] }
 0x23b   :  { %v1102_v28 = vrot.slane %v11887_v16, 4  ;;  %v1125_v29 = vmul.f32 %v11887_v16, %v11887_v16  ;;  %v8412_v17 = vor.u32 %v10669_v12, %v8411_v11  ;;  %v7612_v49 = vor.u32 %v10469_v19, %v7611_v18 }
 0x23c   :  { %v1096_v31 = vrot.slane %v11889_v22, 4  ;;  %v1124_v32 = vmul.f32 %v11889_v22, %v11889_v22 }
 0x23d   :  { %v1103_v36 = vadd.f32 %v1102_v28, %v11887_v16  ;;  %v1134_v37 = vrot.slane %v1125_v29, 4  ;;  %2873 = vmatpush.bf16.msrb.mxu2 %v8412_v17  ;;  %v7868_v28 = vor.u32 %v10533_v25, %v7867_v24  ;;  %2835 = vmatpush.bf16.msra.mxu3 %v7612_v49  ;;  %v8059_v25 = vld [vmem:[#allocation18 + $0x400] sm:$0xf] }
 0x23e   :  { %v1097_v40 = vadd.f32 %v1096_v31, %v11889_v22  ;;  %v1128_v42 = vrot.slane %v1124_v32, 4 }
 0x23f   :  { %v1104_v44 = vrot.slane %v1103_v36, 2  ;;  %v1135_v45 = vadd.f32 %v1134_v37, %v1125_v29  ;;  %v1001_v46 = vpop.f32.mrf.mxu3  ;;  %v8123_v29 = vld [vmem:[#allocation18 + $0x480] sm:$0xf]  ;;  %2848 = vmatpush.bf16.msrb.mxu0 %v7868_v28 }
 0x240   :  { %v1098_v50 = vrot.slane %v1097_v40, 2  ;;  %v1129_v51 = vadd.f32 %v1128_v42, %v1124_v32  ;;  %v1040_v52 = vpop.f32.mrf.mxu2  ;;  %v8124_v35 = vor.u32 %v10597_v30, %v8123_v29  ;;  %v10661_v37 = vld [vmem:[#allocation18 + $0x69c] sm:$0xf0] }
 0x241   :  { %v1105_v56 = vadd.f32 %v1104_v44, %v1103_v36  ;;  %v1136_v57 = vrot.slane %v1135_v45, 2  ;;  %v11899_v58 = vpop.f32.mrf.mxu0  ;;  %v8379_v36 = vld [vmem:[#allocation18 + $0x680] sm:$0xf]  ;;  %2836 = vmatpush.bf16.msra.mxu3 %v7580_v47  ;;  %v8285_v47 = vld [vmem:[#allocation18 + $0x5e0] sm:$0xf0] }
 0x242   :  { %v1099_v62 = vadd.f32 %v1098_v50, %v1097_v40  ;;  %v1130_v0 = vrot.slane %v1129_v51, 2  ;;  %v1077_v1 = vpop.f32.mrf.mxu1  ;;  %v8380_v42 = vor.u32 %v10661_v37, %v8379_v36  ;;  %2861 = vmatpush.bf16.msrb.mxu1 %v8124_v35  ;;  %v8091_v50 = vld [vmem:[#allocation18 + $0x440] sm:$0xf]  ;;  %v10505_v37 = vld [vmem:[#allocation18 + $0x1c4] sm:$0xf] }
 0x243   :  { %v1106_v7 = vrot.slane %v1105_v56, 1  ;;  %v1137_v6 = vadd.f32 %v1136_v57, %v1135_v45  ;;  %v1078_v32 = vadd.f32 %v1077_v1, %v665_v9  ;;  %v8347_v57 = vld [vmem:[#allocation18 + $0x640] sm:$0xf] }
 0x244   :  { %v1100_v13 = vrot.slane %v1099_v62, 1  ;;  %v1131_v14 = vadd.f32 %v1130_v0, %v1129_v51  ;;  %v10589_v51 = vld [vmem:[#allocation18 + $0x45c] sm:$0xf0]  ;;  %2874 = vmatpush.bf16.msrb.mxu2 %v8380_v42  ;;  %v8348_v4 = vor.u32 %v10653_v59, %v8347_v57  ;;  %v10497_v59 = vld [vmem:[#allocation18 + $0x184] sm:$0xf] }
 0x245   :  { %v1107_v20 = vadd.f32 %v1106_v7, %v1105_v56  ;;  %v1138_v21 = vrot.slane %v1137_v6, 1  ;;  %v7836_v56 = vor.u32 %v10525_v48, %v7835_v41  ;;  %v8092_v0 = vor.u32 %v10589_v51, %v8091_v50  ;;  %v10453_v7 = vld [vmem:[#allocation18 + $0x1c] sm:$0xf0] }
 0x246   :  { %v1101_v26 = vadd.f32 %v1100_v13, %v1099_v62  ;;  %v1132_v27 = vrot.slane %v1131_v14, 1  ;;  %v7548_v11 = vor.u32 %v10453_v7, %v7547_v5  ;;  %v10625_v5 = vld [vmem:[#allocation18 + $0x584] sm:$0xf] }
 0x247   :  { %v11904_v31 = vmul.f32 %v1107_v20, %v11823_v23  ;;  %v1139_v63 = vadd.f32 %v1138_v21, %v1137_v6  ;;  %v1051_v33 = vpop.f32.mrf.mxu3  ;;  %2849 = vmatpush.bf16.msrb.mxu0 %v7836_v56  ;;  %2862 = vmatpush.bf16.msrb.mxu1 %v8092_v0  ;;  %v10561_v0 = vld [vmem:[#allocation18 + $0x384] sm:$0xf] }
 0x248   :  { %v11907_v8 = vmul.f32 %v1101_v26, %v11823_v23  ;;  %v1133_v38 = vadd.f32 %v1132_v27, %v1131_v14  ;;  %v1052_v2 = vadd.f32 %v1051_v33, %v664_v15  ;;  %v1090_v40 = vpop.f32.mrf.mxu2  ;;  %2875 = vmatpush.bf16.msrb.mxu2 %v8348_v4  ;;  %v7803_v14 = vld [vmem:[#allocation18 + $0x200] sm:$0xf]  ;;  %2837 = vmatpush.bf16.msra.mxu3 %v7548_v11  ;;  %v8253_v7 = vld [vmem:[#allocation18 + $0x5a0] sm:$0xf0] }
 0x249   :  { %v1153_v44 = vmul.f32 %v1139_v63, %v11823_v23  ;;  %v1157_v45 = vmul.f32 %v11904_v31, %v11904_v31  ;;  %v11912_v46 = vadd.f32 %v1090_v40, %v1078_v32  ;;  %v1066_v39 = vpop.f32.mrf.mxu0  ;;  %v10517_v15 = vld [vmem:[#allocation18 + $0x21c] sm:$0xf0] }
 0x24a   :  { %v1152_v52 = vmul.f32 %v1133_v38, %v11823_v23  ;;  %v1156_v53 = vmul.f32 %v11907_v8, %v11907_v8  ;;  %v11918_v54 = vadd.f32 %v11899_v58, %v1052_v2  ;;  %v1079_v55 = vpop.f32.mrf.mxu1  ;;  %v10581_v26 = vld [vmem:[#allocation18 + $0x41c] sm:$0xf0]  ;;  %v7804_v29 = vor.u32 %v10517_v15, %v7803_v14  ;;  %v7773_v38 = vld [vmem:[#allocation18 + $0x1e0] sm:$0xf0] }
 0x24b   :  { %v1161_v60 = vsub.f32 %v1153_v44, %v1157_v45  ;;  %v1114_v61 = vrot.slane %v11912_v46, 4  ;;  %v1127_v62 = vmul.f32 %v11912_v46, %v11912_v46  ;;  %v8060_v30 = vor.u32 %v10581_v26, %v8059_v25  ;;  %v8315_v63 = vld [vmem:[#allocation18 + $0x600] sm:$0xf]  ;;  %v10633_v39 = vld [vmem:[#allocation18 + $0x5c4] sm:$0xf] }
 0x24c   :  { %v1160_v1 = vsub.f32 %v1152_v52, %v1156_v53  ;;  %v1108_v3 = vrot.slane %v11918_v54, 4  ;;  %v1126_v58 = vmul.f32 %v11918_v54, %v11918_v54  ;;  %v10645_v32 = vld [vmem:[#allocation18 + $0x61c] sm:$0xf0]  ;;  %2850 = vmatpush.bf16.msrb.mxu0 %v7804_v29  ;;  %v7776_v42 = vor.u32 %v10505_v37, %v7773_v38  ;;  %v10697_v52 = vld [vmem:[#allocation18 + $0x7c4] sm:$0xf] }
 0x24d   :  { %v11926_v6 = vadd.f32 0.8, %v1161_v60  ;;  %v1115_v9 = vadd.f32 %v1114_v61, %v11912_v46  ;;  %v1146_v10 = vrot.slane %v1127_v62, 4  ;;  %v8316_v36 = vor.u32 %v10645_v32, %v8315_v63  ;;  %2863 = vmatpush.bf16.msrb.mxu1 %v8060_v30  ;;  %v8541_v53 = vld [vmem:[#allocation18 + $0x7e0] sm:$0xf0] }
 0x24e   :  { %v1109_v12 = vadd.f32 %v1108_v3, %v11918_v54  ;;  %v1140_v13 = vrot.slane %v1126_v58, 4  ;;  %v11930_v17 = vadd.f32 0.8, %v1160_v1  ;;  %v8032_v45 = vor.u32 %v10569_v43, %v8029_v34  ;;  %2882 = vmatpush.bf16.msrb.mxu3 %v7776_v42  ;;  %v7741_v60 = vld [vmem:[#allocation18 + $0x1a0] sm:$0xf0] }
 0x24f   :  { %v1116_v18 = vrot.slane %v1115_v9, 2  ;;  %v1147_v19 = vadd.f32 %v1146_v10, %v1127_v62  ;;  %v1053_v20 = vpop.f32.mrf.mxu3  ;;  %11187 = vrsqrt.f32 %v11926_v6  ;;  %2876 = vmatpush.bf16.msrb.mxu2 %v8316_v36  ;;  %v8288_v51 = vor.u32 %v10633_v39, %v8285_v47  ;;  %v7997_v1 = vld [vmem:[#allocation18 + $0x3a0] sm:$0xf0] }
 0x250   :  { %v1110_v21 = vrot.slane %v1109_v12, 2  ;;  %v1141_v49 = vadd.f32 %v1140_v13, %v1126_v58  ;;  %v1092_v24 = vpop.f32.mrf.mxu2  ;;  %11189 = vrsqrt.f32 %v11930_v17  ;;  %2895 = vmatpush.bf16.msra.mxu0 %v8032_v45  ;;  %v8544_v4 = vor.u32 %v10697_v52, %v8541_v53  ;;  %v10689_v14 = vld [vmem:[#allocation18 + $0x784] sm:$0xf] }
 0x251   :  { %v1117_v27 = vadd.f32 %v1116_v18, %v1115_v9  ;;  %v1148_v28 = vrot.slane %v1147_v19, 2  ;;  %2908 = vmatpush.bf16.msra.mxu1 %v8288_v51  ;;  %v7744_v13 = vor.u32 %v10497_v59, %v7741_v60  ;;  %v8509_v15 = vld [vmem:[#allocation18 + $0x7a0] sm:$0xf0]  ;;  %v8256_v26 = vor.u32 %v10625_v5, %v8253_v7 }
 0x252   :  { %v1111_v33 = vadd.f32 %v1110_v21, %v1109_v12  ;;  %v1142_v35 = vrot.slane %v1141_v49, 2  ;;  %v10489_v18 = vld [vmem:[#allocation18 + $0x144] sm:$0xf]  ;;  %v8000_v21 = vor.u32 %v10561_v0, %v7997_v1  ;;  %vm1184_vm9 = vweird.f32 %v11926_v6 }
 0x253   :  { %v1118_v2 = vrot.slane %v1117_v27, 1  ;;  %v1149_v40 = vadd.f32 %v1148_v28, %v1147_v19  ;;  %2921 = vmatpush.bf16.msra.mxu2 %v8544_v4  ;;  %v10553_v24 = vld [vmem:[#allocation18 + $0x344] sm:$0xf]  ;;  %2883 = vmatpush.bf16.msrb.mxu3 %v7744_v13  ;;  %vm1174_vm10 = vweird.f32 %v11930_v17 }
 0x254   :  { %v1112_v41 = vrot.slane %v1111_v33, 1  ;;  %v1143_v44 = vadd.f32 %v1142_v35, %v1141_v49  ;;  %v7709_v49 = vld [vmem:[#allocation18 + $0x160] sm:$0xf0]  ;;  %2896 = vmatpush.bf16.msra.mxu0 %v8000_v21 }
 0x255   :  { %v1119_v48 = vadd.f32 %v1118_v2, %v1117_v27  ;;  %v1150_v50 = vrot.slane %v1149_v40, 1  ;;  %v11934_v55 = vpop.eup %11187  ;;  %v8512_v27 = vor.u32 %v10689_v14, %v8509_v15  ;;  %v7965_v28 = vld [vmem:[#allocation18 + $0x360] sm:$0xf0]  ;;  %v7712_v32 = vor.u32 %v10489_v18, %v7709_v49  ;;  %2909 = vmatpush.bf16.msra.mxu1 %v8256_v26 }
 0x256   :  { %v1113_v56 = vadd.f32 %v1112_v41, %v1111_v33  ;;  %v1144_v57 = vrot.slane %v1143_v44, 1  ;;  %v11942_v9 = vpop.eup %11189  ;;  %v1179_v10 = vmul.f32 %v11934_v55, %v11926_v6  ;;  %v10617_v29 = vld [vmem:[#allocation18 + $0x544] sm:$0xf]  ;;  %v7968_v33 = vor.u32 %v10553_v24, %v7965_v28 }
 0x257   :  { %v11937_v61 = vmul.f32 %v1119_v48, %v11823_v23  ;;  %v1151_v62 = vadd.f32 %v1150_v50, %v1149_v40  ;;  %v1169_v30 = vmul.f32 %v11942_v9, %v11930_v17  ;;  %v8221_v35 = vld [vmem:[#allocation18 + $0x560] sm:$0xf0]  ;;  %2922 = vmatpush.bf16.msra.mxu2 %v8512_v27  ;;  %2884 = vmatpush.bf16.msrb.mxu3 %v7712_v32  ;;  %vm1185_vm8 = vweird.f32 %v11934_v55 }
 0x258   :  { %v11940_v3 = vmul.f32 %v1113_v56, %v11823_v23  ;;  %v1145_v58 = vadd.f32 %v1144_v57, %v1143_v44  ;;  %v10681_v36 = vld [vmem:[#allocation18 + $0x744] sm:$0xf]  ;;  %v1180_v37 = vmul.f32 %v11934_v55, %v1179_v10  ;;  %v8224_v2 = vor.u32 %v10617_v29, %v8221_v35  ;;  %2897 = vmatpush.bf16.msra.mxu0 %v7968_v33  ;;  %vm11979_vm12 = vmor %vm1184_vm9, %vm1185_vm8 }
 0x259   :  { %v1155_v11 = vmul.f32 %v1151_v62, %v11823_v23  ;;  %v1159_v12 = vmul.f32 %v11937_v61, %v11937_v61  ;;  %v8477_v40 = vld [vmem:[#allocation18 + $0x760] sm:$0xf0]  ;;  %v1170_v48 = vmul.f32 %v11942_v9, %v1169_v30  ;;  %vm1175_vm11 = vweird.f32 %v11942_v9 }
 0x25a   :  { %v1154_v19 = vmul.f32 %v1145_v58, %v11823_v23  ;;  %v1158_v20 = vmul.f32 %v11940_v3, %v11940_v3  ;;  %v8480_v43 = vor.u32 %v10681_v36, %v8477_v40  ;;  %v10481_v34 = vld [vmem:[#allocation18 + $0x104] sm:$0xf]  ;;  %v1181_v56 = vmul.f32 0.5, %v1180_v37  ;;  %2910 = vmatpush.bf16.msra.mxu1 %v8224_v2  ;;  %vm11993_vm15 = vmor %vm1174_vm10, %vm1175_vm11 }
 0x25b   :  { %v1163_v25 = vsub.f32 %v1155_v11, %v1159_v12  ;;  %v7677_v41 = vld [vmem:[#allocation18 + $0x120] sm:$0xf0]  ;;  %v1171_v11 = vmul.f32 0.5, %v1170_v48 }
 0x25c   :  { %v1162_v63 = vsub.f32 %v1154_v19, %v1158_v20  ;;  %v7680_v44 = vor.u32 %v10481_v34, %v7677_v41  ;;  %v10545_v45 = vld [vmem:[#allocation18 + $0x304] sm:$0xf]  ;;  %2923 = vmatpush.bf16.msra.mxu2 %v8480_v43  ;;  %v1182_v18 = vsub.f32 1.5, %v1181_v56 }
 0x25d   :  { %v11955_v38 = vadd.f32 0.8, %v1163_v25  ;;  %v7933_v39 = vld [vmem:[#allocation18 + $0x320] sm:$0xf0]  ;;  %v1172_v32 = vsub.f32 1.5, %v1171_v11 }
 0x25e   :  { %v11957_v42 = vadd.f32 0.8, %v1162_v63  ;;  %v10609_v47 = vld [vmem:[#allocation18 + $0x504] sm:$0xf]  ;;  %v7936_v50 = vor.u32 %v10545_v45, %v7933_v39  ;;  %2885 = vmatpush.bf16.msrb.mxu3 %v7680_v44  ;;  %v1183_v2 = vmul.f32 %v11934_v55, %v1182_v18 }
 0x25f   :  { %11191 = vrsqrt.f32 %v11955_v38  ;;  %v8189_v51 = vld [vmem:[#allocation18 + $0x520] sm:$0xf0]  ;;  %v1173_v6 = vmul.f32 %v11942_v9, %v1172_v32  ;;  %vm1204_vm0 = vweird.f32 %v11955_v38 }
 0x260   :  { %11193 = vrsqrt.f32 %v11957_v42  ;;  %v10673_v52 = vld [vmem:[#allocation18 + $0x704] sm:$0xf]  ;;  %v8192_v57 = vor.u32 %v10609_v47, %v8189_v51  ;;  %2898 = vmatpush.bf16.msra.mxu0 %v7936_v50  ;;  %vm1194_vm1 = vweird.f32 %v11957_v42 }
 0x261   :  { %v8445_v53 = vld [vmem:[#allocation18 + $0x720] sm:$0xf0] }
 0x262   :  { %v10473_v59 = vld [vmem:[#allocation18 + $0xc4] sm:$0xf]  ;;  %v8448_v62 = vor.u32 %v10673_v52, %v8445_v53  ;;  %2911 = vmatpush.bf16.msra.mxu1 %v8192_v57 }
 0x263   :  { %v7645_v60 = vld [vmem:[#allocation18 + $0xe0] sm:$0xf0] }
 0x264   :  { %v10537_v0 = vld [vmem:[#allocation18 + $0x2c4] sm:$0xf]  ;;  %v7648_v4 = vor.u32 %v10473_v59, %v7645_v60  ;;  %2924 = vmatpush.bf16.msra.mxu2 %v8448_v62 }
 0x265   :  { %v7901_v1 = vld [vmem:[#allocation18 + $0x2e0] sm:$0xf0]  ;;  %v11962_v15 = vpop.eup %11191 }
 0x266   :  { %v10601_v58 = vld [vmem:[#allocation18 + $0x4c4] sm:$0xf]  ;;  %v7904_v12 = vor.u32 %v10537_v0, %v7901_v1  ;;  %v11964_v49 = vpop.eup %11193  ;;  %v1199_v24 = vmul.f32 %v11962_v15, %v11955_v38  ;;  %2886 = vmatpush.bf16.msrb.mxu3 %v7648_v4  ;;  %vm1205_vm13 = vweird.f32 %v11962_v15  ;;  %v1187_v0 = vsel %vm11979_vm12, %v11934_v55, %v1183_v2 }
 0x267   :  { %v8157_v5 = vld [vmem:[#allocation18 + $0x4e0] sm:$0xf0]  ;;  %v1189_v28 = vmul.f32 %v11964_v49, %v11957_v42  ;;  %vm1195_vm14 = vweird.f32 %v11964_v49  ;;  %vm12003_vm2 = vmor %vm1204_vm0, %vm1205_vm13 }
 0x268   :  { %v10665_v7 = vld [vmem:[#allocation18 + $0x6c4] sm:$0xf]  ;;  %v8160_v19 = vor.u32 %v10601_v58, %v8157_v5  ;;  %v1200_v33 = vmul.f32 %v11962_v15, %v1199_v24  ;;  %2899 = vmatpush.bf16.msra.mxu0 %v7904_v12  ;;  %vm1196_vm3 = vmor %vm1194_vm1, %vm1195_vm14 }
 0x269   :  { %v8413_v10 = vld [vmem:[#allocation18 + $0x6e0] sm:$0xf0]  ;;  %v1190_v40 = vmul.f32 %v11964_v49, %v1189_v28  ;;  %v1094_v28 = vld [vmem:[#allocation15] sm:$0xf] }
 0x26a   :  { %v10465_v13 = vld [vmem:[#allocation18 + $0x84] sm:$0xf]  ;;  %v8416_v25 = vor.u32 %v10665_v7, %v8413_v10  ;;  %2912 = vmatpush.bf16.msra.mxu1 %v8160_v19  ;;  %v1201_v44 = vmul.f32 0.5, %v1200_v33  ;;  %v1212_v19 = vrot.slane %v1187_v0, 7 }
 0x26b   :  { %v7613_v14 = vld [vmem:[#allocation18 + $0xa0] sm:$0xf0]  ;;  %v1191_v48 = vmul.f32 0.5, %v1190_v40 }
 0x26c   :  { %v10529_v20 = vld [vmem:[#allocation18 + $0x284] sm:$0xf]  ;;  %v7616_v29 = vor.u32 %v10465_v13, %v7613_v14  ;;  %2925 = vmatpush.bf16.msra.mxu2 %v8416_v25  ;;  %v1202_v56 = vsub.f32 1.5, %v1201_v44 }
 0x26d   :  { %v7869_v21 = vld [vmem:[#allocation18 + $0x2a0] sm:$0xf0]  ;;  %v1192_v62 = vsub.f32 1.5, %v1191_v48 }
 0x26e   :  { %v10593_v26 = vld [vmem:[#allocation18 + $0x484] sm:$0xf]  ;;  %v7872_v35 = vor.u32 %v10529_v20, %v7869_v21  ;;  %2887 = vmatpush.bf16.msrb.mxu3 %v7616_v29  ;;  %v1203_v7 = vmul.f32 %v11962_v15, %v1202_v56  ;;  %v1177_v20 = vsel %vm11993_vm15, %v11942_v9, %v1173_v6 }
 0x26f   :  { %v8125_v27 = vld [vmem:[#allocation18 + $0x4a0] sm:$0xf0]  ;;  %v1193_v12 = vmul.f32 %v11964_v49, %v1192_v62  ;;  %v8035_v62 = vld [vmem:[#allocation18 + $0x3c8] sm:$0xf] }
 0x270   :  { %v10657_v30 = vld [vmem:[#allocation18 + $0x684] sm:$0xf]  ;;  %v8128_v43 = vor.u32 %v10593_v26, %v8125_v27  ;;  %2900 = vmatpush.bf16.msra.mxu0 %v7872_v35  ;;  %v1207_v38 = vsel %vm12003_vm2, %v11962_v15, %v1203_v7  ;;  %v1215_v15 = vsel %vm564_vm6, %v1177_v20, %v1212_v19  ;;  %v10638_v7 = vld [vmem:[#allocation18 + $0x5e4] sm:$0xf0] }
 0x271   :  { %v8381_v63 = vld [vmem:[#allocation18 + $0x6a0] sm:$0xf0]  ;;  %v1197_v21 = vsel %vm1196_vm3, %v11964_v49, %v1193_v12  ;;  %v1214_v26 = vrot.slane %v1207_v38, 5  ;;  %v7747_v38 = vld [vmem:[#allocation18 + $0x188] sm:$0xf] }
 0x272   :  { %v10457_v36 = vld [vmem:[#allocation18 + $0x44] sm:$0xf]  ;;  %v8384_v45 = vor.u32 %v10657_v30, %v8381_v63  ;;  %2913 = vmatpush.bf16.msra.mxu1 %v8128_v43  ;;  %v1213_v25 = vrot.slane %v1197_v21, 6  ;;  %v10502_v19 = vld [vmem:[#allocation18 + $0x1a4] sm:$0xf0] }
 0x273   :  { %v7581_v37 = vld [vmem:[#allocation18 + $0x60] sm:$0xf0] }
 0x274   :  { %v10521_v34 = vld [vmem:[#allocation18 + $0x244] sm:$0xf]  ;;  %v7584_v50 = vor.u32 %v10457_v36, %v7581_v37  ;;  %2926 = vmatpush.bf16.msra.mxu2 %v8384_v45  ;;  %v1217_v29 = vsel %vm1216_vm4, %v1213_v25, %v1214_v26  ;;  %v10566_v25 = vld [vmem:[#allocation18 + $0x3a4] sm:$0xf0] }
 0x275   :  { %v7837_v41 = vld [vmem:[#allocation18 + $0x260] sm:$0xf0]  ;;  %v1219_v30 = vsel %vm1218_vm5, %v1215_v15, %v1217_v29  ;;  %v8259_v26 = vld [vmem:[#allocation18 + $0x588] sm:$0xf]  ;;  %v7748_v29 = vor.u32 %v10502_v19, %v7747_v38 }
 0x276   :  { %v10585_v39 = vld [vmem:[#allocation18 + $0x444] sm:$0xf]  ;;  %v7840_v57 = vor.u32 %v10521_v34, %v7837_v41  ;;  %2888 = vmatpush.bf16.msrb.mxu3 %v7584_v50  ;;  %v1221_v9 = vmul.f32 %v1219_v30, %v1094_v28  ;;  %v1095_v41 = vld [vmem:[#allocation16] sm:$0xf]  ;;  %v8515_v28 = vld [vmem:[#allocation18 + $0x788] sm:$0xf] }
 0x277   :  { %v8093_v47 = vld [vmem:[#allocation18 + $0x460] sm:$0xf0]  ;;  %v10694_v15 = vld [vmem:[#allocation18 + $0x7a4] sm:$0xf0] }
 0x278   :  { %v10649_v51 = vld [vmem:[#allocation18 + $0x644] sm:$0xf]  ;;  %v8096_v1 = vor.u32 %v10585_v39, %v8093_v47  ;;  %2901 = vmatpush.bf16.msra.mxu0 %v7840_v57  ;;  %v1223_v49 = vperm.slane %v1221_v9, 0  ;;  %v1224_v63 = vperm.slane %v1221_v9, 1  ;;  %v1225_v32 = vperm.slane %v1221_v9, 2 }
 0x279   :  { %v8349_v52 = vld [vmem:[#allocation18 + $0x660] sm:$0xf0]  ;;  %v1226_v33 = vperm.slane %v1221_v9, 3  ;;  %v7715_v9 = vld [vmem:[#allocation18 + $0x148] sm:$0xf] }
 0x27a   :  { %v10449_v59 = vld [vmem:[#allocation18 + $0x4] sm:$0xf]  ;;  %v8352_v10 = vor.u32 %v10649_v51, %v8349_v52  ;;  %2914 = vmatpush.bf16.msra.mxu1 %v8096_v1  ;;  %v1232_v35 = vmul.f32 %v1224_v63, %v11904_v31  ;;  %v1233_v36 = vmul.f32 %v1225_v32, %v11940_v3  ;;  %v1231_v2 = vmul.f32 %v1223_v49, %v11907_v8  ;;  %v7587_v19 = vld [vmem:[#allocation18 + $0x48] sm:$0xf] }
 0x27b   :  { %v7549_v60 = vld [vmem:[#allocation18 + $0x20] sm:$0xf0]  ;;  %v1234_v37 = vmul.f32 %v1226_v33, %v11937_v61  ;;  %v1247_v48 = vmul.f32 %v1223_v49, %v11889_v22  ;;  %v1248_v31 = vmul.f32 %v1224_v63, %v11887_v16  ;;  %v1249_v3 = vmul.f32 %v1225_v32, %v11918_v54  ;;  %v10574_v16 = vld [vmem:[#allocation18 + $0x3e4] sm:$0xf0] }
 0x27c   :  { %v10513_v58 = vld [vmem:[#allocation18 + $0x204] sm:$0xf]  ;;  %v7552_v13 = vor.u32 %v10449_v59, %v7549_v60  ;;  %2927 = vmatpush.bf16.msra.mxu2 %v8352_v10  ;;  %v1239_v40 = vrot.slane %v1232_v35, 7  ;;  %v1240_v43 = vrot.slane %v1233_v36, 6  ;;  %v1250_v61 = vmul.f32 %v1226_v33, %v11912_v46  ;;  %v7779_v59 = vld [vmem:[#allocation18 + $0x1c8] sm:$0xf] }
 0x27d   :  { %v7805_v4 = vld [vmem:[#allocation18 + $0x220] sm:$0xf0]  ;;  %v1241_v34 = vrot.slane %v1234_v37, 5  ;;  %v10510_v60 = vld [vmem:[#allocation18 + $0x1e4] sm:$0xf0]  ;;  %v8516_v32 = vor.u32 %v10694_v15, %v8515_v28 }
 0x27e   :  { %v10577_v11 = vld [vmem:[#allocation18 + $0x404] sm:$0xf]  ;;  %v7808_v42 = vor.u32 %v10513_v58, %v7805_v4  ;;  %2889 = vmatpush.bf16.msrb.mxu3 %v7552_v13  ;;  %v1242_v44 = vsel %vm564_vm6, %v1231_v2, %v1239_v40  ;;  %v8291_v4 = vld [vmem:[#allocation18 + $0x5c8] sm:$0xf]  ;;  %v7780_v12 = vor.u32 %v10510_v60, %v7779_v59 }
 0x27f   :  { %v8061_v55 = vld [vmem:[#allocation18 + $0x420] sm:$0xf0]  ;;  %v1243_v45 = vsel %vm1216_vm4, %v1240_v43, %v1241_v34  ;;  %v8547_v10 = vld [vmem:[#allocation18 + $0x7c8] sm:$0xf]  ;;  %v8292_v20 = vor.u32 %v10638_v7, %v8291_v4 }
 0x280   :  { %v10641_v14 = vld [vmem:[#allocation18 + $0x604] sm:$0xf]  ;;  %v8064_v24 = vor.u32 %v10577_v11, %v8061_v55  ;;  %2902 = vmatpush.bf16.msra.mxu0 %v7808_v42  ;;  %v1244_v39 = vsel %vm1218_vm5, %v1242_v44, %v1243_v45  ;;  %v10702_v11 = vld [vmem:[#allocation18 + $0x7e4] sm:$0xf0] }
 0x281   :  { %v8317_v18 = vld [vmem:[#allocation18 + $0x620] sm:$0xf0]  ;;  %v1246_v47 = vsub.f32 %v1095_v41, %v1244_v39  ;;  %v8548_v21 = vor.u32 %v10702_v11, %v8547_v10  ;;  %v10494_v49 = vld [vmem:[#allocation18 + $0x164] sm:$0xf0] }
 0x282   :  { %v8320_v27 = vor.u32 %v10641_v14, %v8317_v18  ;;  %2915 = vmatpush.bf16.msra.mxu1 %v8064_v24  ;;  %v8036_v18 = vor.u32 %v10574_v16, %v8035_v62  ;;  %v8003_v24 = vld [vmem:[#allocation18 + $0x388] sm:$0xf]  ;;  %v7716_v43 = vor.u32 %v10494_v49, %v7715_v9 }
 0x283   :  { %v1252_v8 = vperm.slane %v1246_v47, 0  ;;  %v1253_v50 = vperm.slane %v1246_v47, 1  ;;  %v1254_v51 = vperm.slane %v1246_v47, 2  ;;  %v1255_v52 = vperm.slane %v1246_v47, 3  ;;  %v7971_v33 = vld [vmem:[#allocation18 + $0x348] sm:$0xf] }
 0x284   :  { %2928 = vmatpush.bf16.msra.mxu2 %v8320_v27  ;;  %v10630_v27 = vld [vmem:[#allocation18 + $0x5a4] sm:$0xf0]  ;;  %v8004_v30 = vor.u32 %v10566_v25, %v8003_v24 }
 0x285   :  { %v1260_v53 = vadd.f32 %v1252_v8, %v1247_v48  ;;  %v1261_v6 = vadd.f32 %v1253_v50, %v1248_v31  ;;  %v1262_v56 = vadd.f32 %v1254_v51, %v1249_v3  ;;  %v1263_v57 = vadd.f32 %v1255_v52, %v1250_v61  ;;  %v10558_v35 = vld [vmem:[#allocation18 + $0x364] sm:$0xf0] }
 0x286   :  { %v8260_v63 = vor.u32 %v10630_v27, %v8259_v26  ;;  %v8227_v36 = vld [vmem:[#allocation18 + $0x548] sm:$0xf]  ;;  %v7972_v34 = vor.u32 %v10558_v35, %v7971_v33 }
 0x287   :  { %v1264_v0 = vmul.f32 0.2, %v1260_v53  ;;  %v1265_v1 = vmul.f32 0.2, %v1261_v6  ;;  %v1266_v22 = vmul.f32 0.2, %v1262_v56 }
 0x288   :  { %v1267_v58 = vmul.f32 0.2, %v1263_v57  ;;  %v10622_v37 = vld [vmem:[#allocation18 + $0x564] sm:$0xf0] }
 0x289   :  { %v1270_v54 = vmax.f32 %v1262_v56, %v1266_v22  ;;  %v1268_v5 = vmax.f32 %v1260_v53, %v1264_v0  ;;  %v1269_v46 = vmax.f32 %v1261_v6, %v1265_v1  ;;  %v8483_v2 = vld [vmem:[#allocation18 + $0x748] sm:$0xf]  ;;  %v8228_v45 = vor.u32 %v10622_v37, %v8227_v36 }
 0x28a   :  { %v1271_v55 = vmax.f32 %v1263_v57, %v1267_v58  ;;  %v10686_v40 = vld [vmem:[#allocation18 + $0x764] sm:$0xf0] }
 0x28b   :  { %v12030_v17 = vpack.c.bf16 %v1270_v54, %v1270_v54  ;;  %v12032_v13 = vpack.c.bf16 %v1268_v5, %v1268_v5  ;;  %v12034_v14 = vpack.c.bf16 %v1269_v46, %v1269_v46  ;;  %v7683_v41 = vld [vmem:[#allocation18 + $0x108] sm:$0xf]  ;;  %v8484_v39 = vor.u32 %v10686_v40, %v8483_v2 }
 0x28c   :  { %v12036_v42 = vpack.c.bf16 %v1271_v55, %v1271_v55  ;;  %v10486_v44 = vld [vmem:[#allocation18 + $0x124] sm:$0xf0] }
 0x28d   :  { %2838 = vmatmul.bf16.vlgmr.msra.gmra.mxu3 %v12032_v13  ;;  %2851 = vmatmul.bf16.vlgmr.msrb.gmra.mxu0 %v12034_v14  ;;  %v7939_v47 = vld [vmem:[#allocation18 + $0x308] sm:$0xf]  ;;  %v7684_v50 = vor.u32 %v10486_v44, %v7683_v41  ;;  %v7781_v41 = vld [vmem:[#allocation18 + $0x1e8] sm:$0xf0] }
 0x28e   :  { %2864 = vmatmul.bf16.vlgmr.msrb.gmra.mxu1 %v12030_v17  ;;  %2877 = vmatmul.bf16.vlgmr.msrb.gmra.mxu2 %v12036_v42  ;;  %v10550_v48 = vld [vmem:[#allocation18 + $0x324] sm:$0xf0]  ;;  %v10570_v44 = vld [vmem:[#allocation18 + $0x3cc] sm:$0xf] }
 0x28f   :  { %2934 = vmatpush.bf16.msra.mxu3 %v7780_v12  ;;  %2947 = vmatpush.bf16.msrb.mxu0 %v8036_v18  ;;  %v8195_v31 = vld [vmem:[#allocation18 + $0x508] sm:$0xf]  ;;  %v7940_v51 = vor.u32 %v10550_v48, %v7939_v47 }
 0x290   :  { %2960 = vmatpush.bf16.msrb.mxu1 %v8292_v20  ;;  %2973 = vmatpush.bf16.msrb.mxu2 %v8548_v21  ;;  %v10614_v3 = vld [vmem:[#allocation18 + $0x524] sm:$0xf0] }
 0x291   :  { %v8451_v61 = vld [vmem:[#allocation18 + $0x708] sm:$0xf]  ;;  %v8196_v6 = vor.u32 %v10614_v3, %v8195_v31  ;;  %v8293_v31 = vld [vmem:[#allocation18 + $0x5e8] sm:$0xf0] }
 0x292   :  { %v10678_v8 = vld [vmem:[#allocation18 + $0x724] sm:$0xf0]  ;;  %v10698_v3 = vld [vmem:[#allocation18 + $0x7cc] sm:$0xf] }
 0x293   :  { %2935 = vmatpush.bf16.msra.mxu3 %v7748_v29  ;;  %2948 = vmatpush.bf16.msrb.mxu0 %v8004_v30  ;;  %v7651_v52 = vld [vmem:[#allocation18 + $0xc8] sm:$0xf]  ;;  %v8452_v56 = vor.u32 %v10678_v8, %v8451_v61  ;;  %v8549_v61 = vld [vmem:[#allocation18 + $0x7e8] sm:$0xf0] }
 0x294   :  { %2961 = vmatpush.bf16.msrb.mxu1 %v8260_v63  ;;  %2974 = vmatpush.bf16.msrb.mxu2 %v8516_v32  ;;  %v10478_v53 = vld [vmem:[#allocation18 + $0xe4] sm:$0xf0] }
 0x295   :  { %v7907_v57 = vld [vmem:[#allocation18 + $0x2c8] sm:$0xf]  ;;  %v7652_v22 = vor.u32 %v10478_v53, %v7651_v52  ;;  %v10498_v53 = vld [vmem:[#allocation18 + $0x18c] sm:$0xf] }
 0x296   :  { %v10542_v59 = vld [vmem:[#allocation18 + $0x2e4] sm:$0xf0] }
 0x297   :  { %2936 = vmatpush.bf16.msra.mxu3 %v7716_v43  ;;  %2949 = vmatpush.bf16.msrb.mxu0 %v7972_v34  ;;  %v8163_v60 = vld [vmem:[#allocation18 + $0x4c8] sm:$0xf]  ;;  %v7908_v58 = vor.u32 %v10542_v59, %v7907_v57  ;;  %v10506_v34 = vld [vmem:[#allocation18 + $0x1cc] sm:$0xf]  ;;  %v8552_v57 = vor.u32 %v10698_v3, %v8549_v61 }
 0x298   :  { %2962 = vmatpush.bf16.msrb.mxu1 %v8228_v45  ;;  %2975 = vmatpush.bf16.msrb.mxu2 %v8484_v39  ;;  %v10606_v62 = vld [vmem:[#allocation18 + $0x4e4] sm:$0xf0]  ;;  %v8037_v45 = vld [vmem:[#allocation18 + $0x3e8] sm:$0xf0] }
 0x299   :  { %v8419_v0 = vld [vmem:[#allocation18 + $0x6c8] sm:$0xf]  ;;  %v8164_v54 = vor.u32 %v10606_v62, %v8163_v60  ;;  %v10634_v39 = vld [vmem:[#allocation18 + $0x5cc] sm:$0xf]  ;;  %v8040_v52 = vor.u32 %v10570_v44, %v8037_v45 }
 0x29a   :  { %v10670_v1 = vld [vmem:[#allocation18 + $0x6e4] sm:$0xf0]  ;;  %v10562_v59 = vld [vmem:[#allocation18 + $0x38c] sm:$0xf] }
 0x29b   :  { %2937 = vmatpush.bf16.msra.mxu3 %v7684_v50  ;;  %2950 = vmatpush.bf16.msrb.mxu0 %v7940_v51  ;;  %v7619_v16 = vld [vmem:[#allocation18 + $0x88] sm:$0xf]  ;;  %v8420_v5 = vor.u32 %v10670_v1, %v8419_v0  ;;  %v7784_v51 = vor.u32 %v10506_v34, %v7781_v41  ;;  %v8005_v60 = vld [vmem:[#allocation18 + $0x3a8] sm:$0xf0] }
 0x29c   :  { %v10470_v4 = vld [vmem:[#allocation18 + $0xa4] sm:$0xf0]  ;;  %2963 = vmatpush.bf16.msrb.mxu1 %v8196_v6  ;;  %2976 = vmatpush.bf16.msrb.mxu2 %v8452_v56  ;;  %v7749_v6 = vld [vmem:[#allocation18 + $0x1a8] sm:$0xf0]  ;;  %v8296_v56 = vor.u32 %v10634_v39, %v8293_v31 }
 0x29d   :  { %v7875_v46 = vld [vmem:[#allocation18 + $0x288] sm:$0xf]  ;;  %2890 = vmatmul.bf16.vlgmr.msrb.gmra.mxu3 %v12032_v13  ;;  %2903 = vmatmul.bf16.vlgmr.msra.gmra.mxu0 %v12034_v14  ;;  %v7620_v18 = vor.u32 %v10470_v4, %v7619_v16  ;;  %v10626_v62 = vld [vmem:[#allocation18 + $0x58c] sm:$0xf]  ;;  %v8008_v16 = vor.u32 %v10562_v59, %v8005_v60 }
 0x29e   :  { %v10534_v7 = vld [vmem:[#allocation18 + $0x2a4] sm:$0xf0]  ;;  %2916 = vmatmul.bf16.vlgmr.msra.gmra.mxu1 %v12030_v17  ;;  %2929 = vmatmul.bf16.vlgmr.msra.gmra.mxu2 %v12036_v42  ;;  %v8261_v0 = vld [vmem:[#allocation18 + $0x5a8] sm:$0xf0] }
 0x29f   :  { %v8131_v10 = vld [vmem:[#allocation18 + $0x488] sm:$0xf]  ;;  %2938 = vmatpush.bf16.msra.mxu3 %v7652_v22  ;;  %2951 = vmatpush.bf16.msrb.mxu0 %v7908_v58  ;;  %v7876_v38 = vor.u32 %v10534_v7, %v7875_v46  ;;  %v10690_v1 = vld [vmem:[#allocation18 + $0x78c] sm:$0xf]  ;;  %v7752_v58 = vor.u32 %v10498_v53, %v7749_v6 }
 0x2a0   :  { %v10598_v11 = vld [vmem:[#allocation18 + $0x4a4] sm:$0xf0]  ;;  %2964 = vmatpush.bf16.msrb.mxu1 %v8164_v54  ;;  %2977 = vmatpush.bf16.msrb.mxu2 %v8420_v5  ;;  %v8517_v22 = vld [vmem:[#allocation18 + $0x7a8] sm:$0xf0]  ;;  %v8264_v5 = vor.u32 %v10626_v62, %v8261_v0 }
 0x2a1   :  { %v8387_v55 = vld [vmem:[#allocation18 + $0x688] sm:$0xf]  ;;  %v8132_v21 = vor.u32 %v10598_v11, %v8131_v10  ;;  %v10490_v4 = vld [vmem:[#allocation18 + $0x14c] sm:$0xf]  ;;  %v8520_v46 = vor.u32 %v10690_v1, %v8517_v22 }
 0x2a2   :  { %v10662_v12 = vld [vmem:[#allocation18 + $0x6a4] sm:$0xf0]  ;;  %v7717_v54 = vld [vmem:[#allocation18 + $0x168] sm:$0xf0] }
 0x2a3   :  { %v10462_v20 = vld [vmem:[#allocation18 + $0x64] sm:$0xf0]  ;;  %v8388_v24 = vor.u32 %v10662_v12, %v8387_v55  ;;  %2939 = vmatpush.bf16.msra.mxu3 %v7620_v18  ;;  %2952 = vmatpush.bf16.msrb.mxu0 %v7876_v38  ;;  %v10554_v7 = vld [vmem:[#allocation18 + $0x34c] sm:$0xf]  ;;  %v7720_v38 = vor.u32 %v10490_v4, %v7717_v54 }
 0x2a4   :  { %v7843_v25 = vld [vmem:[#allocation18 + $0x248] sm:$0xf]  ;;  %v7588_v9 = vor.u32 %v10462_v20, %v7587_v19  ;;  %2965 = vmatpush.bf16.msrb.mxu1 %v8132_v21  ;;  %v7973_v10 = vld [vmem:[#allocation18 + $0x368] sm:$0xf0] }
 0x2a5   :  { %v10526_v26 = vld [vmem:[#allocation18 + $0x264] sm:$0xf0]  ;;  %2978 = vmatpush.bf16.msrb.mxu2 %v8388_v24  ;;  %v10618_v11 = vld [vmem:[#allocation18 + $0x54c] sm:$0xf]  ;;  %v7976_v19 = vor.u32 %v10554_v7, %v7973_v10 }
 0x2a6   :  { %v8099_v27 = vld [vmem:[#allocation18 + $0x448] sm:$0xf]  ;;  %v7844_v49 = vor.u32 %v10526_v26, %v7843_v25  ;;  %v8229_v55 = vld [vmem:[#allocation18 + $0x568] sm:$0xf0] }
 0x2a7   :  { %v10590_v28 = vld [vmem:[#allocation18 + $0x464] sm:$0xf0]  ;;  %2940 = vmatpush.bf16.msra.mxu3 %v7588_v9  ;;  %v10682_v12 = vld [vmem:[#allocation18 + $0x74c] sm:$0xf]  ;;  %v8232_v24 = vor.u32 %v10618_v11, %v8229_v55 }
 0x2a8   :  { %v8355_v15 = vld [vmem:[#allocation18 + $0x648] sm:$0xf]  ;;  %v8100_v35 = vor.u32 %v10590_v28, %v8099_v27  ;;  %2953 = vmatpush.bf16.msrb.mxu0 %v7844_v49  ;;  %v8485_v18 = vld [vmem:[#allocation18 + $0x768] sm:$0xf0] }
 0x2a9   :  { %v10654_v29 = vld [vmem:[#allocation18 + $0x664] sm:$0xf0]  ;;  %v10482_v20 = vld [vmem:[#allocation18 + $0x10c] sm:$0xf]  ;;  %v8488_v25 = vor.u32 %v10682_v12, %v8485_v18 }
 0x2aa   :  { %v7555_v30 = vld [vmem:[#allocation18 + $0x8] sm:$0xf]  ;;  %v8356_v36 = vor.u32 %v10654_v29, %v8355_v15  ;;  %2966 = vmatpush.bf16.msrb.mxu1 %v8100_v35  ;;  %v7685_v21 = vld [vmem:[#allocation18 + $0x128] sm:$0xf0] }
 0x2ab   :  { %v10454_v63 = vld [vmem:[#allocation18 + $0x24] sm:$0xf0]  ;;  %v10546_v26 = vld [vmem:[#allocation18 + $0x30c] sm:$0xf]  ;;  %v7688_v9 = vor.u32 %v10482_v20, %v7685_v21  ;;  %v10511_v20 = vld [vmem:[#allocation18 + $0x1ec] sm:$0xf0] }
 0x2ac   :  { %v7811_v32 = vld [vmem:[#allocation18 + $0x208] sm:$0xf]  ;;  %v7556_v47 = vor.u32 %v10454_v63, %v7555_v30  ;;  %2979 = vmatpush.bf16.msrb.mxu2 %v8356_v36  ;;  %v7941_v27 = vld [vmem:[#allocation18 + $0x328] sm:$0xf0]  ;;  %v8043_v21 = vld [vmem:[#allocation18 + $0x3d0] sm:$0xf] }
 0x2ad   :  { %v10518_v33 = vld [vmem:[#allocation18 + $0x224] sm:$0xf0]  ;;  %v10610_v28 = vld [vmem:[#allocation18 + $0x50c] sm:$0xf]  ;;  %v7944_v49 = vor.u32 %v10546_v26, %v7941_v27 }
 0x2ae   :  { %v8067_v37 = vld [vmem:[#allocation18 + $0x408] sm:$0xf]  ;;  %v7812_v48 = vor.u32 %v10518_v33, %v7811_v32  ;;  %2941 = vmatpush.bf16.msra.mxu3 %v7556_v47  ;;  %v8197_v15 = vld [vmem:[#allocation18 + $0x528] sm:$0xf0] }
 0x2af   :  { %v10582_v2 = vld [vmem:[#allocation18 + $0x424] sm:$0xf0]  ;;  %v10674_v29 = vld [vmem:[#allocation18 + $0x70c] sm:$0xf]  ;;  %v8200_v33 = vor.u32 %v10610_v28, %v8197_v15  ;;  %v10639_v28 = vld [vmem:[#allocation18 + $0x5ec] sm:$0xf0] }
 0x2b0   :  { %v8323_v40 = vld [vmem:[#allocation18 + $0x608] sm:$0xf]  ;;  %v8068_v8 = vor.u32 %v10582_v2, %v8067_v37  ;;  %2954 = vmatpush.bf16.msrb.mxu0 %v7812_v48  ;;  %v8453_v30 = vld [vmem:[#allocation18 + $0x728] sm:$0xf0]  ;;  %v8555_v15 = vld [vmem:[#allocation18 + $0x7d0] sm:$0xf] }
 0x2b1   :  { %v10646_v43 = vld [vmem:[#allocation18 + $0x624] sm:$0xf0]  ;;  %2942 = vmatmul.bf16.vlgmr.msra.gmra.mxu3 %v12032_v13  ;;  %v10474_v63 = vld [vmem:[#allocation18 + $0xcc] sm:$0xf]  ;;  %v8456_v35 = vor.u32 %v10674_v29, %v8453_v30  ;;  %v10703_v29 = vld [vmem:[#allocation18 + $0x7ec] sm:$0xf0] }
 0x2b2   :  { %v8324_v50 = vor.u32 %v10646_v43, %v8323_v40  ;;  %2967 = vmatpush.bf16.msrb.mxu1 %v8068_v8  ;;  %2986 = vmatpush.bf16.msrb.mxu3 %v7784_v51  ;;  %v7653_v32 = vld [vmem:[#allocation18 + $0xe8] sm:$0xf0] }
 0x2b3   :  { %2955 = vmatmul.bf16.vlgmr.msrb.gmra.mxu0 %v12034_v14  ;;  %v10538_v36 = vld [vmem:[#allocation18 + $0x2cc] sm:$0xf]  ;;  %v7656_v41 = vor.u32 %v10474_v63, %v7653_v32  ;;  %v7755_v32 = vld [vmem:[#allocation18 + $0x190] sm:$0xf] }
 0x2b4   :  { %2980 = vmatpush.bf16.msrb.mxu2 %v8324_v50  ;;  %2999 = vmatpush.bf16.msra.mxu0 %v8040_v52  ;;  %v7909_v37 = vld [vmem:[#allocation18 + $0x2e8] sm:$0xf0] }
 0x2b5   :  { %2968 = vmatmul.bf16.vlgmr.msrb.gmra.mxu1 %v12030_v17  ;;  %v10602_v2 = vld [vmem:[#allocation18 + $0x4cc] sm:$0xf]  ;;  %v7912_v44 = vor.u32 %v10538_v36, %v7909_v37  ;;  %v8556_v36 = vor.u32 %v10703_v29, %v8555_v15  ;;  %v8011_v37 = vld [vmem:[#allocation18 + $0x390] sm:$0xf] }
 0x2b6   :  { %3012 = vmatpush.bf16.msra.mxu1 %v8296_v56  ;;  %2987 = vmatpush.bf16.msrb.mxu3 %v7752_v58  ;;  %v8165_v40 = vld [vmem:[#allocation18 + $0x4e8] sm:$0xf0]  ;;  %v10535_v15 = vld [vmem:[#allocation18 + $0x2ac] sm:$0xf0] }
 0x2b7   :  { %2981 = vmatmul.bf16.vlgmr.msrb.gmra.mxu2 %v12036_v42  ;;  %v10666_v43 = vld [vmem:[#allocation18 + $0x6cc] sm:$0xf]  ;;  %v8168_v47 = vor.u32 %v10602_v2, %v8165_v40  ;;  %v10567_v2 = vld [vmem:[#allocation18 + $0x3ac] sm:$0xf0] }
 0x2b8   :  { %3025 = vmatpush.bf16.msra.mxu2 %v8552_v57  ;;  %3000 = vmatpush.bf16.msra.mxu0 %v8008_v16  ;;  %v8421_v34 = vld [vmem:[#allocation18 + $0x6e8] sm:$0xf0]  ;;  %v8267_v40 = vld [vmem:[#allocation18 + $0x590] sm:$0xf] }
 0x2b9   :  { %v10466_v45 = vld [vmem:[#allocation18 + $0x8c] sm:$0xf]  ;;  %v8424_v48 = vor.u32 %v10666_v43, %v8421_v34  ;;  %v10631_v43 = vld [vmem:[#allocation18 + $0x5ac] sm:$0xf0] }
 0x2ba   :  { %3013 = vmatpush.bf16.msra.mxu1 %v8264_v5  ;;  %2988 = vmatpush.bf16.msrb.mxu3 %v7720_v38  ;;  %v7621_v39 = vld [vmem:[#allocation18 + $0xa8] sm:$0xf0]  ;;  %v8523_v34 = vld [vmem:[#allocation18 + $0x790] sm:$0xf] }
 0x2bb   :  { %v10530_v31 = vld [vmem:[#allocation18 + $0x28c] sm:$0xf]  ;;  %v7624_v52 = vor.u32 %v10466_v45, %v7621_v39  ;;  %v8012_v45 = vor.u32 %v10567_v2, %v8011_v37  ;;  %v7723_v39 = vld [vmem:[#allocation18 + $0x150] sm:$0xf] }
 0x2bc   :  { %3026 = vmatpush.bf16.msra.mxu2 %v8520_v46  ;;  %3001 = vmatpush.bf16.msra.mxu0 %v7976_v19  ;;  %v7877_v3 = vld [vmem:[#allocation18 + $0x2a8] sm:$0xf0]  ;;  %v7787_v19 = vld [vmem:[#allocation18 + $0x1d0] sm:$0xf] }
 0x2bd   :  { %v10594_v61 = vld [vmem:[#allocation18 + $0x48c] sm:$0xf]  ;;  %v7880_v53 = vor.u32 %v10530_v31, %v7877_v3  ;;  %v7979_v3 = vld [vmem:[#allocation18 + $0x350] sm:$0xf] }
 0x2be   :  { %3014 = vmatpush.bf16.msra.mxu1 %v8232_v24  ;;  %2989 = vmatpush.bf16.msrb.mxu3 %v7688_v9  ;;  %v8133_v8 = vld [vmem:[#allocation18 + $0x4a8] sm:$0xf0]  ;;  %v10575_v24 = vld [vmem:[#allocation18 + $0x3ec] sm:$0xf0] }
 0x2bf   :  { %v10658_v50 = vld [vmem:[#allocation18 + $0x68c] sm:$0xf]  ;;  %v8136_v57 = vor.u32 %v10594_v61, %v8133_v8  ;;  %v8044_v63 = vor.u32 %v10575_v24, %v8043_v21  ;;  %v10559_v61 = vld [vmem:[#allocation18 + $0x36c] sm:$0xf0] }
 0x2c0   :  { %3027 = vmatpush.bf16.msra.mxu2 %v8488_v25  ;;  %3002 = vmatpush.bf16.msra.mxu0 %v7944_v49  ;;  %v8389_v51 = vld [vmem:[#allocation18 + $0x6a8] sm:$0xf0]  ;;  %v8299_v25 = vld [vmem:[#allocation18 + $0x5d0] sm:$0xf]  ;;  %v7788_v49 = vor.u32 %v10511_v20, %v7787_v19 }
 0x2c1   :  { %v10458_v6 = vld [vmem:[#allocation18 + $0x4c] sm:$0xf]  ;;  %v8392_v59 = vor.u32 %v10658_v50, %v8389_v51  ;;  %v8235_v8 = vld [vmem:[#allocation18 + $0x550] sm:$0xf] }
 0x2c2   :  { %3015 = vmatpush.bf16.msra.mxu1 %v8200_v33  ;;  %2990 = vmatpush.bf16.msrb.mxu3 %v7656_v41  ;;  %v7589_v56 = vld [vmem:[#allocation18 + $0x68] sm:$0xf0]  ;;  %v10503_v33 = vld [vmem:[#allocation18 + $0x1ac] sm:$0xf0] }
 0x2c3   :  { %v10522_v60 = vld [vmem:[#allocation18 + $0x24c] sm:$0xf]  ;;  %v7592_v4 = vor.u32 %v10458_v6, %v7589_v56  ;;  %v10695_v41 = vld [vmem:[#allocation18 + $0x7ac] sm:$0xf0]  ;;  %v7980_v6 = vor.u32 %v10559_v61, %v7979_v3 }
 0x2c4   :  { %3028 = vmatpush.bf16.msra.mxu2 %v8456_v35  ;;  %3003 = vmatpush.bf16.msra.mxu0 %v7912_v44  ;;  %v7845_v62 = vld [vmem:[#allocation18 + $0x268] sm:$0xf0]  ;;  %v8300_v35 = vor.u32 %v10639_v28, %v8299_v25  ;;  %v7756_v44 = vor.u32 %v10503_v33, %v7755_v32  ;;  %v8524_v31 = vor.u32 %v10695_v41, %v8523_v34  ;;  %v10623_v50 = vld [vmem:[#allocation18 + $0x56c] sm:$0xf0] }
 0x2c5   :  { %v10586_v0 = vld [vmem:[#allocation18 + $0x44c] sm:$0xf]  ;;  %v7848_v54 = vor.u32 %v10522_v60, %v7845_v62  ;;  %v8491_v51 = vld [vmem:[#allocation18 + $0x750] sm:$0xf] }
 0x2c6   :  { %3016 = vmatpush.bf16.msra.mxu1 %v8168_v47  ;;  %v8101_v1 = vld [vmem:[#allocation18 + $0x468] sm:$0xf0]  ;;  %2991 = vmatpush.bf16.msrb.mxu3 %v7624_v52  ;;  %v10495_v47 = vld [vmem:[#allocation18 + $0x16c] sm:$0xf0] }
 0x2c7   :  { %v10650_v22 = vld [vmem:[#allocation18 + $0x64c] sm:$0xf]  ;;  %v8104_v10 = vor.u32 %v10586_v0, %v8101_v1  ;;  %v10687_v52 = vld [vmem:[#allocation18 + $0x76c] sm:$0xf0] }
 0x2c8   :  { %3029 = vmatpush.bf16.msra.mxu2 %v8424_v48  ;;  %v8357_v58 = vld [vmem:[#allocation18 + $0x668] sm:$0xf0]  ;;  %3004 = vmatpush.bf16.msra.mxu0 %v7880_v53  ;;  %v8268_v48 = vor.u32 %v10631_v43, %v8267_v40  ;;  %v7724_v53 = vor.u32 %v10495_v47, %v7723_v39  ;;  %v7691_v56 = vld [vmem:[#allocation18 + $0x110] sm:$0xf]  ;;  %v8492_v60 = vor.u32 %v10687_v52, %v8491_v51 }
 0x2c9   :  { %v10450_v16 = vld [vmem:[#allocation18 + $0xc] sm:$0xf]  ;;  %v8360_v11 = vor.u32 %v10650_v22, %v8357_v58  ;;  %v7947_v62 = vld [vmem:[#allocation18 + $0x310] sm:$0xf] }
 0x2ca   :  { %v7557_v5 = vld [vmem:[#allocation18 + $0x28] sm:$0xf0]  ;;  %3017 = vmatpush.bf16.msra.mxu1 %v8136_v57  ;;  %2992 = vmatpush.bf16.msrb.mxu3 %v7592_v4  ;;  %v10487_v57 = vld [vmem:[#allocation18 + $0x12c] sm:$0xf0] }
 0x2cb   :  { %v10514_v46 = vld [vmem:[#allocation18 + $0x20c] sm:$0xf]  ;;  %v7560_v26 = vor.u32 %v10450_v16, %v7557_v5  ;;  %v10551_v0 = vld [vmem:[#allocation18 + $0x32c] sm:$0xf0]  ;;  %v7692_v4 = vor.u32 %v10487_v57, %v7691_v56  ;;  %v7789_v56 = vld [vmem:[#allocation18 + $0x1f0] sm:$0xf0] }
 0x2cc   :  { %v7813_v7 = vld [vmem:[#allocation18 + $0x228] sm:$0xf0]  ;;  %3030 = vmatpush.bf16.msra.mxu2 %v8392_v59  ;;  %3005 = vmatpush.bf16.msra.mxu0 %v7848_v54  ;;  %v8236_v59 = vor.u32 %v10623_v50, %v8235_v8  ;;  %v8203_v1 = vld [vmem:[#allocation18 + $0x510] sm:$0xf]  ;;  %v7948_v54 = vor.u32 %v10551_v0, %v7947_v62  ;;  %v10571_v57 = vld [vmem:[#allocation18 + $0x3d4] sm:$0xf] }
 0x2cd   :  { %v10578_v55 = vld [vmem:[#allocation18 + $0x40c] sm:$0xf]  ;;  %v7816_v27 = vor.u32 %v10514_v46, %v7813_v7  ;;  %v10615_v22 = vld [vmem:[#allocation18 + $0x52c] sm:$0xf0] }
 0x2ce   :  { %v8069_v12 = vld [vmem:[#allocation18 + $0x428] sm:$0xf0]  ;;  %3018 = vmatpush.bf16.msra.mxu1 %v8104_v10  ;;  %2993 = vmatpush.bf16.msrb.mxu3 %v7560_v26  ;;  %v8459_v58 = vld [vmem:[#allocation18 + $0x710] sm:$0xf]  ;;  %v8204_v7 = vor.u32 %v10615_v22, %v8203_v1  ;;  %v8301_v1 = vld [vmem:[#allocation18 + $0x5f0] sm:$0xf0] }
 0x2cf   :  { %v10642_v18 = vld [vmem:[#allocation18 + $0x60c] sm:$0xf]  ;;  %v8072_v30 = vor.u32 %v10578_v55, %v8069_v12  ;;  %v10679_v16 = vld [vmem:[#allocation18 + $0x72c] sm:$0xf0]  ;;  %v10699_v22 = vld [vmem:[#allocation18 + $0x7d4] sm:$0xf] }
 0x2d0   :  { %v8325_v38 = vld [vmem:[#allocation18 + $0x628] sm:$0xf0]  ;;  %3031 = vmatpush.bf16.msra.mxu2 %v8360_v11  ;;  %3006 = vmatpush.bf16.msra.mxu0 %v7816_v27  ;;  %v7659_v5 = vld [vmem:[#allocation18 + $0xd0] sm:$0xf]  ;;  %v8460_v10 = vor.u32 %v10679_v16, %v8459_v58  ;;  %v8557_v58 = vld [vmem:[#allocation18 + $0x7f0] sm:$0xf0] }
 0x2d1   :  { %v8328_v9 = vor.u32 %v10642_v18, %v8325_v38  ;;  %2994 = vmatmul.bf16.vlgmr.msrb.gmra.mxu3 %v12032_v13  ;;  %v10479_v46 = vld [vmem:[#allocation18 + $0xec] sm:$0xf0] }
 0x2d2   :  { %3019 = vmatpush.bf16.msra.mxu1 %v8072_v30  ;;  %3038 = vmatpush.bf16.msra.mxu3 %v7788_v49  ;;  %v7915_v11 = vld [vmem:[#allocation18 + $0x2d0] sm:$0xf]  ;;  %v7660_v20 = vor.u32 %v10479_v46, %v7659_v5  ;;  %v10499_v46 = vld [vmem:[#allocation18 + $0x194] sm:$0xf] }
 0x2d3   :  { %3007 = vmatmul.bf16.vlgmr.msra.gmra.mxu0 %v12034_v14  ;;  %v10543_v55 = vld [vmem:[#allocation18 + $0x2ec] sm:$0xf0] }
 0x2d4   :  { %3032 = vmatpush.bf16.msra.mxu2 %v8328_v9  ;;  %3051 = vmatpush.bf16.msrb.mxu0 %v8044_v63  ;;  %v8171_v12 = vld [vmem:[#allocation18 + $0x4d0] sm:$0xf]  ;;  %v7916_v21 = vor.u32 %v10543_v55, %v7915_v11  ;;  %v8560_v11 = vor.u32 %v10699_v22, %v8557_v58  ;;  %v10563_v55 = vld [vmem:[#allocation18 + $0x394] sm:$0xf] }
 0x2d5   :  { %3020 = vmatmul.bf16.vlgmr.msra.gmra.mxu1 %v12030_v17  ;;  %v10607_v18 = vld [vmem:[#allocation18 + $0x4ec] sm:$0xf0]  ;;  %v7885_v22 = vld [vmem:[#allocation18 + $0x2b0] sm:$0xf0] }
 0x2d6   :  { %3064 = vmatpush.bf16.msrb.mxu1 %v8300_v35  ;;  %3039 = vmatpush.bf16.msra.mxu3 %v7756_v44  ;;  %v8427_v38 = vld [vmem:[#allocation18 + $0x6d0] sm:$0xf]  ;;  %v8172_v26 = vor.u32 %v10607_v18, %v8171_v12  ;;  %v8013_v12 = vld [vmem:[#allocation18 + $0x3b0] sm:$0xf0] }
 0x2d7   :  { %3033 = vmatmul.bf16.vlgmr.msra.gmra.mxu2 %v12036_v42  ;;  %v10671_v19 = vld [vmem:[#allocation18 + $0x6ec] sm:$0xf0]  ;;  %v10627_v18 = vld [vmem:[#allocation18 + $0x594] sm:$0xf] }
 0x2d8   :  { %3077 = vmatpush.bf16.msrb.mxu2 %v8556_v36  ;;  %3052 = vmatpush.bf16.msrb.mxu0 %v8012_v45  ;;  %v7627_v24 = vld [vmem:[#allocation18 + $0x90] sm:$0xf]  ;;  %v8428_v27 = vor.u32 %v10671_v19, %v8427_v38  ;;  %v8269_v38 = vld [vmem:[#allocation18 + $0x5b0] sm:$0xf0] }
 0x2d9   :  { %v10471_v25 = vld [vmem:[#allocation18 + $0xac] sm:$0xf0]  ;;  %v10691_v19 = vld [vmem:[#allocation18 + $0x794] sm:$0xf] }
 0x2da   :  { %3065 = vmatpush.bf16.msrb.mxu1 %v8268_v48  ;;  %3040 = vmatpush.bf16.msra.mxu3 %v7724_v53  ;;  %v7883_v28 = vld [vmem:[#allocation18 + $0x290] sm:$0xf]  ;;  %v7628_v63 = vor.u32 %v10471_v25, %v7627_v24  ;;  %v8016_v24 = vor.u32 %v10563_v55, %v8013_v12  ;;  %v10491_v25 = vld [vmem:[#allocation18 + $0x154] sm:$0xf] }
 0x2db   :  { %v8139_v29 = vld [vmem:[#allocation18 + $0x490] sm:$0xf]  ;;  %v7884_v32 = vor.u32 %v10535_v15, %v7883_v28  ;;  %v10555_v15 = vld [vmem:[#allocation18 + $0x354] sm:$0xf] }
 0x2dc   :  { %3078 = vmatpush.bf16.msrb.mxu2 %v8524_v31  ;;  %3053 = vmatpush.bf16.msrb.mxu0 %v7980_v6  ;;  %v10599_v30 = vld [vmem:[#allocation18 + $0x4ac] sm:$0xf0]  ;;  %v10507_v6 = vld [vmem:[#allocation18 + $0x1d4] sm:$0xf] }
 0x2dd   :  { %v8395_v9 = vld [vmem:[#allocation18 + $0x690] sm:$0xf]  ;;  %v8140_v36 = vor.u32 %v10599_v30, %v8139_v29  ;;  %v7981_v29 = vld [vmem:[#allocation18 + $0x370] sm:$0xf0] }
 0x2de   :  { %3066 = vmatpush.bf16.msrb.mxu1 %v8236_v59  ;;  %3041 = vmatpush.bf16.msra.mxu3 %v7692_v4  ;;  %v10663_v49 = vld [vmem:[#allocation18 + $0x6ac] sm:$0xf0]  ;;  %v8045_v59 = vld [vmem:[#allocation18 + $0x3f0] sm:$0xf0] }
 0x2df   :  { %v7595_v33 = vld [vmem:[#allocation18 + $0x50] sm:$0xf]  ;;  %v8396_v37 = vor.u32 %v10663_v49, %v8395_v9  ;;  %v8048_v5 = vor.u32 %v10571_v57, %v8045_v59  ;;  %v10619_v30 = vld [vmem:[#allocation18 + $0x554] sm:$0xf] }
 0x2e0   :  { %3079 = vmatpush.bf16.msrb.mxu2 %v8492_v60  ;;  %3054 = vmatpush.bf16.msrb.mxu0 %v7948_v54  ;;  %v10463_v35 = vld [vmem:[#allocation18 + $0x6c] sm:$0xf0]  ;;  %v10635_v60 = vld [vmem:[#allocation18 + $0x5d4] sm:$0xf]  ;;  %v7792_v54 = vor.u32 %v10507_v6, %v7789_v56 }
 0x2e1   :  { %v7851_v2 = vld [vmem:[#allocation18 + $0x250] sm:$0xf]  ;;  %v7596_v39 = vor.u32 %v10463_v35, %v7595_v33  ;;  %v8237_v9 = vld [vmem:[#allocation18 + $0x570] sm:$0xf0]  ;;  %v7984_v33 = vor.u32 %v10555_v15, %v7981_v29 }
 0x2e2   :  { %3067 = vmatpush.bf16.msrb.mxu1 %v8204_v7  ;;  %3042 = vmatpush.bf16.msra.mxu3 %v7660_v20  ;;  %v10527_v40 = vld [vmem:[#allocation18 + $0x26c] sm:$0xf0]  ;;  %v7757_v7 = vld [vmem:[#allocation18 + $0x1b0] sm:$0xf0] }
 0x2e3   :  { %v8107_v43 = vld [vmem:[#allocation18 + $0x450] sm:$0xf]  ;;  %v7852_v47 = vor.u32 %v10527_v40, %v7851_v2  ;;  %v8525_v20 = vld [vmem:[#allocation18 + $0x7b0] sm:$0xf0] }
 0x2e4   :  { %3080 = vmatpush.bf16.msrb.mxu2 %v8460_v10  ;;  %3055 = vmatpush.bf16.msrb.mxu0 %v7916_v21  ;;  %v10591_v34 = vld [vmem:[#allocation18 + $0x46c] sm:$0xf0]  ;;  %v8304_v10 = vor.u32 %v10635_v60, %v8301_v1  ;;  %v7760_v21 = vor.u32 %v10499_v46, %v7757_v7  ;;  %v8528_v28 = vor.u32 %v10691_v19, %v8525_v20  ;;  %v10683_v49 = vld [vmem:[#allocation18 + $0x754] sm:$0xf] }
 0x2e5   :  { %v8363_v41 = vld [vmem:[#allocation18 + $0x650] sm:$0xf]  ;;  %v8108_v61 = vor.u32 %v10591_v34, %v8107_v43  ;;  %v10483_v35 = vld [vmem:[#allocation18 + $0x114] sm:$0xf] }
 0x2e6   :  { %3068 = vmatpush.bf16.msrb.mxu1 %v8172_v26  ;;  %v10655_v44 = vld [vmem:[#allocation18 + $0x66c] sm:$0xf0]  ;;  %3043 = vmatpush.bf16.msra.mxu3 %v7628_v63  ;;  %v7725_v26 = vld [vmem:[#allocation18 + $0x170] sm:$0xf0] }
 0x2e7   :  { %v7563_v45 = vld [vmem:[#allocation18 + $0x10] sm:$0xf]  ;;  %v8364_v8 = vor.u32 %v10655_v44, %v8363_v41  ;;  %v8493_v63 = vld [vmem:[#allocation18 + $0x770] sm:$0xf0] }
 0x2e8   :  { %3081 = vmatpush.bf16.msrb.mxu2 %v8428_v27  ;;  %3056 = vmatpush.bf16.msrb.mxu0 %v7884_v32  ;;  %v10455_v48 = vld [vmem:[#allocation18 + $0x2c] sm:$0xf0]  ;;  %v8272_v27 = vor.u32 %v10627_v18, %v8269_v38  ;;  %v7728_v32 = vor.u32 %v10491_v25, %v7725_v26  ;;  %v8496_v2 = vor.u32 %v10683_v49, %v8493_v63  ;;  %v10547_v40 = vld [vmem:[#allocation18 + $0x314] sm:$0xf] }
 0x2e9   :  { %v7819_v31 = vld [vmem:[#allocation18 + $0x210] sm:$0xf]  ;;  %v7564_v62 = vor.u32 %v10455_v48, %v7563_v45  ;;  %v7949_v43 = vld [vmem:[#allocation18 + $0x330] sm:$0xf0] }
 0x2ea   :  { %v10519_v3 = vld [vmem:[#allocation18 + $0x22c] sm:$0xf0]  ;;  %3069 = vmatpush.bf16.msrb.mxu1 %v8140_v36  ;;  %3044 = vmatpush.bf16.msra.mxu3 %v7596_v39  ;;  %v7693_v36 = vld [vmem:[#allocation18 + $0x130] sm:$0xf0] }
 0x2eb   :  { %v8075_v50 = vld [vmem:[#allocation18 + $0x410] sm:$0xf]  ;;  %v7820_v0 = vor.u32 %v10519_v3, %v7819_v31  ;;  %v10611_v34 = vld [vmem:[#allocation18 + $0x514] sm:$0xf]  ;;  %v7696_v39 = vor.u32 %v10483_v35, %v7693_v36  ;;  %v10512_v35 = vld [vmem:[#allocation18 + $0x1f4] sm:$0xf0] }
 0x2ec   :  { %3082 = vmatpush.bf16.msrb.mxu2 %v8396_v37  ;;  %v10583_v51 = vld [vmem:[#allocation18 + $0x42c] sm:$0xf0]  ;;  %3057 = vmatpush.bf16.msrb.mxu0 %v7852_v47  ;;  %v8240_v37 = vor.u32 %v10619_v30, %v8237_v9  ;;  %v8205_v41 = vld [vmem:[#allocation18 + $0x530] sm:$0xf0]  ;;  %v7952_v47 = vor.u32 %v10547_v40, %v7949_v43  ;;  %v8051_v36 = vld [vmem:[#allocation18 + $0x3d8] sm:$0xf] }
 0x2ed   :  { %v8331_v52 = vld [vmem:[#allocation18 + $0x610] sm:$0xf]  ;;  %v8076_v16 = vor.u32 %v10583_v51, %v8075_v50  ;;  %v10675_v44 = vld [vmem:[#allocation18 + $0x714] sm:$0xf]  ;;  %v8208_v3 = vor.u32 %v10611_v34, %v8205_v41  ;;  %v10640_v34 = vld [vmem:[#allocation18 + $0x5f4] sm:$0xf0] }
 0x2ee   :  { %v10647_v53 = vld [vmem:[#allocation18 + $0x62c] sm:$0xf0]  ;;  %3070 = vmatpush.bf16.msrb.mxu1 %v8108_v61  ;;  %3045 = vmatpush.bf16.msra.mxu3 %v7564_v62  ;;  %v8461_v45 = vld [vmem:[#allocation18 + $0x730] sm:$0xf0]  ;;  %v8563_v41 = vld [vmem:[#allocation18 + $0x7d8] sm:$0xf] }
 0x2ef   :  { %v8332_v4 = vor.u32 %v10647_v53, %v8331_v52  ;;  %v10475_v48 = vld [vmem:[#allocation18 + $0xd4] sm:$0xf]  ;;  %v8464_v61 = vor.u32 %v10675_v44, %v8461_v45  ;;  %v10704_v44 = vld [vmem:[#allocation18 + $0x7f4] sm:$0xf0] }
 0x2f0   :  { %3083 = vmatpush.bf16.msrb.mxu2 %v8364_v8  ;;  %3058 = vmatpush.bf16.msrb.mxu0 %v7820_v0  ;;  %v7661_v31 = vld [vmem:[#allocation18 + $0xf0] sm:$0xf0] }
 0x2f1   :  { %3046 = vmatmul.bf16.vlgmr.msra.gmra.mxu3 %v12032_v13  ;;  %v10539_v8 = vld [vmem:[#allocation18 + $0x2d4] sm:$0xf]  ;;  %v7664_v56 = vor.u32 %v10475_v48, %v7661_v31  ;;  %v7763_v31 = vld [vmem:[#allocation18 + $0x198] sm:$0xf] }
 0x2f2   :  { %3071 = vmatpush.bf16.msrb.mxu1 %v8076_v16  ;;  %3090 = vmatpush.bf16.msrb.mxu3 %v7792_v54  ;;  %v7917_v50 = vld [vmem:[#allocation18 + $0x2f0] sm:$0xf0] }
 0x2f3   :  { %3059 = vmatmul.bf16.vlgmr.msrb.gmra.mxu0 %v12034_v14  ;;  %v10603_v51 = vld [vmem:[#allocation18 + $0x4d4] sm:$0xf]  ;;  %v7920_v57 = vor.u32 %v10539_v8, %v7917_v50  ;;  %v8564_v8 = vor.u32 %v10704_v44, %v8563_v41  ;;  %v8019_v50 = vld [vmem:[#allocation18 + $0x398] sm:$0xf] }
 0x2f4   :  { %3084 = vmatpush.bf16.msrb.mxu2 %v8332_v4  ;;  %3103 = vmatpush.bf16.msra.mxu0 %v8048_v5  ;;  %v8173_v52 = vld [vmem:[#allocation18 + $0x4f0] sm:$0xf0] }
 0x2f5   :  { %3072 = vmatmul.bf16.vlgmr.msrb.gmra.mxu1 %v12030_v17  ;;  %v10667_v53 = vld [vmem:[#allocation18 + $0x6d4] sm:$0xf]  ;;  %v8176_v62 = vor.u32 %v10603_v51, %v8173_v52  ;;  %v10568_v51 = vld [vmem:[#allocation18 + $0x3b4] sm:$0xf0] }
 0x2f6   :  { %3116 = vmatpush.bf16.msra.mxu1 %v8304_v10  ;;  %3091 = vmatpush.bf16.msrb.mxu3 %v7760_v21  ;;  %v8429_v6 = vld [vmem:[#allocation18 + $0x6f0] sm:$0xf0]  ;;  %v8275_v52 = vld [vmem:[#allocation18 + $0x598] sm:$0xf] }
 0x2f7   :  { %3085 = vmatmul.bf16.vlgmr.msrb.gmra.mxu2 %v12036_v42  ;;  %v10467_v59 = vld [vmem:[#allocation18 + $0x94] sm:$0xf]  ;;  %v8432_v0 = vor.u32 %v10667_v53, %v8429_v6  ;;  %v10632_v53 = vld [vmem:[#allocation18 + $0x5b4] sm:$0xf0] }
 0x2f8   :  { %3129 = vmatpush.bf16.msra.mxu2 %v8560_v11  ;;  %3104 = vmatpush.bf16.msra.mxu0 %v8016_v24  ;;  %v7629_v60 = vld [vmem:[#allocation18 + $0xb0] sm:$0xf0]  ;;  %v8531_v6 = vld [vmem:[#allocation18 + $0x798] sm:$0xf] }
 0x2f9   :  { %v10531_v1 = vld [vmem:[#allocation18 + $0x294] sm:$0xf]  ;;  %v7632_v5 = vor.u32 %v10467_v59, %v7629_v60  ;;  %v8020_v59 = vor.u32 %v10568_v51, %v8019_v50  ;;  %v7731_v60 = vld [vmem:[#allocation18 + $0x158] sm:$0xf] }
 0x2fa   :  { %3117 = vmatpush.bf16.msra.mxu1 %v8272_v27  ;;  %3092 = vmatpush.bf16.msrb.mxu3 %v7728_v32  ;;  %v10595_v58 = vld [vmem:[#allocation18 + $0x494] sm:$0xf]  ;;  %v7888_v46 = vor.u32 %v10531_v1, %v7885_v22  ;;  %v7987_v22 = vld [vmem:[#allocation18 + $0x358] sm:$0xf] }
 0x2fb   :  { %v8141_v16 = vld [vmem:[#allocation18 + $0x4b0] sm:$0xf0]  ;;  %v10536_v50 = vld [vmem:[#allocation18 + $0x2b4] sm:$0xf0] }
 0x2fc   :  { %3130 = vmatpush.bf16.msra.mxu2 %v8528_v28  ;;  %3105 = vmatpush.bf16.msra.mxu0 %v7984_v33  ;;  %v10659_v4 = vld [vmem:[#allocation18 + $0x694] sm:$0xf]  ;;  %v8144_v11 = vor.u32 %v10595_v58, %v8141_v16  ;;  %v7795_v33 = vld [vmem:[#allocation18 + $0x1d8] sm:$0xf] }
 0x2fd   :  { %v8397_v54 = vld [vmem:[#allocation18 + $0x6b0] sm:$0xf0]  ;;  %v10560_v58 = vld [vmem:[#allocation18 + $0x374] sm:$0xf0] }
 0x2fe   :  { %3118 = vmatpush.bf16.msra.mxu1 %v8240_v37  ;;  %3093 = vmatpush.bf16.msrb.mxu3 %v7696_v39  ;;  %v10459_v7 = vld [vmem:[#allocation18 + $0x54] sm:$0xf]  ;;  %v8400_v55 = vor.u32 %v10659_v4, %v8397_v54  ;;  %v10576_v37 = vld [vmem:[#allocation18 + $0x3f4] sm:$0xf0] }
 0x2ff   :  { %v7597_v10 = vld [vmem:[#allocation18 + $0x70] sm:$0xf0]  ;;  %v8052_v48 = vor.u32 %v10576_v37, %v8051_v36  ;;  %v8243_v16 = vld [vmem:[#allocation18 + $0x558] sm:$0xf] }
 0x300   :  { %3131 = vmatpush.bf16.msra.mxu2 %v8496_v2  ;;  %3106 = vmatpush.bf16.msra.mxu0 %v7952_v47  ;;  %v10523_v12 = vld [vmem:[#allocation18 + $0x254] sm:$0xf]  ;;  %v7600_v25 = vor.u32 %v10459_v7, %v7597_v10  ;;  %v8307_v2 = vld [vmem:[#allocation18 + $0x5d8] sm:$0xf]  ;;  %v7796_v47 = vor.u32 %v10512_v35, %v7795_v33  ;;  %v12062_v7 = vld [vmem:[#allocation19] sm:$0xff] }
 0x301   :  { %v7853_v18 = vld [vmem:[#allocation18 + $0x270] sm:$0xf0]  ;;  %v10624_v4 = vld [vmem:[#allocation18 + $0x574] sm:$0xf0] }
 0x302   :  { %3119 = vmatpush.bf16.msra.mxu1 %v8208_v3  ;;  %3094 = vmatpush.bf16.msrb.mxu3 %v7664_v56  ;;  %v10587_v38 = vld [vmem:[#allocation18 + $0x454] sm:$0xf]  ;;  %v7856_v26 = vor.u32 %v10523_v12, %v7853_v18  ;;  %v10504_v3 = vld [vmem:[#allocation18 + $0x1b4] sm:$0xf0] }
 0x303   :  { %v8109_v19 = vld [vmem:[#allocation18 + $0x470] sm:$0xf0]  ;;  %v10696_v56 = vld [vmem:[#allocation18 + $0x7b4] sm:$0xf0] }
 0x304   :  { %3132 = vmatpush.bf16.msra.mxu2 %v8464_v61  ;;  %3107 = vmatpush.bf16.msra.mxu0 %v7920_v57  ;;  %v10651_v20 = vld [vmem:[#allocation18 + $0x654] sm:$0xf]  ;;  %v8112_v29 = vor.u32 %v10587_v38, %v8109_v19  ;;  %v8308_v61 = vor.u32 %v10640_v34, %v8307_v2  ;;  %v7764_v57 = vor.u32 %v10504_v3, %v7763_v31  ;;  %v8499_v54 = vld [vmem:[#allocation18 + $0x758] sm:$0xf] }
 0x305   :  { %v8365_v21 = vld [vmem:[#allocation18 + $0x670] sm:$0xf0]  ;;  %v8532_v1 = vor.u32 %v10696_v56, %v8531_v6  ;;  %v7699_v12 = vld [vmem:[#allocation18 + $0x118] sm:$0xf]  ;;  %v8244_v19 = vor.u32 %v10624_v4, %v8243_v16 }
 0x306   :  { %3120 = vmatpush.bf16.msra.mxu1 %v8176_v62  ;;  %v10451_v24 = vld [vmem:[#allocation18 + $0x14] sm:$0xf]  ;;  %3095 = vmatpush.bf16.msrb.mxu3 %v7632_v5  ;;  %v8368_v30 = vor.u32 %v10651_v20, %v8365_v21  ;;  %v10496_v62 = vld [vmem:[#allocation18 + $0x174] sm:$0xf0] }
 0x307   :  { %v7565_v27 = vld [vmem:[#allocation18 + $0x30] sm:$0xf0]  ;;  %v10688_v5 = vld [vmem:[#allocation18 + $0x774] sm:$0xf0]  ;;  %v7732_v10 = vor.u32 %v10496_v62, %v7731_v60 }
 0x308   :  { %3133 = vmatpush.bf16.msra.mxu2 %v8432_v0  ;;  %3108 = vmatpush.bf16.msra.mxu0 %v7888_v46  ;;  %v10515_v28 = vld [vmem:[#allocation18 + $0x214] sm:$0xf]  ;;  %v7568_v40 = vor.u32 %v10451_v24, %v7565_v27  ;;  %v8276_v0 = vor.u32 %v10632_v53, %v8275_v52  ;;  %v10488_v18 = vld [vmem:[#allocation18 + $0x134] sm:$0xf0]  ;;  %v8500_v20 = vor.u32 %v10688_v5, %v8499_v54 }
 0x309   :  { %v7821_v15 = vld [vmem:[#allocation18 + $0x230] sm:$0xf0]  ;;  %v7955_v38 = vld [vmem:[#allocation18 + $0x318] sm:$0xf] }
 0x30a   :  { %3121 = vmatpush.bf16.msra.mxu1 %v8144_v11  ;;  %v10579_v9 = vld [vmem:[#allocation18 + $0x414] sm:$0xf]  ;;  %3096 = vmatpush.bf16.msrb.mxu3 %v7600_v25  ;;  %v7824_v43 = vor.u32 %v10515_v28, %v7821_v15  ;;  %v2852_v46 = vpop.f32.mrf.mxu0  ;;  %v7988_v11 = vor.u32 %v10560_v58, %v7987_v22  ;;  %v10552_v21 = vld [vmem:[#allocation18 + $0x334] sm:$0xf0]  ;;  %v1534_v28 = vperm.slane %v12062_v7, 0  ;;  %v7700_v15 = vor.u32 %v10488_v18, %v7699_v12 }
 0x30b   :  { %v8077_v49 = vld [vmem:[#allocation18 + $0x430] sm:$0xf0]  ;;  %v8211_v24 = vld [vmem:[#allocation18 + $0x518] sm:$0xf] }
 0x30c   :  { %3134 = vmatpush.bf16.msra.mxu2 %v8400_v55  ;;  %v10643_v63 = vld [vmem:[#allocation18 + $0x614] sm:$0xf]  ;;  %3109 = vmatpush.bf16.msra.mxu0 %v7856_v26  ;;  %v8080_v45 = vor.u32 %v10579_v9, %v8077_v49  ;;  %v2865_v55 = vpop.f32.mrf.mxu1  ;;  %v10616_v25 = vld [vmem:[#allocation18 + $0x534] sm:$0xf0] }
 0x30d   :  { %v8333_v32 = vld [vmem:[#allocation18 + $0x630] sm:$0xf0]  ;;  %v8467_v26 = vld [vmem:[#allocation18 + $0x718] sm:$0xf]  ;;  %v8212_v49 = vor.u32 %v10616_v25, %v8211_v24 }
 0x30e   :  { %3122 = vmatpush.bf16.msra.mxu1 %v8112_v29  ;;  %v8336_v39 = vor.u32 %v10643_v63, %v8333_v32  ;;  %3097 = vmatpush.bf16.msrb.mxu3 %v7568_v40  ;;  %v10680_v27 = vld [vmem:[#allocation18 + $0x734] sm:$0xf0]  ;;  %v7956_v29 = vor.u32 %v10552_v21, %v7955_v38 }
 0x30f   :  { %v10480_v9 = vld [vmem:[#allocation18 + $0xf4] sm:$0xf0]  ;;  %v8468_v63 = vor.u32 %v10680_v27, %v8467_v26 }
 0x310   :  { %3135 = vmatpush.bf16.msra.mxu2 %v8368_v30  ;;  %3110 = vmatpush.bf16.msra.mxu0 %v7824_v43  ;;  %v7667_v30 = vld [vmem:[#allocation18 + $0xd8] sm:$0xf]  ;;  %v2839_v32 = vpop.f32.mrf.mxu3 }
 0x311   :  { %3098 = vmatmul.bf16.vlgmr.msrb.gmra.mxu3 %v12032_v13  ;;  %v7923_v33 = vld [vmem:[#allocation18 + $0x2d8] sm:$0xf]  ;;  %v2840_v37 = vadd.f32 %v2839_v32, %v1534_v28  ;;  %v2878_v2 = vpop.f32.mrf.mxu2  ;;  %v10508_v32 = vld [vmem:[#allocation18 + $0x1dc] sm:$0xf] }
 0x312   :  { %3123 = vmatpush.bf16.msra.mxu1 %v8080_v45  ;;  %3142 = vmatpush.bf16.msra.mxu3 %v7796_v47  ;;  %v10544_v35 = vld [vmem:[#allocation18 + $0x2f4] sm:$0xf0]  ;;  %v2854_v41 = vpop.f32.mrf.mxu0  ;;  %v7668_v45 = vor.u32 %v10480_v9, %v7667_v30 }
 0x313   :  { %3111 = vmatmul.bf16.vlgmr.msra.gmra.mxu0 %v12034_v14  ;;  %v8179_v36 = vld [vmem:[#allocation18 + $0x4d8] sm:$0xf]  ;;  %v2853_v44 = vadd.f32 %v2852_v46, %v2840_v37  ;;  %v10572_v37 = vld [vmem:[#allocation18 + $0x3dc] sm:$0xf] }
 0x314   :  { %3136 = vmatpush.bf16.msra.mxu2 %v8336_v39  ;;  %3155 = vmatpush.bf16.msrb.mxu0 %v8052_v48  ;;  %v10608_v40 = vld [vmem:[#allocation18 + $0x4f4] sm:$0xf0]  ;;  %v7924_v39 = vor.u32 %v10544_v35, %v7923_v33  ;;  %v2867_v47 = vpop.f32.mrf.mxu1 }
 0x315   :  { %3124 = vmatmul.bf16.vlgmr.msra.gmra.mxu1 %v12030_v17  ;;  %v8435_v43 = vld [vmem:[#allocation18 + $0x6d8] sm:$0xf]  ;;  %v8180_v3 = vor.u32 %v10608_v40, %v8179_v36  ;;  %v2866_v52 = vadd.f32 %v2865_v55, %v2853_v44  ;;  %v7797_v36 = vld [vmem:[#allocation18 + $0x1f8] sm:$0xf0] }
 0x316   :  { %3168 = vmatpush.bf16.msrb.mxu1 %v8308_v61  ;;  %3143 = vmatpush.bf16.msra.mxu3 %v7764_v57  ;;  %v10672_v34 = vld [vmem:[#allocation18 + $0x6f4] sm:$0xf0]  ;;  %v8053_v40 = vld [vmem:[#allocation18 + $0x3f8] sm:$0xf0] }
 0x317   :  { %3137 = vmatmul.bf16.vlgmr.msra.gmra.mxu2 %v12036_v42  ;;  %v7635_v48 = vld [vmem:[#allocation18 + $0x98] sm:$0xf]  ;;  %v8436_v61 = vor.u32 %v10672_v34, %v8435_v43  ;;  %v12065_v57 = vadd.f32 %v2878_v2, %v2866_v52  ;;  %v1535_v2 = vperm.slane %v12062_v7, 1  ;;  %v10636_v43 = vld [vmem:[#allocation18 + $0x5dc] sm:$0xf] }
 0x318   :  { %3181 = vmatpush.bf16.msrb.mxu2 %v8564_v8  ;;  %3156 = vmatpush.bf16.msrb.mxu0 %v8020_v59  ;;  %v10472_v31 = vld [vmem:[#allocation18 + $0xb4] sm:$0xf0]  ;;  %v2841_v16 = vpop.f32.mrf.mxu3  ;;  %v8309_v34 = vld [vmem:[#allocation18 + $0x5f8] sm:$0xf0] }
 0x319   :  { %v7891_v8 = vld [vmem:[#allocation18 + $0x298] sm:$0xf]  ;;  %v7636_v59 = vor.u32 %v10472_v31, %v7635_v48  ;;  %v3248_v46 = vrot.slane %v12065_v57, 4  ;;  %v10700_v47 = vld [vmem:[#allocation18 + $0x7dc] sm:$0xf] }
 0x31a   :  { %3169 = vmatpush.bf16.msrb.mxu1 %v8276_v0  ;;  %3144 = vmatpush.bf16.msra.mxu3 %v7732_v10  ;;  %v8147_v51 = vld [vmem:[#allocation18 + $0x498] sm:$0xf]  ;;  %v7892_v60 = vor.u32 %v10536_v50, %v7891_v8  ;;  %v3304_v10 = vmul.f32 %v12065_v57, %v12065_v57  ;;  %v2904_v18 = vpop.f32.mrf.mxu0  ;;  %v8565_v48 = vld [vmem:[#allocation18 + $0x7f8] sm:$0xf0] }
 0x31b   :  { %v10600_v53 = vld [vmem:[#allocation18 + $0x4b4] sm:$0xf0]  ;;  %v3249_v24 = vadd.f32 %v3248_v46, %v12065_v57  ;;  %v10500_v50 = vld [vmem:[#allocation18 + $0x19c] sm:$0xf] }
 0x31c   :  { %3182 = vmatpush.bf16.msrb.mxu2 %v8532_v1  ;;  %3157 = vmatpush.bf16.msrb.mxu0 %v7988_v11  ;;  %v8403_v6 = vld [vmem:[#allocation18 + $0x698] sm:$0xf]  ;;  %v8148_v22 = vor.u32 %v10600_v53, %v8147_v51  ;;  %v2880_v11 = vpop.f32.mrf.mxu2  ;;  %v3312_v25 = vrot.slane %v3304_v10, 4  ;;  %v2917_v28 = vpop.f32.mrf.mxu1  ;;  %v7765_v51 = vld [vmem:[#allocation18 + $0x1b8] sm:$0xf0] }
 0x31d   :  { %v10664_v56 = vld [vmem:[#allocation18 + $0x6b4] sm:$0xf0]  ;;  %v3250_v33 = vrot.slane %v3249_v24, 2  ;;  %v8277_v16 = vld [vmem:[#allocation18 + $0x5b8] sm:$0xf0] }
 0x31e   :  { %3170 = vmatpush.bf16.msrb.mxu1 %v8244_v19  ;;  %3145 = vmatpush.bf16.msra.mxu3 %v7700_v15  ;;  %v7603_v62 = vld [vmem:[#allocation18 + $0x58] sm:$0xf]  ;;  %v8404_v58 = vor.u32 %v10664_v56, %v8403_v6  ;;  %v3313_v35 = vadd.f32 %v3312_v25, %v3304_v10  ;;  %v8056_v6 = vor.u32 %v10572_v37, %v8053_v40  ;;  %v10692_v10 = vld [vmem:[#allocation18 + $0x79c] sm:$0xf] }
 0x31f   :  { %v10464_v0 = vld [vmem:[#allocation18 + $0x74] sm:$0xf0]  ;;  %v3251_v41 = vadd.f32 %v3250_v33, %v3249_v24  ;;  %v8533_v11 = vld [vmem:[#allocation18 + $0x7b8] sm:$0xf0] }
 0x320   :  { %3183 = vmatpush.bf16.msrb.mxu2 %v8500_v20  ;;  %3158 = vmatpush.bf16.msrb.mxu0 %v7956_v29  ;;  %v7859_v1 = vld [vmem:[#allocation18 + $0x258] sm:$0xf]  ;;  %v7604_v26 = vor.u32 %v10464_v0, %v7603_v62  ;;  %v3314_v44 = vrot.slane %v3313_v35, 2  ;;  %v2891_v8 = vpop.f32.mrf.mxu3  ;;  %v8021_v62 = vld [vmem:[#allocation18 + $0x3b8] sm:$0xf0]  ;;  %v8312_v0 = vor.u32 %v10636_v43, %v8309_v34 }
 0x321   :  { %v10528_v4 = vld [vmem:[#allocation18 + $0x274] sm:$0xf0]  ;;  %v3252_v52 = vrot.slane %v3251_v41, 1  ;;  %v2892_v56 = vadd.f32 %v2891_v8, %v1535_v2  ;;  %v7733_v24 = vld [vmem:[#allocation18 + $0x178] sm:$0xf0] }
 0x322   :  { %3171 = vmatpush.bf16.msrb.mxu1 %v8212_v49  ;;  %3146 = vmatpush.bf16.msra.mxu3 %v7668_v45  ;;  %v8115_v54 = vld [vmem:[#allocation18 + $0x458] sm:$0xf]  ;;  %v7860_v27 = vor.u32 %v10528_v4, %v7859_v1  ;;  %v3315_v53 = vadd.f32 %v3314_v44, %v3313_v35  ;;  %v8568_v1 = vor.u32 %v10700_v47, %v8565_v48  ;;  %v10484_v33 = vld [vmem:[#allocation18 + $0x11c] sm:$0xf] }
 0x323   :  { %v10592_v5 = vld [vmem:[#allocation18 + $0x474] sm:$0xf0]  ;;  %v3253_v4 = vadd.f32 %v3252_v52, %v3251_v41  ;;  %v7701_v43 = vld [vmem:[#allocation18 + $0x138] sm:$0xf0] }
 0x324   :  { %3184 = vmatpush.bf16.msrb.mxu2 %v8468_v63  ;;  %3159 = vmatpush.bf16.msrb.mxu0 %v7924_v39  ;;  %v8371_v55 = vld [vmem:[#allocation18 + $0x658] sm:$0xf]  ;;  %v8116_v30 = vor.u32 %v10592_v5, %v8115_v54  ;;  %v3316_v54 = vrot.slane %v3315_v53, 1  ;;  %v2905_v5 = vadd.f32 %v2904_v18, %v2892_v56  ;;  %v2919_v46 = vpop.f32.mrf.mxu1  ;;  %v8536_v18 = vor.u32 %v10692_v10, %v8533_v11  ;;  %v10548_v34 = vld [vmem:[#allocation18 + $0x31c] sm:$0xf] }
 0x325   :  { %v10656_v12 = vld [vmem:[#allocation18 + $0x674] sm:$0xf0]  ;;  %v8213_v47 = vld [vmem:[#allocation18 + $0x538] sm:$0xf0]  ;;  %v1536_v11 = vperm.slane %v12062_v7, 2 }
 0x326   :  { %3172 = vmatpush.bf16.msrb.mxu1 %v8180_v3  ;;  %v7571_v38 = vld [vmem:[#allocation18 + $0x18] sm:$0xf]  ;;  %3147 = vmatpush.bf16.msra.mxu3 %v7636_v59  ;;  %v8372_v9 = vor.u32 %v10656_v12, %v8371_v55  ;;  %v2930_v59 = vpop.f32.mrf.mxu2  ;;  %v7768_v55 = vor.u32 %v10500_v50, %v7765_v51  ;;  %v8469_v8 = vld [vmem:[#allocation18 + $0x738] sm:$0xf0] }
 0x327   :  { %v10456_v19 = vld [vmem:[#allocation18 + $0x34] sm:$0xf0]  ;;  %v10476_v51 = vld [vmem:[#allocation18 + $0xdc] sm:$0xf] }
 0x328   :  { %3185 = vmatpush.bf16.msrb.mxu2 %v8436_v61  ;;  %v7827_v20 = vld [vmem:[#allocation18 + $0x218] sm:$0xf]  ;;  %3160 = vmatpush.bf16.msrb.mxu0 %v7892_v60  ;;  %v7572_v45 = vor.u32 %v10456_v19, %v7571_v38  ;;  %v7800_v61 = vor.u32 %v10508_v32, %v7797_v36  ;;  %v10564_v60 = vld [vmem:[#allocation18 + $0x39c] sm:$0xf]  ;;  %v12073_v38 = vmul.f32 %v3253_v4, %v11823_v23  ;;  %v2893_v32 = vpop.f32.mrf.mxu3 }
 0x329   :  { %v10520_v21 = vld [vmem:[#allocation18 + $0x234] sm:$0xf0]  ;;  %v8024_v12 = vor.u32 %v10564_v60, %v8021_v62  ;;  %v3317_v19 = vadd.f32 %v3316_v54, %v3315_v53  ;;  %v7669_v52 = vld [vmem:[#allocation18 + $0xf8] sm:$0xf0] }
 0x32a   :  { %v8083_v15 = vld [vmem:[#allocation18 + $0x418] sm:$0xf]  ;;  %3173 = vmatpush.bf16.msrb.mxu1 %v8148_v22  ;;  %3148 = vmatpush.bf16.msra.mxu3 %v7604_v26  ;;  %v7828_v39 = vor.u32 %v10520_v21, %v7827_v20  ;;  %v2906_v22 = vpop.f32.mrf.mxu0  ;;  %v2918_v20 = vadd.f32 %v2917_v28, %v2905_v5  ;;  %v10492_v21 = vld [vmem:[#allocation18 + $0x15c] sm:$0xf] }
 0x32b   :  { %v10584_v29 = vld [vmem:[#allocation18 + $0x434] sm:$0xf0]  ;;  %v10556_v26 = vld [vmem:[#allocation18 + $0x35c] sm:$0xf]  ;;  %v7736_v37 = vor.u32 %v10492_v21, %v7733_v24  ;;  %v7672_v21 = vor.u32 %v10476_v51, %v7669_v52 }
 0x32c   :  { %3186 = vmatpush.bf16.msrb.mxu2 %v8404_v58  ;;  %v8339_v49 = vld [vmem:[#allocation18 + $0x618] sm:$0xf]  ;;  %3161 = vmatpush.bf16.msrb.mxu0 %v7860_v27  ;;  %v8084_v31 = vor.u32 %v10584_v29, %v8083_v15  ;;  %v10628_v58 = vld [vmem:[#allocation18 + $0x59c] sm:$0xf]  ;;  %v3360_v29 = vmul.f32 %v3317_v19, %v11823_v23 }
 0x32d   :  { %v10648_v63 = vld [vmem:[#allocation18 + $0x634] sm:$0xf0]  ;;  %v8280_v25 = vor.u32 %v10628_v58, %v8277_v16  ;;  %v7989_v27 = vld [vmem:[#allocation18 + $0x378] sm:$0xf0] }
 0x32e   :  { %3174 = vmatpush.bf16.msrb.mxu1 %v8116_v30  ;;  %v8340_v3 = vor.u32 %v10648_v63, %v8339_v49  ;;  %3149 = vmatpush.bf16.msra.mxu3 %v7572_v45  ;;  %v10620_v15 = vld [vmem:[#allocation18 + $0x55c] sm:$0xf]  ;;  %v3368_v30 = vmul.f32 %v12073_v38, %v12073_v38  ;;  %v7992_v2 = vor.u32 %v10556_v26, %v7989_v27  ;;  %v2932_v40 = vpop.f32.mrf.mxu2 }
 0x32f   :  { %v8245_v28 = vld [vmem:[#allocation18 + $0x578] sm:$0xf0] }
 0x330   :  { %3187 = vmatpush.bf16.msrb.mxu2 %v8372_v9  ;;  %3162 = vmatpush.bf16.msrb.mxu0 %v7828_v39  ;;  %v12078_v9 = vadd.f32 %v2930_v59, %v2918_v20  ;;  %v10684_v49 = vld [vmem:[#allocation18 + $0x75c] sm:$0xf]  ;;  %v8248_v41 = vor.u32 %v10620_v15, %v8245_v28  ;;  %v3376_v48 = vsub.f32 %v3360_v29, %v3368_v30 }
 0x331   :  { %3150 = vmatmul.bf16.vlgmr.msra.gmra.mxu3 %v12032_v13  ;;  %v8501_v63 = vld [vmem:[#allocation18 + $0x778] sm:$0xf0]  ;;  %v7704_v59 = vor.u32 %v10484_v33, %v7701_v43 }
 0x332   :  { %3175 = vmatpush.bf16.msrb.mxu1 %v8084_v31  ;;  %3194 = vmatpush.bf16.msrb.mxu3 %v7800_v61  ;;  %v3254_v35 = vrot.slane %v12078_v9, 4  ;;  %v3305_v36 = vmul.f32 %v12078_v9, %v12078_v9  ;;  %v8504_v44 = vor.u32 %v10684_v49, %v8501_v63  ;;  %v7957_v45 = vld [vmem:[#allocation18 + $0x338] sm:$0xf0]  ;;  %v2956_v50 = vpop.f32.mrf.mxu0  ;;  %v2969_v56 = vpop.f32.mrf.mxu1  ;;  %v12088_v54 = vadd.f32 0.8, %v3376_v48 }
 0x333   :  { %3163 = vmatmul.bf16.vlgmr.msrb.gmra.mxu0 %v12034_v14  ;;  %v10612_v39 = vld [vmem:[#allocation18 + $0x51c] sm:$0xf]  ;;  %v7960_v60 = vor.u32 %v10548_v34, %v7957_v45 }
 0x334   :  { %3188 = vmatpush.bf16.msrb.mxu2 %v8340_v3  ;;  %3207 = vmatpush.bf16.msra.mxu0 %v8056_v6  ;;  %v3255_v31 = vadd.f32 %v3254_v35, %v12078_v9  ;;  %v3318_v3 = vrot.slane %v3305_v36, 4  ;;  %v10676_v61 = vld [vmem:[#allocation18 + $0x71c] sm:$0xf]  ;;  %v2943_v15 = vpop.f32.mrf.mxu3  ;;  %11195 = vrsqrt.f32 %v12088_v54  ;;  %vm3398_vm11 = vweird.f32 %v12088_v54 }
 0x335   :  { %3176 = vmatmul.bf16.vlgmr.msrb.gmra.mxu1 %v12030_v17  ;;  %v10540_v62 = vld [vmem:[#allocation18 + $0x2dc] sm:$0xf]  ;;  %v8472_v22 = vor.u32 %v10676_v61, %v8469_v8  ;;  %v2944_v63 = vadd.f32 %v2943_v15, %v1536_v11 }
 0x336   :  { %3220 = vmatpush.bf16.msra.mxu1 %v8312_v0  ;;  %3195 = vmatpush.bf16.msrb.mxu3 %v7768_v55  ;;  %v3256_v53 = vrot.slane %v3255_v31, 2  ;;  %v3319_v6 = vadd.f32 %v3318_v3, %v3305_v36  ;;  %v7925_v0 = vld [vmem:[#allocation18 + $0x2f8] sm:$0xf0] }
 0x337   :  { %3189 = vmatmul.bf16.vlgmr.msrb.gmra.mxu2 %v12036_v42  ;;  %v10604_v58 = vld [vmem:[#allocation18 + $0x4dc] sm:$0xf]  ;;  %v7928_v24 = vor.u32 %v10540_v62, %v7925_v0  ;;  %v2957_v34 = vadd.f32 %v2956_v50, %v2944_v63 }
 0x338   :  { %3233 = vmatpush.bf16.msra.mxu2 %v8568_v1  ;;  %3208 = vmatpush.bf16.msra.mxu0 %v8024_v12  ;;  %v8216_v1 = vor.u32 %v10612_v39, %v8213_v47  ;;  %v8181_v16 = vld [vmem:[#allocation18 + $0x4f8] sm:$0xf0]  ;;  %v3257_v5 = vadd.f32 %v3256_v53, %v3255_v31  ;;  %v3320_v46 = vrot.slane %v3319_v6, 2 }
 0x339   :  { %v10668_v4 = vld [vmem:[#allocation18 + $0x6dc] sm:$0xf]  ;;  %v8184_v26 = vor.u32 %v10604_v58, %v8181_v16  ;;  %v2970_v51 = vadd.f32 %v2969_v56, %v2957_v34 }
 0x33a   :  { %3221 = vmatpush.bf16.msra.mxu1 %v8280_v25  ;;  %3196 = vmatpush.bf16.msrb.mxu3 %v7736_v37  ;;  %v8437_v10 = vld [vmem:[#allocation18 + $0x6f8] sm:$0xf0]  ;;  %v3258_v19 = vrot.slane %v3257_v5, 1  ;;  %v3321_v20 = vadd.f32 %v3320_v46, %v3319_v6  ;;  %v2982_v32 = vpop.f32.mrf.mxu2  ;;  %v2958_v36 = vpop.f32.mrf.mxu0 }
 0x33b   :  { %v10468_v55 = vld [vmem:[#allocation18 + $0x9c] sm:$0xf]  ;;  %v8440_v27 = vor.u32 %v10668_v4, %v8437_v10  ;;  %v12100_v0 = vadd.f32 %v2982_v32, %v2970_v51 }
 0x33c   :  { %3234 = vmatpush.bf16.msra.mxu2 %v8536_v18  ;;  %3209 = vmatpush.bf16.msra.mxu0 %v7992_v2  ;;  %v7637_v12 = vld [vmem:[#allocation18 + $0xb8] sm:$0xf0]  ;;  %v3259_v28 = vadd.f32 %v3258_v19, %v3257_v5  ;;  %v3322_v49 = vrot.slane %v3321_v20, 1  ;;  %v2945_v5 = vpop.f32.mrf.mxu3 }
 0x33d   :  { %v10532_v25 = vld [vmem:[#allocation18 + $0x29c] sm:$0xf]  ;;  %v7640_v37 = vor.u32 %v10468_v55, %v7637_v12  ;;  %v3260_v12 = vrot.slane %v12100_v0, 4  ;;  %v3306_v19 = vmul.f32 %v12100_v0, %v12100_v0 }
 0x33e   :  { %3222 = vmatpush.bf16.msra.mxu1 %v8248_v41  ;;  %3197 = vmatpush.bf16.msrb.mxu3 %v7704_v59  ;;  %v7893_v18 = vld [vmem:[#allocation18 + $0x2b8] sm:$0xf0]  ;;  %v12093_v40 = vmul.f32 %v3259_v28, %v11823_v23  ;;  %v3323_v43 = vadd.f32 %v3322_v49, %v3321_v20  ;;  %v2971_v41 = vpop.f32.mrf.mxu1 }
 0x33f   :  { %v10596_v29 = vld [vmem:[#allocation18 + $0x49c] sm:$0xf]  ;;  %v7896_v2 = vor.u32 %v10532_v25, %v7893_v18  ;;  %v3261_v18 = vadd.f32 %v3260_v12, %v12100_v0 }
 0x340   :  { %3235 = vmatpush.bf16.msra.mxu2 %v8504_v44  ;;  %3210 = vmatpush.bf16.msra.mxu0 %v7960_v60  ;;  %v8149_v30 = vld [vmem:[#allocation18 + $0x4b8] sm:$0xf0]  ;;  %v3361_v61 = vmul.f32 %v3323_v43, %v11823_v23  ;;  %v3369_v8 = vmul.f32 %v12093_v40, %v12093_v40  ;;  %v12098_v60 = vpop.eup %11195 }
 0x341   :  { %v10660_v33 = vld [vmem:[#allocation18 + $0x69c] sm:$0xf]  ;;  %v8152_v39 = vor.u32 %v10596_v29, %v8149_v30  ;;  %v3262_v30 = vrot.slane %v3261_v18, 2  ;;  %vm3399_vm8 = vweird.f32 %v12098_v60 }
 0x342   :  { %3223 = vmatpush.bf16.msra.mxu1 %v8216_v1  ;;  %v8405_v35 = vld [vmem:[#allocation18 + $0x6b8] sm:$0xf0]  ;;  %3198 = vmatpush.bf16.msrb.mxu3 %v7672_v21  ;;  %v3377_v62 = vsub.f32 %v3361_v61, %v3369_v8  ;;  %v2984_v20 = vpop.f32.mrf.mxu2  ;;  %vm3400_vm12 = vmor %vm3398_vm11, %vm3399_vm8 }
 0x343   :  { %v10460_v44 = vld [vmem:[#allocation18 + $0x5c] sm:$0xf]  ;;  %v8408_v47 = vor.u32 %v10660_v33, %v8405_v35  ;;  %v3263_v32 = vadd.f32 %v3262_v30, %v3261_v18 }
 0x344   :  { %3236 = vmatpush.bf16.msra.mxu2 %v8472_v22  ;;  %3211 = vmatpush.bf16.msra.mxu0 %v7928_v24  ;;  %v7605_v45 = vld [vmem:[#allocation18 + $0x78] sm:$0xf0]  ;;  %v3385_v55 = vadd.f32 0.8, %v3377_v62  ;;  %v3393_v24 = vmul.f32 %v12098_v60, %v12088_v54 }
 0x345   :  { %v10524_v48 = vld [vmem:[#allocation18 + $0x25c] sm:$0xf]  ;;  %v7608_v50 = vor.u32 %v10460_v44, %v7605_v45 }
 0x346   :  { %3224 = vmatpush.bf16.msra.mxu1 %v8184_v26  ;;  %v7861_v31 = vld [vmem:[#allocation18 + $0x278] sm:$0xf0]  ;;  %3199 = vmatpush.bf16.msrb.mxu3 %v7640_v37  ;;  %11197 = vrsqrt.f32 %v3385_v55  ;;  %v3324_v26 = vrot.slane %v3306_v19, 4  ;;  %v3394_v49 = vmul.f32 %v12098_v60, %v3393_v24  ;;  %vm3408_vm9 = vweird.f32 %v3385_v55 }
 0x347   :  { %v10588_v3 = vld [vmem:[#allocation18 + $0x45c] sm:$0xf]  ;;  %v7864_v1 = vor.u32 %v10524_v48, %v7861_v31 }
 0x348   :  { %3237 = vmatpush.bf16.msra.mxu2 %v8440_v27  ;;  %v8117_v52 = vld [vmem:[#allocation18 + $0x478] sm:$0xf0]  ;;  %3212 = vmatpush.bf16.msra.mxu0 %v7896_v2  ;;  %v3325_v28 = vadd.f32 %v3324_v26, %v3306_v19  ;;  %v3395_v35 = vmul.f32 0.5, %v3394_v49  ;;  %v3264_v2 = vrot.slane %v3263_v32, 1 }
 0x349   :  { %v10652_v53 = vld [vmem:[#allocation18 + $0x65c] sm:$0xf]  ;;  %v8120_v4 = vor.u32 %v10588_v3, %v8117_v52 }
 0x34a   :  { %v8373_v6 = vld [vmem:[#allocation18 + $0x678] sm:$0xf0]  ;;  %3225 = vmatpush.bf16.msra.mxu1 %v8152_v39  ;;  %3200 = vmatpush.bf16.msrb.mxu3 %v7608_v50  ;;  %v3326_v33 = vrot.slane %v3325_v28, 2  ;;  %v3396_v34 = vsub.f32 1.5, %v3395_v35  ;;  %v3265_v39 = vadd.f32 %v3264_v2, %v3263_v32  ;;  %v1538_v35 = vperm.slane %v12062_v7, 4 }
 0x34b   :  { %v10452_v59 = vld [vmem:[#allocation18 + $0x1c] sm:$0xf]  ;;  %v8376_v56 = vor.u32 %v10652_v53, %v8373_v6 }
 0x34c   :  { %v7573_v22 = vld [vmem:[#allocation18 + $0x38] sm:$0xf0]  ;;  %3238 = vmatpush.bf16.msra.mxu2 %v8408_v47  ;;  %3213 = vmatpush.bf16.msra.mxu0 %v7864_v1  ;;  %v11198_v63 = vpop.eup %11197  ;;  %v3327_v43 = vadd.f32 %v3326_v33, %v3325_v28  ;;  %v3397_v31 = vmul.f32 %v12098_v60, %v3396_v34  ;;  %v12118_v3 = vmul.f32 %v3265_v39, %v11823_v23 }
 0x34d   :  { %v10516_v58 = vld [vmem:[#allocation18 + $0x21c] sm:$0xf]  ;;  %v7576_v25 = vor.u32 %v10452_v59, %v7573_v22  ;;  %v3403_v36 = vmul.f32 %v11198_v63, %v3385_v55  ;;  %vm3409_vm7 = vweird.f32 %v11198_v63 }
 0x34e   :  { %v7829_v16 = vld [vmem:[#allocation18 + $0x238] sm:$0xf0]  ;;  %3226 = vmatpush.bf16.msra.mxu1 %v8120_v4  ;;  %v3328_v47 = vrot.slane %v3327_v43, 1  ;;  %vm3410_vm10 = vmor %vm3408_vm9, %vm3409_vm7  ;;  %v3401_v8 = vsel %vm3400_vm12, %v12098_v60, %v3397_v31  ;;  %v3370_v54 = vmul.f32 %v12118_v3, %v12118_v3 }
 0x34f   :  { %v10580_v46 = vld [vmem:[#allocation18 + $0x41c] sm:$0xf]  ;;  %v7832_v27 = vor.u32 %v10516_v58, %v7829_v16  ;;  %3201 = vmatpush.bf16.msrb.mxu3 %v7576_v25  ;;  %v3404_v37 = vmul.f32 %v11198_v63, %v3403_v36 }
 0x350   :  { %v8085_v10 = vld [vmem:[#allocation18 + $0x438] sm:$0xf0]  ;;  %3239 = vmatpush.bf16.msra.mxu2 %v8376_v56  ;;  %v3008_v45 = vpop.f32.mrf.mxu0  ;;  %v3329_v61 = vadd.f32 %v3328_v47, %v3327_v43 }
 0x351   :  { %v10644_v11 = vld [vmem:[#allocation18 + $0x61c] sm:$0xf]  ;;  %v8088_v15 = vor.u32 %v10580_v46, %v8085_v10  ;;  %3214 = vmatpush.bf16.msra.mxu0 %v7832_v27  ;;  %v3405_v41 = vmul.f32 0.5, %v3404_v37 }
 0x352   :  { %v8341_v21 = vld [vmem:[#allocation18 + $0x638] sm:$0xf0]  ;;  %3202 = vmatmul.bf16.vlgmr.msrb.gmra.mxu3 %v12032_v13  ;;  %v3021_v48 = vpop.f32.mrf.mxu1  ;;  %v3362_v59 = vmul.f32 %v3329_v61, %v11823_v23 }
 0x353   :  { %v8344_v29 = vor.u32 %v10644_v11, %v8341_v21  ;;  %3227 = vmatpush.bf16.msra.mxu1 %v8088_v15  ;;  %v3406_v44 = vsub.f32 1.5, %v3405_v41 }
 0x354   :  { %3215 = vmatmul.bf16.vlgmr.msra.gmra.mxu0 %v12034_v14  ;;  %v2995_v51 = vpop.f32.mrf.mxu3  ;;  %v3378_v58 = vsub.f32 %v3362_v59, %v3370_v54 }
 0x355   :  { %3240 = vmatpush.bf16.msra.mxu2 %v8344_v29  ;;  %v3407_v13 = vmul.f32 %v11198_v63, %v3406_v44 }
 0x356   :  { %3228 = vmatmul.bf16.vlgmr.msra.gmra.mxu1 %v12030_v17  ;;  %v1537_v17 = vperm.slane %v12062_v7, 3  ;;  %v3386_v46 = vadd.f32 0.8, %v3378_v58 }
 0x357   :  { %v3411_v14 = vsel %vm3410_vm10, %v11198_v63, %v3407_v13 }
 0x358   :  { %3241 = vmatmul.bf16.vlgmr.msra.gmra.mxu2 %v12036_v42  ;;  %v3480_v42 = vrot.slane %v3411_v14, 7  ;;  %v2996_v52 = vadd.f32 %v2995_v51, %v1537_v17  ;;  %v3010_v50 = vpop.f32.mrf.mxu0  ;;  %11199 = vrsqrt.f32 %v3386_v46  ;;  %vm3418_vm14 = vweird.f32 %v3386_v46 }
 0x35a   :  { %v3034_v53 = vpop.f32.mrf.mxu2  ;;  %v12122_v6 = vsel %vm564_vm6, %v3401_v8, %v3480_v42  ;;  %v3009_v62 = vadd.f32 %v3008_v45, %v2996_v52  ;;  %v3023_v1 = vpop.f32.mrf.mxu1 }
 0x35c   :  { %v3022_v22 = vadd.f32 %v3021_v48, %v3009_v62  ;;  %v2997_v4 = vpop.f32.mrf.mxu3 }
 0x35d   :  { %v1539_v4 = vperm.slane %v12062_v7, 5 }
 0x35e   :  { %v12127_v16 = vadd.f32 %v3034_v53, %v3022_v22  ;;  %v11200_v26 = vpop.eup %11199 }
 0x35f   :  { %v3413_v28 = vmul.f32 %v11200_v26, %v3386_v46  ;;  %vm3419_vm13 = vweird.f32 %v11200_v26 }
 0x360   :  { %v3266_v60 = vrot.slane %v12127_v16, 4  ;;  %v3307_v56 = vmul.f32 %v12127_v16, %v12127_v16  ;;  %vm3420_vm0 = vmor %vm3418_vm14, %vm3419_vm13 }
 0x361   :  { %v3414_v36 = vmul.f32 %v11200_v26, %v3413_v28 }
 0x362   :  { %v3036_v5 = vpop.f32.mrf.mxu2  ;;  %v3267_v10 = vadd.f32 %v3266_v60, %v12127_v16  ;;  %v3330_v11 = vrot.slane %v3307_v56, 4 }
 0x363   :  { %v3415_v34 = vmul.f32 0.5, %v3414_v36 }
 0x364   :  { %v3268_v55 = vrot.slane %v3267_v10, 2  ;;  %v3331_v12 = vadd.f32 %v3330_v11, %v3307_v56 }
 0x365   :  { %v3416_v48 = vsub.f32 1.5, %v3415_v34 }
 0x366   :  { %v3269_v19 = vadd.f32 %v3268_v55, %v3267_v10  ;;  %v3332_v20 = vrot.slane %v3331_v12, 2 }
 0x367   :  { %v3417_v61 = vmul.f32 %v11200_v26, %v3416_v48 }
 0x368   :  { %v3270_v21 = vrot.slane %v3269_v19, 1  ;;  %v3333_v24 = vadd.f32 %v3332_v20, %v3331_v12 }
 0x369   :  { %v3421_v52 = vsel %vm3420_vm0, %v11200_v26, %v3417_v61 }
 0x36a   :  { %v3271_v25 = vadd.f32 %v3270_v21, %v3269_v19  ;;  %v3334_v18 = vrot.slane %v3333_v24, 1  ;;  %v3481_v59 = vrot.slane %v3421_v52, 6 }
 0x36c   :  { %v12134_v27 = vmul.f32 %v3271_v25, %v11823_v23  ;;  %v3335_v15 = vadd.f32 %v3334_v18, %v3333_v24 }
 0x36e   :  { %v3363_v29 = vmul.f32 %v3335_v15, %v11823_v23  ;;  %v3371_v30 = vmul.f32 %v12134_v27, %v12134_v27  ;;  %v1540_v15 = vperm.slane %v12062_v7, 6 }
 0x370   :  { %v3060_v49 = vpop.f32.mrf.mxu0  ;;  %v3379_v63 = vsub.f32 %v3363_v29, %v3371_v30 }
 0x372   :  { %v3073_v32 = vpop.f32.mrf.mxu1  ;;  %v3387_v33 = vadd.f32 0.8, %v3379_v63 }
 0x374   :  { %11201 = vrsqrt.f32 %v3387_v33  ;;  %v3047_v37 = vpop.f32.mrf.mxu3  ;;  %vm3428_vm1 = vweird.f32 %v3387_v33 }
 0x375   :  { %v3048_v2 = vadd.f32 %v3047_v37, %v1538_v35 }
 0x377   :  { %v3061_v44 = vadd.f32 %v3060_v49, %v3048_v2 }
 0x378   :  { %v3062_v41 = vpop.f32.mrf.mxu0 }
 0x379   :  { %v3074_v47 = vadd.f32 %v3073_v32, %v3061_v44 }
 0x37a   :  { %v3086_v43 = vpop.f32.mrf.mxu2  ;;  %v3075_v45 = vpop.f32.mrf.mxu1 }
 0x37b   :  { %v11202_v39 = vpop.eup %11201  ;;  %v12140_v13 = vadd.f32 %v3086_v43, %v3074_v47 }
 0x37c   :  { %v3423_v31 = vmul.f32 %v11202_v39, %v3387_v33  ;;  %v3049_v14 = vpop.f32.mrf.mxu3  ;;  %vm3429_vm15 = vweird.f32 %v11202_v39 }
 0x37d   :  { %vm3430_vm2 = vmor %vm3428_vm1, %vm3429_vm15  ;;  %v3272_v21 = vrot.slane %v12140_v13, 4 }
 0x37e   :  { %v3424_v17 = vmul.f32 %v11202_v39, %v3423_v31 }
 0x37f   :  { %v3273_v24 = vadd.f32 %v3272_v21, %v12140_v13 }
 0x380   :  { %v3425_v8 = vmul.f32 0.5, %v3424_v17 }
 0x381   :  { %v3274_v29 = vrot.slane %v3273_v24, 2 }
 0x382   :  { %v3088_v42 = vpop.f32.mrf.mxu2  ;;  %v3426_v51 = vsub.f32 1.5, %v3425_v8 }
 0x383   :  { %v3275_v35 = vadd.f32 %v3274_v29, %v3273_v24  ;;  %v9439_v24 = vld [vmem:[#allocation24 + $0x6c8] sm:$0xf] }
 0x384   :  { %v3427_v53 = vmul.f32 %v11202_v39, %v3426_v51 }
 0x385   :  { %v3276_v7 = vrot.slane %v3275_v35, 1 }
 0x386   :  { %v3431_v50 = vsel %vm3430_vm2, %v11202_v39, %v3427_v53  ;;  %vm3490_vm2 = vcmask 1044484  }
 0x387   :  { %v3482_v54 = vrot.slane %v3431_v50, 5  ;;  %v3277_v61 = vadd.f32 %v3276_v7, %v3275_v35 }
 0x389   :  { %v3488_v62 = vsel %vm1216_vm4, %v3481_v59, %v3482_v54 }
 0x38a   :  { %v12145_v1 = vsel %vm1218_vm5, %v12122_v6, %v3488_v62  ;;  %v3308_v6 = vmul.f32 %v12140_v13, %v12140_v13  ;;  %v12166_v62 = vmul.f32 %v3277_v61, %v11823_v23 }
 0x38c   :  { %v3336_v25 = vrot.slane %v3308_v6, 4  ;;  %v3372_v29 = vmul.f32 %v12166_v62, %v12166_v62 }
 0x38e   :  { %v3337_v30 = vadd.f32 %v3336_v25, %v3308_v6  ;;  %v10869_v6 = vld [vmem:[#allocation24 + $0x520] sm:$0xf0] }
 0x390   :  { %v3112_v22 = vpop.f32.mrf.mxu0  ;;  %v3338_v36 = vrot.slane %v3337_v30, 2 }
 0x392   :  { %v3125_v58 = vpop.f32.mrf.mxu1  ;;  %v3339_v45 = vadd.f32 %v3338_v36, %v3337_v30  ;;  %v8963_v36 = vld [vmem:[#allocation24 + $0x310] sm:$0xf] }
 0x394   :  { %v3099_v60 = vpop.f32.mrf.mxu3  ;;  %v3340_v8 = vrot.slane %v3339_v45, 1 }
 0x395   :  { %v3100_v56 = vadd.f32 %v3099_v60, %v1539_v4 }
 0x397   :  { %v3113_v10 = vadd.f32 %v3112_v22, %v3100_v56  ;;  %v3341_v22 = vadd.f32 %v3340_v8, %v3339_v45 }
 0x398   :  { %v3114_v46 = vpop.f32.mrf.mxu0 }
 0x399   :  { %v3126_v55 = vadd.f32 %v3125_v58, %v3113_v10  ;;  %v10757_v46 = vld [vmem:[#allocation24 + $0x1a0] sm:$0xf0]  ;;  %v3364_v25 = vmul.f32 %v3341_v22, %v11823_v23 }
 0x39a   :  { %v3138_v5 = vpop.f32.mrf.mxu2  ;;  %v3127_v11 = vpop.f32.mrf.mxu1 }
 0x39b   :  { %v12148_v12 = vadd.f32 %v3138_v5, %v3126_v55  ;;  %v8767_v5 = vld [vmem:[#allocation24 + $0x188] sm:$0xf]  ;;  %v10813_v55 = vld [vmem:[#allocation24 + $0x360] sm:$0xf0] }
 0x39c   :  { %v3101_v19 = vpop.f32.mrf.mxu3  ;;  %v8768_v10 = vor.u32 %v10757_v46, %v8767_v5  ;;  %v8991_v11 = vld [vmem:[#allocation24 + $0x348] sm:$0xf] }
 0x39d   :  { %v3278_v28 = vrot.slane %v12148_v12, 4  ;;  %v3309_v49 = vmul.f32 %v12148_v12, %v12148_v12  ;;  %v9215_v19 = vld [vmem:[#allocation24 + $0x508] sm:$0xf]  ;;  %v8992_v21 = vor.u32 %v10813_v55, %v8991_v11 }
 0x39e   :  { %6438 = vmatpush.bf16.msra.mxu3 %v8768_v10  ;;  %v11225_v46 = vld [vmem:[#allocation19] sm:$0xff] }
 0x39f   :  { %v3279_v2 = vadd.f32 %v3278_v28, %v12148_v12  ;;  %v3342_v43 = vrot.slane %v3309_v49, 4  ;;  %6451 = vmatpush.bf16.msrb.mxu0 %v8992_v21  ;;  %v1541_v10 = vperm.slane %v11225_v46, 7  ;;  %v10736_v21 = vld [vmem:[#allocation24 + $0xf8] sm:$0xf0]  ;;  %v9075_v46 = vld [vmem:[#allocation24 + $0x3f0] sm:$0xf] }
 0x3a1   :  { %v3280_v39 = vrot.slane %v3279_v2, 2  ;;  %v3343_v47 = vadd.f32 %v3342_v43, %v3309_v49 }
 0x3a2   :  { %v3140_v20 = vpop.f32.mrf.mxu2 }
 0x3a3   :  { %v3281_v51 = vadd.f32 %v3280_v39, %v3279_v2  ;;  %v3344_v52 = vrot.slane %v3343_v47, 2  ;;  %v9187_v2 = vld [vmem:[#allocation24 + $0x4d0] sm:$0xf] }
 0x3a5   :  { %v3282_v58 = vrot.slane %v3281_v51, 1  ;;  %v3345_v4 = vadd.f32 %v3344_v52, %v3343_v47  ;;  %v3380_v47 = vsub.f32 %v3364_v25, %v3372_v29  ;;  %v10799_v52 = vld [vmem:[#allocation24 + $0x2f0] sm:$0xf0] }
 0x3a7   :  { %v3346_v30 = vrot.slane %v3345_v4, 1  ;;  %v12177_v55 = vadd.f32 0.8, %v3380_v47  ;;  %v10841_v47 = vld [vmem:[#allocation24 + $0x440] sm:$0xf0] }
 0x3a9   :  { %11203 = vrsqrt.f32 %v12177_v55  ;;  %vm3438_vm7 = vweird.f32 %v12177_v55 }
 0x3b0   :  { %v3164_v18 = vpop.f32.mrf.mxu0 }
 0x3b2   :  { %v3177_v26 = vpop.f32.mrf.mxu1 }
 0x3b4   :  { %v3151_v63 = vpop.f32.mrf.mxu3 }
 0x3b5   :  { %v3152_v32 = vadd.f32 %v3151_v63, %v1540_v15  ;;  %v10925_v15 = vld [vmem:[#allocation24 + $0x6e0] sm:$0xf0]  ;;  %v8739_v63 = vld [vmem:[#allocation24 + $0x150] sm:$0xf] }
 0x3b6   :  { %v9440_v49 = vor.u32 %v10925_v15, %v9439_v24  ;;  %v9131_v24 = vld [vmem:[#allocation24 + $0x460] sm:$0xf] }
 0x3b7   :  { %v3165_v34 = vadd.f32 %v3164_v18, %v3152_v32  ;;  %v10750_v32 = vld [vmem:[#allocation24 + $0x168] sm:$0xf0] }
 0x3b8   :  { %v3166_v37 = vpop.f32.mrf.mxu0  ;;  %v8740_v35 = vor.u32 %v10750_v32, %v8739_v63  ;;  %6477 = vmatpush.bf16.msrb.mxu2 %v9440_v49  ;;  %v10904_v49 = vld [vmem:[#allocation24 + $0x638] sm:$0xf0] }
 0x3b9   :  { %v3178_v44 = vadd.f32 %v3177_v26, %v3165_v34  ;;  %v9216_v26 = vor.u32 %v10869_v6, %v9215_v19  ;;  %v10806_v37 = vld [vmem:[#allocation24 + $0x328] sm:$0xf0]  ;;  %v8683_v19 = vld [vmem:[#allocation24 + $0xe0] sm:$0xf]  ;;  %v10792_v6 = vld [vmem:[#allocation24 + $0x2b8] sm:$0xf0] }
 0x3ba   :  { %v3190_v33 = vpop.f32.mrf.mxu2  ;;  %v3179_v41 = vpop.f32.mrf.mxu1  ;;  %v8964_v43 = vor.u32 %v10806_v37, %v8963_v36  ;;  %v10862_v34 = vld [vmem:[#allocation24 + $0x4e8] sm:$0xf0]  ;;  %6439 = vmatpush.bf16.msra.mxu3 %v8740_v35 }
 0x3bb   :  { %v12159_v48 = vadd.f32 %v3190_v33, %v3178_v44  ;;  %v3283_v33 = vadd.f32 %v3282_v58, %v3281_v51  ;;  %6464 = vmatpush.bf16.msrb.mxu1 %v9216_v26  ;;  %v9411_v41 = vld [vmem:[#allocation24 + $0x690] sm:$0xf]  ;;  %v10918_v44 = vld [vmem:[#allocation24 + $0x6a8] sm:$0xf0]  ;;  %v9188_v45 = vor.u32 %v10862_v34, %v9187_v2  ;;  %v8655_v2 = vld [vmem:[#allocation24 + $0xa8] sm:$0xf] }
 0x3bc   :  { %v3153_v31 = vpop.f32.mrf.mxu3  ;;  %v9412_v39 = vor.u32 %v10918_v44, %v9411_v41  ;;  %6452 = vmatpush.bf16.msrb.mxu0 %v8964_v43  ;;  %v10729_v43 = vld [vmem:[#allocation24 + $0xc0] sm:$0xf0]  ;;  %v8879_v34 = vld [vmem:[#allocation24 + $0x268] sm:$0xf] }
 0x3bd   :  { %v3284_v17 = vrot.slane %v12159_v48, 4  ;;  %v3310_v14 = vmul.f32 %v12159_v48, %v12159_v48  ;;  %v12172_v61 = vmul.f32 %v3283_v33, %v11823_v23 }
 0x3be   :  { %6478 = vmatpush.bf16.msrb.mxu2 %v9412_v39  ;;  %v9103_v39 = vld [vmem:[#allocation24 + $0x428] sm:$0xf] }
 0x3bf   :  { %v3285_v53 = vadd.f32 %v3284_v17, %v12159_v48  ;;  %v3348_v50 = vrot.slane %v3310_v14, 4  ;;  %v8711_v17 = vld [vmem:[#allocation24 + $0x118] sm:$0xf]  ;;  %6465 = vmatpush.bf16.msrb.mxu1 %v9188_v45  ;;  %v10785_v45 = vld [vmem:[#allocation24 + $0x280] sm:$0xf0] }
 0x3c1   :  { %v3286_v59 = vrot.slane %v3285_v53, 2  ;;  %v3349_v54 = vadd.f32 %v3348_v50, %v3310_v14  ;;  %v10743_v14 = vld [vmem:[#allocation24 + $0x130] sm:$0xf0] }
 0x3c2   :  { %v3192_v42 = vpop.f32.mrf.mxu2  ;;  %v8712_v51 = vor.u32 %v10743_v14, %v8711_v17  ;;  %v10855_v50 = vld [vmem:[#allocation24 + $0x4b0] sm:$0xf0]  ;;  %v8880_v14 = vor.u32 %v10785_v45, %v8879_v34  ;;  %v8571_v45 = vld [vmem:[#allocation24] sm:$0xf] }
 0x3c3   :  { %v3287_v60 = vadd.f32 %v3286_v59, %v3285_v53  ;;  %v3350_v56 = vrot.slane %v3349_v54, 2  ;;  %v8935_v42 = vld [vmem:[#allocation24 + $0x2d8] sm:$0xf]  ;;  %v3347_v59 = vadd.f32 %v3346_v30, %v3345_v4  ;;  %v8684_v4 = vor.u32 %v10736_v21, %v8683_v19  ;;  %v10848_v30 = vld [vmem:[#allocation24 + $0x478] sm:$0xf0] }
 0x3c4   :  { %v9159_v53 = vld [vmem:[#allocation24 + $0x498] sm:$0xf]  ;;  %v8936_v22 = vor.u32 %v10799_v52, %v8935_v42  ;;  %6440 = vmatpush.bf16.msra.mxu3 %v8712_v51  ;;  %v9132_v35 = vor.u32 %v10848_v30, %v9131_v24  ;;  %v9104_v42 = vor.u32 %v10841_v47, %v9103_v39  ;;  %v9327_v51 = vld [vmem:[#allocation24 + $0x5e8] sm:$0xf]  ;;  %v10897_v52 = vld [vmem:[#allocation24 + $0x600] sm:$0xf0] }
 0x3c5   :  { %v3351_v20 = vadd.f32 %v3350_v56, %v3349_v54  ;;  %v3288_v18 = vrot.slane %v3287_v60, 1  ;;  %v9160_v58 = vor.u32 %v10855_v50, %v9159_v53  ;;  %v10911_v56 = vld [vmem:[#allocation24 + $0x670] sm:$0xf0]  ;;  %v3365_v25 = vmul.f32 %v3347_v59, %v11823_v23  ;;  %v8823_v30 = vld [vmem:[#allocation24 + $0x1f8] sm:$0xf] }
 0x3c6   :  { %6453 = vmatpush.bf16.msrb.mxu0 %v8936_v22  ;;  %v9328_v59 = vor.u32 %v10897_v52, %v9327_v51  ;;  %v10722_v22 = vld [vmem:[#allocation24 + $0x88] sm:$0xf0]  ;;  %v10708_v39 = vld [vmem:[#allocation24 + $0x18] sm:$0xf0]  ;;  %v8795_v47 = vld [vmem:[#allocation24 + $0x1c0] sm:$0xf] }
 0x3c7   :  { %v3352_v28 = vrot.slane %v3351_v20, 1  ;;  %v3289_v7 = vadd.f32 %v3288_v18, %v3287_v60  ;;  %v9383_v60 = vld [vmem:[#allocation24 + $0x658] sm:$0xf]  ;;  %6466 = vmatpush.bf16.msrb.mxu1 %v9160_v58  ;;  %v3373_v18 = vmul.f32 %v12172_v61, %v12172_v61  ;;  %v9019_v51 = vld [vmem:[#allocation24 + $0x380] sm:$0xf] }
 0x3c8   :  { %v9384_v11 = vor.u32 %v10911_v56, %v9383_v60  ;;  %6441 = vmatpush.bf16.msra.mxu3 %v8684_v4  ;;  %v10778_v56 = vld [vmem:[#allocation24 + $0x248] sm:$0xf0]  ;;  %v9299_v4 = vld [vmem:[#allocation24 + $0x5b0] sm:$0xf] }
 0x3c9   :  { %v3353_v54 = vadd.f32 %v3352_v28, %v3351_v20  ;;  %v12175_v5 = vmul.f32 %v3289_v7, %v11823_v23  ;;  %v8907_v20 = vld [vmem:[#allocation24 + $0x2a0] sm:$0xf]  ;;  %v8656_v7 = vor.u32 %v10729_v43, %v8655_v2  ;;  %v3381_v17 = vsub.f32 %v3365_v25, %v3373_v18  ;;  %v10883_v2 = vld [vmem:[#allocation24 + $0x590] sm:$0xf0]  ;;  %v12197_v43 = vpop.eup %11203 }
 0x3ca   :  { %6479 = vmatpush.bf16.msrb.mxu2 %v9384_v11  ;;  %v8908_v29 = vor.u32 %v10792_v6, %v8907_v20  ;;  %v9355_v28 = vld [vmem:[#allocation24 + $0x620] sm:$0xf]  ;;  %v10890_v20 = vld [vmem:[#allocation24 + $0x5c8] sm:$0xf0]  ;;  %v3433_v52 = vmul.f32 %v12197_v43, %v12177_v55  ;;  %vm3439_vm3 = vweird.f32 %v12197_v43 }
 0x3cb   :  { %v3366_v26 = vmul.f32 %v3353_v54, %v11823_v23  ;;  %v3374_v63 = vmul.f32 %v12175_v5, %v12175_v5  ;;  %v9356_v36 = vor.u32 %v10904_v49, %v9355_v28  ;;  %6467 = vmatpush.bf16.msrb.mxu1 %v9132_v35  ;;  %v8627_v54 = vld [vmem:[#allocation24 + $0x70] sm:$0xf]  ;;  %v12188_v11 = vadd.f32 0.8, %v3381_v17  ;;  %vm12232_vm9 = vmor %vm3438_vm7, %vm3439_vm3 }
 0x3cc   :  { %6454 = vmatpush.bf16.msrb.mxu0 %v8908_v29  ;;  %6442 = vmatpush.bf16.msra.mxu3 %v8656_v7  ;;  %v8628_v60 = vor.u32 %v10722_v22, %v8627_v54  ;;  %v10715_v29 = vld [vmem:[#allocation24 + $0x50] sm:$0xf0]  ;;  %v9243_v54 = vld [vmem:[#allocation24 + $0x540] sm:$0xf]  ;;  %v10876_v22 = vld [vmem:[#allocation24 + $0x558] sm:$0xf0] }
 0x3cd   :  { %v3382_v53 = vsub.f32 %v3366_v26, %v3374_v63  ;;  %v9300_v26 = vor.u32 %v10890_v20, %v9299_v4  ;;  %11205 = vrsqrt.f32 %v12188_v11  ;;  %v11037_v4 = vld [vmem:[#allocation24 + $0xa60] sm:$0xf0]  ;;  %vm3448_vm10 = vweird.f32 %v12188_v11 }
 0x3ce   :  { %6480 = vmatpush.bf16.msrb.mxu2 %v9356_v36  ;;  %v10827_v36 = vld [vmem:[#allocation24 + $0x3d0] sm:$0xf0]  ;;  %vm3492_vm3 = vcmask 1046534   ;;  %vm3494_vm7 = vcmask 1045508  }
 0x3cf   :  { %6468 = vmatpush.bf16.msrb.mxu1 %v9104_v42  ;;  %v12190_v6 = vadd.f32 0.8, %v3382_v53  ;;  %v10764_v42 = vld [vmem:[#allocation24 + $0x1d8] sm:$0xf0]  ;;  %v8572_v53 = vor.u32 %v10708_v39, %v8571_v45  ;;  %v10083_v39 = vld [vmem:[#allocation24 + $0xbd0] sm:$0xf] }
 0x3d0   :  { %6455 = vmatpush.bf16.msrb.mxu0 %v8880_v14  ;;  %6443 = vmatpush.bf16.msra.mxu3 %v8628_v60 }
 0x3d1   :  { %v3216_v31 = vpop.f32.mrf.mxu0  ;;  %11207 = vrsqrt.f32 %v12190_v6  ;;  %vm3458_vm13 = vweird.f32 %v12190_v6 }
 0x3d2   :  { %6481 = vmatpush.bf16.msrb.mxu2 %v9328_v59  ;;  %v10820_v59 = vld [vmem:[#allocation24 + $0x398] sm:$0xf0] }
 0x3d3   :  { %v3229_v8 = vpop.f32.mrf.mxu1 }
 0x3d5   :  { %v3203_v15 = vpop.f32.mrf.mxu3 }
 0x3d6   :  { %v3204_v32 = vadd.f32 %v3203_v15, %v1541_v10  ;;  %v10834_v10 = vld [vmem:[#allocation24 + $0x408] sm:$0xf0]  ;;  %v8599_v15 = vld [vmem:[#allocation24 + $0x38] sm:$0xf]  ;;  %6482 = vmatpush.bf16.msrb.mxu2 %v9300_v26 }
 0x3d7   :  { %v9076_v21 = vor.u32 %v10834_v10, %v9075_v46  ;;  %v8600_v63 = vor.u32 %v10715_v29, %v8599_v15  ;;  %v10981_v46 = vld [vmem:[#allocation24 + $0x8a0] sm:$0xf0]  ;;  %v12202_v10 = vpop.eup %11205  ;;  %v10111_v15 = vld [vmem:[#allocation24 + $0xc08] sm:$0xf] }
 0x3d8   :  { %v3217_v41 = vadd.f32 %v3216_v31, %v3204_v32  ;;  %v8851_v31 = vld [vmem:[#allocation24 + $0x230] sm:$0xf]  ;;  %v10771_v32 = vld [vmem:[#allocation24 + $0x210] sm:$0xf0]  ;;  %v12204_v20 = vpop.eup %11207  ;;  %v11093_v29 = vld [vmem:[#allocation24 + $0xc20] sm:$0xf0]  ;;  %vm3449_vm8 = vweird.f32 %v12202_v10 }
 0x3d9   :  { %v3218_v37 = vpop.f32.mrf.mxu0  ;;  %6469 = vmatpush.bf16.msrb.mxu1 %v9076_v21  ;;  %v8824_v35 = vor.u32 %v10771_v32, %v8823_v30  ;;  %6444 = vmatpush.bf16.msra.mxu3 %v8600_v63  ;;  %v9887_v21 = vld [vmem:[#allocation24 + $0xa48] sm:$0xf]  ;;  %v3434_v30 = vmul.f32 %v12197_v43, %v3433_v52  ;;  %v11149_v63 = vld [vmem:[#allocation24 + $0xde0] sm:$0xf0]  ;;  %v9635_v32 = vld [vmem:[#allocation24 + $0x850] sm:$0xf]  ;;  %vm3459_vm11 = vweird.f32 %v12204_v20 }
 0x3da   :  { %v3230_v50 = vadd.f32 %v3229_v8, %v3217_v41  ;;  %v8852_v8 = vor.u32 %v10778_v56, %v8851_v31  ;;  %v9271_v37 = vld [vmem:[#allocation24 + $0x578] sm:$0xf]  ;;  %v9663_v56 = vld [vmem:[#allocation24 + $0x888] sm:$0xf]  ;;  %v9888_v26 = vor.u32 %v11037_v4, %v9887_v21  ;;  %v11142_v52 = vld [vmem:[#allocation24 + $0xda8] sm:$0xf0] }
 0x3db   :  { %v3242_v33 = vpop.f32.mrf.mxu2  ;;  %v3231_v44 = vpop.f32.mrf.mxu1  ;;  %v9272_v7 = vor.u32 %v10883_v2, %v9271_v37  ;;  %v10974_v37 = vld [vmem:[#allocation24 + $0x868] sm:$0xf0]  ;;  %v9859_v2 = vld [vmem:[#allocation24 + $0xa10] sm:$0xf]  ;;  %v3435_v21 = vmul.f32 0.5, %v3434_v30  ;;  %vm12242_vm12 = vmor %vm3448_vm10, %vm3449_vm8  ;;  %vm3496_vm8 = vcmask 1043456  }
 0x3dc   :  { %v12186_v58 = vadd.f32 %v3242_v33, %v3230_v50  ;;  %6456 = vmatpush.bf16.msrb.mxu0 %v8852_v8  ;;  %v9047_v33 = vld [vmem:[#allocation24 + $0x3b8] sm:$0xf]  ;;  %v8796_v50 = vor.u32 %v10764_v42, %v8795_v47  ;;  %v9244_v8 = vor.u32 %v10876_v22, %v9243_v54  ;;  %v11086_v47 = vld [vmem:[#allocation24 + $0xbe8] sm:$0xf0]  ;;  %v11023_v22 = vld [vmem:[#allocation24 + $0x9f0] sm:$0xf0] }
 0x3dd   :  { %v3205_v19 = vpop.f32.mrf.mxu3  ;;  %v9048_v44 = vor.u32 %v10827_v36, %v9047_v33  ;;  %6483 = vmatpush.bf16.msrb.mxu2 %v9272_v7  ;;  %6445 = vmatpush.bf16.msra.mxu3 %v8572_v53  ;;  %v9636_v7 = vor.u32 %v10974_v37, %v9635_v32  ;;  %v9607_v53 = vld [vmem:[#allocation24 + $0x818] sm:$0xf]  ;;  %v11128_v37 = vld [vmem:[#allocation24 + $0xd38] sm:$0xf0]  ;;  %vm12256_vm14 = vmor %vm3458_vm13, %vm3459_vm11 }
 0x3de   :  { %v3290_v24 = vrot.slane %v12186_v58, 4  ;;  %v3311_v25 = vmul.f32 %v12186_v58, %v12186_v58  ;;  %v9020_v19 = vor.u32 %v10820_v59, %v9019_v51  ;;  %v10084_v51 = vor.u32 %v11086_v47, %v10083_v39  ;;  %v9831_v54 = vld [vmem:[#allocation24 + $0x9d8] sm:$0xf]  ;;  %v9775_v39 = vld [vmem:[#allocation24 + $0x968] sm:$0xf] }
 0x3df   :  { %6470 = vmatpush.bf16.msrb.mxu1 %v9048_v44  ;;  %v3453_v44 = vmul.f32 %v12204_v20, %v12190_v6  ;;  %v11009_v47 = vld [vmem:[#allocation24 + $0x980] sm:$0xf0] }
 0x3e0   :  { %v3291_v28 = vadd.f32 %v3290_v24, %v12186_v58  ;;  %v3354_v49 = vrot.slane %v3311_v25, 4  ;;  %6457 = vmatpush.bf16.msrb.mxu0 %v8824_v35 }
 0x3e1   :  { %6484 = vmatpush.bf16.msrb.mxu2 %v9244_v8  ;;  %v10279_v8 = vld [vmem:[#allocation24 + $0xd58] sm:$0xf] }
 0x3e2   :  { %v3292_v34 = vrot.slane %v3291_v28, 2  ;;  %v3355_v41 = vadd.f32 %v3354_v49, %v3311_v25  ;;  %v10335_v49 = vld [vmem:[#allocation24 + $0xdc8] sm:$0xf] }
 0x3e3   :  { %v3244_v18 = vpop.f32.mrf.mxu2  ;;  %6471 = vmatpush.bf16.msrb.mxu1 %v9020_v19  ;;  %v10336_v36 = vor.u32 %v11149_v63, %v10335_v49  ;;  %v11079_v19 = vld [vmem:[#allocation24 + $0xbb0] sm:$0xf0]  ;;  %v11016_v49 = vld [vmem:[#allocation24 + $0x9b8] sm:$0xf0]  ;;  %v10027_v63 = vld [vmem:[#allocation24 + $0xb60] sm:$0xf] }
 0x3e4   :  { %v3293_v17 = vadd.f32 %v3292_v34, %v3291_v28  ;;  %v3356_v14 = vrot.slane %v3355_v41, 2  ;;  %6458 = vmatpush.bf16.msrb.mxu0 %v8796_v50  ;;  %v9664_v18 = vor.u32 %v10981_v46, %v9663_v56  ;;  %v10112_v28 = vor.u32 %v11093_v29, %v10111_v15  ;;  %v11030_v34 = vld [vmem:[#allocation24 + $0xa28] sm:$0xf0]  ;;  %v10967_v50 = vld [vmem:[#allocation24 + $0x830] sm:$0xf0] }
 0x3e5   :  { %v9860_v45 = vor.u32 %v11030_v34, %v9859_v2  ;;  %6529 = vmatpush.bf16.msra.mxu2 %v10336_v36  ;;  %v9608_v56 = vor.u32 %v10967_v50, %v9607_v53  ;;  %v9832_v46 = vor.u32 %v11023_v22, %v9831_v54  ;;  %v9579_v15 = vld [vmem:[#allocation24 + $0x7e0] sm:$0xf]  ;;  %v10960_v29 = vld [vmem:[#allocation24 + $0x7f8] sm:$0xf0]  ;;  %v10223_v53 = vld [vmem:[#allocation24 + $0xce8] sm:$0xf] }
 0x3e6   :  { %v3294_v31 = vrot.slane %v3293_v17, 1  ;;  %v3357_v60 = vadd.f32 %v3356_v14, %v3355_v41  ;;  %6490 = vmatpush.bf16.msrb.mxu3 %v9664_v18  ;;  %v3443_v41 = vmul.f32 %v12202_v10, %v12188_v11  ;;  %v9580_v30 = vor.u32 %v10960_v29, %v9579_v15  ;;  %v10251_v36 = vld [vmem:[#allocation24 + $0xd20] sm:$0xf]  ;;  %v11121_v50 = vld [vmem:[#allocation24 + $0xd00] sm:$0xf0] }
 0x3e7   :  { %6516 = vmatpush.bf16.msra.mxu1 %v10112_v28  ;;  %v9803_v28 = vld [vmem:[#allocation24 + $0x9a0] sm:$0xf]  ;;  %v10195_v15 = vld [vmem:[#allocation24 + $0xcb0] sm:$0xf]  ;;  %v11114_v29 = vld [vmem:[#allocation24 + $0xcc8] sm:$0xf0] }
 0x3e8   :  { %v3295_v24 = vadd.f32 %v3294_v31, %v3293_v17  ;;  %v3358_v25 = vrot.slane %v3357_v60, 1  ;;  %6503 = vmatpush.bf16.msra.mxu0 %v9888_v26  ;;  %v10307_v17 = vld [vmem:[#allocation24 + $0xd90] sm:$0xf]  ;;  %v10055_v31 = vld [vmem:[#allocation24 + $0xb98] sm:$0xf]  ;;  %v3444_v4 = vmul.f32 %v12202_v10, %v3443_v41  ;;  %v9804_v32 = vor.u32 %v11016_v49, %v9803_v28 }
 0x3e9   :  { %v10308_v59 = vor.u32 %v11142_v52, %v10307_v17  ;;  %v9999_v17 = vld [vmem:[#allocation24 + $0xb28] sm:$0xf]  ;;  %v9776_v52 = vor.u32 %v11009_v47, %v9775_v39  ;;  %v11051_v39 = vld [vmem:[#allocation24 + $0xad0] sm:$0xf0]  ;;  %v10167_v47 = vld [vmem:[#allocation24 + $0xc78] sm:$0xf] }
 0x3ea   :  { %v12208_v33 = vmul.f32 %v3295_v24, %v11823_v23  ;;  %v3359_v35 = vadd.f32 %v3358_v25, %v3357_v60  ;;  %6491 = vmatpush.bf16.msrb.mxu3 %v9636_v7  ;;  %v3454_v24 = vmul.f32 %v12204_v20, %v3453_v44  ;;  %v10056_v25 = vor.u32 %v11079_v19, %v10055_v31  ;;  %v9551_v7 = vld [vmem:[#allocation24 + $0x7a8] sm:$0xf]  ;;  %v9747_v19 = vld [vmem:[#allocation24 + $0x930] sm:$0xf] }
 0x3eb   :  { %6517 = vmatpush.bf16.msra.mxu1 %v10084_v51  ;;  %6530 = vmatpush.bf16.msra.mxu2 %v10308_v59  ;;  %v3445_v2 = vmul.f32 0.5, %v3444_v4  ;;  %v10252_v44 = vor.u32 %v11128_v37, %v10251_v36  ;;  %v11058_v4 = vld [vmem:[#allocation24 + $0xb08] sm:$0xf0]  ;;  %v9719_v36 = vld [vmem:[#allocation24 + $0x8f8] sm:$0xf] }
 0x3ec   :  { %v3367_v14 = vmul.f32 %v3359_v35, %v11823_v23  ;;  %v3375_v42 = vmul.f32 %v12208_v33, %v12208_v33  ;;  %6504 = vmatpush.bf16.msra.mxu0 %v9860_v45  ;;  %v11135_v23 = vld [vmem:[#allocation24 + $0xd70] sm:$0xf0]  ;;  %v11072_v35 = vld [vmem:[#allocation24 + $0xb78] sm:$0xf0]  ;;  %v3455_v34 = vmul.f32 0.5, %v3454_v24 }
 0x3ed   :  { %v10280_v26 = vor.u32 %v11135_v23, %v10279_v8  ;;  %v10028_v41 = vor.u32 %v11072_v35, %v10027_v63  ;;  %v10953_v45 = vld [vmem:[#allocation24 + $0x7c0] sm:$0xf0]  ;;  %v3446_v59 = vsub.f32 1.5, %v3445_v2  ;;  %v11002_v23 = vld [vmem:[#allocation24 + $0x948] sm:$0xf0] }
 0x3ee   :  { %v3383_v60 = vsub.f32 %v3367_v14, %v3375_v42  ;;  %6492 = vmatpush.bf16.msrb.mxu3 %v9608_v56  ;;  %v11065_v14 = vld [vmem:[#allocation24 + $0xb40] sm:$0xf0]  ;;  %v3436_v42 = vsub.f32 1.5, %v3435_v21  ;;  %v9552_v51 = vor.u32 %v10953_v45, %v9551_v7  ;;  %v3456_v54 = vsub.f32 1.5, %v3455_v34  ;;  %v9523_v56 = vld [vmem:[#allocation24 + $0x770] sm:$0xf] }
 0x3ef   :  { %6518 = vmatpush.bf16.msra.mxu1 %v10056_v25  ;;  %6531 = vmatpush.bf16.msra.mxu2 %v10280_v26  ;;  %v10000_v22 = vor.u32 %v11065_v14, %v9999_v17  ;;  %v9971_v21 = vld [vmem:[#allocation24 + $0xaf0] sm:$0xf]  ;;  %v9748_v26 = vor.u32 %v11002_v23, %v9747_v19  ;;  %v3447_v28 = vmul.f32 %v12202_v10, %v3446_v59  ;;  %v10939_v35 = vld [vmem:[#allocation24 + $0x750] sm:$0xf0]  ;;  %v10988_v59 = vld [vmem:[#allocation24 + $0x8d8] sm:$0xf0] }
 0x3f0   :  { %v12219_v18 = vadd.f32 0.8, %v3383_v60  ;;  %6505 = vmatpush.bf16.msra.mxu0 %v9832_v46  ;;  %v10224_v60 = vor.u32 %v11121_v50, %v10223_v53  ;;  %v10946_v46 = vld [vmem:[#allocation24 + $0x788] sm:$0xf0]  ;;  %v3437_v24 = vmul.f32 %v12197_v43, %v3436_v42  ;;  %v9972_v63 = vor.u32 %v11058_v4, %v9971_v21  ;;  %v11107_v17 = vld [vmem:[#allocation24 + $0xc90] sm:$0xf0] }
 0x3f1   :  { %v9524_v25 = vor.u32 %v10946_v46, %v9523_v56  ;;  %v3457_v2 = vmul.f32 %v12204_v20, %v3456_v54  ;;  %v3451_v14 = vsel %vm12242_vm12, %v12202_v10, %v3447_v28  ;;  %v10168_v53 = vor.u32 %v11107_v17, %v10167_v47  ;;  %v9691_v50 = vld [vmem:[#allocation24 + $0x8c0] sm:$0xf]  ;;  %v11100_v46 = vld [vmem:[#allocation24 + $0xc58] sm:$0xf0] }
 0x3f2   :  { %11209 = vrsqrt.f32 %v12219_v18  ;;  %6493 = vmatpush.bf16.msrb.mxu3 %v9580_v30  ;;  %v10196_v30 = vor.u32 %v11114_v29, %v10195_v15  ;;  %v3441_v11 = vsel %vm12232_vm9, %v12197_v43, %v3437_v24  ;;  %v9915_v54 = vld [vmem:[#allocation24 + $0xa80] sm:$0xf]  ;;  %vm3468_vm0 = vweird.f32 %v12219_v18 }
 0x3f3   :  { %6519 = vmatpush.bf16.msra.mxu1 %v10028_v41  ;;  %6532 = vmatpush.bf16.msra.mxu2 %v10252_v44  ;;  %v10995_v41 = vld [vmem:[#allocation24 + $0x910] sm:$0xf0]  ;;  %v9943_v44 = vld [vmem:[#allocation24 + $0xab8] sm:$0xf]  ;;  %v3461_v10 = vsel %vm12256_vm14, %v12204_v20, %v3457_v2  ;;  %v10139_v56 = vld [vmem:[#allocation24 + $0xc40] sm:$0xf]  ;;  %v9692_v21 = vor.u32 %v10988_v59, %v9691_v50 }
 0x3f4   :  { %6506 = vmatpush.bf16.msra.mxu0 %v9804_v32  ;;  %v9495_v32 = vld [vmem:[#allocation24 + $0x738] sm:$0xf]  ;;  %v9720_v45 = vor.u32 %v10995_v41, %v9719_v36  ;;  %v9944_v6 = vor.u32 %v11051_v39, %v9943_v44  ;;  %v3483_v19 = vrot.slane %v3441_v11, 4  ;;  %v3485_v24 = vrot.slane %v3461_v10, 2 }
 0x3f5   :  { %v9496_v7 = vor.u32 %v10939_v35, %v9495_v32 }
 0x3f6   :  { %6494 = vmatpush.bf16.msrb.mxu3 %v9552_v51  ;;  %v9467_v51 = vld [vmem:[#allocation24 + $0x700] sm:$0xf] }
 0x3f7   :  { %6520 = vmatpush.bf16.msra.mxu1 %v10000_v22  ;;  %6533 = vmatpush.bf16.msra.mxu2 %v10224_v60  ;;  %v11044_v60 = vld [vmem:[#allocation24 + $0xa98] sm:$0xf0] }
 0x3f8   :  { %v12222_v31 = vpop.eup %11209  ;;  %6507 = vmatpush.bf16.msra.mxu0 %v9776_v52  ;;  %v10932_v52 = vld [vmem:[#allocation24 + $0x718] sm:$0xf0]  ;;  %v9916_v20 = vor.u32 %v11044_v60, %v9915_v54 }
 0x3f9   :  { %v3463_v8 = vmul.f32 %v12222_v31, %v12219_v18  ;;  %vm3469_vm15 = vweird.f32 %v12222_v31  ;;  %v9468_v23 = vor.u32 %v10932_v52, %v9467_v51 }
 0x3fa   :  { %6495 = vmatpush.bf16.msrb.mxu3 %v9524_v25  ;;  %vm3470_vm1 = vmor %vm3468_vm0, %vm3469_vm15  ;;  %v10140_v25 = vor.u32 %v11100_v46, %v10139_v56 }
 0x3fb   :  { %v3464_v49 = vmul.f32 %v12222_v31, %v3463_v8  ;;  %6521 = vmatpush.bf16.msra.mxu1 %v9972_v63  ;;  %6534 = vmatpush.bf16.msra.mxu2 %v10196_v30  ;;  %v3484_v8 = vrot.slane %v3451_v14, 3 }
 0x3fc   :  { %6508 = vmatpush.bf16.msra.mxu0 %v9748_v26  ;;  %v3246_v26 = vld [vmem:[#allocation21] sm:$0xff] }
 0x3fd   :  { %v3465_v34 = vmul.f32 0.5, %v3464_v49  ;;  %v3491_v15 = vsel %vm3490_vm2, %v3483_v19, %v3484_v8 }
 0x3fe   :  { %6496 = vmatpush.bf16.msrb.mxu3 %v9496_v7 }
 0x3ff   :  { %v3466_v43 = vsub.f32 1.5, %v3465_v34  ;;  %6522 = vmatpush.bf16.msra.mxu1 %v9944_v6  ;;  %6535 = vmatpush.bf16.msra.mxu2 %v10168_v53 }
 0x400   :  { %6509 = vmatpush.bf16.msra.mxu0 %v9720_v45 }
 0x401   :  { %v3467_v22 = vmul.f32 %v12222_v31, %v3466_v43 }
 0x402   :  { %6497 = vmatpush.bf16.msrb.mxu3 %v9468_v23 }
 0x403   :  { %v3471_v4 = vsel %vm3470_vm1, %v12222_v31, %v3467_v22  ;;  %6523 = vmatpush.bf16.msra.mxu1 %v9916_v20  ;;  %6536 = vmatpush.bf16.msra.mxu2 %v10140_v25  ;;  %v10810_v25 = vld [vmem:[#allocation24 + $0x34c] sm:$0xf] }
 0x404   :  { %v3486_v18 = vrot.slane %v3471_v4, 1  ;;  %6510 = vmatpush.bf16.msra.mxu0 %v9692_v21 }
 0x406   :  { %v3493_v29 = vsel %vm3492_vm3, %v3485_v24, %v3486_v18  ;;  %v10754_v18 = vld [vmem:[#allocation24 + $0x18c] sm:$0xf] }
 0x407   :  { %v3495_v55 = vsel %vm3494_vm7, %v3491_v15, %v3493_v29 }
 0x408   :  { %v3497_v31 = vsel %vm3496_vm8, %v12145_v1, %v3495_v55  ;;  %v8993_v55 = vld [vmem:[#allocation24 + $0x364] sm:$0xf0] }
 0x409   :  { %v3499_v28 = vmul.f32 %v3497_v31, %v3246_v26 }
 0x40b   :  { %v3501_v49 = vperm.slane %v3499_v28, 0  ;;  %v3502_v63 = vperm.slane %v3499_v28, 1  ;;  %v3503_v30 = vperm.slane %v3499_v28, 2  ;;  %v3504_v32 = vperm.slane %v3499_v28, 3 }
 0x40c   :  { %v3505_v35 = vperm.slane %v3499_v28, 4  ;;  %v3506_v36 = vperm.slane %v3499_v28, 5  ;;  %v3507_v37 = vperm.slane %v3499_v28, 6  ;;  %v3508_v2 = vperm.slane %v3499_v28, 7 }
 0x40d   :  { %v3517_v34 = vmul.f32 %v3501_v49, %v12073_v38  ;;  %v3518_v41 = vmul.f32 %v3502_v63, %v12093_v40  ;;  %v3519_v44 = vmul.f32 %v3503_v30, %v12118_v3  ;;  %v3520_v11 = vmul.f32 %v3504_v32, %v12134_v27 }
 0x40e   :  { %v3521_v1 = vmul.f32 %v3505_v35, %v12166_v62  ;;  %v3522_v7 = vmul.f32 %v3506_v36, %v12172_v61  ;;  %v3523_v45 = vmul.f32 %v3507_v37, %v12175_v5  ;;  %v3524_v39 = vmul.f32 %v3508_v2, %v12208_v33  ;;  %v3247_v61 = vld [vmem:[#allocation22] sm:$0xff] }
 0x40f   :  { %v3533_v47 = vrot.slane %v3518_v41, 7  ;;  %v3534_v17 = vrot.slane %v3519_v44, 6  ;;  %v3535_v14 = vrot.slane %v3520_v11, 5  ;;  %v3556_v27 = vmul.f32 %v3508_v2, %v12186_v58 }
 0x410   :  { %v3536_v42 = vrot.slane %v3521_v1, 4  ;;  %v3537_v43 = vrot.slane %v3522_v7, 3  ;;  %v3538_v38 = vrot.slane %v3523_v45, 2  ;;  %v3539_v6 = vrot.slane %v3524_v39, 1  ;;  %v10747_v1 = vld [vmem:[#allocation24 + $0x154] sm:$0xf] }
 0x411   :  { %v3540_v40 = vsel %vm564_vm6, %v3517_v34, %v3533_v47  ;;  %v3541_v3 = vsel %vm1216_vm4, %v3534_v17, %v3535_v14  ;;  %v3549_v62 = vmul.f32 %v3501_v49, %v12065_v57  ;;  %v3550_v52 = vmul.f32 %v3502_v63, %v12078_v9  ;;  %v10866_v49 = vld [vmem:[#allocation24 + $0x50c] sm:$0xf]  ;;  %v8741_v7 = vld [vmem:[#allocation24 + $0x16c] sm:$0xf0]  ;;  %v10803_v14 = vld [vmem:[#allocation24 + $0x314] sm:$0xf] }
 0x412   :  { %v3542_v5 = vsel %vm1218_vm5, %v3540_v40, %v3541_v3  ;;  %v3543_v33 = vsel %vm3490_vm2, %v3536_v42, %v3537_v43  ;;  %v3544_v51 = vsel %vm3492_vm3, %v3538_v38, %v3539_v6  ;;  %v3551_v50 = vmul.f32 %v3503_v30, %v12100_v0  ;;  %v8965_v42 = vld [vmem:[#allocation24 + $0x32c] sm:$0xf0]  ;;  %v10859_v43 = vld [vmem:[#allocation24 + $0x4d4] sm:$0xf] }
 0x413   :  { %v3545_v53 = vsel %vm3494_vm7, %v3543_v33, %v3544_v51  ;;  %v3552_v59 = vmul.f32 %v3504_v32, %v12127_v16  ;;  %v3555_v57 = vmul.f32 %v3507_v37, %v12159_v48  ;;  %v3553_v10 = vmul.f32 %v3505_v35, %v12140_v13  ;;  %v8769_v48 = vld [vmem:[#allocation24 + $0x1a4] sm:$0xf0]  ;;  %v10922_v35 = vld [vmem:[#allocation24 + $0x6cc] sm:$0xf]  ;;  %v9189_v38 = vld [vmem:[#allocation24 + $0x4ec] sm:$0xf0] }
 0x414   :  { %v3546_v54 = vsel %vm3496_vm8, %v3542_v5, %v3545_v53  ;;  %v3554_v22 = vmul.f32 %v3506_v36, %v12148_v12  ;;  %v9217_v32 = vld [vmem:[#allocation24 + $0x524] sm:$0xf0]  ;;  %v8772_v44 = vor.u32 %v10754_v18, %v8769_v48  ;;  %v8996_v11 = vor.u32 %v10810_v25, %v8993_v55  ;;  %v10915_v6 = vld [vmem:[#allocation24 + $0x694] sm:$0xf]  ;;  %v9413_v40 = vld [vmem:[#allocation24 + $0x6ac] sm:$0xf0] }
 0x415   :  { %v3548_v58 = vsub.f32 %v3247_v61, %v3546_v54  ;;  %v9441_v36 = vld [vmem:[#allocation24 + $0x6e4] sm:$0xf0]  ;;  %v9220_v47 = vor.u32 %v10866_v49, %v9217_v32  ;;  %v8744_v3 = vor.u32 %v10747_v1, %v8741_v7  ;;  %v8713_v61 = vld [vmem:[#allocation24 + $0x134] sm:$0xf0]  ;;  %v10796_v5 = vld [vmem:[#allocation24 + $0x2dc] sm:$0xf]  ;;  %v9192_v33 = vor.u32 %v10859_v43, %v9189_v38 }
 0x416   :  { %v9444_v17 = vor.u32 %v10922_v35, %v9441_v36  ;;  %v9416_v51 = vor.u32 %v10915_v6, %v9413_v40  ;;  %v10852_v53 = vld [vmem:[#allocation24 + $0x49c] sm:$0xf]  ;;  %v9385_v54 = vld [vmem:[#allocation24 + $0x674] sm:$0xf0]  ;;  %v10726_v25 = vld [vmem:[#allocation24 + $0xac] sm:$0xf] }
 0x417   :  { %v3565_v60 = vperm.slane %v3548_v58, 7  ;;  %v3558_v56 = vperm.slane %v3548_v58, 0  ;;  %v3559_v46 = vperm.slane %v3548_v58, 1  ;;  %v3560_v19 = vperm.slane %v3548_v58, 2  ;;  %v8881_v49 = vld [vmem:[#allocation24 + $0x284] sm:$0xf0] }
 0x418   :  { %v3561_v9 = vperm.slane %v3548_v58, 3  ;;  %v3562_v8 = vperm.slane %v3548_v58, 4  ;;  %v3563_v23 = vperm.slane %v3548_v58, 5  ;;  %v3564_v21 = vperm.slane %v3548_v58, 6  ;;  %v10733_v58 = vld [vmem:[#allocation24 + $0xe4] sm:$0xf] }
 0x419   :  { %v12297_v0 = vadd.f32 %v3565_v60, %v3556_v27  ;;  %v3574_v16 = vadd.f32 %v3558_v56, %v3549_v62  ;;  %v3575_v4 = vadd.f32 %v3559_v46, %v3550_v52  ;;  %v3576_v20 = vadd.f32 %v3560_v19, %v3551_v50  ;;  %v10740_v62 = vld [vmem:[#allocation24 + $0x11c] sm:$0xf]  ;;  %v8937_v52 = vld [vmem:[#allocation24 + $0x2f4] sm:$0xf0]  ;;  %v10845_v46 = vld [vmem:[#allocation24 + $0x464] sm:$0xf] }
 0x41a   :  { %v3577_v24 = vadd.f32 %v3561_v9, %v3552_v59  ;;  %v12299_v13 = vadd.f32 %v3562_v8, %v3553_v10  ;;  %v12301_v12 = vadd.f32 %v3563_v23, %v3554_v22  ;;  %v12303_v26 = vadd.f32 %v3564_v21, %v3555_v57  ;;  %v9161_v50 = vld [vmem:[#allocation24 + $0x4b4] sm:$0xf0]  ;;  %v10908_v59 = vld [vmem:[#allocation24 + $0x65c] sm:$0xf]  ;;  %v8685_v57 = vld [vmem:[#allocation24 + $0xfc] sm:$0xf0] }
 0x41b   :  { %v3582_v15 = vmul.f32 0.2, %v3574_v16  ;;  %v3583_v29 = vmul.f32 0.2, %v3575_v4  ;;  %v3584_v31 = vmul.f32 0.2, %v3576_v20  ;;  %v8968_v27 = vor.u32 %v10803_v14, %v8965_v42 }
 0x41c   :  { %v3585_v28 = vmul.f32 0.2, %v3577_v24  ;;  %v10789_v10 = vld [vmem:[#allocation24 + $0x2a4] sm:$0xf]  ;;  %v8909_v22 = vld [vmem:[#allocation24 + $0x2bc] sm:$0xf0]  ;;  %v8716_v60 = vor.u32 %v10740_v62, %v8713_v61  ;;  %v8940_v56 = vor.u32 %v10796_v5, %v8937_v52  ;;  %v9164_v23 = vor.u32 %v10852_v53, %v9161_v50 }
 0x41d   :  { %v3590_v63 = vmax.f32 %v3574_v16, %v3582_v15  ;;  %v3591_v30 = vmax.f32 %v3575_v4, %v3583_v29  ;;  %v3592_v37 = vmax.f32 %v3576_v20, %v3584_v31  ;;  %v3586_v19 = vmul.f32 0.2, %v12299_v13  ;;  %v9133_v16 = vld [vmem:[#allocation24 + $0x47c] sm:$0xf0]  ;;  %v10901_v20 = vld [vmem:[#allocation24 + $0x624] sm:$0xf] }
 0x41e   :  { %v3593_v2 = vmax.f32 %v3577_v24, %v3585_v28  ;;  %v3587_v9 = vmul.f32 0.2, %v12301_v12  ;;  %v3589_v8 = vmul.f32 0.2, %v12297_v0  ;;  %v9388_v21 = vor.u32 %v10908_v59, %v9385_v54  ;;  %v9357_v24 = vld [vmem:[#allocation24 + $0x63c] sm:$0xf0] }
 0x41f   :  { %v12305_v34 = vpack.c.bf16 %v3590_v63, %v3590_v63  ;;  %v12307_v41 = vpack.c.bf16 %v3591_v30, %v3591_v30  ;;  %v12309_v45 = vpack.c.bf16 %v3592_v37, %v3592_v37  ;;  %v3588_v4 = vmul.f32 0.2, %v12303_v26  ;;  %v8657_v31 = vld [vmem:[#allocation24 + $0xc4] sm:$0xf0]  ;;  %v10782_v28 = vld [vmem:[#allocation24 + $0x26c] sm:$0xf] }
 0x420   :  { %v12311_v39 = vpack.c.bf16 %v3593_v2, %v3593_v2  ;;  %v8688_v18 = vor.u32 %v10733_v58, %v8685_v57  ;;  %v8912_v48 = vor.u32 %v10789_v10, %v8909_v22  ;;  %v9136_v15 = vor.u32 %v10845_v46, %v9133_v16  ;;  %v10838_v35 = vld [vmem:[#allocation24 + $0x42c] sm:$0xf]  ;;  %v9105_v36 = vld [vmem:[#allocation24 + $0x444] sm:$0xf0]  ;;  %v10719_v7 = vld [vmem:[#allocation24 + $0x74] sm:$0xf] }
 0x421   :  { %6446 = vmatmul.bf16.vlgmr.msra.gmra.mxu3 %v12305_v34  ;;  %6459 = vmatmul.bf16.vlgmr.msrb.gmra.mxu0 %v12307_v41  ;;  %v3594_v29 = vmax.f32 %v12299_v13, %v3586_v19  ;;  %v3595_v55 = vmax.f32 %v12301_v12, %v3587_v9  ;;  %v3597_v63 = vmax.f32 %v12297_v0, %v3589_v8  ;;  %v10894_v37 = vld [vmem:[#allocation24 + $0x5ec] sm:$0xf]  ;;  %v9329_v2 = vld [vmem:[#allocation24 + $0x604] sm:$0xf0]  ;;  %v8629_v0 = vld [vmem:[#allocation24 + $0x8c] sm:$0xf0] }
 0x422   :  { %6472 = vmatmul.bf16.vlgmr.msrb.gmra.mxu1 %v12309_v45  ;;  %6485 = vmatmul.bf16.vlgmr.msrb.gmra.mxu2 %v12311_v39  ;;  %v9360_v30 = vor.u32 %v10901_v20, %v9357_v24  ;;  %v3596_v32 = vmax.f32 %v12303_v26, %v3588_v4  ;;  %v9108_v1 = vor.u32 %v10838_v35, %v9105_v36  ;;  %v10775_v14 = vld [vmem:[#allocation24 + $0x234] sm:$0xf]  ;;  %v8853_v42 = vld [vmem:[#allocation24 + $0x24c] sm:$0xf0]  ;;  %v10712_v62 = vld [vmem:[#allocation24 + $0x3c] sm:$0xf] }
 0x423   :  { %6542 = vmatpush.bf16.msra.mxu3 %v8772_v44  ;;  %6555 = vmatpush.bf16.msrb.mxu0 %v8996_v11  ;;  %v8660_v44 = vor.u32 %v10726_v25, %v8657_v31  ;;  %v8884_v11 = vor.u32 %v10782_v28, %v8881_v49  ;;  %v12325_v13 = vpack.c.bf16 %v3594_v29, %v3594_v29  ;;  %v10831_v43 = vld [vmem:[#allocation24 + $0x3f4] sm:$0xf]  ;;  %v9077_v38 = vld [vmem:[#allocation24 + $0x40c] sm:$0xf0]  ;;  %v8601_v61 = vld [vmem:[#allocation24 + $0x54] sm:$0xf0] }
 0x424   :  { %6568 = vmatpush.bf16.msrb.mxu1 %v9220_v47  ;;  %6581 = vmatpush.bf16.msrb.mxu2 %v9444_v17  ;;  %v12327_v12 = vpack.c.bf16 %v3595_v55, %v3595_v55  ;;  %v12329_v47 = vpack.c.bf16 %v3597_v63, %v3597_v63  ;;  %v12331_v26 = vpack.c.bf16 %v3596_v32, %v3596_v32  ;;  %v10887_v6 = vld [vmem:[#allocation24 + $0x5b4] sm:$0xf]  ;;  %v9301_v40 = vld [vmem:[#allocation24 + $0x5cc] sm:$0xf0]  ;;  %v8825_v52 = vld [vmem:[#allocation24 + $0x214] sm:$0xf0] }
 0x425   :  { %v9332_v17 = vor.u32 %v10894_v37, %v9329_v2  ;;  %v9080_v5 = vor.u32 %v10831_v43, %v9077_v38  ;;  %v10824_v53 = vld [vmem:[#allocation24 + $0x3bc] sm:$0xf]  ;;  %v9049_v50 = vld [vmem:[#allocation24 + $0x3d4] sm:$0xf0]  ;;  %v10705_v58 = vld [vmem:[#allocation24 + $0x4] sm:$0xf]  ;;  %v8604_v57 = vor.u32 %v10712_v62, %v8601_v61 }
 0x426   :  { %v10880_v59 = vld [vmem:[#allocation24 + $0x57c] sm:$0xf]  ;;  %v9273_v54 = vld [vmem:[#allocation24 + $0x594] sm:$0xf0]  ;;  %v8573_v22 = vld [vmem:[#allocation24 + $0x1c] sm:$0xf0]  ;;  %v9052_v46 = vor.u32 %v10824_v53, %v9049_v50 }
 0x427   :  { %6543 = vmatpush.bf16.msra.mxu3 %v8744_v3  ;;  %6556 = vmatpush.bf16.msrb.mxu0 %v8968_v27  ;;  %v8632_v3 = vor.u32 %v10719_v7, %v8629_v0  ;;  %v8856_v27 = vor.u32 %v10775_v14, %v8853_v42  ;;  %v9276_v19 = vor.u32 %v10880_v59, %v9273_v54  ;;  %v10817_v9 = vld [vmem:[#allocation24 + $0x384] sm:$0xf]  ;;  %v9021_v8 = vld [vmem:[#allocation24 + $0x39c] sm:$0xf0]  ;;  %v10978_v16 = vld [vmem:[#allocation24 + $0x88c] sm:$0xf] }
 0x428   :  { %6569 = vmatpush.bf16.msrb.mxu1 %v9192_v33  ;;  %6582 = vmatpush.bf16.msrb.mxu2 %v9416_v51  ;;  %v9304_v33 = vor.u32 %v10887_v6, %v9301_v40  ;;  %v10768_v51 = vld [vmem:[#allocation24 + $0x1fc] sm:$0xf]  ;;  %v9665_v4 = vld [vmem:[#allocation24 + $0x8a4] sm:$0xf0]  ;;  %v11034_v20 = vld [vmem:[#allocation24 + $0xa4c] sm:$0xf]  ;;  %v9024_v31 = vor.u32 %v10817_v9, %v9021_v8 }
 0x429   :  { %v8828_v10 = vor.u32 %v10768_v51, %v8825_v52  ;;  %v9889_v24 = vld [vmem:[#allocation24 + $0xa64] sm:$0xf0]  ;;  %v11146_v29 = vld [vmem:[#allocation24 + $0xdcc] sm:$0xf]  ;;  %v9668_v49 = vor.u32 %v10978_v16, %v9665_v4  ;;  %v9637_v32 = vld [vmem:[#allocation24 + $0x86c] sm:$0xf0] }
 0x42a   :  { %v10337_v55 = vld [vmem:[#allocation24 + $0xde4] sm:$0xf0]  ;;  %v9892_v63 = vor.u32 %v11034_v20, %v9889_v24  ;;  %v11027_v37 = vld [vmem:[#allocation24 + $0xa14] sm:$0xf]  ;;  %v9861_v2 = vld [vmem:[#allocation24 + $0xa2c] sm:$0xf0] }
 0x42b   :  { %6544 = vmatpush.bf16.msra.mxu3 %v8716_v60  ;;  %6557 = vmatpush.bf16.msrb.mxu0 %v8940_v56  ;;  %v10761_v60 = vld [vmem:[#allocation24 + $0x1c4] sm:$0xf]  ;;  %v8797_v56 = vld [vmem:[#allocation24 + $0x1dc] sm:$0xf0]  ;;  %v10340_v36 = vor.u32 %v11146_v29, %v10337_v55  ;;  %v10309_v7 = vld [vmem:[#allocation24 + $0xdac] sm:$0xf0] }
 0x42c   :  { %6570 = vmatpush.bf16.msrb.mxu1 %v9164_v23  ;;  %6583 = vmatpush.bf16.msrb.mxu2 %v9388_v21  ;;  %v10873_v23 = vld [vmem:[#allocation24 + $0x544] sm:$0xf]  ;;  %v9245_v21 = vld [vmem:[#allocation24 + $0x55c] sm:$0xf0]  ;;  %v8800_v25 = vor.u32 %v10761_v60, %v8797_v56  ;;  %v10964_v14 = vld [vmem:[#allocation24 + $0x81c] sm:$0xf] }
 0x42d   :  { %v9248_v28 = vor.u32 %v10873_v23, %v9245_v21  ;;  %v9609_v42 = vld [vmem:[#allocation24 + $0x834] sm:$0xf0]  ;;  %v11020_v6 = vld [vmem:[#allocation24 + $0x9dc] sm:$0xf]  ;;  %v10957_v51 = vld [vmem:[#allocation24 + $0x7e4] sm:$0xf] }
 0x42e   :  { %v9833_v40 = vld [vmem:[#allocation24 + $0x9f4] sm:$0xf0]  ;;  %v11132_v62 = vld [vmem:[#allocation24 + $0xd5c] sm:$0xf]  ;;  %v9581_v52 = vld [vmem:[#allocation24 + $0x7fc] sm:$0xf0] }
 0x42f   :  { %6545 = vmatpush.bf16.msra.mxu3 %v8688_v18  ;;  %6558 = vmatpush.bf16.msrb.mxu0 %v8912_v48  ;;  %v11090_v18 = vld [vmem:[#allocation24 + $0xc0c] sm:$0xf]  ;;  %v8576_v48 = vor.u32 %v10705_v58, %v8573_v22  ;;  %v10281_v61 = vld [vmem:[#allocation24 + $0xd74] sm:$0xf0]  ;;  %v11013_v59 = vld [vmem:[#allocation24 + $0x9a4] sm:$0xf]  ;;  %v9584_v60 = vor.u32 %v10957_v51, %v9581_v52 }
 0x430   :  { %6571 = vmatpush.bf16.msrb.mxu1 %v9136_v15  ;;  %6584 = vmatpush.bf16.msrb.mxu2 %v9360_v30  ;;  %v10113_v15 = vld [vmem:[#allocation24 + $0xc24] sm:$0xf0]  ;;  %v10971_v30 = vld [vmem:[#allocation24 + $0x854] sm:$0xf]  ;;  %v10284_v50 = vor.u32 %v11132_v62, %v10281_v61  ;;  %v9805_v54 = vld [vmem:[#allocation24 + $0x9bc] sm:$0xf0] }
 0x431   :  { %6498 = vmatmul.bf16.vlgmr.msrb.gmra.mxu3 %v12325_v13  ;;  %6511 = vmatmul.bf16.vlgmr.msra.gmra.mxu0 %v12327_v12  ;;  %v10116_v35 = vor.u32 %v11090_v18, %v10113_v15  ;;  %v9640_v0 = vor.u32 %v10971_v30, %v9637_v32  ;;  %v11069_v58 = vld [vmem:[#allocation24 + $0xb64] sm:$0xf]  ;;  %v10253_v22 = vld [vmem:[#allocation24 + $0xd3c] sm:$0xf0]  ;;  %v9808_v56 = vor.u32 %v11013_v59, %v9805_v54  ;;  %v11006_v23 = vld [vmem:[#allocation24 + $0x96c] sm:$0xf] }
 0x432   :  { %6524 = vmatmul.bf16.vlgmr.msra.gmra.mxu1 %v12331_v26  ;;  %6537 = vmatmul.bf16.vlgmr.msra.gmra.mxu2 %v12329_v47  ;;  %v9777_v21 = vld [vmem:[#allocation24 + $0x984] sm:$0xf0]  ;;  %v11062_v16 = vld [vmem:[#allocation24 + $0xb2c] sm:$0xf]  ;;  %v9525_v15 = vld [vmem:[#allocation24 + $0x78c] sm:$0xf0] }
 0x433   :  { %6546 = vmatpush.bf16.msra.mxu3 %v8660_v44  ;;  %6559 = vmatpush.bf16.msrb.mxu0 %v8884_v11  ;;  %v11083_v44 = vld [vmem:[#allocation24 + $0xbd4] sm:$0xf]  ;;  %v10085_v11 = vld [vmem:[#allocation24 + $0xbec] sm:$0xf0]  ;;  %v10001_v4 = vld [vmem:[#allocation24 + $0xb44] sm:$0xf0] }
 0x434   :  { %6572 = vmatpush.bf16.msrb.mxu1 %v9108_v1  ;;  %6585 = vmatpush.bf16.msrb.mxu2 %v9332_v17  ;;  %v11139_v1 = vld [vmem:[#allocation24 + $0xd94] sm:$0xf]  ;;  %v9864_v17 = vor.u32 %v11027_v37, %v9861_v2  ;;  %v10088_v43 = vor.u32 %v11083_v44, %v10085_v11  ;;  %v11118_v20 = vld [vmem:[#allocation24 + $0xcec] sm:$0xf]  ;;  %v10225_v24 = vld [vmem:[#allocation24 + $0xd04] sm:$0xf0]  ;;  %v10004_v29 = vor.u32 %v11062_v16, %v10001_v4 }
 0x435   :  { %v10312_v38 = vor.u32 %v11139_v1, %v10309_v7  ;;  %v10228_v55 = vor.u32 %v11118_v20, %v10225_v24  ;;  %v11111_v30 = vld [vmem:[#allocation24 + $0xcb4] sm:$0xf]  ;;  %v10197_v32 = vld [vmem:[#allocation24 + $0xccc] sm:$0xf0]  ;;  %v10936_v37 = vld [vmem:[#allocation24 + $0x73c] sm:$0xf] }
 0x436   :  { %v9497_v2 = vld [vmem:[#allocation24 + $0x754] sm:$0xf0]  ;;  %v10200_v11 = vor.u32 %v11111_v30, %v10197_v32  ;;  %v10992_v1 = vld [vmem:[#allocation24 + $0x8fc] sm:$0xf]  ;;  %v11097_v51 = vld [vmem:[#allocation24 + $0xc44] sm:$0xf] }
 0x437   :  { %6547 = vmatpush.bf16.msra.mxu3 %v8632_v3  ;;  %6560 = vmatpush.bf16.msrb.mxu0 %v8856_v27  ;;  %v11076_v3 = vld [vmem:[#allocation24 + $0xb9c] sm:$0xf]  ;;  %v10057_v27 = vld [vmem:[#allocation24 + $0xbb4] sm:$0xf0]  ;;  %v10141_v52 = vld [vmem:[#allocation24 + $0xc5c] sm:$0xf0] }
 0x438   :  { %6573 = vmatpush.bf16.msrb.mxu1 %v9080_v5  ;;  %6586 = vmatpush.bf16.msrb.mxu2 %v9304_v33  ;;  %v9612_v5 = vor.u32 %v10964_v14, %v9609_v42  ;;  %v9836_v33 = vor.u32 %v11020_v6, %v9833_v40  ;;  %v10060_v53 = vor.u32 %v11076_v3, %v10057_v27  ;;  %v9721_v7 = vld [vmem:[#allocation24 + $0x914] sm:$0xf0]  ;;  %v11104_v14 = vld [vmem:[#allocation24 + $0xc7c] sm:$0xf]  ;;  %v9469_v40 = vld [vmem:[#allocation24 + $0x71c] sm:$0xf0] }
 0x439   :  { %v10169_v42 = vld [vmem:[#allocation24 + $0xc94] sm:$0xf0]  ;;  %v9724_v6 = vor.u32 %v10992_v1, %v9721_v7  ;;  %v10985_v3 = vld [vmem:[#allocation24 + $0x8c4] sm:$0xf]  ;;  %v9693_v27 = vld [vmem:[#allocation24 + $0x8dc] sm:$0xf0] }
 0x43a   :  { %v10172_v61 = vor.u32 %v11104_v14, %v10169_v42  ;;  %v8999_v59 = vld [vmem:[#allocation24 + $0x350] sm:$0xf]  ;;  %v10814_v54 = vld [vmem:[#allocation24 + $0x368] sm:$0xf0]  ;;  %v8971_v20 = vld [vmem:[#allocation24 + $0x318] sm:$0xf] }
 0x43b   :  { %6548 = vmatpush.bf16.msra.mxu3 %v8604_v57  ;;  %6561 = vmatpush.bf16.msrb.mxu0 %v8828_v10  ;;  %v10029_v57 = vld [vmem:[#allocation24 + $0xb7c] sm:$0xf0]  ;;  %v11125_v10 = vld [vmem:[#allocation24 + $0xd24] sm:$0xf]  ;;  %v10807_v24 = vld [vmem:[#allocation24 + $0x330] sm:$0xf0] }
 0x43c   :  { %6574 = vmatpush.bf16.msrb.mxu1 %v9052_v46  ;;  %6587 = vmatpush.bf16.msrb.mxu2 %v9276_v19  ;;  %v10950_v46 = vld [vmem:[#allocation24 + $0x7ac] sm:$0xf]  ;;  %v9553_v19 = vld [vmem:[#allocation24 + $0x7c4] sm:$0xf0]  ;;  %v10032_v9 = vor.u32 %v11069_v58, %v10029_v57  ;;  %v10256_v8 = vor.u32 %v11125_v10, %v10253_v22  ;;  %v9223_v58 = vld [vmem:[#allocation24 + $0x510] sm:$0xf]  ;;  %v9696_v10 = vor.u32 %v10985_v3, %v9693_v27 }
 0x43d   :  { %v9556_v18 = vor.u32 %v10950_v46, %v9553_v19  ;;  %v10870_v22 = vld [vmem:[#allocation24 + $0x528] sm:$0xf0]  ;;  %v10144_v19 = vor.u32 %v11097_v51, %v10141_v52  ;;  %v8943_v30 = vld [vmem:[#allocation24 + $0x2e0] sm:$0xf]  ;;  %v10800_v32 = vld [vmem:[#allocation24 + $0x2f8] sm:$0xf0] }
 0x43e   :  { %v9224_v16 = vor.u32 %v10870_v22, %v9223_v58  ;;  %v8691_v1 = vld [vmem:[#allocation24 + $0xe8] sm:$0xf]  ;;  %v10737_v7 = vld [vmem:[#allocation24 + $0x100] sm:$0xf0]  ;;  %v8887_v51 = vld [vmem:[#allocation24 + $0x270] sm:$0xf] }
 0x43f   :  { %6549 = vmatpush.bf16.msra.mxu3 %v8576_v48  ;;  %6562 = vmatpush.bf16.msrb.mxu0 %v8800_v25  ;;  %v9780_v48 = vor.u32 %v11006_v23, %v9777_v21  ;;  %v10943_v25 = vld [vmem:[#allocation24 + $0x774] sm:$0xf]  ;;  %v8747_v23 = vld [vmem:[#allocation24 + $0x158] sm:$0xf]  ;;  %v8915_v14 = vld [vmem:[#allocation24 + $0x2a8] sm:$0xf]  ;;  %v8692_v3 = vor.u32 %v10737_v7, %v8691_v1 }
 0x440   :  { %6575 = vmatpush.bf16.msrb.mxu1 %v9024_v31  ;;  %6588 = vmatpush.bf16.msrb.mxu2 %v9248_v28  ;;  %v10999_v31 = vld [vmem:[#allocation24 + $0x934] sm:$0xf]  ;;  %v9749_v28 = vld [vmem:[#allocation24 + $0x94c] sm:$0xf0]  ;;  %v10793_v42 = vld [vmem:[#allocation24 + $0x2c0] sm:$0xf0] }
 0x441   :  { %v10751_v21 = vld [vmem:[#allocation24 + $0x170] sm:$0xf0]  ;;  %v8916_v27 = vor.u32 %v10793_v42, %v8915_v14  ;;  %v10786_v52 = vld [vmem:[#allocation24 + $0x288] sm:$0xf0]  ;;  %v9251_v1 = vld [vmem:[#allocation24 + $0x548] sm:$0xf] }
 0x442   :  { %6550 = vmatmul.bf16.vlgmr.msra.gmra.mxu3 %v12305_v34  ;;  %6563 = vmatmul.bf16.vlgmr.msrb.gmra.mxu0 %v12307_v41  ;;  %v10723_v22 = vld [vmem:[#allocation24 + $0x90] sm:$0xf0]  ;;  %v10877_v7 = vld [vmem:[#allocation24 + $0x560] sm:$0xf0]  ;;  %v9895_v14 = vld [vmem:[#allocation24 + $0xa50] sm:$0xf] }
 0x443   :  { %6594 = vmatpush.bf16.msrb.mxu3 %v9668_v49  ;;  %6607 = vmatpush.bf16.msra.mxu0 %v9892_v63  ;;  %v11055_v49 = vld [vmem:[#allocation24 + $0xaf4] sm:$0xf]  ;;  %v9973_v63 = vld [vmem:[#allocation24 + $0xb0c] sm:$0xf0]  ;;  %v11038_v42 = vld [vmem:[#allocation24 + $0xa68] sm:$0xf0] }
 0x444   :  { %6620 = vmatpush.bf16.msra.mxu1 %v10116_v35  ;;  %6633 = vmatpush.bf16.msra.mxu2 %v10340_v36  ;;  %v9528_v35 = vor.u32 %v10943_v25, %v9525_v15  ;;  %v9752_v36 = vor.u32 %v10999_v31, %v9749_v28  ;;  %v9976_v44 = vor.u32 %v11055_v49, %v9973_v63  ;;  %v9419_v25 = vld [vmem:[#allocation24 + $0x698] sm:$0xf]  ;;  %v10919_v15 = vld [vmem:[#allocation24 + $0x6b0] sm:$0xf0]  ;;  %v8719_v31 = vld [vmem:[#allocation24 + $0x120] sm:$0xf] }
 0x445   :  { %6576 = vmatmul.bf16.vlgmr.msrb.gmra.mxu1 %v12309_v45  ;;  %6589 = vmatmul.bf16.vlgmr.msrb.gmra.mxu2 %v12311_v39  ;;  %v10744_v28 = vld [vmem:[#allocation24 + $0x138] sm:$0xf0]  ;;  %v9420_v63 = vor.u32 %v10919_v15, %v9419_v25  ;;  %v8831_v25 = vld [vmem:[#allocation24 + $0x200] sm:$0xf] }
 0x446   :  { %v10772_v15 = vld [vmem:[#allocation24 + $0x218] sm:$0xf0] }
 0x447   :  { %6595 = vmatpush.bf16.msrb.mxu3 %v9640_v0  ;;  %6608 = vmatpush.bf16.msra.mxu0 %v9864_v17  ;;  %v11048_v0 = vld [vmem:[#allocation24 + $0xabc] sm:$0xf]  ;;  %v9945_v17 = vld [vmem:[#allocation24 + $0xad4] sm:$0xf0] }
 0x448   :  { %6621 = vmatpush.bf16.msra.mxu1 %v10088_v43  ;;  %6634 = vmatpush.bf16.msra.mxu2 %v10312_v38  ;;  %v10929_v43 = vld [vmem:[#allocation24 + $0x704] sm:$0xf]  ;;  %v9500_v38 = vor.u32 %v10936_v37, %v9497_v2  ;;  %v9948_v62 = vor.u32 %v11048_v0, %v9945_v17  ;;  %v9391_v37 = vld [vmem:[#allocation24 + $0x660] sm:$0xf]  ;;  %v10912_v2 = vld [vmem:[#allocation24 + $0x678] sm:$0xf0] }
 0x449   :  { %v9472_v57 = vor.u32 %v10929_v43, %v9469_v40  ;;  %v9392_v17 = vor.u32 %v10912_v2, %v9391_v37  ;;  %v9139_v43 = vld [vmem:[#allocation24 + $0x468] sm:$0xf]  ;;  %v10905_v40 = vld [vmem:[#allocation24 + $0x640] sm:$0xf0] }
 0x44b   :  { %6596 = vmatpush.bf16.msrb.mxu3 %v9612_v5  ;;  %6609 = vmatpush.bf16.msra.mxu0 %v9836_v33  ;;  %v11041_v5 = vld [vmem:[#allocation24 + $0xa84] sm:$0xf]  ;;  %v9917_v33 = vld [vmem:[#allocation24 + $0xa9c] sm:$0xf0] }
 0x44c   :  { %6622 = vmatpush.bf16.msra.mxu1 %v10060_v53  ;;  %6635 = vmatpush.bf16.msra.mxu2 %v10284_v50  ;;  %v8775_v53 = vld [vmem:[#allocation24 + $0x190] sm:$0xf]  ;;  %v10758_v50 = vld [vmem:[#allocation24 + $0x1a8] sm:$0xf0]  ;;  %v9920_v46 = vor.u32 %v11041_v5, %v9917_v33 }
 0x44f   :  { %6597 = vmatpush.bf16.msrb.mxu3 %v9584_v60  ;;  %6610 = vmatpush.bf16.msra.mxu0 %v9808_v56  ;;  %v9447_v60 = vld [vmem:[#allocation24 + $0x6d0] sm:$0xf]  ;;  %v10926_v56 = vld [vmem:[#allocation24 + $0x6e8] sm:$0xf0] }
 0x450   :  { %6623 = vmatpush.bf16.msra.mxu1 %v10032_v9  ;;  %6636 = vmatpush.bf16.msra.mxu2 %v10256_v8  ;;  %v8776_v9 = vor.u32 %v10758_v50, %v8775_v53  ;;  %v9000_v8 = vor.u32 %v10814_v54, %v8999_v59  ;;  %v9448_v4 = vor.u32 %v10926_v56, %v9447_v60  ;;  %v9111_v53 = vld [vmem:[#allocation24 + $0x430] sm:$0xf]  ;;  %v10842_v50 = vld [vmem:[#allocation24 + $0x448] sm:$0xf0] }
 0x451   :  { %v9335_v59 = vld [vmem:[#allocation24 + $0x5f0] sm:$0xf]  ;;  %v10898_v54 = vld [vmem:[#allocation24 + $0x608] sm:$0xf0]  ;;  %v9112_v60 = vor.u32 %v10842_v50, %v9111_v53 }
 0x452   :  { %v9336_v56 = vor.u32 %v10898_v54, %v9335_v59  ;;  %v9867_v59 = vld [vmem:[#allocation24 + $0xa18] sm:$0xf]  ;;  %v11031_v54 = vld [vmem:[#allocation24 + $0xa30] sm:$0xf0] }
 0x453   :  { %6598 = vmatpush.bf16.msrb.mxu3 %v9556_v18  ;;  %6611 = vmatpush.bf16.msra.mxu0 %v9780_v48  ;;  %v9195_v18 = vld [vmem:[#allocation24 + $0x4d8] sm:$0xf]  ;;  %v10863_v48 = vld [vmem:[#allocation24 + $0x4f0] sm:$0xf0] }
 0x454   :  { %6624 = vmatpush.bf16.msra.mxu1 %v10004_v29  ;;  %6637 = vmatpush.bf16.msra.mxu2 %v10228_v55  ;;  %v8748_v29 = vor.u32 %v10751_v21, %v8747_v23  ;;  %v8972_v55 = vor.u32 %v10807_v24, %v8971_v20  ;;  %v9196_v49 = vor.u32 %v10863_v48, %v9195_v18  ;;  %v9307_v23 = vld [vmem:[#allocation24 + $0x5b8] sm:$0xf]  ;;  %v10891_v21 = vld [vmem:[#allocation24 + $0x5d0] sm:$0xf0]  ;;  %v8607_v20 = vld [vmem:[#allocation24 + $0x40] sm:$0xf] }
 0x455   :  { %v10716_v24 = vld [vmem:[#allocation24 + $0x58] sm:$0xf0]  ;;  %v9308_v48 = vor.u32 %v10891_v21, %v9307_v23  ;;  %v9839_v23 = vld [vmem:[#allocation24 + $0x9e0] sm:$0xf] }
 0x456   :  { %v11024_v21 = vld [vmem:[#allocation24 + $0x9f8] sm:$0xf0] }
 0x457   :  { %6599 = vmatpush.bf16.msrb.mxu3 %v9528_v35  ;;  %6612 = vmatpush.bf16.msra.mxu0 %v9752_v36  ;;  %v9167_v35 = vld [vmem:[#allocation24 + $0x4a0] sm:$0xf]  ;;  %v10856_v36 = vld [vmem:[#allocation24 + $0x4b8] sm:$0xf0] }
 0x458   :  { %6625 = vmatpush.bf16.msra.mxu1 %v9976_v44  ;;  %6638 = vmatpush.bf16.msra.mxu2 %v10200_v11  ;;  %v8720_v44 = vor.u32 %v10744_v28, %v8719_v31  ;;  %v8944_v11 = vor.u32 %v10800_v32, %v8943_v30  ;;  %v9168_v0 = vor.u32 %v10856_v36, %v9167_v35  ;;  %v9279_v31 = vld [vmem:[#allocation24 + $0x580] sm:$0xf]  ;;  %v10884_v28 = vld [vmem:[#allocation24 + $0x598] sm:$0xf0]  ;;  %v10709_v32 = vld [vmem:[#allocation24 + $0x20] sm:$0xf0] }
 0x459   :  { %v8832_v30 = vor.u32 %v10772_v15, %v8831_v25  ;;  %v8803_v35 = vld [vmem:[#allocation24 + $0x1c8] sm:$0xf]  ;;  %v10765_v36 = vld [vmem:[#allocation24 + $0x1e0] sm:$0xf0]  ;;  %v9280_v2 = vor.u32 %v10884_v28, %v9279_v31 }
 0x45a   :  { %v9587_v25 = vld [vmem:[#allocation24 + $0x7e8] sm:$0xf]  ;;  %v10961_v15 = vld [vmem:[#allocation24 + $0x800] sm:$0xf0] }
 0x45b   :  { %6600 = vmatpush.bf16.msrb.mxu3 %v9500_v38  ;;  %6613 = vmatpush.bf16.msra.mxu0 %v9724_v6  ;;  %v10849_v38 = vld [vmem:[#allocation24 + $0x480] sm:$0xf0]  ;;  %v9363_v6 = vld [vmem:[#allocation24 + $0x628] sm:$0xf] }
 0x45c   :  { %6626 = vmatpush.bf16.msra.mxu1 %v9948_v62  ;;  %6639 = vmatpush.bf16.msra.mxu2 %v10172_v61  ;;  %v8663_v62 = vld [vmem:[#allocation24 + $0xb0] sm:$0xf]  ;;  %v10730_v61 = vld [vmem:[#allocation24 + $0xc8] sm:$0xf0]  ;;  %v9140_v5 = vor.u32 %v10849_v38, %v9139_v43  ;;  %v9364_v33 = vor.u32 %v10905_v40, %v9363_v6  ;;  %v8804_v6 = vor.u32 %v10765_v36, %v8803_v35  ;;  %v9811_v31 = vld [vmem:[#allocation24 + $0x9a8] sm:$0xf] }
 0x45d   :  { %v8664_v58 = vor.u32 %v10730_v61, %v8663_v62  ;;  %v10119_v43 = vld [vmem:[#allocation24 + $0xc10] sm:$0xf]  ;;  %v11094_v40 = vld [vmem:[#allocation24 + $0xc28] sm:$0xf0]  ;;  %v9252_v61 = vor.u32 %v10877_v7, %v9251_v1  ;;  %v11017_v28 = vld [vmem:[#allocation24 + $0x9c0] sm:$0xf0]  ;;  %v9588_v35 = vor.u32 %v10961_v15, %v9587_v25 }
 0x45e   :  { %v10120_v53 = vor.u32 %v11094_v40, %v10119_v43  ;;  %v9812_v36 = vor.u32 %v11017_v28, %v9811_v31  ;;  %v9783_v1 = vld [vmem:[#allocation24 + $0x970] sm:$0xf]  ;;  %v11010_v7 = vld [vmem:[#allocation24 + $0x988] sm:$0xf0]  ;;  %v10947_v40 = vld [vmem:[#allocation24 + $0x790] sm:$0xf0] }
 0x45f   :  { %6601 = vmatpush.bf16.msrb.mxu3 %v9472_v57  ;;  %6614 = vmatpush.bf16.msra.mxu0 %v9696_v10  ;;  %v8888_v57 = vor.u32 %v10786_v52, %v8887_v51  ;;  %v8635_v10 = vld [vmem:[#allocation24 + $0x78] sm:$0xf]  ;;  %v10975_v52 = vld [vmem:[#allocation24 + $0x870] sm:$0xf0]  ;;  %v10147_v25 = vld [vmem:[#allocation24 + $0xc48] sm:$0xf] }
 0x460   :  { %6627 = vmatpush.bf16.msra.mxu1 %v9920_v46  ;;  %6640 = vmatpush.bf16.msra.mxu2 %v10144_v19  ;;  %v8859_v46 = vld [vmem:[#allocation24 + $0x238] sm:$0xf]  ;;  %v10779_v19 = vld [vmem:[#allocation24 + $0x250] sm:$0xf0]  ;;  %v11101_v15 = vld [vmem:[#allocation24 + $0xc60] sm:$0xf0] }
 0x461   :  { %v9643_v51 = vld [vmem:[#allocation24 + $0x858] sm:$0xf]  ;;  %v10811_v31 = vld [vmem:[#allocation24 + $0x354] sm:$0xf]  ;;  %v9001_v28 = vld [vmem:[#allocation24 + $0x36c] sm:$0xf0] }
 0x462   :  { %6602 = vmatmul.bf16.vlgmr.msrb.gmra.mxu3 %v12325_v13  ;;  %6615 = vmatmul.bf16.vlgmr.msra.gmra.mxu0 %v12327_v12 }
 0x463   :  { %6646 = vmatpush.bf16.msra.mxu3 %v8776_v9  ;;  %6659 = vmatpush.bf16.msrb.mxu0 %v9000_v8  ;;  %v9083_v9 = vld [vmem:[#allocation24 + $0x3f8] sm:$0xf]  ;;  %v10835_v8 = vld [vmem:[#allocation24 + $0x410] sm:$0xf0] }
 0x464   :  { %6672 = vmatpush.bf16.msrb.mxu1 %v9224_v16  ;;  %6685 = vmatpush.bf16.msrb.mxu2 %v9448_v4  ;;  %v8636_v16 = vor.u32 %v10723_v22, %v8635_v10  ;;  %v8860_v4 = vor.u32 %v10779_v19, %v8859_v46  ;;  %v9084_v18 = vor.u32 %v10835_v8, %v9083_v9  ;;  %v10315_v10 = vld [vmem:[#allocation24 + $0xd98] sm:$0xf]  ;;  %v11143_v22 = vld [vmem:[#allocation24 + $0xdb0] sm:$0xf0]  ;;  %v9615_v46 = vld [vmem:[#allocation24 + $0x820] sm:$0xf] }
 0x465   :  { %6628 = vmatmul.bf16.vlgmr.msra.gmra.mxu1 %v12331_v26  ;;  %6641 = vmatmul.bf16.vlgmr.msra.gmra.mxu2 %v12329_v47  ;;  %v10968_v19 = vld [vmem:[#allocation24 + $0x838] sm:$0xf0]  ;;  %v10316_v8 = vor.u32 %v11143_v22, %v10315_v10  ;;  %v9727_v10 = vld [vmem:[#allocation24 + $0x900] sm:$0xf] }
 0x466   :  { %v10996_v22 = vld [vmem:[#allocation24 + $0x918] sm:$0xf0] }
 0x467   :  { %6647 = vmatpush.bf16.msra.mxu3 %v8748_v29  ;;  %6660 = vmatpush.bf16.msrb.mxu0 %v8972_v55  ;;  %v9055_v29 = vld [vmem:[#allocation24 + $0x3c0] sm:$0xf]  ;;  %v10828_v55 = vld [vmem:[#allocation24 + $0x3d8] sm:$0xf0] }
 0x468   :  { %6673 = vmatpush.bf16.msrb.mxu1 %v9196_v49  ;;  %6686 = vmatpush.bf16.msrb.mxu2 %v9420_v63  ;;  %v8579_v49 = vld [vmem:[#allocation24 + $0x8] sm:$0xf]  ;;  %v8608_v63 = vor.u32 %v10716_v24, %v8607_v20  ;;  %v9056_v37 = vor.u32 %v10828_v55, %v9055_v29  ;;  %v10287_v20 = vld [vmem:[#allocation24 + $0xd60] sm:$0xf]  ;;  %v11136_v24 = vld [vmem:[#allocation24 + $0xd78] sm:$0xf0] }
 0x469   :  { %v8580_v38 = vor.u32 %v10709_v32, %v8579_v49  ;;  %v10288_v55 = vor.u32 %v11136_v24, %v10287_v20  ;;  %v10035_v49 = vld [vmem:[#allocation24 + $0xb68] sm:$0xf]  ;;  %v11129_v32 = vld [vmem:[#allocation24 + $0xd40] sm:$0xf0] }
 0x46b   :  { %6648 = vmatpush.bf16.msra.mxu3 %v8720_v44  ;;  %6661 = vmatpush.bf16.msrb.mxu0 %v8944_v11  ;;  %v9027_v44 = vld [vmem:[#allocation24 + $0x388] sm:$0xf]  ;;  %v10821_v11 = vld [vmem:[#allocation24 + $0x3a0] sm:$0xf0] }
 0x46c   :  { %6674 = vmatpush.bf16.msrb.mxu1 %v9168_v0  ;;  %6687 = vmatpush.bf16.msrb.mxu2 %v9392_v17  ;;  %v9671_v0 = vld [vmem:[#allocation24 + $0x890] sm:$0xf]  ;;  %v10982_v17 = vld [vmem:[#allocation24 + $0x8a8] sm:$0xf0]  ;;  %v9028_v62 = vor.u32 %v10821_v11, %v9027_v44 }
 0x46f   :  { %6649 = vmatpush.bf16.msra.mxu3 %v8692_v3  ;;  %6662 = vmatpush.bf16.msrb.mxu0 %v8916_v27  ;;  %v10343_v3 = vld [vmem:[#allocation24 + $0xdd0] sm:$0xf]  ;;  %v11150_v27 = vld [vmem:[#allocation24 + $0xde8] sm:$0xf0] }
 0x470   :  { %6675 = vmatpush.bf16.msrb.mxu1 %v9140_v5  ;;  %6688 = vmatpush.bf16.msrb.mxu2 %v9364_v33  ;;  %v9672_v5 = vor.u32 %v10982_v17, %v9671_v0  ;;  %v9896_v33 = vor.u32 %v11038_v42, %v9895_v14  ;;  %v10344_v50 = vor.u32 %v11150_v27, %v10343_v3  ;;  %v10007_v0 = vld [vmem:[#allocation24 + $0xb30] sm:$0xf]  ;;  %v11066_v17 = vld [vmem:[#allocation24 + $0xb48] sm:$0xf0] }
 0x471   :  { %v10231_v14 = vld [vmem:[#allocation24 + $0xcf0] sm:$0xf]  ;;  %v11122_v42 = vld [vmem:[#allocation24 + $0xd08] sm:$0xf0]  ;;  %v10008_v3 = vor.u32 %v11066_v17, %v10007_v0 }
 0x472   :  { %v10232_v27 = vor.u32 %v11122_v42, %v10231_v14  ;;  %v10804_v14 = vld [vmem:[#allocation24 + $0x31c] sm:$0xf]  ;;  %v8973_v42 = vld [vmem:[#allocation24 + $0x334] sm:$0xf0] }
 0x473   :  { %6650 = vmatpush.bf16.msra.mxu3 %v8664_v58  ;;  %6663 = vmatpush.bf16.msrb.mxu0 %v8888_v57  ;;  %v10091_v58 = vld [vmem:[#allocation24 + $0xbd8] sm:$0xf]  ;;  %v11087_v57 = vld [vmem:[#allocation24 + $0xbf0] sm:$0xf0] }
 0x474   :  { %6676 = vmatpush.bf16.msrb.mxu1 %v9112_v60  ;;  %6689 = vmatpush.bf16.msrb.mxu2 %v9336_v56  ;;  %v9644_v60 = vor.u32 %v10975_v52, %v9643_v51  ;;  %v9868_v56 = vor.u32 %v11031_v54, %v9867_v59  ;;  %v10092_v9 = vor.u32 %v11087_v57, %v10091_v58  ;;  %v10203_v51 = vld [vmem:[#allocation24 + $0xcb8] sm:$0xf]  ;;  %v11115_v52 = vld [vmem:[#allocation24 + $0xcd0] sm:$0xf0]  ;;  %v9503_v59 = vld [vmem:[#allocation24 + $0x740] sm:$0xf] }
 0x475   :  { %v10940_v54 = vld [vmem:[#allocation24 + $0x758] sm:$0xf0]  ;;  %v10204_v57 = vor.u32 %v11115_v52, %v10203_v51  ;;  %v10797_v51 = vld [vmem:[#allocation24 + $0x2e4] sm:$0xf]  ;;  %v8945_v52 = vld [vmem:[#allocation24 + $0x2fc] sm:$0xf0] }
 0x477   :  { %6651 = vmatpush.bf16.msra.mxu3 %v8636_v16  ;;  %6664 = vmatpush.bf16.msrb.mxu0 %v8860_v4  ;;  %v10063_v16 = vld [vmem:[#allocation24 + $0xba0] sm:$0xf]  ;;  %v11080_v4 = vld [vmem:[#allocation24 + $0xbb8] sm:$0xf0] }
 0x478   :  { %6677 = vmatpush.bf16.msrb.mxu1 %v9084_v18  ;;  %6690 = vmatpush.bf16.msrb.mxu2 %v9308_v48  ;;  %v9616_v18 = vor.u32 %v10968_v19, %v9615_v46  ;;  %v9840_v48 = vor.u32 %v11024_v21, %v9839_v23  ;;  %v10064_v29 = vor.u32 %v11080_v4, %v10063_v16  ;;  %v10175_v46 = vld [vmem:[#allocation24 + $0xc80] sm:$0xf]  ;;  %v11108_v19 = vld [vmem:[#allocation24 + $0xc98] sm:$0xf0]  ;;  %v10933_v21 = vld [vmem:[#allocation24 + $0x720] sm:$0xf0] }
 0x479   :  { %v9728_v23 = vor.u32 %v10996_v22, %v9727_v10  ;;  %v9699_v16 = vld [vmem:[#allocation24 + $0x8c8] sm:$0xf]  ;;  %v10989_v4 = vld [vmem:[#allocation24 + $0x8e0] sm:$0xf0]  ;;  %v10176_v24 = vor.u32 %v11108_v19, %v10175_v46  ;;  %v8948_v10 = vor.u32 %v10797_v51, %v8945_v52  ;;  %v10790_v46 = vld [vmem:[#allocation24 + $0x2ac] sm:$0xf] }
 0x47b   :  { %6652 = vmatpush.bf16.msra.mxu3 %v8608_v63  ;;  %6665 = vmatpush.bf16.msrb.mxu0 %v8832_v30  ;;  %v11073_v63 = vld [vmem:[#allocation24 + $0xb80] sm:$0xf0]  ;;  %v10259_v30 = vld [vmem:[#allocation24 + $0xd28] sm:$0xf] }
 0x47c   :  { %6678 = vmatpush.bf16.msrb.mxu1 %v9056_v37  ;;  %6691 = vmatpush.bf16.msrb.mxu2 %v9280_v2  ;;  %v9559_v37 = vld [vmem:[#allocation24 + $0x7b0] sm:$0xf]  ;;  %v10954_v2 = vld [vmem:[#allocation24 + $0x7c8] sm:$0xf0]  ;;  %v10036_v44 = vor.u32 %v11073_v63, %v10035_v49  ;;  %v10260_v11 = vor.u32 %v11129_v32, %v10259_v30  ;;  %v10867_v49 = vld [vmem:[#allocation24 + $0x514] sm:$0xf]  ;;  %v9700_v30 = vor.u32 %v10989_v4, %v9699_v16 }
 0x47d   :  { %v9560_v43 = vor.u32 %v10954_v2, %v9559_v37  ;;  %v9225_v32 = vld [vmem:[#allocation24 + $0x52c] sm:$0xf0]  ;;  %v10148_v2 = vor.u32 %v11101_v15, %v10147_v25  ;;  %v9141_v16 = vld [vmem:[#allocation24 + $0x484] sm:$0xf0]  ;;  %v10902_v4 = vld [vmem:[#allocation24 + $0x62c] sm:$0xf] }
 0x47e   :  { %v9228_v0 = vor.u32 %v10867_v49, %v9225_v32  ;;  %v10727_v25 = vld [vmem:[#allocation24 + $0xb4] sm:$0xf]  ;;  %v8665_v15 = vld [vmem:[#allocation24 + $0xcc] sm:$0xf0] }
 0x47f   :  { %6653 = vmatpush.bf16.msra.mxu3 %v8580_v38  ;;  %6666 = vmatpush.bf16.msrb.mxu0 %v8804_v6  ;;  %v9784_v38 = vor.u32 %v11010_v7, %v9783_v1  ;;  %v9531_v6 = vld [vmem:[#allocation24 + $0x778] sm:$0xf]  ;;  %v10748_v1 = vld [vmem:[#allocation24 + $0x15c] sm:$0xf]  ;;  %v8889_v49 = vld [vmem:[#allocation24 + $0x28c] sm:$0xf0] }
 0x480   :  { %6679 = vmatpush.bf16.msrb.mxu1 %v9028_v62  ;;  %6692 = vmatpush.bf16.msrb.mxu2 %v9252_v61  ;;  %v9755_v62 = vld [vmem:[#allocation24 + $0x938] sm:$0xf]  ;;  %v11003_v61 = vld [vmem:[#allocation24 + $0x950] sm:$0xf0]  ;;  %v9113_v32 = vld [vmem:[#allocation24 + $0x44c] sm:$0xf0] }
 0x481   :  { %v8749_v7 = vld [vmem:[#allocation24 + $0x174] sm:$0xf0] }
 0x482   :  { %6654 = vmatmul.bf16.vlgmr.msra.gmra.mxu3 %v12305_v34  ;;  %6667 = vmatmul.bf16.vlgmr.msrb.gmra.mxu0 %v12307_v41 }
 0x483   :  { %6698 = vmatpush.bf16.msrb.mxu3 %v9672_v5  ;;  %6711 = vmatpush.bf16.msra.mxu0 %v9896_v33  ;;  %v9979_v5 = vld [vmem:[#allocation24 + $0xaf8] sm:$0xf]  ;;  %v11059_v33 = vld [vmem:[#allocation24 + $0xb10] sm:$0xf0] }
 0x484   :  { %6724 = vmatpush.bf16.msra.mxu1 %v10120_v53  ;;  %6737 = vmatpush.bf16.msra.mxu2 %v10344_v50  ;;  %v9532_v53 = vor.u32 %v10947_v40, %v9531_v6  ;;  %v9756_v50 = vor.u32 %v11003_v61, %v9755_v62  ;;  %v9980_v58 = vor.u32 %v11059_v33, %v9979_v5  ;;  %v10916_v6 = vld [vmem:[#allocation24 + $0x69c] sm:$0xf]  ;;  %v9421_v40 = vld [vmem:[#allocation24 + $0x6b4] sm:$0xf0]  ;;  %v10741_v62 = vld [vmem:[#allocation24 + $0x124] sm:$0xf] }
 0x485   :  { %6680 = vmatmul.bf16.vlgmr.msrb.gmra.mxu1 %v12309_v45  ;;  %6693 = vmatmul.bf16.vlgmr.msrb.gmra.mxu2 %v12311_v39  ;;  %v8721_v61 = vld [vmem:[#allocation24 + $0x13c] sm:$0xf0]  ;;  %v9424_v33 = vor.u32 %v10916_v6, %v9421_v40  ;;  %v9085_v6 = vld [vmem:[#allocation24 + $0x414] sm:$0xf0]  ;;  %v10888_v40 = vld [vmem:[#allocation24 + $0x5bc] sm:$0xf] }
 0x487   :  { %6699 = vmatpush.bf16.msrb.mxu3 %v9644_v60  ;;  %6712 = vmatpush.bf16.msra.mxu0 %v9868_v56  ;;  %v9951_v60 = vld [vmem:[#allocation24 + $0xac0] sm:$0xf]  ;;  %v11052_v56 = vld [vmem:[#allocation24 + $0xad8] sm:$0xf0] }
 0x488   :  { %6725 = vmatpush.bf16.msra.mxu1 %v10092_v9  ;;  %6738 = vmatpush.bf16.msra.mxu2 %v10316_v8  ;;  %v9475_v9 = vld [vmem:[#allocation24 + $0x708] sm:$0xf]  ;;  %v9504_v8 = vor.u32 %v10940_v54, %v9503_v59  ;;  %v9952_v20 = vor.u32 %v11052_v56, %v9951_v60  ;;  %v10909_v59 = vld [vmem:[#allocation24 + $0x664] sm:$0xf]  ;;  %v9393_v54 = vld [vmem:[#allocation24 + $0x67c] sm:$0xf0] }
 0x489   :  { %v9476_v63 = vor.u32 %v10933_v21, %v9475_v9  ;;  %v10734_v60 = vld [vmem:[#allocation24 + $0xec] sm:$0xf]  ;;  %v8693_v56 = vld [vmem:[#allocation24 + $0x104] sm:$0xf0]  ;;  %v9396_v9 = vor.u32 %v10909_v59, %v9393_v54  ;;  %v12355_v21 = vld [vmem:[#allocation25] sm:$0xff] }
 0x48a   :  { %v8833_v59 = vld [vmem:[#allocation24 + $0x21c] sm:$0xf0]  ;;  %v10825_v54 = vld [vmem:[#allocation24 + $0x3c4] sm:$0xf] }
 0x48b   :  { %6700 = vmatpush.bf16.msrb.mxu3 %v9616_v18  ;;  %6713 = vmatpush.bf16.msra.mxu0 %v9840_v48  ;;  %v9923_v18 = vld [vmem:[#allocation24 + $0xa88] sm:$0xf]  ;;  %v11045_v48 = vld [vmem:[#allocation24 + $0xaa0] sm:$0xf0] }
 0x48c   :  { %6726 = vmatpush.bf16.msra.mxu1 %v10064_v29  ;;  %6739 = vmatpush.bf16.msra.mxu2 %v10288_v55  ;;  %v10755_v29 = vld [vmem:[#allocation24 + $0x194] sm:$0xf]  ;;  %v8777_v55 = vld [vmem:[#allocation24 + $0x1ac] sm:$0xf0]  ;;  %v9924_v37 = vor.u32 %v11045_v48, %v9923_v18  ;;  %v4120_v48 = vperm.slane %v12355_v21, 0 }
 0x48f   :  { %6701 = vmatpush.bf16.msrb.mxu3 %v9588_v35  ;;  %6714 = vmatpush.bf16.msra.mxu0 %v9812_v36  ;;  %v10923_v35 = vld [vmem:[#allocation24 + $0x6d4] sm:$0xf]  ;;  %v9449_v36 = vld [vmem:[#allocation24 + $0x6ec] sm:$0xf0] }
 0x490   :  { %6727 = vmatpush.bf16.msra.mxu1 %v10036_v44  ;;  %6740 = vmatpush.bf16.msra.mxu2 %v10260_v11  ;;  %v8780_v44 = vor.u32 %v10755_v29, %v8777_v55  ;;  %v9004_v11 = vor.u32 %v10811_v31, %v9001_v28  ;;  %v9452_v17 = vor.u32 %v10923_v35, %v9449_v36  ;;  %v10783_v28 = vld [vmem:[#allocation24 + $0x274] sm:$0xf]  ;;  %v9337_v36 = vld [vmem:[#allocation24 + $0x60c] sm:$0xf0] }
 0x491   :  { %v10895_v35 = vld [vmem:[#allocation24 + $0x5f4] sm:$0xf] }
 0x493   :  { %6702 = vmatpush.bf16.msrb.mxu3 %v9560_v43  ;;  %6715 = vmatpush.bf16.msra.mxu0 %v9784_v38  ;;  %v10860_v43 = vld [vmem:[#allocation24 + $0x4dc] sm:$0xf]  ;;  %v9197_v38 = vld [vmem:[#allocation24 + $0x4f4] sm:$0xf0] }
 0x494   :  { %6728 = vmatpush.bf16.msra.mxu1 %v10008_v3  ;;  %6741 = vmatpush.bf16.msra.mxu2 %v10232_v27  ;;  %v8752_v3 = vor.u32 %v10748_v1, %v8749_v7  ;;  %v8976_v27 = vor.u32 %v10804_v14, %v8973_v42  ;;  %v9200_v5 = vor.u32 %v10860_v43, %v9197_v38  ;;  %v10720_v7 = vld [vmem:[#allocation24 + $0x7c] sm:$0xf]  ;;  %v8861_v43 = vld [vmem:[#allocation24 + $0x254] sm:$0xf0] }
 0x495   :  { %v9340_v14 = vor.u32 %v10895_v35, %v9337_v36  ;;  %v10776_v42 = vld [vmem:[#allocation24 + $0x23c] sm:$0xf]  ;;  %v10121_v36 = vld [vmem:[#allocation24 + $0xc2c] sm:$0xf0] }
 0x496   :  { %v10832_v38 = vld [vmem:[#allocation24 + $0x3fc] sm:$0xf] }
 0x497   :  { %6703 = vmatpush.bf16.msrb.mxu3 %v9532_v53  ;;  %6716 = vmatpush.bf16.msra.mxu0 %v9756_v50  ;;  %v10853_v53 = vld [vmem:[#allocation24 + $0x4a4] sm:$0xf]  ;;  %v9169_v50 = vld [vmem:[#allocation24 + $0x4bc] sm:$0xf0]  ;;  %v9088_v51 = vor.u32 %v10832_v38, %v9085_v6 }
 0x498   :  { %6729 = vmatpush.bf16.msra.mxu1 %v9980_v58  ;;  %6742 = vmatpush.bf16.msra.mxu2 %v10204_v57  ;;  %v8724_v57 = vor.u32 %v10741_v62, %v8721_v61  ;;  %v9172_v19 = vor.u32 %v10853_v53, %v9169_v50  ;;  %v8864_v61 = vor.u32 %v10776_v42, %v8861_v43  ;;  %v10769_v50 = vld [vmem:[#allocation24 + $0x204] sm:$0xf]  ;;  %v10972_v42 = vld [vmem:[#allocation24 + $0x85c] sm:$0xf]  ;;  %v9645_v43 = vld [vmem:[#allocation24 + $0x874] sm:$0xf0] }
 0x49b   :  { %6704 = vmatpush.bf16.msrb.mxu3 %v9504_v8  ;;  %6717 = vmatpush.bf16.msra.mxu0 %v9728_v23  ;;  %v8917_v8 = vld [vmem:[#allocation24 + $0x2c4] sm:$0xf0]  ;;  %v10846_v23 = vld [vmem:[#allocation24 + $0x46c] sm:$0xf] }
 0x49c   :  { %6730 = vmatpush.bf16.msra.mxu1 %v9952_v20  ;;  %6743 = vmatpush.bf16.msra.mxu2 %v10176_v24  ;;  %v9365_v20 = vld [vmem:[#allocation24 + $0x644] sm:$0xf0]  ;;  %v8696_v24 = vor.u32 %v10734_v60, %v8693_v56  ;;  %v8920_v18 = vor.u32 %v10790_v46, %v8917_v8  ;;  %v9144_v29 = vor.u32 %v10846_v23, %v9141_v16  ;;  %v10881_v60 = vld [vmem:[#allocation24 + $0x584] sm:$0xf]  ;;  %v9281_v56 = vld [vmem:[#allocation24 + $0x59c] sm:$0xf0] }
 0x49d   :  { %v9368_v55 = vor.u32 %v10902_v4, %v9365_v20  ;;  %v8836_v8 = vor.u32 %v10769_v50, %v8833_v59  ;;  %v8581_v16 = vld [vmem:[#allocation24 + $0x24] sm:$0xf0]  ;;  %v10762_v4 = vld [vmem:[#allocation24 + $0x1cc] sm:$0xf]  ;;  %v10965_v59 = vld [vmem:[#allocation24 + $0x824] sm:$0xf] }
 0x49e   :  { %v6460_v58 = vpop.f32.mrf.mxu0  ;;  %v8805_v20 = vld [vmem:[#allocation24 + $0x1e4] sm:$0xf0] }
 0x49f   :  { %6705 = vmatpush.bf16.msrb.mxu3 %v9476_v63  ;;  %6718 = vmatpush.bf16.msra.mxu0 %v9700_v30  ;;  %v12353_v22 = vpop.f32.mrf.mxu1  ;;  %v10839_v63 = vld [vmem:[#allocation24 + $0x434] sm:$0xf]  ;;  %v8808_v35 = vor.u32 %v10762_v4, %v8805_v20 }
 0x4a0   :  { %6731 = vmatpush.bf16.msra.mxu1 %v9924_v37  ;;  %6744 = vmatpush.bf16.msra.mxu2 %v10148_v2 }
 0x4a2   :  { %6706 = vmatmul.bf16.vlgmr.msrb.gmra.mxu3 %v12325_v13  ;;  %6719 = vmatmul.bf16.vlgmr.msra.gmra.mxu0 %v12327_v12 }
 0x4a3   :  { %6750 = vmatpush.bf16.msra.mxu3 %v8780_v44  ;;  %6763 = vmatpush.bf16.msrb.mxu0 %v9004_v11  ;;  %v8668_v44 = vor.u32 %v10727_v25, %v8665_v15  ;;  %v8892_v11 = vor.u32 %v10783_v28, %v8889_v49  ;;  %v9029_v25 = vld [vmem:[#allocation24 + $0x3a4] sm:$0xf0]  ;;  %v10874_v15 = vld [vmem:[#allocation24 + $0x54c] sm:$0xf]  ;;  %v11035_v28 = vld [vmem:[#allocation24 + $0xa54] sm:$0xf] }
 0x4a4   :  { %6776 = vmatpush.bf16.msrb.mxu1 %v9228_v0  ;;  %6789 = vmatpush.bf16.msrb.mxu2 %v9452_v17  ;;  %v6447_v31 = vpop.f32.mrf.mxu3  ;;  %v8637_v0 = vld [vmem:[#allocation24 + $0x94] sm:$0xf0]  ;;  %v9116_v17 = vor.u32 %v10839_v63, %v9113_v32  ;;  %v11091_v49 = vld [vmem:[#allocation24 + $0xc14] sm:$0xf] }
 0x4a5   :  { %6732 = vmatmul.bf16.vlgmr.msra.gmra.mxu1 %v12331_v26  ;;  %6745 = vmatmul.bf16.vlgmr.msra.gmra.mxu2 %v12329_v47  ;;  %v12358_v30 = vpop.f32.mrf.mxu2  ;;  %v6448_v2 = vadd.f32 %v6447_v31, %v4120_v48  ;;  %v8640_v62 = vor.u32 %v10720_v7, %v8637_v0  ;;  %v10818_v48 = vld [vmem:[#allocation24 + $0x38c] sm:$0xf]  ;;  %v9673_v31 = vld [vmem:[#allocation24 + $0x8ac] sm:$0xf0]  ;;  %v10124_v38 = vor.u32 %v11091_v49, %v10121_v36  ;;  %v10951_v36 = vld [vmem:[#allocation24 + $0x7b4] sm:$0xf] }
 0x4a6   :  { %v6462_v37 = vpop.f32.mrf.mxu0 }
 0x4a7   :  { %6751 = vmatpush.bf16.msra.mxu3 %v8752_v3  ;;  %6764 = vmatpush.bf16.msrb.mxu0 %v8976_v27  ;;  %v6475_v1 = vpop.f32.mrf.mxu1  ;;  %v9309_v3 = vld [vmem:[#allocation24 + $0x5d4] sm:$0xf0]  ;;  %v6461_v27 = vadd.f32 %v6460_v58, %v6448_v2  ;;  %v10706_v58 = vld [vmem:[#allocation24 + $0xc] sm:$0xf]  ;;  %v11147_v37 = vld [vmem:[#allocation24 + $0xdd4] sm:$0xf] }
 0x4a8   :  { %6777 = vmatpush.bf16.msrb.mxu1 %v9200_v5  ;;  %6790 = vmatpush.bf16.msrb.mxu2 %v9424_v33  ;;  %v10713_v5 = vld [vmem:[#allocation24 + $0x44] sm:$0xf]  ;;  %v8609_v33 = vld [vmem:[#allocation24 + $0x5c] sm:$0xf0]  ;;  %v9312_v52 = vor.u32 %v10888_v40, %v9309_v3  ;;  %v8584_v32 = vor.u32 %v10706_v58, %v8581_v16  ;;  %v10345_v2 = vld [vmem:[#allocation24 + $0xdec] sm:$0xf0] }
 0x4a9   :  { %v11028_v40 = vld [vmem:[#allocation24 + $0xa1c] sm:$0xf]  ;;  %v9869_v3 = vld [vmem:[#allocation24 + $0xa34] sm:$0xf0] }
 0x4aa   :  { %v9872_v50 = vor.u32 %v11028_v40, %v9869_v3 }
 0x4ab   :  { %6752 = vmatpush.bf16.msra.mxu3 %v8724_v57  ;;  %6765 = vmatpush.bf16.msrb.mxu0 %v8948_v10  ;;  %v9057_v10 = vld [vmem:[#allocation24 + $0x3dc] sm:$0xf0] }
 0x4ac   :  { %6778 = vmatpush.bf16.msrb.mxu1 %v9172_v19  ;;  %6791 = vmatpush.bf16.msrb.mxu2 %v9396_v9  ;;  %v6449_v53 = vpop.f32.mrf.mxu3  ;;  %v6474_v19 = vadd.f32 %v12353_v22, %v6461_v27  ;;  %v8612_v9 = vor.u32 %v10713_v5, %v8609_v33  ;;  %v9897_v22 = vld [vmem:[#allocation24 + $0xa6c] sm:$0xf0]  ;;  %v11084_v27 = vld [vmem:[#allocation24 + $0xbdc] sm:$0xf]  ;;  %v10093_v5 = vld [vmem:[#allocation24 + $0xbf4] sm:$0xf0] }
 0x4ad   :  { %v6488_v57 = vpop.f32.mrf.mxu2  ;;  %v9900_v0 = vor.u32 %v11035_v28, %v9897_v22  ;;  %v11140_v33 = vld [vmem:[#allocation24 + $0xd9c] sm:$0xf]  ;;  %v9648_v53 = vor.u32 %v10972_v42, %v9645_v43  ;;  %v11126_v28 = vld [vmem:[#allocation24 + $0xd2c] sm:$0xf]  ;;  %v10261_v22 = vld [vmem:[#allocation24 + $0xd44] sm:$0xf0] }
 0x4ae   :  { %v6512_v46 = vpop.f32.mrf.mxu0  ;;  %v6487_v63 = vadd.f32 %v12358_v30, %v6474_v19  ;;  %v10348_v30 = vor.u32 %v11147_v37, %v10345_v2  ;;  %v10096_v57 = vor.u32 %v11084_v27, %v10093_v5  ;;  %v10065_v19 = vld [vmem:[#allocation24 + $0xbbc] sm:$0xf0]  ;;  %v9561_v37 = vld [vmem:[#allocation24 + $0x7cc] sm:$0xf0]  ;;  %v11056_v5 = vld [vmem:[#allocation24 + $0xafc] sm:$0xf] }
 0x4af   :  { %6753 = vmatpush.bf16.msra.mxu3 %v8696_v24  ;;  %6766 = vmatpush.bf16.msrb.mxu0 %v8920_v18  ;;  %v6525_v23 = vpop.f32.mrf.mxu1  ;;  %v9060_v24 = vor.u32 %v10825_v54, %v9057_v10  ;;  %v9284_v18 = vor.u32 %v10881_v60, %v9281_v56  ;;  %v9617_v54 = vld [vmem:[#allocation24 + $0x83c] sm:$0xf0]  ;;  %v11021_v60 = vld [vmem:[#allocation24 + $0x9e4] sm:$0xf]  ;;  %v10233_v42 = vld [vmem:[#allocation24 + $0xd0c] sm:$0xf0]  ;;  %v9564_v43 = vor.u32 %v10951_v36, %v9561_v37 }
 0x4b0   :  { %6779 = vmatpush.bf16.msrb.mxu1 %v9144_v29  ;;  %6792 = vmatpush.bf16.msrb.mxu2 %v9368_v55  ;;  %v9253_v29 = vld [vmem:[#allocation24 + $0x564] sm:$0xf0]  ;;  %v10979_v55 = vld [vmem:[#allocation24 + $0x894] sm:$0xf]  ;;  %v9841_v56 = vld [vmem:[#allocation24 + $0x9fc] sm:$0xf0]  ;;  %v9620_v16 = vor.u32 %v10965_v59, %v9617_v54 }
 0x4b1   :  { %v9676_v7 = vor.u32 %v10979_v55, %v9673_v31  ;;  %v9844_v4 = vor.u32 %v11021_v60, %v9841_v56  ;;  %v11070_v55 = vld [vmem:[#allocation24 + $0xb6c] sm:$0xf]  ;;  %v10037_v31 = vld [vmem:[#allocation24 + $0xb84] sm:$0xf0]  ;;  %v9505_v60 = vld [vmem:[#allocation24 + $0x75c] sm:$0xf0] }
 0x4b2   :  { %v10040_v2 = vor.u32 %v11070_v55, %v10037_v31  ;;  %v11042_v31 = vld [vmem:[#allocation24 + $0xa8c] sm:$0xf]  ;;  %v8783_v36 = vld [vmem:[#allocation24 + $0x198] sm:$0xf]  ;;  %v10759_v37 = vld [vmem:[#allocation24 + $0x1b0] sm:$0xf0] }
 0x4b3   :  { %6754 = vmatpush.bf16.msra.mxu3 %v8668_v44  ;;  %6767 = vmatpush.bf16.msrb.mxu0 %v8892_v11  ;;  %v9032_v44 = vor.u32 %v10818_v48, %v9029_v25  ;;  %v9256_v11 = vor.u32 %v10874_v15, %v9253_v29  ;;  %v11014_v15 = vld [vmem:[#allocation24 + $0x9ac] sm:$0xf]  ;;  %v9813_v29 = vld [vmem:[#allocation24 + $0x9c4] sm:$0xf0] }
 0x4b4   :  { %6780 = vmatpush.bf16.msrb.mxu1 %v9116_v17  ;;  %6793 = vmatpush.bf16.msrb.mxu2 %v9340_v14  ;;  %v6499_v1 = vpop.f32.mrf.mxu3 }
 0x4b5   :  { %v6500_v17 = vadd.f32 %v6499_v1, %v6487_v63  ;;  %v6538_v14 = vpop.f32.mrf.mxu2  ;;  %v9785_v1 = vld [vmem:[#allocation24 + $0x98c] sm:$0xf0] }
 0x4b6   :  { %v6514_v6 = vpop.f32.mrf.mxu0 }
 0x4b7   :  { %6755 = vmatpush.bf16.msra.mxu3 %v8640_v62  ;;  %6768 = vmatpush.bf16.msrb.mxu0 %v8864_v61  ;;  %v6513_v62 = vadd.f32 %v6512_v46, %v6500_v17  ;;  %v6527_v61 = vpop.f32.mrf.mxu1  ;;  %v11077_v46 = vld [vmem:[#allocation24 + $0xba4] sm:$0xf]  ;;  %v10009_v17 = vld [vmem:[#allocation24 + $0xb4c] sm:$0xf0]  ;;  %v9533_v6 = vld [vmem:[#allocation24 + $0x794] sm:$0xf0] }
 0x4b8   :  { %6781 = vmatpush.bf16.msrb.mxu1 %v9088_v51  ;;  %6794 = vmatpush.bf16.msrb.mxu2 %v9312_v52  ;;  %v10317_v51 = vld [vmem:[#allocation24 + $0xdb4] sm:$0xf0]  ;;  %v10068_v48 = vor.u32 %v11077_v46, %v10065_v19  ;;  %v9729_v19 = vld [vmem:[#allocation24 + $0x91c] sm:$0xf0] }
 0x4b9   :  { %v6526_v52 = vadd.f32 %v6525_v23, %v6513_v62  ;;  %v10320_v10 = vor.u32 %v11140_v33, %v10317_v51  ;;  %v11000_v62 = vld [vmem:[#allocation24 + $0x93c] sm:$0xf]  ;;  %v9757_v61 = vld [vmem:[#allocation24 + $0x954] sm:$0xf0] }
 0x4ba   :  { %v9981_v51 = vld [vmem:[#allocation24 + $0xb14] sm:$0xf0] }
 0x4bb   :  { %6756 = vmatpush.bf16.msra.mxu3 %v8612_v9  ;;  %6769 = vmatpush.bf16.msrb.mxu0 %v8836_v8  ;;  %v6539_v58 = vadd.f32 %v6538_v14, %v6526_v52  ;;  %v11133_v9 = vld [vmem:[#allocation24 + $0xd64] sm:$0xf]  ;;  %v10289_v8 = vld [vmem:[#allocation24 + $0xd7c] sm:$0xf0]  ;;  %v11119_v14 = vld [vmem:[#allocation24 + $0xcf4] sm:$0xf]  ;;  %v9984_v56 = vor.u32 %v11056_v5, %v9981_v51 }
 0x4bc   :  { %6782 = vmatpush.bf16.msrb.mxu1 %v9060_v24  ;;  %6795 = vmatpush.bf16.msrb.mxu2 %v9284_v18  ;;  %v6501_v23 = vpop.f32.mrf.mxu3  ;;  %v10958_v24 = vld [vmem:[#allocation24 + $0x7ec] sm:$0xf]  ;;  %v9589_v18 = vld [vmem:[#allocation24 + $0x804] sm:$0xf0]  ;;  %v10292_v25 = vor.u32 %v11133_v9, %v10289_v8  ;;  %v10236_v3 = vor.u32 %v11119_v14, %v10233_v42  ;;  %v11112_v52 = vld [vmem:[#allocation24 + $0xcbc] sm:$0xf] }
 0x4bd   :  { %11211 = vtanh.f32 %v6539_v58  ;;  %v6540_v20 = vpop.f32.mrf.mxu2  ;;  %v10993_v58 = vld [vmem:[#allocation24 + $0x904] sm:$0xf]  ;;  %v9953_v8 = vld [vmem:[#allocation24 + $0xadc] sm:$0xf0]  ;;  %v10927_v14 = vld [vmem:[#allocation24 + $0x6f0] sm:$0xf0] }
 0x4be   :  { %v11049_v9 = vld [vmem:[#allocation24 + $0xac4] sm:$0xf]  ;;  %v8979_v5 = vld [vmem:[#allocation24 + $0x320] sm:$0xf]  ;;  %v10808_v51 = vld [vmem:[#allocation24 + $0x338] sm:$0xf0] }
 0x4bf   :  { %6757 = vmatpush.bf16.msra.mxu3 %v8584_v32  ;;  %6770 = vmatpush.bf16.msrb.mxu0 %v8808_v35  ;;  %v12366_v49 = vpop.f32.mrf.mxu0  ;;  %v9592_v32 = vor.u32 %v10958_v24, %v9589_v18  ;;  %v9816_v35 = vor.u32 %v11014_v15, %v9813_v29  ;;  %v11105_v23 = vld [vmem:[#allocation24 + $0xc84] sm:$0xf]  ;;  %v9732_v24 = vor.u32 %v10993_v58, %v9729_v19  ;;  %v9477_v18 = vld [vmem:[#allocation24 + $0x724] sm:$0xf0] }
 0x4c0   :  { %6783 = vmatpush.bf16.msrb.mxu1 %v9032_v44  ;;  %6796 = vmatpush.bf16.msrb.mxu2 %v9256_v11  ;;  %v10264_v44 = vor.u32 %v11126_v28, %v10261_v22  ;;  %v11007_v11 = vld [vmem:[#allocation24 + $0x974] sm:$0xf]  ;;  %v9956_v15 = vor.u32 %v11049_v9, %v9953_v8  ;;  %v9925_v28 = vld [vmem:[#allocation24 + $0xaa4] sm:$0xf0]  ;;  %v11098_v22 = vld [vmem:[#allocation24 + $0xc4c] sm:$0xf] }
 0x4c1   :  { %v9928_v42 = vor.u32 %v11042_v31, %v9925_v28  ;;  %v8951_v58 = vld [vmem:[#allocation24 + $0x2e8] sm:$0xf]  ;;  %v10801_v19 = vld [vmem:[#allocation24 + $0x300] sm:$0xf0]  ;;  %v10850_v31 = vld [vmem:[#allocation24 + $0x488] sm:$0xf0] }
 0x4c2   :  { %6758 = vmatmul.bf16.vlgmr.msra.gmra.mxu3 %v12305_v34  ;;  %6771 = vmatmul.bf16.vlgmr.msrb.gmra.mxu0 %v12307_v41  ;;  %v12368_v63 = vpop.f32.mrf.mxu1  ;;  %v9175_v9 = vld [vmem:[#allocation24 + $0x4a8] sm:$0xf]  ;;  %v10857_v8 = vld [vmem:[#allocation24 + $0x4c0] sm:$0xf0]  ;;  %v9371_v28 = vld [vmem:[#allocation24 + $0x630] sm:$0xf] }
 0x4c3   :  { %6802 = vmatpush.bf16.msrb.mxu3 %v9676_v7  ;;  %6815 = vmatpush.bf16.msra.mxu0 %v9900_v0  ;;  %v11063_v7 = vld [vmem:[#allocation24 + $0xb34] sm:$0xf]  ;;  %v11212_v0 = vpop.eup %11211 }
 0x4c4   :  { %6828 = vmatpush.bf16.msra.mxu1 %v10124_v38  ;;  %6841 = vmatpush.bf16.msra.mxu2 %v10348_v30  ;;  %7173 = vst [vmem:[%s12487_s17] sm:$0xff] %v11212_v0  ;;  %v9788_v38 = vor.u32 %v11007_v11, %v9785_v1  ;;  %v10944_v30 = vld [vmem:[#allocation24 + $0x77c] sm:$0xf]  ;;  %v10012_v40 = vor.u32 %v11063_v7, %v10009_v17  ;;  %v9231_v11 = vld [vmem:[#allocation24 + $0x518] sm:$0xf]  ;;  %v10871_v0 = vld [vmem:[#allocation24 + $0x530] sm:$0xf0] }
 0x4c5   :  { %6784 = vmatmul.bf16.vlgmr.msrb.gmra.mxu1 %v12309_v45  ;;  %6797 = vmatmul.bf16.vlgmr.msrb.gmra.mxu2 %v12311_v39  ;;  %v12373_v27 = vpop.f32.mrf.mxu3  ;;  %v9536_v54 = vor.u32 %v10944_v30, %v9533_v6  ;;  %v9455_v17 = vld [vmem:[#allocation24 + $0x6d8] sm:$0xf]  ;;  %v8784_v30 = vor.u32 %v10759_v37, %v8783_v36 }
 0x4c7   :  { %6803 = vmatpush.bf16.msrb.mxu3 %v9648_v53  ;;  %6816 = vmatpush.bf16.msra.mxu0 %v9872_v50  ;;  %v10205_v53 = vld [vmem:[#allocation24 + $0xcd4] sm:$0xf0]  ;;  %v6566_v50 = vpop.f32.mrf.mxu0 }
 0x4c8   :  { %6829 = vmatpush.bf16.msra.mxu1 %v10096_v57  ;;  %6842 = vmatpush.bf16.msra.mxu2 %v10320_v10  ;;  %v12375_v33 = vpop.f32.mrf.mxu2  ;;  %v9760_v57 = vor.u32 %v11000_v62, %v9757_v61  ;;  %v10937_v10 = vld [vmem:[#allocation24 + $0x744] sm:$0xf]  ;;  %v10208_v46 = vor.u32 %v11112_v52, %v10205_v53  ;;  %v9232_v62 = vor.u32 %v10871_v0, %v9231_v11  ;;  %v9203_v52 = vld [vmem:[#allocation24 + $0x4e0] sm:$0xf]  ;;  %v10864_v53 = vld [vmem:[#allocation24 + $0x4f8] sm:$0xf0] }
 0x4c9   :  { %v9508_v20 = vor.u32 %v10937_v10, %v9505_v60  ;;  %v9456_v61 = vor.u32 %v10927_v14, %v9455_v17  ;;  %v9427_v50 = vld [vmem:[#allocation24 + $0x6a0] sm:$0xf]  ;;  %v8727_v10 = vld [vmem:[#allocation24 + $0x128] sm:$0xf]  ;;  %v10745_v60 = vld [vmem:[#allocation24 + $0x140] sm:$0xf0] }
 0x4ca   :  { %v6579_v59 = vpop.f32.mrf.mxu1  ;;  %v10787_v0 = vld [vmem:[#allocation24 + $0x290] sm:$0xf0]  ;;  %v9119_v17 = vld [vmem:[#allocation24 + $0x438] sm:$0xf] }
 0x4cb   :  { %6804 = vmatpush.bf16.msrb.mxu3 %v9620_v16  ;;  %6817 = vmatpush.bf16.msra.mxu0 %v9844_v4  ;;  %v10177_v16 = vld [vmem:[#allocation24 + $0xc9c] sm:$0xf0]  ;;  %v10930_v4 = vld [vmem:[#allocation24 + $0x70c] sm:$0xf]  ;;  %v10920_v59 = vld [vmem:[#allocation24 + $0x6b8] sm:$0xf0] }
 0x4cc   :  { %6830 = vmatpush.bf16.msra.mxu1 %v10068_v48  ;;  %6843 = vmatpush.bf16.msra.mxu2 %v10292_v25  ;;  %v10986_v48 = vld [vmem:[#allocation24 + $0x8cc] sm:$0xf]  ;;  %v9701_v25 = vld [vmem:[#allocation24 + $0x8e4] sm:$0xf0]  ;;  %v10180_v29 = vor.u32 %v11105_v23, %v10177_v16  ;;  %v9480_v1 = vor.u32 %v10930_v4, %v9477_v18  ;;  %v8728_v4 = vor.u32 %v10745_v60, %v8727_v10  ;;  %v10843_v14 = vld [vmem:[#allocation24 + $0x450] sm:$0xf0] }
 0x4cd   :  { %v6553_v55 = vpop.f32.mrf.mxu3  ;;  %v9704_v7 = vor.u32 %v10986_v48, %v9701_v25  ;;  %v9399_v23 = vld [vmem:[#allocation24 + $0x668] sm:$0xf]  ;;  %v10738_v18 = vld [vmem:[#allocation24 + $0x108] sm:$0xf0]  ;;  %v9176_v48 = vor.u32 %v10857_v8, %v9175_v9 }
 0x4ce   :  { %v9147_v55 = vld [vmem:[#allocation24 + $0x470] sm:$0xf]  ;;  %v8839_v8 = vld [vmem:[#allocation24 + $0x208] sm:$0xf] }
 0x4cf   :  { %6805 = vmatpush.bf16.msrb.mxu3 %v9592_v32  ;;  %6818 = vmatpush.bf16.msra.mxu0 %v9816_v35  ;;  %v10149_v35 = vld [vmem:[#allocation24 + $0xc64] sm:$0xf0]  ;;  %v9148_v11 = vor.u32 %v10850_v31, %v9147_v55  ;;  %v8811_v55 = vld [vmem:[#allocation24 + $0x1d0] sm:$0xf]  ;;  %v10766_v31 = vld [vmem:[#allocation24 + $0x1e8] sm:$0xf0] }
 0x4d0   :  { %6831 = vmatpush.bf16.msra.mxu1 %v10040_v2  ;;  %6844 = vmatpush.bf16.msra.mxu2 %v10264_v44  ;;  %v6592_v32 = vpop.f32.mrf.mxu2  ;;  %v9007_v2 = vld [vmem:[#allocation24 + $0x358] sm:$0xf]  ;;  %v10815_v44 = vld [vmem:[#allocation24 + $0x370] sm:$0xf0] }
 0x4d1   :  { %v9008_v6 = vor.u32 %v10815_v44, %v9007_v2  ;;  %v8671_v2 = vld [vmem:[#allocation24 + $0xb8] sm:$0xf]  ;;  %v10731_v44 = vld [vmem:[#allocation24 + $0xd0] sm:$0xf0] }
 0x4d3   :  { %6806 = vmatpush.bf16.msrb.mxu3 %v9564_v43  ;;  %6819 = vmatpush.bf16.msra.mxu0 %v9788_v38  ;;  %v10152_v43 = vor.u32 %v11098_v22, %v10149_v35  ;;  %v4121_v38 = vperm.slane %v12355_v21, 1  ;;  %v10906_v22 = vld [vmem:[#allocation24 + $0x648] sm:$0xf0] }
 0x4d4   :  { %6832 = vmatpush.bf16.msra.mxu1 %v10012_v40  ;;  %6845 = vmatpush.bf16.msra.mxu2 %v10236_v3  ;;  %v8755_v40 = vld [vmem:[#allocation24 + $0x160] sm:$0xf]  ;;  %v10752_v3 = vld [vmem:[#allocation24 + $0x178] sm:$0xf0] }
 0x4d5   :  { %v8756_v21 = vor.u32 %v10752_v3, %v8755_v40  ;;  %v10724_v40 = vld [vmem:[#allocation24 + $0x98] sm:$0xf0]  ;;  %v9120_v3 = vor.u32 %v10843_v14, %v9119_v17  ;;  %v8812_v14 = vor.u32 %v10766_v31, %v8811_v55  ;;  %v11074_v55 = vld [vmem:[#allocation24 + $0xb88] sm:$0xf0]  ;;  %v10267_v31 = vld [vmem:[#allocation24 + $0xd30] sm:$0xf] }
 0x4d7   :  { %6807 = vmatpush.bf16.msrb.mxu3 %v9536_v54  ;;  %6820 = vmatpush.bf16.msra.mxu0 %v9760_v57  ;;  %v6552_v54 = vadd.f32 %v12373_v27, %v4121_v38  ;;  %v8980_v57 = vor.u32 %v10808_v51, %v8979_v5  ;;  %v10913_v27 = vld [vmem:[#allocation24 + $0x680] sm:$0xf0]  ;;  %v8867_v5 = vld [vmem:[#allocation24 + $0x240] sm:$0xf]  ;;  %v10780_v51 = vld [vmem:[#allocation24 + $0x258] sm:$0xf0] }
 0x4d8   :  { %6833 = vmatpush.bf16.msra.mxu1 %v9984_v56  ;;  %6846 = vmatpush.bf16.msra.mxu2 %v10208_v46  ;;  %v9204_v56 = vor.u32 %v10864_v53, %v9203_v52  ;;  %v9428_v46 = vor.u32 %v10920_v59, %v9427_v50  ;;  %v9400_v25 = vor.u32 %v10913_v27, %v9399_v23  ;;  %v9091_v52 = vld [vmem:[#allocation24 + $0x400] sm:$0xf]  ;;  %v10836_v59 = vld [vmem:[#allocation24 + $0x418] sm:$0xf0]  ;;  %v10773_v23 = vld [vmem:[#allocation24 + $0x220] sm:$0xf0] }
 0x4d9   :  { %v6565_v16 = vadd.f32 %v12366_v49, %v6552_v54  ;;  %v9315_v54 = vld [vmem:[#allocation24 + $0x5c0] sm:$0xf]  ;;  %v9063_v27 = vld [vmem:[#allocation24 + $0x3c8] sm:$0xf] }
 0x4db   :  { %6808 = vmatpush.bf16.msrb.mxu3 %v9508_v20  ;;  %6821 = vmatpush.bf16.msra.mxu0 %v9732_v24  ;;  %v8952_v20 = vor.u32 %v10801_v19, %v8951_v58  ;;  %v8699_v24 = vld [vmem:[#allocation24 + $0xf0] sm:$0xf]  ;;  %v6578_v35 = vadd.f32 %v12368_v63, %v6565_v16  ;;  %v8672_v63 = vor.u32 %v10731_v44, %v8671_v2  ;;  %v10717_v58 = vld [vmem:[#allocation24 + $0x60] sm:$0xf0]  ;;  %v10878_v2 = vld [vmem:[#allocation24 + $0x568] sm:$0xf0] }
 0x4dc   :  { %6834 = vmatpush.bf16.msra.mxu1 %v9956_v15  ;;  %6847 = vmatpush.bf16.msra.mxu2 %v10180_v29  ;;  %v8923_v15 = vld [vmem:[#allocation24 + $0x2b0] sm:$0xf]  ;;  %v10794_v29 = vld [vmem:[#allocation24 + $0x2c8] sm:$0xf0]  ;;  %v8700_v36 = vor.u32 %v10738_v18, %v8699_v24  ;;  %v9092_v19 = vor.u32 %v10836_v59, %v9091_v52  ;;  %v10885_v24 = vld [vmem:[#allocation24 + $0x5a0] sm:$0xf0] }
 0x4dd   :  { %v8924_v37 = vor.u32 %v10794_v29, %v8923_v15  ;;  %v6591_v38 = vadd.f32 %v12375_v33, %v6578_v35  ;;  %v8587_v18 = vld [vmem:[#allocation24 + $0x10] sm:$0xf]  ;;  %v8840_v15 = vor.u32 %v10773_v23, %v8839_v8  ;;  %v10710_v29 = vld [vmem:[#allocation24 + $0x28] sm:$0xf0]  ;;  %v9679_v44 = vld [vmem:[#allocation24 + $0x898] sm:$0xf] }
 0x4de   :  { %v9035_v35 = vld [vmem:[#allocation24 + $0x390] sm:$0xf]  ;;  %v8588_v17 = vor.u32 %v10710_v29, %v8587_v18  ;;  %v11032_v52 = vld [vmem:[#allocation24 + $0xa38] sm:$0xf0]  ;;  %v11081_v8 = vld [vmem:[#allocation24 + $0xbc0] sm:$0xf0] }
 0x4df   :  { %6809 = vmatpush.bf16.msrb.mxu3 %v9480_v1  ;;  %6822 = vmatpush.bf16.msra.mxu0 %v9704_v7  ;;  %v6616_v32 = vpop.f32.mrf.mxu0  ;;  %v9372_v1 = vor.u32 %v10906_v22, %v9371_v28  ;;  %v8895_v7 = vld [vmem:[#allocation24 + $0x278] sm:$0xf]  ;;  %v11088_v59 = vld [vmem:[#allocation24 + $0xbf8] sm:$0xf0]  ;;  %v10295_v23 = vld [vmem:[#allocation24 + $0xd68] sm:$0xf] }
 0x4e0   :  { %6835 = vmatpush.bf16.msra.mxu1 %v9928_v42  ;;  %6848 = vmatpush.bf16.msra.mxu2 %v10152_v43  ;;  %v9343_v42 = vld [vmem:[#allocation24 + $0x5f8] sm:$0xf]  ;;  %v10899_v43 = vld [vmem:[#allocation24 + $0x610] sm:$0xf0]  ;;  %v10043_v29 = vld [vmem:[#allocation24 + $0xb70] sm:$0xf] }
 0x4e2   :  { %6810 = vmatmul.bf16.vlgmr.msrb.gmra.mxu3 %v12325_v13  ;;  %6823 = vmatmul.bf16.vlgmr.msra.gmra.mxu0 %v12327_v12  ;;  %v6629_v49 = vpop.f32.mrf.mxu1 }
 0x4e3   :  { %6854 = vmatpush.bf16.msra.mxu3 %v8784_v30  ;;  %6867 = vmatpush.bf16.msrb.mxu0 %v9008_v6  ;;  %v8896_v30 = vor.u32 %v10787_v0, %v8895_v7  ;;  %v8643_v6 = vld [vmem:[#allocation24 + $0x80] sm:$0xf]  ;;  %v11039_v7 = vld [vmem:[#allocation24 + $0xa70] sm:$0xf0]  ;;  %v10127_v0 = vld [vmem:[#allocation24 + $0xc18] sm:$0xf] }
 0x4e4   :  { %6880 = vmatpush.bf16.msrb.mxu1 %v9232_v62  ;;  %6893 = vmatpush.bf16.msrb.mxu2 %v9456_v61  ;;  %v9344_v62 = vor.u32 %v10899_v43, %v9343_v42  ;;  %v8644_v60 = vor.u32 %v10724_v40, %v8643_v6  ;;  %v11095_v42 = vld [vmem:[#allocation24 + $0xc30] sm:$0xf0]  ;;  %v10351_v43 = vld [vmem:[#allocation24 + $0xdd8] sm:$0xf] }
 0x4e5   :  { %6836 = vmatmul.bf16.vlgmr.msra.gmra.mxu1 %v12331_v26  ;;  %6849 = vmatmul.bf16.vlgmr.msra.gmra.mxu2 %v12329_v47  ;;  %v6603_v61 = vpop.f32.mrf.mxu3 }
 0x4e6   :  { %v6604_v53 = vadd.f32 %v6603_v61, %v6591_v38  ;;  %v11151_v38 = vld [vmem:[#allocation24 + $0xdf0] sm:$0xf0]  ;;  %v10128_v61 = vor.u32 %v11095_v42, %v10127_v0 }
 0x4e7   :  { %6855 = vmatpush.bf16.msra.mxu3 %v8756_v21  ;;  %6868 = vmatpush.bf16.msrb.mxu0 %v8980_v57  ;;  %v10892_v21 = vld [vmem:[#allocation24 + $0x5d8] sm:$0xf0]  ;;  %v6618_v33 = vpop.f32.mrf.mxu0  ;;  %v11067_v0 = vld [vmem:[#allocation24 + $0xb50] sm:$0xf0] }
 0x4e8   :  { %6881 = vmatpush.bf16.msrb.mxu1 %v9204_v56  ;;  %6894 = vmatpush.bf16.msrb.mxu2 %v9428_v46  ;;  %v6642_v50 = vpop.f32.mrf.mxu2  ;;  %v6617_v57 = vadd.f32 %v6616_v32, %v6604_v53  ;;  %v8868_v56 = vor.u32 %v10780_v51, %v8867_v5  ;;  %v8615_v46 = vld [vmem:[#allocation24 + $0x48] sm:$0xf]  ;;  %v9316_v9 = vor.u32 %v10892_v21, %v9315_v54  ;;  %v9875_v51 = vld [vmem:[#allocation24 + $0xa20] sm:$0xf]  ;;  %v11144_v21 = vld [vmem:[#allocation24 + $0xdb8] sm:$0xf0] }
 0x4e9   :  { %v10352_v5 = vor.u32 %v11151_v38, %v10351_v43  ;;  %v10099_v53 = vld [vmem:[#allocation24 + $0xbe0] sm:$0xf] }
 0x4ea   :  { %v6631_v10 = vpop.f32.mrf.mxu1  ;;  %v6630_v16 = vadd.f32 %v6629_v49, %v6617_v57  ;;  %v9259_v49 = vld [vmem:[#allocation24 + $0x550] sm:$0xf]  ;;  %v10323_v54 = vld [vmem:[#allocation24 + $0xda0] sm:$0xf]  ;;  %v9876_v57 = vor.u32 %v11032_v52, %v9875_v51  ;;  %v11060_v51 = vld [vmem:[#allocation24 + $0xb18] sm:$0xf0] }
 0x4eb   :  { %6856 = vmatpush.bf16.msra.mxu3 %v8728_v4  ;;  %6869 = vmatpush.bf16.msrb.mxu0 %v8952_v20  ;;  %v10829_v4 = vld [vmem:[#allocation24 + $0x3e0] sm:$0xf0]  ;;  %v9287_v20 = vld [vmem:[#allocation24 + $0x588] sm:$0xf]  ;;  %v9539_v38 = vld [vmem:[#allocation24 + $0x780] sm:$0xf] }
 0x4ec   :  { %6882 = vmatpush.bf16.msrb.mxu1 %v9176_v48  ;;  %6895 = vmatpush.bf16.msrb.mxu2 %v9400_v25  ;;  %v6643_v48 = vadd.f32 %v6642_v50, %v6630_v16  ;;  %v8616_v25 = vor.u32 %v10717_v58, %v8615_v46  ;;  %v9064_v28 = vor.u32 %v10829_v4, %v9063_v27  ;;  %v9623_v10 = vld [vmem:[#allocation24 + $0x828] sm:$0xf]  ;;  %v11137_v27 = vld [vmem:[#allocation24 + $0xd80] sm:$0xf0]  ;;  %v10211_v52 = vld [vmem:[#allocation24 + $0xcc0] sm:$0xf] }
 0x4ed   :  { %v9288_v22 = vor.u32 %v10885_v24, %v9287_v20  ;;  %v6605_v32 = vpop.f32.mrf.mxu3  ;;  %v10324_v46 = vor.u32 %v11144_v21, %v10323_v54  ;;  %v9847_v58 = vld [vmem:[#allocation24 + $0x9e8] sm:$0xf]  ;;  %v9595_v20 = vld [vmem:[#allocation24 + $0x7f0] sm:$0xf]  ;;  %v10962_v24 = vld [vmem:[#allocation24 + $0x808] sm:$0xf0] }
 0x4ee   :  { %11213 = vtanh.f32 %v6643_v48  ;;  %v10296_v48 = vor.u32 %v11137_v27, %v10295_v23  ;;  %v9483_v23 = vld [vmem:[#allocation24 + $0x710] sm:$0xf] }
 0x4ef   :  { %6857 = vmatpush.bf16.msra.mxu3 %v8700_v36  ;;  %6870 = vmatpush.bf16.msrb.mxu0 %v8924_v37  ;;  %v10822_v36 = vld [vmem:[#allocation24 + $0x3a8] sm:$0xf0] }
 0x4f0   :  { %6883 = vmatpush.bf16.msrb.mxu1 %v9148_v11  ;;  %6896 = vmatpush.bf16.msrb.mxu2 %v9372_v1  ;;  %v6644_v37 = vpop.f32.mrf.mxu2  ;;  %v10983_v11 = vld [vmem:[#allocation24 + $0x8b0] sm:$0xf0]  ;;  %v9903_v1 = vld [vmem:[#allocation24 + $0xa58] sm:$0xf] }
 0x4f1   :  { %v9680_v6 = vor.u32 %v10983_v11, %v9679_v44  ;;  %v9904_v40 = vor.u32 %v11039_v7, %v9903_v1  ;;  %v10955_v37 = vld [vmem:[#allocation24 + $0x7d0] sm:$0xf0]  ;;  %v9791_v11 = vld [vmem:[#allocation24 + $0x978] sm:$0xf] }
 0x4f2   :  { %v11011_v1 = vld [vmem:[#allocation24 + $0x990] sm:$0xf0]  ;;  %v10015_v7 = vld [vmem:[#allocation24 + $0xb38] sm:$0xf] }
 0x4f3   :  { %6858 = vmatpush.bf16.msra.mxu3 %v8672_v63  ;;  %6871 = vmatpush.bf16.msrb.mxu0 %v8896_v30  ;;  %v9036_v63 = vor.u32 %v10822_v36, %v9035_v35  ;;  %v9260_v30 = vor.u32 %v10878_v2, %v9259_v49  ;;  %v9596_v35 = vor.u32 %v10962_v24, %v9595_v20  ;;  %v9567_v49 = vld [vmem:[#allocation24 + $0x7b8] sm:$0xf]  ;;  %v9707_v20 = vld [vmem:[#allocation24 + $0x8d0] sm:$0xf]  ;;  %v10990_v24 = vld [vmem:[#allocation24 + $0x8e8] sm:$0xf0] }
 0x4f4   :  { %6884 = vmatpush.bf16.msrb.mxu1 %v9120_v3  ;;  %6897 = vmatpush.bf16.msrb.mxu2 %v9344_v62  ;;  %v9651_v3 = vld [vmem:[#allocation24 + $0x860] sm:$0xf]  ;;  %v10976_v62 = vld [vmem:[#allocation24 + $0x878] sm:$0xf0]  ;;  %v11214_v50 = vpop.eup %11213  ;;  %v10044_v2 = vor.u32 %v11074_v55, %v10043_v29  ;;  %v9568_v42 = vor.u32 %v10955_v37, %v9567_v49  ;;  %v9792_v43 = vor.u32 %v11011_v1, %v9791_v11  ;;  %v11046_v29 = vld [vmem:[#allocation24 + $0xaa8] sm:$0xf0] }
 0x4f5   :  { %7174 = vst [vmem:[%s12487_s17 + $0x8] sm:$0xff] %v11214_v50  ;;  %v9652_v33 = vor.u32 %v10976_v62, %v9651_v3  ;;  %v9763_v3 = vld [vmem:[#allocation24 + $0x940] sm:$0xf]  ;;  %v11004_v62 = vld [vmem:[#allocation24 + $0x958] sm:$0xf0]  ;;  %v9708_v11 = vor.u32 %v10990_v24, %v9707_v20 }
 0x4f6   :  { %v9764_v21 = vor.u32 %v11004_v62, %v9763_v3  ;;  %v10155_v55 = vld [vmem:[#allocation24 + $0xc50] sm:$0xf]  ;;  %v10812_v49 = vld [vmem:[#allocation24 + $0x35c] sm:$0xf]  ;;  %v9009_v37 = vld [vmem:[#allocation24 + $0x374] sm:$0xf0] }
 0x4f7   :  { %6859 = vmatpush.bf16.msra.mxu3 %v8644_v60  ;;  %6872 = vmatpush.bf16.msrb.mxu0 %v8868_v56  ;;  %v10969_v60 = vld [vmem:[#allocation24 + $0x840] sm:$0xf0]  ;;  %v10100_v56 = vor.u32 %v11088_v59, %v10099_v53  ;;  %v11116_v53 = vld [vmem:[#allocation24 + $0xcd8] sm:$0xf0]  ;;  %v9233_v1 = vld [vmem:[#allocation24 + $0x534] sm:$0xf0] }
 0x4f8   :  { %6885 = vmatpush.bf16.msrb.mxu1 %v9092_v19  ;;  %6898 = vmatpush.bf16.msrb.mxu2 %v9316_v9  ;;  %v11025_v19 = vld [vmem:[#allocation24 + $0xa00] sm:$0xf0]  ;;  %v10071_v9 = vld [vmem:[#allocation24 + $0xba8] sm:$0xf]  ;;  %v9624_v16 = vor.u32 %v10969_v60, %v9623_v10  ;;  %v10212_v60 = vor.u32 %v11116_v53, %v10211_v52  ;;  %v9205_v53 = vld [vmem:[#allocation24 + $0x4fc] sm:$0xf0] }
 0x4f9   :  { %v9848_v4 = vor.u32 %v11025_v19, %v9847_v58  ;;  %v10072_v18 = vor.u32 %v11081_v8, %v10071_v9  ;;  %v9959_v58 = vld [vmem:[#allocation24 + $0xac8] sm:$0xf]  ;;  %v11053_v19 = vld [vmem:[#allocation24 + $0xae0] sm:$0xf0]  ;;  %v8701_v20 = vld [vmem:[#allocation24 + $0x10c] sm:$0xf0] }
 0x4fa   :  { %v10183_v9 = vld [vmem:[#allocation24 + $0xc88] sm:$0xf]  ;;  %v11109_v8 = vld [vmem:[#allocation24 + $0xca0] sm:$0xf0] }
 0x4fb   :  { %6860 = vmatpush.bf16.msra.mxu3 %v8616_v25  ;;  %6873 = vmatpush.bf16.msrb.mxu0 %v8840_v15  ;;  %v9819_v25 = vld [vmem:[#allocation24 + $0x9b0] sm:$0xf]  ;;  %v11018_v15 = vld [vmem:[#allocation24 + $0x9c8] sm:$0xf0]  ;;  %v10861_v52 = vld [vmem:[#allocation24 + $0x4e4] sm:$0xf] }
 0x4fc   :  { %6886 = vmatpush.bf16.msrb.mxu1 %v9064_v28  ;;  %6899 = vmatpush.bf16.msrb.mxu2 %v9288_v22  ;;  %v11130_v28 = vld [vmem:[#allocation24 + $0xd48] sm:$0xf0]  ;;  %v9820_v36 = vor.u32 %v11018_v15, %v9819_v25  ;;  %v9931_v15 = vld [vmem:[#allocation24 + $0xa90] sm:$0xf] }
 0x4fd   :  { %v10268_v44 = vor.u32 %v11130_v28, %v10267_v31  ;;  %v11102_v28 = vld [vmem:[#allocation24 + $0xc68] sm:$0xf0] }
 0x4ff   :  { %6861 = vmatpush.bf16.msra.mxu3 %v8588_v17  ;;  %6874 = vmatpush.bf16.msrb.mxu0 %v8812_v14  ;;  %v12393_v22 = vpop.f32.mrf.mxu0  ;;  %v10239_v17 = vld [vmem:[#allocation24 + $0xcf8] sm:$0xf]  ;;  %v11123_v14 = vld [vmem:[#allocation24 + $0xd10] sm:$0xf0] }
 0x500   :  { %6887 = vmatpush.bf16.msrb.mxu1 %v9036_v63  ;;  %6900 = vmatpush.bf16.msrb.mxu2 %v9260_v30  ;;  %v10948_v63 = vld [vmem:[#allocation24 + $0x798] sm:$0xf0]  ;;  %v10016_v30 = vor.u32 %v11067_v0, %v10015_v7  ;;  %v9457_v0 = vld [vmem:[#allocation24 + $0x6f4] sm:$0xf0] }
 0x501   :  { %v9540_v54 = vor.u32 %v10948_v63, %v9539_v38  ;;  %v10924_v7 = vld [vmem:[#allocation24 + $0x6dc] sm:$0xf]  ;;  %v9012_v63 = vor.u32 %v10812_v49, %v9009_v37 }
 0x502   :  { %6862 = vmatmul.bf16.vlgmr.msra.gmra.mxu3 %v12305_v34  ;;  %6875 = vmatmul.bf16.vlgmr.msrb.gmra.mxu0 %v12307_v41  ;;  %v12395_v32 = vpop.f32.mrf.mxu1  ;;  %v9460_v62 = vor.u32 %v10924_v7, %v9457_v0  ;;  %v10728_v37 = vld [vmem:[#allocation24 + $0xbc] sm:$0xf]  ;;  %v8897_v7 = vld [vmem:[#allocation24 + $0x294] sm:$0xf0] }
 0x503   :  { %6906 = vmatpush.bf16.msrb.mxu3 %v9680_v6  ;;  %6919 = vmatpush.bf16.msra.mxu0 %v9904_v40  ;;  %v10240_v6 = vor.u32 %v11123_v14, %v10239_v17  ;;  %v9932_v17 = vor.u32 %v11046_v29, %v9931_v15  ;;  %v10156_v14 = vor.u32 %v11102_v28, %v10155_v55  ;;  %v10847_v15 = vld [vmem:[#allocation24 + $0x474] sm:$0xf]  ;;  %v9149_v29 = vld [vmem:[#allocation24 + $0x48c] sm:$0xf0]  ;;  %v10840_v0 = vld [vmem:[#allocation24 + $0x43c] sm:$0xf] }
 0x504   :  { %6932 = vmatpush.bf16.msra.mxu1 %v10128_v61  ;;  %6945 = vmatpush.bf16.msra.mxu2 %v10352_v5  ;;  %v9987_v61 = vld [vmem:[#allocation24 + $0xb00] sm:$0xf]  ;;  %v10903_v55 = vld [vmem:[#allocation24 + $0x634] sm:$0xf] }
 0x505   :  { %6888 = vmatmul.bf16.vlgmr.msrb.gmra.mxu1 %v12309_v45  ;;  %6901 = vmatmul.bf16.vlgmr.msrb.gmra.mxu2 %v12311_v39  ;;  %v12397_v40 = vpop.f32.mrf.mxu3  ;;  %v9988_v10 = vor.u32 %v11060_v51, %v9987_v61  ;;  %v10805_v61 = vld [vmem:[#allocation24 + $0x324] sm:$0xf]  ;;  %v8981_v51 = vld [vmem:[#allocation24 + $0x33c] sm:$0xf0] }
 0x507   :  { %6907 = vmatpush.bf16.msrb.mxu3 %v9652_v33  ;;  %6920 = vmatpush.bf16.msra.mxu0 %v9876_v57  ;;  %v6670_v50 = vpop.f32.mrf.mxu0  ;;  %v9511_v33 = vld [vmem:[#allocation24 + $0x748] sm:$0xf]  ;;  %v10941_v57 = vld [vmem:[#allocation24 + $0x760] sm:$0xf0] }
 0x508   :  { %6933 = vmatpush.bf16.msra.mxu1 %v10100_v56  ;;  %6946 = vmatpush.bf16.msra.mxu2 %v10324_v46  ;;  %v12399_v5 = vpop.f32.mrf.mxu2  ;;  %v9735_v56 = vld [vmem:[#allocation24 + $0x908] sm:$0xf]  ;;  %v10997_v46 = vld [vmem:[#allocation24 + $0x920] sm:$0xf0]  ;;  %v9512_v27 = vor.u32 %v10941_v57, %v9511_v33  ;;  %v8984_v33 = vor.u32 %v10805_v61, %v8981_v51  ;;  %v10742_v57 = vld [vmem:[#allocation24 + $0x12c] sm:$0xf] }
 0x509   :  { %v10917_v50 = vld [vmem:[#allocation24 + $0x6a4] sm:$0xf] }
 0x50a   :  { %v6683_v59 = vpop.f32.mrf.mxu1  ;;  %v10777_v51 = vld [vmem:[#allocation24 + $0x244] sm:$0xf] }
 0x50b   :  { %6908 = vmatpush.bf16.msrb.mxu3 %v9624_v16  ;;  %6921 = vmatpush.bf16.msra.mxu0 %v9848_v4  ;;  %v9736_v16 = vor.u32 %v10997_v46, %v9735_v56  ;;  %v10934_v4 = vld [vmem:[#allocation24 + $0x728] sm:$0xf0]  ;;  %v9429_v59 = vld [vmem:[#allocation24 + $0x6bc] sm:$0xf0] }
 0x50c   :  { %6934 = vmatpush.bf16.msra.mxu1 %v10072_v18  ;;  %6947 = vmatpush.bf16.msra.mxu2 %v10296_v48  ;;  %v9960_v18 = vor.u32 %v11053_v19, %v9959_v58  ;;  %v10184_v48 = vor.u32 %v11109_v8, %v10183_v9  ;;  %v9432_v56 = vor.u32 %v10917_v50, %v9429_v59  ;;  %v10798_v46 = vld [vmem:[#allocation24 + $0x2ec] sm:$0xf]  ;;  %v8953_v58 = vld [vmem:[#allocation24 + $0x304] sm:$0xf0] }
 0x50d   :  { %v6657_v25 = vpop.f32.mrf.mxu3  ;;  %v10854_v19 = vld [vmem:[#allocation24 + $0x4ac] sm:$0xf]  ;;  %v9177_v9 = vld [vmem:[#allocation24 + $0x4c4] sm:$0xf0] }
 0x50e   :  { %v10910_v8 = vld [vmem:[#allocation24 + $0x66c] sm:$0xf]  ;;  %v9180_v24 = vor.u32 %v10854_v19, %v9177_v9  ;;  %v8925_v25 = vld [vmem:[#allocation24 + $0x2cc] sm:$0xf0] }
 0x50f   :  { %6909 = vmatpush.bf16.msrb.mxu3 %v9596_v35  ;;  %6922 = vmatpush.bf16.msra.mxu0 %v9820_v36  ;;  %v10756_v35 = vld [vmem:[#allocation24 + $0x19c] sm:$0xf]  ;;  %v8785_v36 = vld [vmem:[#allocation24 + $0x1b4] sm:$0xf0] }
 0x510   :  { %6935 = vmatpush.bf16.msra.mxu1 %v10044_v2  ;;  %6948 = vmatpush.bf16.msra.mxu2 %v10268_v44  ;;  %v6696_v31 = vpop.f32.mrf.mxu2  ;;  %v10868_v2 = vld [vmem:[#allocation24 + $0x51c] sm:$0xf]  ;;  %v9484_v44 = vor.u32 %v10934_v4, %v9483_v23  ;;  %v8788_v38 = vor.u32 %v10756_v35, %v8785_v36  ;;  %v10735_v4 = vld [vmem:[#allocation24 + $0xf4] sm:$0xf] }
 0x511   :  { %v9236_v3 = vor.u32 %v10868_v2, %v9233_v1  ;;  %v9373_v31 = vld [vmem:[#allocation24 + $0x64c] sm:$0xf0]  ;;  %v8704_v36 = vor.u32 %v10735_v4, %v8701_v20  ;;  %v8673_v2 = vld [vmem:[#allocation24 + $0xd4] sm:$0xf0]  ;;  %v10784_v1 = vld [vmem:[#allocation24 + $0x27c] sm:$0xf] }
 0x512   :  { %v10882_v4 = vld [vmem:[#allocation24 + $0x58c] sm:$0xf]  ;;  %v9289_v20 = vld [vmem:[#allocation24 + $0x5a4] sm:$0xf0] }
 0x513   :  { %6910 = vmatpush.bf16.msrb.mxu3 %v9568_v42  ;;  %6923 = vmatpush.bf16.msra.mxu0 %v9792_v43  ;;  %v12401_v42 = vld [vmem:[#allocation25] sm:$0xff] }
 0x514   :  { %6936 = vmatpush.bf16.msra.mxu1 %v10016_v30  ;;  %6949 = vmatpush.bf16.msra.mxu2 %v10240_v6  ;;  %v4122_v43 = vperm.slane %v12401_v42, 2  ;;  %v10749_v30 = vld [vmem:[#allocation24 + $0x164] sm:$0xf]  ;;  %v8757_v6 = vld [vmem:[#allocation24 + $0x17c] sm:$0xf0] }
 0x517   :  { %6911 = vmatpush.bf16.msrb.mxu3 %v9540_v54  ;;  %6924 = vmatpush.bf16.msra.mxu0 %v9764_v21  ;;  %v6656_v54 = vadd.f32 %v12397_v40, %v4122_v43  ;;  %v8760_v21 = vor.u32 %v10749_v30, %v8757_v6  ;;  %v9401_v40 = vld [vmem:[#allocation24 + $0x684] sm:$0xf0]  ;;  %v9345_v43 = vld [vmem:[#allocation24 + $0x614] sm:$0xf0]  ;;  %v10721_v30 = vld [vmem:[#allocation24 + $0x84] sm:$0xf] }
 0x518   :  { %6937 = vmatpush.bf16.msra.mxu1 %v9988_v10  ;;  %6950 = vmatpush.bf16.msra.mxu2 %v10212_v60  ;;  %v8729_v10 = vld [vmem:[#allocation24 + $0x144] sm:$0xf0]  ;;  %v9208_v60 = vor.u32 %v10861_v52, %v9205_v53  ;;  %v8645_v6 = vld [vmem:[#allocation24 + $0x9c] sm:$0xf0]  ;;  %v10833_v53 = vld [vmem:[#allocation24 + $0x404] sm:$0xf] }
 0x519   :  { %v6669_v23 = vadd.f32 %v12393_v22, %v6656_v54  ;;  %v8869_v52 = vld [vmem:[#allocation24 + $0x25c] sm:$0xf0] }
 0x51a   :  { %v9093_v54 = vld [vmem:[#allocation24 + $0x41c] sm:$0xf0] }
 0x51b   :  { %6912 = vmatpush.bf16.msrb.mxu3 %v9512_v27  ;;  %6925 = vmatpush.bf16.msra.mxu0 %v9736_v16  ;;  %v8732_v27 = vor.u32 %v10742_v57, %v8729_v10  ;;  %v8956_v16 = vor.u32 %v10798_v46, %v8953_v58  ;;  %v6682_v35 = vadd.f32 %v12395_v32, %v6669_v23  ;;  %v10714_v46 = vld [vmem:[#allocation24 + $0x4c] sm:$0xf]  ;;  %v8617_v58 = vld [vmem:[#allocation24 + $0x64] sm:$0xf0] }
 0x51c   :  { %6938 = vmatpush.bf16.msra.mxu1 %v9960_v18  ;;  %6951 = vmatpush.bf16.msra.mxu2 %v10184_v48  ;;  %v9404_v18 = vor.u32 %v10910_v8, %v9401_v40  ;;  %v10791_v48 = vld [vmem:[#allocation24 + $0x2b4] sm:$0xf]  ;;  %v8676_v32 = vor.u32 %v10728_v37, %v8673_v2  ;;  %v9096_v19 = vor.u32 %v10833_v53, %v9093_v54  ;;  %v10770_v8 = vld [vmem:[#allocation24 + $0x20c] sm:$0xf]  ;;  %v8841_v40 = vld [vmem:[#allocation24 + $0x224] sm:$0xf0] }
 0x51d   :  { %v8928_v49 = vor.u32 %v10791_v48, %v8925_v25  ;;  %v10826_v23 = vld [vmem:[#allocation24 + $0x3cc] sm:$0xf]  ;;  %v8620_v48 = vor.u32 %v10714_v46, %v8617_v58  ;;  %v8844_v25 = vor.u32 %v10770_v8, %v8841_v40  ;;  %v9261_v2 = vld [vmem:[#allocation24 + $0x56c] sm:$0xf0]  ;;  %v11029_v53 = vld [vmem:[#allocation24 + $0xa24] sm:$0xf] }
 0x51e   :  { %v11078_v8 = vld [vmem:[#allocation24 + $0xbac] sm:$0xf]  ;;  %v10073_v40 = vld [vmem:[#allocation24 + $0xbc4] sm:$0xf0] }
 0x51f   :  { %6913 = vmatpush.bf16.msrb.mxu3 %v9484_v44  ;;  %6926 = vmatpush.bf16.msra.mxu0 %v9708_v11  ;;  %v6720_v28 = vpop.f32.mrf.mxu0  ;;  %v9152_v44 = vor.u32 %v10847_v15, %v9149_v29  ;;  %v9376_v11 = vor.u32 %v10903_v55, %v9373_v31  ;;  %v8589_v15 = vld [vmem:[#allocation24 + $0x2c] sm:$0xf0]  ;;  %v10763_v29 = vld [vmem:[#allocation24 + $0x1d4] sm:$0xf] }
 0x520   :  { %6939 = vmatpush.bf16.msra.mxu1 %v9932_v17  ;;  %6952 = vmatpush.bf16.msra.mxu2 %v10156_v14  ;;  %v9121_v17 = vld [vmem:[#allocation24 + $0x454] sm:$0xf0]  ;;  %v10896_v14 = vld [vmem:[#allocation24 + $0x5fc] sm:$0xf]  ;;  %v8813_v55 = vld [vmem:[#allocation24 + $0x1ec] sm:$0xf0] }
 0x522   :  { %6914 = vmatmul.bf16.vlgmr.msrb.gmra.mxu3 %v12325_v13  ;;  %6927 = vmatmul.bf16.vlgmr.msra.gmra.mxu0 %v12327_v12  ;;  %v6733_v22 = vpop.f32.mrf.mxu1 }
 0x523   :  { %6958 = vmatpush.bf16.msra.mxu3 %v8788_v38  ;;  %6971 = vmatpush.bf16.msrb.mxu0 %v9012_v63  ;;  %v6695_v38 = vadd.f32 %v12399_v5, %v6682_v35  ;;  %v8900_v63 = vor.u32 %v10784_v1, %v8897_v7  ;;  %v11036_v1 = vld [vmem:[#allocation24 + $0xa5c] sm:$0xf]  ;;  %v9905_v7 = vld [vmem:[#allocation24 + $0xa74] sm:$0xf0] }
 0x524   :  { %6984 = vmatpush.bf16.msrb.mxu1 %v9236_v3  ;;  %6997 = vmatpush.bf16.msrb.mxu2 %v9460_v62  ;;  %v9124_v3 = vor.u32 %v10840_v0, %v9121_v17  ;;  %v9348_v62 = vor.u32 %v10896_v14, %v9345_v43  ;;  %v11092_v0 = vld [vmem:[#allocation24 + $0xc1c] sm:$0xf]  ;;  %v8816_v14 = vor.u32 %v10763_v29, %v8813_v55  ;;  %v10129_v43 = vld [vmem:[#allocation24 + $0xc34] sm:$0xf0]  ;;  %v11071_v29 = vld [vmem:[#allocation24 + $0xb74] sm:$0xf] }
 0x525   :  { %6940 = vmatmul.bf16.vlgmr.msra.gmra.mxu1 %v12331_v26  ;;  %6953 = vmatmul.bf16.vlgmr.msra.gmra.mxu2 %v12329_v47  ;;  %v6707_v61 = vpop.f32.mrf.mxu3  ;;  %v10045_v55 = vld [vmem:[#allocation24 + $0xb8c] sm:$0xf0] }
 0x526   :  { %v6708_v50 = vadd.f32 %v6707_v61, %v6695_v38  ;;  %v11148_v38 = vld [vmem:[#allocation24 + $0xddc] sm:$0xf]  ;;  %v9653_v61 = vld [vmem:[#allocation24 + $0x87c] sm:$0xf0] }
 0x527   :  { %6959 = vmatpush.bf16.msra.mxu3 %v8760_v21  ;;  %6972 = vmatpush.bf16.msrb.mxu0 %v8984_v33  ;;  %v10889_v21 = vld [vmem:[#allocation24 + $0x5c4] sm:$0xf]  ;;  %v9317_v33 = vld [vmem:[#allocation24 + $0x5dc] sm:$0xf0]  ;;  %v6722_v5 = vpop.f32.mrf.mxu0 }
 0x528   :  { %6985 = vmatpush.bf16.msrb.mxu1 %v9208_v60  ;;  %6998 = vmatpush.bf16.msrb.mxu2 %v9432_v56  ;;  %v6746_v59 = vpop.f32.mrf.mxu2  ;;  %v6721_v57 = vadd.f32 %v6720_v28, %v6708_v50  ;;  %v8648_v60 = vor.u32 %v10721_v30, %v8645_v6  ;;  %v8872_v56 = vor.u32 %v10777_v51, %v8869_v52  ;;  %v9877_v50 = vld [vmem:[#allocation24 + $0xa3c] sm:$0xf0] }
 0x529   :  { %v9320_v9 = vor.u32 %v10889_v21, %v9317_v33  ;;  %v9292_v28 = vor.u32 %v10882_v4, %v9289_v20  ;;  %v10132_v51 = vor.u32 %v11092_v0, %v10129_v43  ;;  %v10101_v21 = vld [vmem:[#allocation24 + $0xbfc] sm:$0xf0]  ;;  %v11141_v33 = vld [vmem:[#allocation24 + $0xda4] sm:$0xf]  ;;  %v10959_v20 = vld [vmem:[#allocation24 + $0x7f4] sm:$0xf] }
 0x52a   :  { %v6735_v10 = vpop.f32.mrf.mxu1  ;;  %v10325_v5 = vld [vmem:[#allocation24 + $0xdbc] sm:$0xf0]  ;;  %v11064_v0 = vld [vmem:[#allocation24 + $0xb3c] sm:$0xf]  ;;  %v10241_v43 = vld [vmem:[#allocation24 + $0xd14] sm:$0xf0] }
 0x52b   :  { %6960 = vmatpush.bf16.msra.mxu3 %v8732_v27  ;;  %6973 = vmatpush.bf16.msrb.mxu0 %v8956_v16  ;;  %v6734_v27 = vadd.f32 %v6733_v22, %v6721_v57  ;;  %v9065_v16 = vld [vmem:[#allocation24 + $0x3e4] sm:$0xf0]  ;;  %v10875_v22 = vld [vmem:[#allocation24 + $0x554] sm:$0xf]  ;;  %v9880_v10 = vor.u32 %v11029_v53, %v9877_v50  ;;  %v10328_v58 = vor.u32 %v11141_v33, %v10325_v5  ;;  %v9989_v50 = vld [vmem:[#allocation24 + $0xb1c] sm:$0xf0] }
 0x52c   :  { %6986 = vmatpush.bf16.msrb.mxu1 %v9180_v24  ;;  %6999 = vmatpush.bf16.msrb.mxu2 %v9404_v18  ;;  %v10707_v24 = vld [vmem:[#allocation24 + $0x14] sm:$0xf]  ;;  %v9068_v31 = vor.u32 %v10826_v23, %v9065_v16  ;;  %v9264_v30 = vor.u32 %v10875_v22, %v9261_v2  ;;  %v11134_v23 = vld [vmem:[#allocation24 + $0xd6c] sm:$0xf]  ;;  %v9569_v2 = vld [vmem:[#allocation24 + $0x7d4] sm:$0xf0] }
 0x52d   :  { %v6747_v18 = vadd.f32 %v6746_v59, %v6734_v27  ;;  %v6709_v35 = vpop.f32.mrf.mxu3  ;;  %v8592_v17 = vor.u32 %v10707_v24, %v8589_v15  ;;  %v11085_v59 = vld [vmem:[#allocation24 + $0xbe4] sm:$0xf]  ;;  %v10297_v27 = vld [vmem:[#allocation24 + $0xd84] sm:$0xf0]  ;;  %v9597_v24 = vld [vmem:[#allocation24 + $0x80c] sm:$0xf0] }
 0x52e   :  { %v10104_v46 = vor.u32 %v11085_v59, %v10101_v21  ;;  %v9821_v15 = vld [vmem:[#allocation24 + $0x9cc] sm:$0xf0]  ;;  %v11113_v59 = vld [vmem:[#allocation24 + $0xcc4] sm:$0xf] }
 0x52f   :  { %6961 = vmatpush.bf16.msra.mxu3 %v8704_v36  ;;  %6974 = vmatpush.bf16.msrb.mxu0 %v8928_v49  ;;  %v10819_v36 = vld [vmem:[#allocation24 + $0x394] sm:$0xf]  ;;  %v9037_v49 = vld [vmem:[#allocation24 + $0x3ac] sm:$0xf0]  ;;  %11215 = vtanh.f32 %v6747_v18  ;;  %v10076_v18 = vor.u32 %v11078_v8, %v10073_v40  ;;  %v9961_v8 = vld [vmem:[#allocation24 + $0xae4] sm:$0xf0] }
 0x530   :  { %6987 = vmatpush.bf16.msrb.mxu1 %v9152_v44  ;;  %7000 = vmatpush.bf16.msrb.mxu2 %v9376_v11  ;;  %v6748_v37 = vpop.f32.mrf.mxu2  ;;  %v10980_v44 = vld [vmem:[#allocation24 + $0x89c] sm:$0xf]  ;;  %v9681_v11 = vld [vmem:[#allocation24 + $0x8b4] sm:$0xf0]  ;;  %v11106_v40 = vld [vmem:[#allocation24 + $0xc8c] sm:$0xf] }
 0x531   :  { %v9684_v6 = vor.u32 %v10980_v44, %v9681_v11  ;;  %v10952_v37 = vld [vmem:[#allocation24 + $0x7bc] sm:$0xf]  ;;  %v10048_v44 = vor.u32 %v11071_v29, %v10045_v55  ;;  %v11043_v29 = vld [vmem:[#allocation24 + $0xa94] sm:$0xf]  ;;  %v9933_v55 = vld [vmem:[#allocation24 + $0xaac] sm:$0xf0] }
 0x533   :  { %6962 = vmatpush.bf16.msra.mxu3 %v8676_v32  ;;  %6975 = vmatpush.bf16.msrb.mxu0 %v8900_v63  ;;  %v10353_v32 = vld [vmem:[#allocation24 + $0xdf4] sm:$0xf0]  ;;  %v9040_v63 = vor.u32 %v10819_v36, %v9037_v49  ;;  %v9600_v49 = vor.u32 %v10959_v20, %v9597_v24  ;;  %v9485_v20 = vld [vmem:[#allocation24 + $0x72c] sm:$0xf0]  ;;  %v10987_v24 = vld [vmem:[#allocation24 + $0x8d4] sm:$0xf] }
 0x534   :  { %6988 = vmatpush.bf16.msrb.mxu1 %v9124_v3  ;;  %7001 = vmatpush.bf16.msrb.mxu2 %v9348_v62  ;;  %v9908_v3 = vor.u32 %v11036_v1, %v9905_v7  ;;  %v10973_v62 = vld [vmem:[#allocation24 + $0x864] sm:$0xf]  ;;  %v10356_v52 = vor.u32 %v11148_v38, %v10353_v32  ;;  %v11008_v1 = vld [vmem:[#allocation24 + $0x97c] sm:$0xf]  ;;  %v9793_v7 = vld [vmem:[#allocation24 + $0x994] sm:$0xf0]  ;;  %v9572_v38 = vor.u32 %v10952_v37, %v9569_v2 }
 0x535   :  { %v11216_v54 = vpop.eup %11215  ;;  %v9656_v57 = vor.u32 %v10973_v62, %v9653_v61  ;;  %v9796_v32 = vor.u32 %v11008_v1, %v9793_v7  ;;  %v11001_v61 = vld [vmem:[#allocation24 + $0x944] sm:$0xf]  ;;  %v10760_v37 = vld [vmem:[#allocation24 + $0x1b8] sm:$0xf0]  ;;  %v9015_v2 = vld [vmem:[#allocation24 + $0x360] sm:$0xf] }
 0x536   :  { %7175 = vst [vmem:[%s12487_s17 + $0x10] sm:$0xff] %v11216_v54  ;;  %v10213_v54 = vld [vmem:[#allocation24 + $0xcdc] sm:$0xf0] }
 0x537   :  { %6963 = vmatpush.bf16.msra.mxu3 %v8648_v60  ;;  %6976 = vmatpush.bf16.msrb.mxu0 %v8872_v56  ;;  %v10966_v60 = vld [vmem:[#allocation24 + $0x82c] sm:$0xf]  ;;  %v9625_v56 = vld [vmem:[#allocation24 + $0x844] sm:$0xf0] }
 0x538   :  { %6989 = vmatpush.bf16.msrb.mxu1 %v9096_v19  ;;  %7002 = vmatpush.bf16.msrb.mxu2 %v9320_v9  ;;  %v11022_v19 = vld [vmem:[#allocation24 + $0x9ec] sm:$0xf]  ;;  %v9849_v9 = vld [vmem:[#allocation24 + $0xa04] sm:$0xf0]  ;;  %v9628_v16 = vor.u32 %v10966_v60, %v9625_v56 }
 0x539   :  { %v9852_v4 = vor.u32 %v11022_v19, %v9849_v9  ;;  %v9513_v60 = vld [vmem:[#allocation24 + $0x764] sm:$0xf0]  ;;  %v11050_v9 = vld [vmem:[#allocation24 + $0xacc] sm:$0xf] }
 0x53a   :  { %v9737_v19 = vld [vmem:[#allocation24 + $0x924] sm:$0xf0] }
 0x53b   :  { %6964 = vmatpush.bf16.msra.mxu3 %v8620_v48  ;;  %6977 = vmatpush.bf16.msrb.mxu0 %v8844_v25  ;;  %v10300_v48 = vor.u32 %v11134_v23, %v10297_v27  ;;  %v11015_v25 = vld [vmem:[#allocation24 + $0x9b4] sm:$0xf]  ;;  %v10185_v23 = vld [vmem:[#allocation24 + $0xca4] sm:$0xf0] }
 0x53c   :  { %6990 = vmatpush.bf16.msrb.mxu1 %v9068_v31  ;;  %7003 = vmatpush.bf16.msrb.mxu2 %v9292_v28  ;;  %v11127_v31 = vld [vmem:[#allocation24 + $0xd34] sm:$0xf]  ;;  %v10269_v28 = vld [vmem:[#allocation24 + $0xd4c] sm:$0xf0]  ;;  %v9824_v22 = vor.u32 %v11015_v25, %v9821_v15  ;;  %v10188_v25 = vor.u32 %v11106_v40, %v10185_v23 }
 0x53d   :  { %v10272_v11 = vor.u32 %v11127_v31, %v10269_v28  ;;  %v10931_v27 = vld [vmem:[#allocation24 + $0x714] sm:$0xf]  ;;  %v9407_v40 = vld [vmem:[#allocation24 + $0x670] sm:$0xf] }
 0x53e   :  { %v11099_v31 = vld [vmem:[#allocation24 + $0xc54] sm:$0xf]  ;;  %v9488_v1 = vor.u32 %v10931_v27, %v9485_v20 }
 0x53f   :  { %6965 = vmatpush.bf16.msra.mxu3 %v8592_v17  ;;  %6978 = vmatpush.bf16.msrb.mxu0 %v8816_v14  ;;  %v12419_v35 = vpop.f32.mrf.mxu0  ;;  %v10017_v17 = vld [vmem:[#allocation24 + $0xb54] sm:$0xf0]  ;;  %v11120_v14 = vld [vmem:[#allocation24 + $0xcfc] sm:$0xf]  ;;  %v10739_v20 = vld [vmem:[#allocation24 + $0x110] sm:$0xf0] }
 0x540   :  { %6991 = vmatpush.bf16.msrb.mxu1 %v9040_v63  ;;  %7004 = vmatpush.bf16.msrb.mxu2 %v9264_v30  ;;  %v10945_v63 = vld [vmem:[#allocation24 + $0x784] sm:$0xf]  ;;  %v9541_v30 = vld [vmem:[#allocation24 + $0x79c] sm:$0xf0] }
 0x541   :  { %v9544_v5 = vor.u32 %v10945_v63, %v9541_v30 }
 0x542   :  { %6966 = vmatmul.bf16.vlgmr.msra.gmra.mxu3 %v12305_v34  ;;  %6979 = vmatmul.bf16.vlgmr.msrb.gmra.mxu0 %v12307_v41  ;;  %v12421_v36 = vpop.f32.mrf.mxu1 }
 0x543   :  { %7010 = vmatpush.bf16.msrb.mxu3 %v9684_v6  ;;  %7023 = vmatpush.bf16.msra.mxu0 %v9908_v3  ;;  %v10020_v6 = vor.u32 %v11064_v0, %v10017_v17  ;;  %v10244_v3 = vor.u32 %v11120_v14, %v10241_v43  ;;  %v10872_v0 = vld [vmem:[#allocation24 + $0x538] sm:$0xf0]  ;;  %v9463_v17 = vld [vmem:[#allocation24 + $0x6e0] sm:$0xf]  ;;  %v9936_v43 = vor.u32 %v11043_v29, %v9933_v55  ;;  %v10851_v29 = vld [vmem:[#allocation24 + $0x490] sm:$0xf0] }
 0x544   :  { %7036 = vmatpush.bf16.msra.mxu1 %v10132_v51  ;;  %7049 = vmatpush.bf16.msra.mxu2 %v10356_v52  ;;  %v9765_v51 = vld [vmem:[#allocation24 + $0x95c] sm:$0xf0]  ;;  %v11057_v52 = vld [vmem:[#allocation24 + $0xb04] sm:$0xf]  ;;  %v10928_v14 = vld [vmem:[#allocation24 + $0x6f8] sm:$0xf0] }
 0x545   :  { %6992 = vmatmul.bf16.vlgmr.msrb.gmra.mxu1 %v12309_v45  ;;  %7005 = vmatmul.bf16.vlgmr.msrb.gmra.mxu2 %v12311_v39  ;;  %v12423_v62 = vpop.f32.mrf.mxu3  ;;  %v9992_v56 = vor.u32 %v11057_v52, %v9989_v50  ;;  %v8987_v52 = vld [vmem:[#allocation24 + $0x328] sm:$0xf]  ;;  %v10809_v50 = vld [vmem:[#allocation24 + $0x340] sm:$0xf0]  ;;  %v9379_v55 = vld [vmem:[#allocation24 + $0x638] sm:$0xf] }
 0x547   :  { %7011 = vmatpush.bf16.msrb.mxu3 %v9656_v57  ;;  %7024 = vmatpush.bf16.msra.mxu0 %v9880_v10  ;;  %v6774_v21 = vpop.f32.mrf.mxu0  ;;  %v9768_v57 = vor.u32 %v11001_v61, %v9765_v51  ;;  %v10938_v10 = vld [vmem:[#allocation24 + $0x74c] sm:$0xf]  ;;  %v9464_v51 = vor.u32 %v10928_v14, %v9463_v17  ;;  %v9127_v17 = vld [vmem:[#allocation24 + $0x440] sm:$0xf]  ;;  %v10844_v14 = vld [vmem:[#allocation24 + $0x458] sm:$0xf0] }
 0x548   :  { %7037 = vmatpush.bf16.msra.mxu1 %v10104_v46  ;;  %7050 = vmatpush.bf16.msra.mxu2 %v10328_v58  ;;  %v12425_v53 = vpop.f32.mrf.mxu2  ;;  %v10216_v46 = vor.u32 %v11113_v59, %v10213_v54  ;;  %v10994_v58 = vld [vmem:[#allocation24 + $0x90c] sm:$0xf]  ;;  %v9211_v59 = vld [vmem:[#allocation24 + $0x4e8] sm:$0xf]  ;;  %v10865_v54 = vld [vmem:[#allocation24 + $0x500] sm:$0xf0] }
 0x549   :  { %v9435_v21 = vld [vmem:[#allocation24 + $0x6a8] sm:$0xf] }
 0x54a   :  { %v6787_v33 = vpop.f32.mrf.mxu1 }
 0x54b   :  { %7012 = vmatpush.bf16.msrb.mxu3 %v9628_v16  ;;  %7025 = vmatpush.bf16.msra.mxu0 %v9852_v4  ;;  %v9516_v16 = vor.u32 %v10938_v10, %v9513_v60  ;;  %v9740_v4 = vor.u32 %v10994_v58, %v9737_v19  ;;  %v10921_v33 = vld [vmem:[#allocation24 + $0x6c0] sm:$0xf0]  ;;  %v8735_v10 = vld [vmem:[#allocation24 + $0x130] sm:$0xf]  ;;  %v10746_v60 = vld [vmem:[#allocation24 + $0x148] sm:$0xf0] }
 0x54c   :  { %7038 = vmatpush.bf16.msra.mxu1 %v10076_v18  ;;  %7051 = vmatpush.bf16.msra.mxu2 %v10300_v48  ;;  %v9709_v18 = vld [vmem:[#allocation24 + $0x8ec] sm:$0xf0]  ;;  %v9964_v48 = vor.u32 %v11050_v9, %v9961_v8  ;;  %v10802_v19 = vld [vmem:[#allocation24 + $0x308] sm:$0xf0]  ;;  %v8736_v27 = vor.u32 %v10746_v60, %v8735_v10 }
 0x54d   :  { %v6761_v15 = vpop.f32.mrf.mxu3  ;;  %v9712_v7 = vor.u32 %v10987_v24, %v9709_v18  ;;  %v8959_v58 = vld [vmem:[#allocation24 + $0x2f0] sm:$0xf]  ;;  %v10858_v8 = vld [vmem:[#allocation24 + $0x4c8] sm:$0xf0] }
 0x54e   :  { %v9183_v9 = vld [vmem:[#allocation24 + $0x4b0] sm:$0xf]  ;;  %v9155_v15 = vld [vmem:[#allocation24 + $0x478] sm:$0xf] }
 0x54f   :  { %7013 = vmatpush.bf16.msrb.mxu3 %v9600_v49  ;;  %7026 = vmatpush.bf16.msra.mxu0 %v9824_v22  ;;  %v10157_v49 = vld [vmem:[#allocation24 + $0xc6c] sm:$0xf0]  ;;  %v8791_v22 = vld [vmem:[#allocation24 + $0x1a0] sm:$0xf]  ;;  %v9184_v24 = vor.u32 %v10858_v8, %v9183_v9 }
 0x550   :  { %7039 = vmatpush.bf16.msra.mxu1 %v10048_v44  ;;  %7052 = vmatpush.bf16.msra.mxu2 %v10272_v11  ;;  %v6800_v28 = vpop.f32.mrf.mxu2  ;;  %v10816_v44 = vld [vmem:[#allocation24 + $0x378] sm:$0xf0]  ;;  %v9239_v11 = vld [vmem:[#allocation24 + $0x520] sm:$0xf]  ;;  %v8792_v63 = vor.u32 %v10760_v37, %v8791_v22  ;;  %v8847_v8 = vld [vmem:[#allocation24 + $0x210] sm:$0xf] }
 0x551   :  { %v9016_v30 = vor.u32 %v10816_v44, %v9015_v2  ;;  %v9240_v61 = vor.u32 %v10872_v0, %v9239_v11  ;;  %v8679_v2 = vld [vmem:[#allocation24 + $0xc0] sm:$0xf]  ;;  %v10732_v44 = vld [vmem:[#allocation24 + $0xd8] sm:$0xf0]  ;;  %v9156_v11 = vor.u32 %v10851_v29, %v9155_v15  ;;  %v8819_v15 = vld [vmem:[#allocation24 + $0x1d8] sm:$0xf] }
 0x552   :  { %v10788_v0 = vld [vmem:[#allocation24 + $0x298] sm:$0xf0]  ;;  %v10767_v29 = vld [vmem:[#allocation24 + $0x1f0] sm:$0xf0] }
 0x553   :  { %7014 = vmatpush.bf16.msrb.mxu3 %v9572_v38  ;;  %7027 = vmatpush.bf16.msra.mxu0 %v9796_v32  ;;  %v10160_v38 = vor.u32 %v11099_v31, %v10157_v49  ;;  %v4123_v32 = vperm.slane %v12401_v42, 3  ;;  %v10907_v31 = vld [vmem:[#allocation24 + $0x650] sm:$0xf0] }
 0x554   :  { %7040 = vmatpush.bf16.msra.mxu1 %v10020_v6  ;;  %7053 = vmatpush.bf16.msra.mxu2 %v10244_v3  ;;  %v8763_v6 = vld [vmem:[#allocation24 + $0x168] sm:$0xf]  ;;  %v10753_v3 = vld [vmem:[#allocation24 + $0x180] sm:$0xf0] }
 0x555   :  { %v8764_v42 = vor.u32 %v10753_v3, %v8763_v6  ;;  %v10725_v6 = vld [vmem:[#allocation24 + $0xa0] sm:$0xf0]  ;;  %v9128_v3 = vor.u32 %v10844_v14, %v9127_v17  ;;  %v8820_v14 = vor.u32 %v10767_v29, %v8819_v15  ;;  %v11131_v15 = vld [vmem:[#allocation24 + $0xd50] sm:$0xf0] }
 0x557   :  { %7015 = vmatpush.bf16.msrb.mxu3 %v9544_v5  ;;  %7028 = vmatpush.bf16.msra.mxu0 %v9768_v57  ;;  %v6760_v5 = vadd.f32 %v12423_v62, %v4123_v32  ;;  %v8988_v57 = vor.u32 %v10809_v50, %v8987_v52  ;;  %v10914_v62 = vld [vmem:[#allocation24 + $0x688] sm:$0xf0]  ;;  %v8875_v52 = vld [vmem:[#allocation24 + $0x248] sm:$0xf]  ;;  %v10781_v50 = vld [vmem:[#allocation24 + $0x260] sm:$0xf0] }
 0x558   :  { %7041 = vmatpush.bf16.msra.mxu1 %v9992_v56  ;;  %7054 = vmatpush.bf16.msra.mxu2 %v10216_v46  ;;  %v9212_v56 = vor.u32 %v10865_v54, %v9211_v59  ;;  %v9436_v46 = vor.u32 %v10921_v33, %v9435_v21  ;;  %v9408_v18 = vor.u32 %v10914_v62, %v9407_v40  ;;  %v9099_v59 = vld [vmem:[#allocation24 + $0x408] sm:$0xf]  ;;  %v10837_v33 = vld [vmem:[#allocation24 + $0x420] sm:$0xf0]  ;;  %v10774_v40 = vld [vmem:[#allocation24 + $0x228] sm:$0xf0] }
 0x559   :  { %v6773_v23 = vadd.f32 %v12419_v35, %v6760_v5  ;;  %v9323_v5 = vld [vmem:[#allocation24 + $0x5c8] sm:$0xf]  ;;  %v9071_v62 = vld [vmem:[#allocation24 + $0x3d0] sm:$0xf] }
 0x55b   :  { %7016 = vmatpush.bf16.msrb.mxu3 %v9516_v16  ;;  %7029 = vmatpush.bf16.msra.mxu0 %v9740_v4  ;;  %v8960_v16 = vor.u32 %v10802_v19, %v8959_v58  ;;  %v8707_v4 = vld [vmem:[#allocation24 + $0xf8] sm:$0xf]  ;;  %v6786_v49 = vadd.f32 %v12421_v36, %v6773_v23  ;;  %v8680_v36 = vor.u32 %v10732_v44, %v8679_v2  ;;  %v10718_v58 = vld [vmem:[#allocation24 + $0x68] sm:$0xf0]  ;;  %v10879_v2 = vld [vmem:[#allocation24 + $0x570] sm:$0xf0] }
 0x55c   :  { %7042 = vmatpush.bf16.msra.mxu1 %v9964_v48  ;;  %7055 = vmatpush.bf16.msra.mxu2 %v10188_v25  ;;  %v8931_v48 = vld [vmem:[#allocation24 + $0x2b8] sm:$0xf]  ;;  %v10795_v25 = vld [vmem:[#allocation24 + $0x2d0] sm:$0xf0]  ;;  %v8708_v22 = vor.u32 %v10739_v20, %v8707_v4  ;;  %v9100_v19 = vor.u32 %v10837_v33, %v9099_v59  ;;  %v10886_v4 = vld [vmem:[#allocation24 + $0x5a8] sm:$0xf0] }
 0x55d   :  { %v8932_v37 = vor.u32 %v10795_v25, %v8931_v48  ;;  %v6799_v32 = vadd.f32 %v12425_v53, %v6786_v49  ;;  %v8595_v20 = vld [vmem:[#allocation24 + $0x18] sm:$0xf]  ;;  %v8848_v48 = vor.u32 %v10774_v40, %v8847_v8  ;;  %v10711_v25 = vld [vmem:[#allocation24 + $0x30] sm:$0xf0]  ;;  %v9687_v44 = vld [vmem:[#allocation24 + $0x8a0] sm:$0xf] }
 0x55e   :  { %v9043_v49 = vld [vmem:[#allocation24 + $0x398] sm:$0xf]  ;;  %v8596_v17 = vor.u32 %v10711_v25, %v8595_v20  ;;  %v11033_v59 = vld [vmem:[#allocation24 + $0xa40] sm:$0xf0]  ;;  %v11082_v8 = vld [vmem:[#allocation24 + $0xbc8] sm:$0xf0] }
 0x55f   :  { %7017 = vmatpush.bf16.msrb.mxu3 %v9488_v1  ;;  %7030 = vmatpush.bf16.msra.mxu0 %v9712_v7  ;;  %v6824_v28 = vpop.f32.mrf.mxu0  ;;  %v9380_v1 = vor.u32 %v10907_v31, %v9379_v55  ;;  %v8903_v7 = vld [vmem:[#allocation24 + $0x280] sm:$0xf]  ;;  %v11089_v33 = vld [vmem:[#allocation24 + $0xc00] sm:$0xf0]  ;;  %v10303_v40 = vld [vmem:[#allocation24 + $0xd70] sm:$0xf] }
 0x560   :  { %7043 = vmatpush.bf16.msra.mxu1 %v9936_v43  ;;  %7056 = vmatpush.bf16.msra.mxu2 %v10160_v38  ;;  %v9351_v43 = vld [vmem:[#allocation24 + $0x600] sm:$0xf]  ;;  %v10900_v38 = vld [vmem:[#allocation24 + $0x618] sm:$0xf0]  ;;  %v10275_v25 = vld [vmem:[#allocation24 + $0xd38] sm:$0xf] }
 0x562   :  { %7018 = vmatmul.bf16.vlgmr.msrb.gmra.mxu3 %v12325_v13  ;;  %7031 = vmatmul.bf16.vlgmr.msra.gmra.mxu0 %v12327_v12  ;;  %v6837_v35 = vpop.f32.mrf.mxu1 }
 0x563   :  { %7062 = vmatpush.bf16.msra.mxu3 %v8792_v63  ;;  %7075 = vmatpush.bf16.msrb.mxu0 %v9016_v30  ;;  %v8904_v63 = vor.u32 %v10788_v0, %v8903_v7  ;;  %v8651_v30 = vld [vmem:[#allocation24 + $0x88] sm:$0xf]  ;;  %v11040_v7 = vld [vmem:[#allocation24 + $0xa78] sm:$0xf0]  ;;  %v10135_v0 = vld [vmem:[#allocation24 + $0xc20] sm:$0xf] }
 0x564   :  { %7088 = vmatpush.bf16.msrb.mxu1 %v9240_v61  ;;  %7101 = vmatpush.bf16.msrb.mxu2 %v9464_v51  ;;  %v9352_v61 = vor.u32 %v10900_v38, %v9351_v43  ;;  %v8652_v60 = vor.u32 %v10725_v6, %v8651_v30  ;;  %v11096_v43 = vld [vmem:[#allocation24 + $0xc38] sm:$0xf0]  ;;  %v10359_v38 = vld [vmem:[#allocation24 + $0xde0] sm:$0xf] }
 0x565   :  { %7044 = vmatmul.bf16.vlgmr.msra.gmra.mxu1 %v12331_v26  ;;  %7057 = vmatmul.bf16.vlgmr.msra.gmra.mxu2 %v12329_v47  ;;  %v6811_v51 = vpop.f32.mrf.mxu3 }
 0x566   :  { %v6812_v54 = vadd.f32 %v6811_v51, %v6799_v32  ;;  %v11152_v32 = vld [vmem:[#allocation24 + $0xdf8] sm:$0xf0]  ;;  %v10136_v51 = vor.u32 %v11096_v43, %v10135_v0 }
 0x567   :  { %7063 = vmatpush.bf16.msra.mxu3 %v8764_v42  ;;  %7076 = vmatpush.bf16.msrb.mxu0 %v8988_v57  ;;  %v10893_v42 = vld [vmem:[#allocation24 + $0x5e0] sm:$0xf0]  ;;  %v6826_v53 = vpop.f32.mrf.mxu0 }
 0x568   :  { %7089 = vmatpush.bf16.msrb.mxu1 %v9212_v56  ;;  %7102 = vmatpush.bf16.msrb.mxu2 %v9436_v46  ;;  %v6850_v21 = vpop.f32.mrf.mxu2  ;;  %v6825_v57 = vadd.f32 %v6824_v28, %v6812_v54  ;;  %v8876_v56 = vor.u32 %v10781_v50, %v8875_v52  ;;  %v8623_v46 = vld [vmem:[#allocation24 + $0x50] sm:$0xf]  ;;  %v9324_v9 = vor.u32 %v10893_v42, %v9323_v5  ;;  %v9883_v50 = vld [vmem:[#allocation24 + $0xa28] sm:$0xf]  ;;  %v11145_v42 = vld [vmem:[#allocation24 + $0xdc0] sm:$0xf0] }
 0x569   :  { %v10360_v52 = vor.u32 %v11152_v32, %v10359_v38  ;;  %v10107_v54 = vld [vmem:[#allocation24 + $0xbe8] sm:$0xf] }
 0x56a   :  { %v6839_v10 = vpop.f32.mrf.mxu1  ;;  %v6838_v23 = vadd.f32 %v6837_v35, %v6825_v57  ;;  %v9267_v35 = vld [vmem:[#allocation24 + $0x558] sm:$0xf]  ;;  %v10331_v5 = vld [vmem:[#allocation24 + $0xda8] sm:$0xf]  ;;  %v9884_v57 = vor.u32 %v11033_v59, %v9883_v50 }
 0x56b   :  { %7064 = vmatpush.bf16.msra.mxu3 %v8736_v27  ;;  %7077 = vmatpush.bf16.msrb.mxu0 %v8960_v16  ;;  %v10830_v27 = vld [vmem:[#allocation24 + $0x3e8] sm:$0xf0]  ;;  %v9295_v16 = vld [vmem:[#allocation24 + $0x590] sm:$0xf] }
 0x56c   :  { %7090 = vmatpush.bf16.msrb.mxu1 %v9184_v24  ;;  %7103 = vmatpush.bf16.msrb.mxu2 %v9408_v18  ;;  %v6851_v24 = vadd.f32 %v6850_v21, %v6838_v23  ;;  %v8624_v18 = vor.u32 %v10718_v58, %v8623_v46  ;;  %v9072_v55 = vor.u32 %v10830_v27, %v9071_v62  ;;  %v9631_v10 = vld [vmem:[#allocation24 + $0x830] sm:$0xf]  ;;  %v11138_v62 = vld [vmem:[#allocation24 + $0xd88] sm:$0xf0] }
 0x56d   :  { %v9296_v31 = vor.u32 %v10886_v4, %v9295_v16  ;;  %v6813_v28 = vpop.f32.mrf.mxu3  ;;  %v10332_v46 = vor.u32 %v11145_v42, %v10331_v5  ;;  %v9855_v58 = vld [vmem:[#allocation24 + $0x9f0] sm:$0xf]  ;;  %v9603_v16 = vld [vmem:[#allocation24 + $0x7f8] sm:$0xf]  ;;  %v10963_v4 = vld [vmem:[#allocation24 + $0x810] sm:$0xf0] }
 0x56e   :  { %11217 = vtanh.f32 %v6851_v24  ;;  %v10304_v24 = vor.u32 %v11138_v62, %v10303_v40  ;;  %v10956_v28 = vld [vmem:[#allocation24 + $0x7d8] sm:$0xf0] }
 0x56f   :  { %7065 = vmatpush.bf16.msra.mxu3 %v8708_v22  ;;  %7078 = vmatpush.bf16.msrb.mxu0 %v8932_v37  ;;  %v10823_v22 = vld [vmem:[#allocation24 + $0x3b0] sm:$0xf0] }
 0x570   :  { %7091 = vmatpush.bf16.msrb.mxu1 %v9156_v11  ;;  %7104 = vmatpush.bf16.msrb.mxu2 %v9380_v1  ;;  %v6852_v37 = vpop.f32.mrf.mxu2  ;;  %v10984_v11 = vld [vmem:[#allocation24 + $0x8b8] sm:$0xf0]  ;;  %v9911_v1 = vld [vmem:[#allocation24 + $0xa60] sm:$0xf] }
 0x571   :  { %v9688_v30 = vor.u32 %v10984_v11, %v9687_v44  ;;  %v9912_v6 = vor.u32 %v11040_v7, %v9911_v1  ;;  %v11012_v37 = vld [vmem:[#allocation24 + $0x998] sm:$0xf0]  ;;  %v10247_v11 = vld [vmem:[#allocation24 + $0xd00] sm:$0xf] }
 0x572   :  { %v11068_v44 = vld [vmem:[#allocation24 + $0xb58] sm:$0xf0] }
 0x573   :  { %7066 = vmatpush.bf16.msra.mxu3 %v8680_v36  ;;  %7079 = vmatpush.bf16.msrb.mxu0 %v8904_v63  ;;  %v9044_v36 = vor.u32 %v10823_v22, %v9043_v49  ;;  %v9268_v63 = vor.u32 %v10879_v2, %v9267_v35  ;;  %v10276_v22 = vor.u32 %v11131_v15, %v10275_v25  ;;  %v9799_v35 = vld [vmem:[#allocation24 + $0x980] sm:$0xf]  ;;  %v11124_v1 = vld [vmem:[#allocation24 + $0xd18] sm:$0xf0] }
 0x574   :  { %7092 = vmatpush.bf16.msrb.mxu1 %v9128_v3  ;;  %7105 = vmatpush.bf16.msrb.mxu2 %v9352_v61  ;;  %v9659_v3 = vld [vmem:[#allocation24 + $0x868] sm:$0xf]  ;;  %v10977_v61 = vld [vmem:[#allocation24 + $0x880] sm:$0xf0]  ;;  %v11218_v21 = vpop.eup %11217  ;;  %v10023_v2 = vld [vmem:[#allocation24 + $0xb40] sm:$0xf]  ;;  %v9800_v0 = vor.u32 %v11012_v37, %v9799_v35  ;;  %v10248_v38 = vor.u32 %v11124_v1, %v10247_v11 }
 0x575   :  { %7176 = vst [vmem:[%s12487_s17 + $0x18] sm:$0xff] %v11218_v21  ;;  %v9660_v53 = vor.u32 %v10977_v61, %v9659_v3  ;;  %v10024_v43 = vor.u32 %v11068_v44, %v10023_v2  ;;  %v11061_v3 = vld [vmem:[#allocation24 + $0xb20] sm:$0xf0]  ;;  %v10219_v61 = vld [vmem:[#allocation24 + $0xcc8] sm:$0xf] }
 0x576   :  { %v9519_v21 = vld [vmem:[#allocation24 + $0x750] sm:$0xf] }
 0x577   :  { %7067 = vmatpush.bf16.msra.mxu3 %v8652_v60  ;;  %7080 = vmatpush.bf16.msrb.mxu0 %v8876_v56  ;;  %v10970_v60 = vld [vmem:[#allocation24 + $0x848] sm:$0xf0]  ;;  %v10108_v56 = vor.u32 %v11089_v33, %v10107_v54 }
 0x578   :  { %7093 = vmatpush.bf16.msrb.mxu1 %v9100_v19  ;;  %7106 = vmatpush.bf16.msrb.mxu2 %v9324_v9  ;;  %v11026_v19 = vld [vmem:[#allocation24 + $0xa08] sm:$0xf0]  ;;  %v10079_v9 = vld [vmem:[#allocation24 + $0xbb0] sm:$0xf]  ;;  %v9632_v23 = vor.u32 %v10970_v60, %v9631_v10 }
 0x579   :  { %v9856_v27 = vor.u32 %v11026_v19, %v9855_v58  ;;  %v10080_v20 = vor.u32 %v11082_v8, %v10079_v9  ;;  %v10942_v33 = vld [vmem:[#allocation24 + $0x768] sm:$0xf0]  ;;  %v9967_v10 = vld [vmem:[#allocation24 + $0xad0] sm:$0xf]  ;;  %v9491_v9 = vld [vmem:[#allocation24 + $0x718] sm:$0xf] }
 0x57a   :  { %v11054_v60 = vld [vmem:[#allocation24 + $0xae8] sm:$0xf0]  ;;  %v9520_v58 = vor.u32 %v10942_v33, %v9519_v21  ;;  %v10935_v8 = vld [vmem:[#allocation24 + $0x730] sm:$0xf0] }
 0x57b   :  { %7068 = vmatpush.bf16.msra.mxu3 %v8624_v18  ;;  %7081 = vmatpush.bf16.msrb.mxu0 %v8848_v48  ;;  %v11019_v18 = vld [vmem:[#allocation24 + $0x9d0] sm:$0xf0]  ;;  %v9968_v40 = vor.u32 %v11054_v60, %v9967_v10 }
 0x57c   :  { %7094 = vmatpush.bf16.msrb.mxu1 %v9072_v55  ;;  %7107 = vmatpush.bf16.msrb.mxu2 %v9296_v31  ;;  %v11075_v48 = vld [vmem:[#allocation24 + $0xb90] sm:$0xf0]  ;;  %v9575_v31 = vld [vmem:[#allocation24 + $0x7c0] sm:$0xf] }
 0x57d   :  { %v9576_v7 = vor.u32 %v10956_v28, %v9575_v31 }
 0x57f   :  { %7069 = vmatpush.bf16.msra.mxu3 %v8596_v17  ;;  %7082 = vmatpush.bf16.msrb.mxu0 %v8820_v14  ;;  %v12443_v29 = vpop.f32.mrf.mxu0  ;;  %v9547_v17 = vld [vmem:[#allocation24 + $0x788] sm:$0xf]  ;;  %v10949_v14 = vld [vmem:[#allocation24 + $0x7a0] sm:$0xf0] }
 0x580   :  { %7095 = vmatpush.bf16.msrb.mxu1 %v9044_v36  ;;  %7108 = vmatpush.bf16.msrb.mxu2 %v9268_v63  ;;  %v9771_v36 = vld [vmem:[#allocation24 + $0x948] sm:$0xf]  ;;  %v11005_v63 = vld [vmem:[#allocation24 + $0x960] sm:$0xf0]  ;;  %v9548_v59 = vor.u32 %v10949_v14, %v9547_v17 }
 0x581   :  { %v9772_v54 = vor.u32 %v11005_v63, %v9771_v36 }
 0x582   :  { %7070 = vmatmul.bf16.vlgmr.msra.gmra.mxu3 %v12305_v34  ;;  %7083 = vmatmul.bf16.vlgmr.msrb.gmra.mxu0 %v12307_v41  ;;  %v9827_v34 = vld [vmem:[#allocation24 + $0x9b8] sm:$0xf] }
 0x583   :  { %7114 = vmatpush.bf16.msrb.mxu3 %v9688_v30  ;;  %7127 = vmatpush.bf16.msra.mxu0 %v9912_v6  ;;  %v10051_v41 = vld [vmem:[#allocation24 + $0xb78] sm:$0xf]  ;;  %v9828_v55 = vor.u32 %v11019_v18, %v9827_v34  ;;  %v9995_v30 = vld [vmem:[#allocation24 + $0xb08] sm:$0xf]  ;;  %v11103_v18 = vld [vmem:[#allocation24 + $0xc70] sm:$0xf0] }
 0x584   :  { %7140 = vmatpush.bf16.msra.mxu1 %v10136_v51  ;;  %7153 = vmatpush.bf16.msra.mxu2 %v10360_v52  ;;  %v10052_v49 = vor.u32 %v11075_v48, %v10051_v41  ;;  %v11117_v51 = vld [vmem:[#allocation24 + $0xce0] sm:$0xf0]  ;;  %v9996_v5 = vor.u32 %v11061_v3, %v9995_v30  ;;  %v10163_v34 = vld [vmem:[#allocation24 + $0xc58] sm:$0xf]  ;;  %v9492_v41 = vor.u32 %v10935_v8, %v9491_v9 }
 0x585   :  { %7096 = vmatmul.bf16.vlgmr.msrb.gmra.mxu1 %v12309_v45  ;;  %7109 = vmatmul.bf16.vlgmr.msrb.gmra.mxu2 %v12311_v39  ;;  %v12445_v45 = vpop.f32.mrf.mxu1  ;;  %v9604_v39 = vor.u32 %v10963_v4, %v9603_v16  ;;  %v6863_v32 = vpop.f32.mrf.mxu3  ;;  %v10220_v42 = vor.u32 %v11117_v51, %v10219_v61  ;;  %v10991_v16 = vld [vmem:[#allocation24 + $0x8f0] sm:$0xf0]  ;;  %v9939_v4 = vld [vmem:[#allocation24 + $0xa98] sm:$0xf]  ;;  %v10164_v15 = vor.u32 %v11103_v18, %v10163_v34 }
 0x587   :  { %7115 = vmatpush.bf16.msrb.mxu3 %v9660_v53  ;;  %7128 = vmatpush.bf16.msra.mxu0 %v9884_v57  ;;  %v6878_v52 = vpop.f32.mrf.mxu0  ;;  %v9743_v53 = vld [vmem:[#allocation24 + $0x910] sm:$0xf]  ;;  %v10998_v57 = vld [vmem:[#allocation24 + $0x928] sm:$0xf0] }
 0x588   :  { %7141 = vmatpush.bf16.msra.mxu1 %v10108_v56  ;;  %7154 = vmatpush.bf16.msra.mxu2 %v10332_v46  ;;  %v12447_v6 = vpop.f32.mrf.mxu2  ;;  %v10191_v56 = vld [vmem:[#allocation24 + $0xc90] sm:$0xf]  ;;  %v11110_v46 = vld [vmem:[#allocation24 + $0xca8] sm:$0xf0]  ;;  %v9744_v19 = vor.u32 %v10998_v57, %v9743_v53 }
 0x589   :  { %v10192_v62 = vor.u32 %v11110_v46, %v10191_v56 }
 0x58b   :  { %7116 = vmatpush.bf16.msrb.mxu3 %v9632_v23  ;;  %7129 = vmatpush.bf16.msra.mxu0 %v9856_v27  ;;  %v9715_v27 = vld [vmem:[#allocation24 + $0x8d8] sm:$0xf] }
 0x58c   :  { %7142 = vmatpush.bf16.msra.mxu1 %v10080_v20  ;;  %7155 = vmatpush.bf16.msra.mxu2 %v10304_v24  ;;  %v11047_v24 = vld [vmem:[#allocation24 + $0xab0] sm:$0xf0]  ;;  %v9716_v48 = vor.u32 %v10991_v16, %v9715_v27 }
 0x58d   :  { %v6891_v50 = vpop.f32.mrf.mxu1  ;;  %v6865_v23 = vpop.f32.mrf.mxu3  ;;  %v9940_v25 = vor.u32 %v11047_v24, %v9939_v4 }
 0x58f   :  { %7117 = vmatpush.bf16.msrb.mxu3 %v9604_v39  ;;  %7130 = vmatpush.bf16.msra.mxu0 %v9828_v55  ;;  %v12449_v39 = vld [vmem:[#allocation25] sm:$0xff] }
 0x590   :  { %7143 = vmatpush.bf16.msra.mxu1 %v10052_v49  ;;  %7156 = vmatpush.bf16.msra.mxu2 %v10276_v22  ;;  %v6904_v20 = vpop.f32.mrf.mxu2  ;;  %v4124_v55 = vperm.slane %v12449_v39, 4  ;;  %v4125_v30 = vperm.slane %v12449_v39, 5  ;;  %v4126_v27 = vperm.slane %v12449_v39, 6 }
 0x592   :  { %v6864_v31 = vadd.f32 %v6863_v32, %v4124_v55 }
 0x593   :  { %7118 = vmatpush.bf16.msrb.mxu3 %v9576_v7  ;;  %7131 = vmatpush.bf16.msra.mxu0 %v9800_v0 }
 0x594   :  { %7144 = vmatpush.bf16.msra.mxu1 %v10024_v43  ;;  %7157 = vmatpush.bf16.msra.mxu2 %v10248_v38  ;;  %v6877_v28 = vadd.f32 %v12443_v29, %v6864_v31 }
 0x596   :  { %v6890_v22 = vadd.f32 %v12445_v45, %v6877_v28 }
 0x597   :  { %7119 = vmatpush.bf16.msrb.mxu3 %v9548_v59  ;;  %7132 = vmatpush.bf16.msra.mxu0 %v9772_v54 }
 0x598   :  { %7145 = vmatpush.bf16.msra.mxu1 %v9996_v5  ;;  %7158 = vmatpush.bf16.msra.mxu2 %v10220_v42  ;;  %v6903_v37 = vadd.f32 %v12447_v6, %v6890_v22 }
 0x59b   :  { %7120 = vmatpush.bf16.msrb.mxu3 %v9520_v58  ;;  %7133 = vmatpush.bf16.msra.mxu0 %v9744_v19 }
 0x59c   :  { %7146 = vmatpush.bf16.msra.mxu1 %v9968_v40  ;;  %7159 = vmatpush.bf16.msra.mxu2 %v10192_v62 }
 0x59f   :  { %7121 = vmatpush.bf16.msrb.mxu3 %v9492_v41  ;;  %7134 = vmatpush.bf16.msra.mxu0 %v9716_v48  ;;  %v6928_v49 = vpop.f32.mrf.mxu0 }
 0x5a0   :  { %7147 = vmatpush.bf16.msra.mxu1 %v9940_v25  ;;  %7160 = vmatpush.bf16.msra.mxu2 %v10164_v15 }
 0x5a2   :  { %7122 = vmatmul.bf16.vlgmr.msrb.gmra.mxu3 %v12325_v13  ;;  %7135 = vmatmul.bf16.vlgmr.msra.gmra.mxu0 %v12327_v12  ;;  %v6941_v35 = vpop.f32.mrf.mxu1 }
 0x5a3   :  { %7148 = vmatmul.bf16.vlgmr.msra.gmra.mxu1 %v12331_v26  ;;  %7161 = vmatmul.bf16.vlgmr.msra.gmra.mxu2 %v12329_v47 }
 0x5a5   :  { %v6915_v2 = vpop.f32.mrf.mxu3 }
 0x5a6   :  { %v6916_v44 = vadd.f32 %v6915_v2, %v6903_v37 }
 0x5a7   :  { %v6930_v1 = vpop.f32.mrf.mxu0 }
 0x5a8   :  { %v6954_v11 = vpop.f32.mrf.mxu2  ;;  %v6929_v7 = vadd.f32 %v6928_v49, %v6916_v44 }
 0x5aa   :  { %v6943_v13 = vpop.f32.mrf.mxu1  ;;  %v6942_v0 = vadd.f32 %v6941_v35, %v6929_v7 }
 0x5ac   :  { %v6955_v12 = vadd.f32 %v6954_v11, %v6942_v0 }
 0x5ad   :  { %v6917_v17 = vpop.f32.mrf.mxu3 }
 0x5ae   :  { %11219 = vtanh.f32 %v6955_v12 }
 0x5b0   :  { %v6956_v26 = vpop.f32.mrf.mxu2 }
 0x5b4   :  { %v11220_v47 = vpop.eup %11219 }
 0x5b5   :  { %7177 = vst [vmem:[%s12487_s17 + $0x20] sm:$0xff] %v11220_v47 }
 0x5bf   :  { %v6980_v29 = vpop.f32.mrf.mxu0 }
 0x5c2   :  { %v6993_v45 = vpop.f32.mrf.mxu1 }
 0x5c5   :  { %v6967_v14 = vpop.f32.mrf.mxu3 }
 0x5c6   :  { %v6968_v6 = vadd.f32 %v6967_v14, %v4125_v30 }
 0x5c7   :  { %v6982_v38 = vpop.f32.mrf.mxu0 }
 0x5c8   :  { %v7006_v43 = vpop.f32.mrf.mxu2  ;;  %v6981_v3 = vadd.f32 %v6980_v29, %v6968_v6 }
 0x5ca   :  { %v6995_v32 = vpop.f32.mrf.mxu1  ;;  %v6994_v51 = vadd.f32 %v6993_v45, %v6981_v3 }
 0x5cc   :  { %v7007_v50 = vadd.f32 %v7006_v43, %v6994_v51 }
 0x5cd   :  { %v6969_v36 = vpop.f32.mrf.mxu3 }
 0x5d0   :  { %v7008_v63 = vpop.f32.mrf.mxu2 }
 0x5df   :  { %v7032_v61 = vpop.f32.mrf.mxu0 }
 0x5e2   :  { %v7045_v52 = vpop.f32.mrf.mxu1 }
 0x5e5   :  { %v7019_v59 = vpop.f32.mrf.mxu3 }
 0x5e6   :  { %v7020_v54 = vadd.f32 %v7019_v59, %v7007_v50 }
 0x5e7   :  { %v7034_v33 = vpop.f32.mrf.mxu0 }
 0x5e8   :  { %v7058_v21 = vpop.f32.mrf.mxu2  ;;  %v7033_v5 = vadd.f32 %v7032_v61, %v7020_v54 }
 0x5ea   :  { %v7047_v42 = vpop.f32.mrf.mxu1  ;;  %v7046_v53 = vadd.f32 %v7045_v52, %v7033_v5 }
 0x5ec   :  { %v7059_v57 = vadd.f32 %v7058_v21, %v7046_v53 }
 0x5ed   :  { %v7021_v10 = vpop.f32.mrf.mxu3 }
 0x5ee   :  { %11221 = vtanh.f32 %v7059_v57 }
 0x5f0   :  { %v7060_v60 = vpop.f32.mrf.mxu2 }
 0x5f4   :  { %v11222_v56 = vpop.eup %11221 }
 0x5f5   :  { %7178 = vst [vmem:[%s12487_s17 + $0x28] sm:$0xff] %v11222_v56 }
 0x5ff   :  { %v7084_v46 = vpop.f32.mrf.mxu0 }
 0x602   :  { %v7097_v58 = vpop.f32.mrf.mxu1 }
 0x605   :  { %v7071_v19 = vpop.f32.mrf.mxu3 }
 0x606   :  { %v7072_v16 = vadd.f32 %v7071_v19, %v4126_v27 }
 0x607   :  { %v7086_v8 = vpop.f32.mrf.mxu0 }
 0x608   :  { %v7110_v9 = vpop.f32.mrf.mxu2  ;;  %v7085_v4 = vadd.f32 %v7084_v46, %v7072_v16 }
 0x60a   :  { %v7099_v40 = vpop.f32.mrf.mxu1  ;;  %v7098_v24 = vadd.f32 %v7097_v58, %v7085_v4 }
 0x60c   :  { %v7111_v18 = vadd.f32 %v7110_v9, %v7098_v24 }
 0x60d   :  { %v7073_v62 = vpop.f32.mrf.mxu3 }
 0x610   :  { %v7112_v23 = vpop.f32.mrf.mxu2 }
 0x61f   :  { %v7136_v20 = vpop.f32.mrf.mxu0 }
 0x620   :  { %v7149_v34 = vpop.f32.mrf.mxu1 }
 0x625   :  { %v7123_v41 = vpop.f32.mrf.mxu3 }
 0x626   :  { %v7124_v48 = vadd.f32 %v7123_v41, %v7111_v18  ;;  %v7162_v25 = vpop.f32.mrf.mxu2 }
 0x627   :  { %v7138_v15 = vpop.f32.mrf.mxu0 }
 0x628   :  { %v7137_v55 = vadd.f32 %v7136_v20, %v7124_v48  ;;  %v7151_v31 = vpop.f32.mrf.mxu1 }
 0x62a   :  { %v7150_v28 = vadd.f32 %v7149_v34, %v7137_v55 }
 0x62c   :  { %v7163_v49 = vadd.f32 %v7162_v25, %v7150_v28 }
 0x62d   :  { %v7125_v22 = vpop.f32.mrf.mxu3 }
 0x62e   :  { %11223 = vtanh.f32 %v7163_v49  ;;  %v7164_v35 = vpop.f32.mrf.mxu2 }
 0x634   :  { %v11224_v37 = vpop.eup %11223 }
 0x635   :  { %7179 = vst [vmem:[%s12487_s17 + $0x30] sm:$0xff] %v11224_v37 }
 0x636   :  { %7184 = vsyncpa [#allocation3], 1 }
 0x637   :  { %7185 = vsyncpa [#allocation5], 1 }
 0x638   :  { %7186 = vsyncpa [#allocation8], 1 }
 0x639   :  { %7187 = vsyncpa [#allocation11], 1 }
 0x63a   :  { %7188 = vsyncpa [#allocation14], 1 }
 0x63b   :  { %7189 = vsyncpa [#allocation17], 1 }
 0x63c   :  { %7190 = vsyncpa [#allocation20], 1 }
 0x63d   :  { %7191 = vsyncpa [#allocation23], 1 }
 0x63e   :  { %7192 = vsyncpa [#allocation26], 1 }

</bundles_post_ra>
